<compile_context>
chip_gen: v5e
topology: v5e:2x2
jax: 0.10.0
libtpu: 0.0.40
codegen_flags: <defaults>
</compile_context>

<pallas_src>
import functools
import math

import jax
import jax.numpy as jnp
from jax.experimental import pallas as pl
from jax.experimental.pallas import tpu as pltpu

LATENT = 20


# ----------------------------------------------------------------------------
# Pallas kernels
# ----------------------------------------------------------------------------
def _stable_sigmoid(x):
    # exp(-|x|) never overflows; exp runs on the EUP slot.
    e = jnp.exp(-jnp.abs(x))
    return jnp.where(x >= 0.0, 1.0 / (1.0 + e), e / (1.0 + e))


def _mm_bias_act_kernel(x_ref, w_ref, b_ref, o_ref, *, act):
    """One M-tile of  o = act(x @ w + b);  bf16 operands, f32 accumulate."""
    acc = jnp.dot(x_ref[...], w_ref[...], preferred_element_type=jnp.float32)
    acc = acc + b_ref[...]
    if act == "relu":
        acc = jnp.maximum(acc, 0.0)
    elif act == "sigmoid":
        acc = _stable_sigmoid(acc)
    o_ref[...] = acc.astype(o_ref.dtype)


def matmul_bias_act(x, w, b, act="none", out_dtype=jnp.float32, tile_m=256):
    """Tiled (grid over M) fused matmul + bias + activation."""
    M, K = x.shape
    K2, N = w.shape
    assert K == K2 and b.shape == (1, N)
    x = x.astype(jnp.bfloat16)
    w = w.astype(jnp.bfloat16)
    b = b.astype(jnp.float32)

    if M <= tile_m:
        tm, Mp = M, M
    else:
        tm = tile_m
        Mp = ((M + tm - 1) // tm) * tm
        if Mp != M:
            x = jnp.pad(x, ((0, Mp - M), (0, 0)))

    out = pl.pallas_call(
        functools.partial(_mm_bias_act_kernel, act=act),
        grid=(Mp // tm,),
        in_specs=[
            pl.BlockSpec((tm, K), lambda i: (i, 0)),
            pl.BlockSpec((K, N), lambda i: (0, 0)),
            pl.BlockSpec((1, N), lambda i: (0, 0)),
        ],
        out_specs=pl.BlockSpec((tm, N), lambda i: (i, 0)),
        out_shape=jax.ShapeDtypeStruct((Mp, N), out_dtype),
        compiler_params=pltpu.CompilerParams(
            dimension_semantics=("parallel",)),
    )(x, w, b)
    return out[:M] if Mp != M else out


def _fc_chain_kernel(flat_ref, eps_ref,
                     w_enc_ref, b_enc_ref,
                     w_mu_ref, b_mu_ref, w_var_ref, b_var_ref,
                     w_d1_ref, b_d1_ref, w_d2_ref, b_d2_ref,
                     d2_ref, mu_ref, lv_ref):
    """Fused: enc_fc -> mu/log_var heads -> reparameterize -> dec_fc1 -> dec_fc2.
    All intermediates (B x 256 / B x 20 / B x 3136) live in VMEM; single launch."""
    h = jnp.dot(flat_ref[...], w_enc_ref[...], preferred_element_type=jnp.float32)
    h = jnp.maximum(h + b_enc_ref[...], 0.0)
    hb = h.astype(jnp.bfloat16)

    # latent heads (kept as two MXU dots inside the same kernel to avoid unaligned
    # lane slicing; the launch/HBM savings come from the fusion itself)
    mu = jnp.dot(hb, w_mu_ref[...], preferred_element_type=jnp.float32) + b_mu_ref[...]
    log_var = jnp.dot(hb, w_var_ref[...], preferred_element_type=jnp.float32) + b_var_ref[...]

    # reparameterize: z = mu + eps * exp(0.5 * log_var)
    z = mu + eps_ref[...] * jnp.exp(0.5 * log_var)

    d = jnp.dot(z.astype(jnp.bfloat16), w_d1_ref[...], preferred_element_type=jnp.float32)
    d = jnp.maximum(d + b_d1_ref[...], 0.0)
    d = jnp.dot(d.astype(jnp.bfloat16), w_d2_ref[...], preferred_element_type=jnp.float32)
    d = jnp.maximum(d + b_d2_ref[...], 0.0)

    d2_ref[...] = d.astype(d2_ref.dtype)
    mu_ref[...] = mu
    lv_ref[...] = log_var


def fc_latent_chain(flat, eps, p):
    B, _ = flat.shape
    L = eps.shape[1]
    Dout = p["dec_fc2_w"].shape[1]
    args = (flat.astype(jnp.bfloat16), eps.astype(jnp.float32),
            p["enc_fc_w"], p["enc_fc_b"],
            p["mu_w"], p["mu_b"], p["var_w"], p["var_b"],
            p["dec_fc1_w"], p["dec_fc1_b"], p["dec_fc2_w"], p["dec_fc2_b"])
    in_specs = [pl.BlockSpec(a.shape, lambda i: (0, 0)) for a in args]
    return pl.pallas_call(
        _fc_chain_kernel,
        grid=(1,),
        in_specs=in_specs,
        out_specs=(pl.BlockSpec((B, Dout), lambda i: (0, 0)),
                   pl.BlockSpec((B, L), lambda i: (0, 0)),
                   pl.BlockSpec((B, L), lambda i: (0, 0))),
        out_shape=(jax.ShapeDtypeStruct((B, Dout), jnp.bfloat16),
                   jax.ShapeDtypeStruct((B, L), jnp.float32),
                   jax.ShapeDtypeStruct((B, L), jnp.float32)),
    )(*args)


# ----------------------------------------------------------------------------
# JAX glue: NHWC im2col / pixel-shuffle (small reshapes; all matmuls are Pallas)
# ----------------------------------------------------------------------------
def _im2col_conv(x, k, stride, pad):
    """NHWC im2col; column order (ky, kx, c)."""
    B, H, W, C = x.shape
    xp = jnp.pad(x, ((0, 0), (pad, pad), (pad, pad), (0, 0)))
    OH = (H + 2 * pad - k) // stride + 1
    OW = (W + 2 * pad - k) // stride + 1
    patches = [xp[:, ky:ky + stride * OH:stride, kx:kx + stride * OW:stride, :]
               for ky in range(k) for kx in range(k)]
    cols = jnp.stack(patches, axis=3)                 # (B, OH, OW, k*k, C)
    return cols.reshape(B * OH * OW, k * k * C), OH, OW


def _im2col_2x2(x):
    """Bottom/right zero-padded 2x2 neighbourhood; column order ((dy,dx), c)."""
    B, H, W, C = x.shape
    xp = jnp.pad(x, ((0, 0), (0, 1), (0, 1), (0, 0)))
    pos = [xp[:, dy:dy + H, dx:dx + W, :] for dy in range(2) for dx in range(2)]
    cols = jnp.stack(pos, axis=3)                     # (B, H, W, 4, C)
    return cols.reshape(B * H * W, 4 * C)


def conv2d_nhwc(x, w_mat, b, stride, pad, act, out_dtype):
    """Conv2d (k=3) as im2col + Pallas matmul; x NHWC, w_mat (k*k*C, O)."""
    B = x.shape[0]
    C = x.shape[3]
    k = int(round(math.sqrt(w_mat.shape[0] // C)))
    cols, OH, OW = _im2col_conv(x, k, stride, pad)
    y = matmul_bias_act(cols, w_mat, b, act=act, out_dtype=out_dtype)
    return y.reshape(B, OH, OW, -1)


def conv_transpose2d_subpixel(x, w_mat, b, act, out_dtype):
    """ConvTranspose2d(k=3, stride=2, pad=1, output_padding=1) via sub-pixel phases.
    w_mat: (4*Cin, 4*Cout) phase-packed weight; output columns ordered (ph, pw, cout)."""
    B, H, W, _ = x.shape
    Cout = w_mat.shape[1] // 4
    cols = _im2col_2x2(x)                             # (B*H*W, 4*Cin)
    y = matmul_bias_act(cols, w_mat, b, act=act, out_dtype=out_dtype)  # (B*H*W, 4*Cout)
    y = y.reshape(B, H, W, 2, 2, Cout).transpose(0, 1, 3, 2, 4, 5)     # pixel shuffle
    return y.reshape(B, 2 * H, 2 * W, Cout)


# ----------------------------------------------------------------------------
# Parameters: PyTorch-layout synthetic init, then one-time kernel-friendly prep
# ----------------------------------------------------------------------------
def init_torch_params(key, latent_dim=LATENT):
    ks = jax.random.split(key, 9)

    def w(k, shape, fan_in):
        return jax.random.normal(k, shape, jnp.float32) * (1.0 / math.sqrt(fan_in))

    return {
        "enc_w1": w(ks[0], (32, 1, 3, 3), 9),         "enc_b1": jnp.zeros((32,), jnp.float32),
        "enc_w2": w(ks[1], (64, 32, 3, 3), 32 * 9),   "enc_b2": jnp.zeros((64,), jnp.float32),
        "enc_fc_w": w(ks[2], (256, 64 * 7 * 7), 64 * 7 * 7),
        "enc_fc_b": jnp.zeros((256,), jnp.float32),
        "mu_w": w(ks[3], (latent_dim, 256), 256),     "mu_b": jnp.zeros((latent_dim,), jnp.float32),
        "var_w": w(ks[4], (latent_dim, 256), 256),    "var_b": jnp.zeros((latent_dim,), jnp.float32),
        "dec_fc1_w": w(ks[5], (256, latent_dim), latent_dim),
        "dec_fc1_b": jnp.zeros((256,), jnp.float32),
        "dec_fc2_w": w(ks[6], (64 * 7 * 7, 256), 256),
        "dec_fc2_b": jnp.zeros((64 * 7 * 7,), jnp.float32),
        "dct1_w": w(ks[7], (64, 32, 3, 3), 64 * 9),   "dct1_b": jnp.zeros((32,), jnp.float32),
        "dct2_w": w(ks[8], (32, 1, 3, 3), 32 * 9),    "dct2_b": jnp.zeros((1,), jnp.float32),
    }
    # TODO(synk): classifier head (Linear->ReLU->Linear->LogSoftmax) is unused by
    # VAE.forward() and therefore not instantiated here.


def _conv_weight_to_matrix(w):
    """PyTorch Conv2d weight (O, C, k, k) -> (k*k*C, O), row order (ky, kx, c)."""
    O, C, k, _ = w.shape
    return w.transpose(2, 3, 1, 0).reshape(k * k * C, O)


def _convT_subpixel_weight(w_t):
    """PyTorch ConvTranspose2d weight (Cin, Cout, 3, 3) -> (4*Cin, 4*Cout).
    Output phase (ph, pw) reads input offset (dy, dx) with kernel tap
    (ky, kx) = (ph + 1 - 2*dy, pw + 1 - 2*dx) when in range (stride=2, pad=1, out_pad=1)."""
    Cin, Cout, _, _ = w_t.shape
    rows = []
    for dy in range(2):
        for dx in range(2):
            blocks = []
            for ph in range(2):
                for pw in range(2):
                    ky, kx = ph + 1 - 2 * dy, pw + 1 - 2 * dx
                    if 0 <= ky < 3 and 0 <= kx < 3:
                        blocks.append(w_t[:, :, ky, kx])
                    else:
                        blocks.append(jnp.zeros((Cin, Cout), w_t.dtype))
            rows.append(jnp.concatenate(blocks, axis=1))
    return jnp.concatenate(rows, axis=0)


def prepare_params(tp):
    """One-time re-layout: pre-transposed matmul weights (bf16), (1,N) f32 biases,
    flatten-order permutations folded into the FC weights."""
    bf = jnp.bfloat16
    # enc_fc: PyTorch flattens NCHW as (c,h,w); internal layout is NHWC (h,w,c).
    enc_fc = tp["enc_fc_w"].reshape(256, 64, 7, 7).transpose(0, 2, 3, 1).reshape(256, 64 * 7 * 7)
    # dec_fc2: Unflatten target is (c,h,w); permute output rows to (h,w,c).
    dec_fc2 = tp["dec_fc2_w"].reshape(64, 7, 7, 256).transpose(1, 2, 0, 3).reshape(64 * 7 * 7, 256)
    dec_fc2_b = tp["dec_fc2_b"].reshape(64, 7, 7).transpose(1, 2, 0).reshape(64 * 7 * 7)

    return {
        "enc_w1": _conv_weight_to_matrix(tp["enc_w1"]).astype(bf),   # (9, 32)
        "enc_b1": tp["enc_b1"].reshape(1, -1),
        "enc_w2": _conv_weight_to_matrix(tp["enc_w2"]).astype(bf),   # (288, 64)
        "enc_b2": tp["enc_b2"].reshape(1, -1),
        "enc_fc_w": enc_fc.T.astype(bf),                             # (3136, 256)
        "enc_fc_b": tp["enc_fc_b"].reshape(1, -1),
        "mu_w": tp["mu_w"].T.astype(bf),                             # (256, 20)
        "mu_b": tp["mu_b"].reshape(1, -1),
        "var_w": tp["var_w"].T.astype(bf),                           # (256, 20)
        "var_b": tp["var_b"].reshape(1, -1),
        "dec_fc1_w": tp["dec_fc1_w"].T.astype(bf),                   # (20, 256)
        "dec_fc1_b": tp["dec_fc1_b"].reshape(1, -1),
        "dec_fc2_w": dec_fc2.T.astype(bf),                           # (256, 3136)
        "dec_fc2_b": dec_fc2_b.reshape(1, -1),
        "dct1_w": _convT_subpixel_weight(tp["dct1_w"]).astype(bf),   # (256, 128)
        "dct1_b": jnp.tile(tp["dct1_b"], 4).reshape(1, -1),          # (1, 128)
        "dct2_w": _convT_subpixel_weight(tp["dct2_w"]).astype(bf),   # (128, 4)
        "dct2_b": jnp.tile(tp["dct2_b"], 4).reshape(1, -1),          # (1, 4)
    }


# ----------------------------------------------------------------------------
# VAE forward (returns (recon, mu, log_var) like VAE.forward)
# ----------------------------------------------------------------------------
def vae_forward(params, x_nchw, eps):
    B = x_nchw.shape[0]
    x = x_nchw.transpose(0, 2, 3, 1).astype(jnp.bfloat16)                       # NHWC

    # ---- encoder convs (im2col + Pallas matmul, bf16) ----
    h = conv2d_nhwc(x, params["enc_w1"], params["enc_b1"], 2, 1, "relu", jnp.bfloat16)  # (B,14,14,32)
    h = conv2d_nhwc(h, params["enc_w2"], params["enc_b2"], 2, 1, "relu", jnp.bfloat16)  # (B,7,7,64)
    flat = h.reshape(B, 7 * 7 * 64)                                              # NHWC flatten (folded into enc_fc_w)

    # ---- fused FC chain: enc_fc -> mu/log_var -> reparameterize -> dec_fc1/2 ----
    d2, mu, log_var = fc_latent_chain(flat, eps, params)                         # (B,3136),(B,20),(B,20)

    # ---- decoder transposed convs (sub-pixel decomposition) ----
    d = d2.reshape(B, 7, 7, 64)
    d = conv_transpose2d_subpixel(d, params["dct1_w"], params["dct1_b"],
                                  "relu", jnp.bfloat16)                          # (B,14,14,32)
    recon = conv_transpose2d_subpixel(d, params["dct2_w"], params["dct2_b"],
                                      "sigmoid", jnp.float32)                    # (B,28,28,1)
    return recon.transpose(0, 3, 1, 2), mu, log_var                              # NCHW out


# ----------------------------------------------------------------------------
if __name__ == "__main__":
    B = 2  # spatial must be 28x28 (module hard-codes 64*7*7 after two stride-2 convs)

    key = jax.random.PRNGKey(0)
    k_params, k_x, k_eps = jax.random.split(key, 3)

    params = prepare_params(init_torch_params(k_params, LATENT))
    x = jax.random.normal(k_x, (B, 1, 28, 28), jnp.float32)
    eps = jax.random.normal(k_eps, (B, LATENT), jnp.float32)

    fwd = jax.jit(vae_forward)
    recon, mu, log_var = fwd(params, x, eps)
    jax.block_until_ready((recon, mu, log_var))

    assert recon.shape == (B, 1, 28, 28), recon.shape
    assert mu.shape == (B, LATENT), mu.shape
    assert log_var.shape == (B, LATENT), log_var.shape
    assert bool(jnp.all(jnp.isfinite(recon)))
    assert bool(jnp.all(jnp.isfinite(mu))) and bool(jnp.all(jnp.isfinite(log_var)))
    assert bool(jnp.all((recon >= 0.0) & (recon <= 1.0)))  # sigmoid output

    print("KERNEL_OK")
</pallas_src>

<mosaic_0001>
module attributes {stable_mosaic.version = 11 : i64} {
  func.func @_mm_bias_act_kernel(%arg0: i32, %arg1: memref<256x9xbf16, #tpu.memory_space<vmem>>, %arg2: memref<9x32xbf16, #tpu.memory_space<vmem>>, %arg3: memref<1x32xf32, #tpu.memory_space<vmem>>, %arg4: memref<256x32xbf16, #tpu.memory_space<vmem>>) attributes {dimension_semantics = [#tpu.dimension_semantics<parallel>], iteration_bounds = array<i64: 2>, scalar_prefetch = 0 : i64, scratch_operands = 0 : i64, tpu.core_type = #tpu.core_type<tc>, window_params = [{transform_indices = @transform_0, window_bounds = array<i64: 256, 9>}, {pipeline_mode = #tpu.pipeline_mode<synchronous>, transform_indices = @transform_1, window_bounds = array<i64: 9, 32>}, {pipeline_mode = #tpu.pipeline_mode<synchronous>, transform_indices = @transform_2, window_bounds = array<i64: 1, 32>}, {transform_indices = @transform_3, window_bounds = array<i64: 256, 32>}]} {
    %c0 = arith.constant 0 : index
    %c0_0 = arith.constant 0 : index
    %0 = vector.load %arg1[%c0, %c0_0] : memref<256x9xbf16, #tpu.memory_space<vmem>>, vector<256x9xbf16>
    %c0_1 = arith.constant 0 : index
    %c0_2 = arith.constant 0 : index
    %1 = vector.load %arg2[%c0_1, %c0_2] : memref<9x32xbf16, #tpu.memory_space<vmem>>, vector<9x32xbf16>
    %cst = arith.constant dense<0.000000e+00> : vector<256x32xf32>
    %2 = tpu.matmul %0, %1, %cst {dimension_numbers = #tpu.dot_dimension_numbers<[1], [0], [0], [1], [0, 0, 1, 1], [], []>} : vector<256x9xbf16>, vector<9x32xbf16>, vector<256x32xf32> -> vector<256x32xf32>
    %c0_3 = arith.constant 0 : index
    %c0_4 = arith.constant 0 : index
    %3 = vector.load %arg3[%c0_3, %c0_4] : memref<1x32xf32, #tpu.memory_space<vmem>>, vector<1x32xf32>
    %4 = vector.broadcast %3 : vector<1x32xf32> to vector<256x32xf32>
    %5 = arith.addf %2, %4 : vector<256x32xf32>
    %cst_5 = arith.constant 0.000000e+00 : f32
    %6 = vector.broadcast %cst_5 : f32 to vector<256x32xf32>
    %7 = arith.maximumf %5, %6 : vector<256x32xf32>
    %8 = arith.truncf %7 : vector<256x32xf32> to vector<256x32xbf16>
    %c0_6 = arith.constant 0 : index
    %c0_7 = arith.constant 0 : index
    %9 = vector.load %arg4[%c0_6, %c0_7] : memref<256x32xbf16, #tpu.memory_space<vmem>>, vector<256x32xbf16>
    tpu.vector_store %arg4[%c0_6, %c0_7], %8 {strides = array<i32>} : memref<256x32xbf16, #tpu.memory_space<vmem>>, vector<256x32xbf16>,
    return
  }
  func.func @transform_0(%arg0: i32) -> (i32, i32) {
    %c0_i32 = arith.constant 0 : i32
    %c0_i32_0 = arith.constant 0 : i32
    return %arg0, %c0_i32 : i32, i32
  }
  func.func @transform_1(%arg0: i32) -> (i32, i32) {
    %c0_i32 = arith.constant 0 : i32
    %c0_i32_0 = arith.constant 0 : i32
    %c0_i32_1 = arith.constant 0 : i32
    return %c0_i32, %c0_i32_0 : i32, i32
  }
  func.func @transform_2(%arg0: i32) -> (i32, i32) {
    %c0_i32 = arith.constant 0 : i32
    %c0_i32_0 = arith.constant 0 : i32
    %c0_i32_1 = arith.constant 0 : i32
    return %c0_i32, %c0_i32_0 : i32, i32
  }
  func.func @transform_3(%arg0: i32) -> (i32, i32) {
    %c0_i32 = arith.constant 0 : i32
    %c0_i32_0 = arith.constant 0 : i32
    return %arg0, %c0_i32 : i32, i32
  }
}

module attributes {stable_mosaic.version = 11 : i64} {
  func.func @_mm_bias_act_kernel(%arg0: i32, %arg1: memref<98x288xbf16, #tpu.memory_space<vmem>>, %arg2: memref<288x64xbf16, #tpu.memory_space<vmem>>, %arg3: memref<1x64xf32, #tpu.memory_space<vmem>>, %arg4: memref<98x64xbf16, #tpu.memory_space<vmem>>) attributes {dimension_semantics = [#tpu.dimension_semantics<parallel>], iteration_bounds = array<i64: 1>, scalar_prefetch = 0 : i64, scratch_operands = 0 : i64, tpu.core_type = #tpu.core_type<tc>, window_params = [{transform_indices = @transform_0, window_bounds = array<i64: 98, 288>}, {pipeline_mode = #tpu.pipeline_mode<synchronous>, transform_indices = @transform_1, window_bounds = array<i64: 288, 64>}, {pipeline_mode = #tpu.pipeline_mode<synchronous>, transform_indices = @transform_2, window_bounds = array<i64: 1, 64>}, {transform_indices = @transform_3, window_bounds = array<i64: 98, 64>}]} {
    %c0 = arith.constant 0 : index
    %c0_0 = arith.constant 0 : index
    %0 = vector.load %arg1[%c0, %c0_0] : memref<98x288xbf16, #tpu.memory_space<vmem>>, vector<98x288xbf16>
    %c0_1 = arith.constant 0 : index
    %c0_2 = arith.constant 0 : index
    %1 = vector.load %arg2[%c0_1, %c0_2] : memref<288x64xbf16, #tpu.memory_space<vmem>>, vector<288x64xbf16>
    %cst = arith.constant dense<0.000000e+00> : vector<98x64xf32>
    %2 = tpu.matmul %0, %1, %cst {dimension_numbers = #tpu.dot_dimension_numbers<[1], [0], [0], [1], [0, 0, 1, 1], [], []>} : vector<98x288xbf16>, vector<288x64xbf16>, vector<98x64xf32> -> vector<98x64xf32>
    %c0_3 = arith.constant 0 : index
    %c0_4 = arith.constant 0 : index
    %3 = vector.load %arg3[%c0_3, %c0_4] : memref<1x64xf32, #tpu.memory_space<vmem>>, vector<1x64xf32>
    %4 = vector.broadcast %3 : vector<1x64xf32> to vector<98x64xf32>
    %5 = arith.addf %2, %4 : vector<98x64xf32>
    %cst_5 = arith.constant 0.000000e+00 : f32
    %6 = vector.broadcast %cst_5 : f32 to vector<98x64xf32>
    %7 = arith.maximumf %5, %6 : vector<98x64xf32>
    %8 = arith.truncf %7 : vector<98x64xf32> to vector<98x64xbf16>
    %c0_6 = arith.constant 0 : index
    %c0_7 = arith.constant 0 : index
    %9 = vector.load %arg4[%c0_6, %c0_7] : memref<98x64xbf16, #tpu.memory_space<vmem>>, vector<98x64xbf16>
    tpu.vector_store %arg4[%c0_6, %c0_7], %8 {strides = array<i32>} : memref<98x64xbf16, #tpu.memory_space<vmem>>, vector<98x64xbf16>,
    return
  }
  func.func @transform_0(%arg0: i32) -> (i32, i32) {
    %c0_i32 = arith.constant 0 : i32
    %c0_i32_0 = arith.constant 0 : i32
    return %arg0, %c0_i32 : i32, i32
  }
  func.func @transform_1(%arg0: i32) -> (i32, i32) {
    %c0_i32 = arith.constant 0 : i32
    %c0_i32_0 = arith.constant 0 : i32
    %c0_i32_1 = arith.constant 0 : i32
    return %c0_i32, %c0_i32_0 : i32, i32
  }
  func.func @transform_2(%arg0: i32) -> (i32, i32) {
    %c0_i32 = arith.constant 0 : i32
    %c0_i32_0 = arith.constant 0 : i32
    %c0_i32_1 = arith.constant 0 : i32
    return %c0_i32, %c0_i32_0 : i32, i32
  }
  func.func @transform_3(%arg0: i32) -> (i32, i32) {
    %c0_i32 = arith.constant 0 : i32
    %c0_i32_0 = arith.constant 0 : i32
    return %arg0, %c0_i32 : i32, i32
  }
}

module attributes {stable_mosaic.version = 11 : i64} {
  func.func @_fc_chain_kernel(%arg0: i32, %arg1: memref<2x3136xbf16, #tpu.memory_space<vmem>>, %arg2: memref<2x20xf32, #tpu.memory_space<vmem>>, %arg3: memref<3136x256xbf16, #tpu.memory_space<vmem>>, %arg4: memref<1x256xf32, #tpu.memory_space<vmem>>, %arg5: memref<256x20xbf16, #tpu.memory_space<vmem>>, %arg6: memref<1x20xf32, #tpu.memory_space<vmem>>, %arg7: memref<256x20xbf16, #tpu.memory_space<vmem>>, %arg8: memref<1x20xf32, #tpu.memory_space<vmem>>, %arg9: memref<20x256xbf16, #tpu.memory_space<vmem>>, %arg10: memref<1x256xf32, #tpu.memory_space<vmem>>, %arg11: memref<256x3136xbf16, #tpu.memory_space<vmem>>, %arg12: memref<1x3136xf32, #tpu.memory_space<vmem>>, %arg13: memref<2x3136xbf16, #tpu.memory_space<vmem>>, %arg14: memref<2x20xf32, #tpu.memory_space<vmem>>, %arg15: memref<2x20xf32, #tpu.memory_space<vmem>>) attributes {dimension_semantics = [#tpu.dimension_semantics<arbitrary>], iteration_bounds = array<i64: 1>, scalar_prefetch = 0 : i64, scratch_operands = 0 : i64, tpu.core_type = #tpu.core_type<tc>, window_params = [{pipeline_mode = #tpu.pipeline_mode<synchronous>, transform_indices = @transform_0, window_bounds = array<i64: 2, 3136>}, {pipeline_mode = #tpu.pipeline_mode<synchronous>, transform_indices = @transform_1, window_bounds = array<i64: 2, 20>}, {pipeline_mode = #tpu.pipeline_mode<synchronous>, transform_indices = @transform_2, window_bounds = array<i64: 3136, 256>}, {pipeline_mode = #tpu.pipeline_mode<synchronous>, transform_indices = @transform_3, window_bounds = array<i64: 1, 256>}, {pipeline_mode = #tpu.pipeline_mode<synchronous>, transform_indices = @transform_4, window_bounds = array<i64: 256, 20>}, {pipeline_mode = #tpu.pipeline_mode<synchronous>, transform_indices = @transform_5, window_bounds = array<i64: 1, 20>}, {pipeline_mode = #tpu.pipeline_mode<synchronous>, transform_indices = @transform_6, window_bounds = array<i64: 256, 20>}, {pipeline_mode = #tpu.pipeline_mode<synchronous>, transform_indices = @transform_7, window_bounds = array<i64: 1, 20>}, {pipeline_mode = #tpu.pipeline_mode<synchronous>, transform_indices = @transform_8, window_bounds = array<i64: 20, 256>}, {pipeline_mode = #tpu.pipeline_mode<synchronous>, transform_indices = @transform_9, window_bounds = array<i64: 1, 256>}, {pipeline_mode = #tpu.pipeline_mode<synchronous>, transform_indices = @transform_10, window_bounds = array<i64: 256, 3136>}, {pipeline_mode = #tpu.pipeline_mode<synchronous>, transform_indices = @transform_11, window_bounds = array<i64: 1, 3136>}, {pipeline_mode = #tpu.pipeline_mode<synchronous>, transform_indices = @transform_12, window_bounds = array<i64: 2, 3136>}, {pipeline_mode = #tpu.pipeline_mode<synchronous>, transform_indices = @transform_13, window_bounds = array<i64: 2, 20>}, {pipeline_mode = #tpu.pipeline_mode<synchronous>, transform_indices = @transform_14, window_bounds = array<i64: 2, 20>}]} {
    %c0 = arith.constant 0 : index
    %c0_0 = arith.constant 0 : index
    %0 = vector.load %arg1[%c0, %c0_0] : memref<2x3136xbf16, #tpu.memory_space<vmem>>, vector<2x3136xbf16>
    %c0_1 = arith.constant 0 : index
    %c0_2 = arith.constant 0 : index
    %1 = vector.load %arg3[%c0_1, %c0_2] : memref<3136x256xbf16, #tpu.memory_space<vmem>>, vector<3136x256xbf16>
    %cst = arith.constant dense<0.000000e+00> : vector<2x256xf32>
    %2 = tpu.matmul %0, %1, %cst {dimension_numbers = #tpu.dot_dimension_numbers<[1], [0], [0], [1], [0, 0, 1, 1], [], []>} : vector<2x3136xbf16>, vector<3136x256xbf16>, vector<2x256xf32> -> vector<2x256xf32>
    %c0_3 = arith.constant 0 : index
    %c0_4 = arith.constant 0 : index
    %3 = vector.load %arg4[%c0_3, %c0_4] : memref<1x256xf32, #tpu.memory_space<vmem>>, vector<1x256xf32>
    %4 = vector.broadcast %3 : vector<1x256xf32> to vector<2x256xf32>
    %5 = arith.addf %2, %4 : vector<2x256xf32>
    %cst_5 = arith.constant 0.000000e+00 : f32
    %6 = vector.broadcast %cst_5 : f32 to vector<2x256xf32>
    %7 = arith.maximumf %5, %6 : vector<2x256xf32>
    %8 = arith.truncf %7 : vector<2x256xf32> to vector<2x256xbf16>
    %c0_6 = arith.constant 0 : index
    %c0_7 = arith.constant 0 : index
    %9 = vector.load %arg5[%c0_6, %c0_7] : memref<256x20xbf16, #tpu.memory_space<vmem>>, vector<256x20xbf16>
    %cst_8 = arith.constant dense<0.000000e+00> : vector<2x20xf32>
    %10 = tpu.matmul %8, %9, %cst_8 {dimension_numbers = #tpu.dot_dimension_numbers<[1], [0], [0], [1], [0, 0, 1, 1], [], []>} : vector<2x256xbf16>, vector<256x20xbf16>, vector<2x20xf32> -> vector<2x20xf32>
    %c0_9 = arith.constant 0 : index
    %c0_10 = arith.constant 0 : index
    %11 = vector.load %arg6[%c0_9, %c0_10] : memref<1x20xf32, #tpu.memory_space<vmem>>, vector<1x20xf32>
    %12 = vector.broadcast %11 : vector<1x20xf32> to vector<2x20xf32>
    %13 = arith.addf %10, %12 : vector<2x20xf32>
    %c0_11 = arith.constant 0 : index
    %c0_12 = arith.constant 0 : index
    %14 = vector.load %arg7[%c0_11, %c0_12] : memref<256x20xbf16, #tpu.memory_space<vmem>>, vector<256x20xbf16>
    %cst_13 = arith.constant dense<0.000000e+00> : vector<2x20xf32>
    %15 = tpu.matmul %8, %14, %cst_13 {dimension_numbers = #tpu.dot_dimension_numbers<[1], [0], [0], [1], [0, 0, 1, 1], [], []>} : vector<2x256xbf16>, vector<256x20xbf16>, vector<2x20xf32> -> vector<2x20xf32>
    %c0_14 = arith.constant 0 : index
    %c0_15 = arith.constant 0 : index
    %16 = vector.load %arg8[%c0_14, %c0_15] : memref<1x20xf32, #tpu.memory_space<vmem>>, vector<1x20xf32>
    %17 = vector.broadcast %16 : vector<1x20xf32> to vector<2x20xf32>
    %18 = arith.addf %15, %17 : vector<2x20xf32>
    %c0_16 = arith.constant 0 : index
    %c0_17 = arith.constant 0 : index
    %19 = vector.load %arg2[%c0_16, %c0_17] : memref<2x20xf32, #tpu.memory_space<vmem>>, vector<2x20xf32>
    %cst_18 = arith.constant 5.000000e-01 : f32
    %20 = vector.broadcast %cst_18 : f32 to vector<2x20xf32>
    %21 = arith.mulf %20, %18 : vector<2x20xf32>
    %22 = math.exp %21 : vector<2x20xf32>
    %23 = arith.mulf %19, %22 : vector<2x20xf32>
    %24 = arith.addf %13, %23 : vector<2x20xf32>
    %25 = arith.truncf %24 : vector<2x20xf32> to vector<2x20xbf16>
    %c0_19 = arith.constant 0 : index
    %c0_20 = arith.constant 0 : index
    %26 = vector.load %arg9[%c0_19, %c0_20] : memref<20x256xbf16, #tpu.memory_space<vmem>>, vector<20x256xbf16>
    %cst_21 = arith.constant dense<0.000000e+00> : vector<2x256xf32>
    %27 = tpu.matmul %25, %26, %cst_21 {dimension_numbers = #tpu.dot_dimension_numbers<[1], [0], [0], [1], [0, 0, 1, 1], [], []>} : vector<2x20xbf16>, vector<20x256xbf16>, vector<2x256xf32> -> vector<2x256xf32>
    %c0_22 = arith.constant 0 : index
    %c0_23 = arith.constant 0 : index
    %28 = vector.load %arg10[%c0_22, %c0_23] : memref<1x256xf32, #tpu.memory_space<vmem>>, vector<1x256xf32>
    %29 = vector.broadcast %28 : vector<1x256xf32> to vector<2x256xf32>
    %30 = arith.addf %27, %29 : vector<2x256xf32>
    %cst_24 = arith.constant 0.000000e+00 : f32
    %31 = vector.broadcast %cst_24 : f32 to vector<2x256xf32>
    %32 = arith.maximumf %30, %31 : vector<2x256xf32>
    %33 = arith.truncf %32 : vector<2x256xf32> to vector<2x256xbf16>
    %c0_25 = arith.constant 0 : index
    %c0_26 = arith.constant 0 : index
    %34 = vector.load %arg11[%c0_25, %c0_26] : memref<256x3136xbf16, #tpu.memory_space<vmem>>, vector<256x3136xbf16>
    %cst_27 = arith.constant dense<0.000000e+00> : vector<2x3136xf32>
    %35 = tpu.matmul %33, %34, %cst_27 {dimension_numbers = #tpu.dot_dimension_numbers<[1], [0], [0], [1], [0, 0, 1, 1], [], []>} : vector<2x256xbf16>, vector<256x3136xbf16>, vector<2x3136xf32> -> vector<2x3136xf32>
    %c0_28 = arith.constant 0 : index
    %c0_29 = arith.constant 0 : index
    %36 = vector.load %arg12[%c0_28, %c0_29] : memref<1x3136xf32, #tpu.memory_space<vmem>>, vector<1x3136xf32>
    %37 = vector.broadcast %36 : vector<1x3136xf32> to vector<2x3136xf32>
    %38 = arith.addf %35, %37 : vector<2x3136xf32>
    %cst_30 = arith.constant 0.000000e+00 : f32
    %39 = vector.broadcast %cst_30 : f32 to vector<2x3136xf32>
    %40 = arith.maximumf %38, %39 : vector<2x3136xf32>
    %41 = arith.truncf %40 : vector<2x3136xf32> to vector<2x3136xbf16>
    %c0_31 = arith.constant 0 : index
    %c0_32 = arith.constant 0 : index
    %42 = vector.load %arg13[%c0_31, %c0_32] : memref<2x3136xbf16, #tpu.memory_space<vmem>>, vector<2x3136xbf16>
    tpu.vector_store %arg13[%c0_31, %c0_32], %41 {strides = array<i32>} : memref<2x3136xbf16, #tpu.memory_space<vmem>>, vector<2x3136xbf16>,
    %c0_33 = arith.constant 0 : index
    %c0_34 = arith.constant 0 : index
    %43 = vector.load %arg14[%c0_33, %c0_34] : memref<2x20xf32, #tpu.memory_space<vmem>>, vector<2x20xf32>
    tpu.vector_store %arg14[%c0_33, %c0_34], %13 {strides = array<i32>} : memref<2x20xf32, #tpu.memory_space<vmem>>, vector<2x20xf32>,
    %c0_35 = arith.constant 0 : index
    %c0_36 = arith.constant 0 : index
    %44 = vector.load %arg15[%c0_35, %c0_36] : memref<2x20xf32, #tpu.memory_space<vmem>>, vector<2x20xf32>
    tpu.vector_store %arg15[%c0_35, %c0_36], %18 {strides = array<i32>} : memref<2x20xf32, #tpu.memory_space<vmem>>, vector<2x20xf32>,
    return
  }
  func.func @transform_0(%arg0: i32) -> (i32, i32) {
    %c0_i32 = arith.constant 0 : i32
    %c0_i32_0 = arith.constant 0 : i32
    %c0_i32_1 = arith.constant 0 : i32
    return %c0_i32, %c0_i32_0 : i32, i32
  }
  func.func @transform_1(%arg0: i32) -> (i32, i32) {
    %c0_i32 = arith.constant 0 : i32
    %c0_i32_0 = arith.constant 0 : i32
    %c0_i32_1 = arith.constant 0 : i32
    return %c0_i32, %c0_i32_0 : i32, i32
  }
  func.func @transform_2(%arg0: i32) -> (i32, i32) {
    %c0_i32 = arith.constant 0 : i32
    %c0_i32_0 = arith.constant 0 : i32
    %c0_i32_1 = arith.constant 0 : i32
    return %c0_i32, %c0_i32_0 : i32, i32
  }
  func.func @transform_3(%arg0: i32) -> (i32, i32) {
    %c0_i32 = arith.constant 0 : i32
    %c0_i32_0 = arith.constant 0 : i32
    %c0_i32_1 = arith.constant 0 : i32
    return %c0_i32, %c0_i32_0 : i32, i32
  }
  func.func @transform_4(%arg0: i32) -> (i32, i32) {
    %c0_i32 = arith.constant 0 : i32
    %c0_i32_0 = arith.constant 0 : i32
    %c0_i32_1 = arith.constant 0 : i32
    return %c0_i32, %c0_i32_0 : i32, i32
  }
  func.func @transform_5(%arg0: i32) -> (i32, i32) {
    %c0_i32 = arith.constant 0 : i32
    %c0_i32_0 = arith.constant 0 : i32
    %c0_i32_1 = arith.constant 0 : i32
    return %c0_i32, %c0_i32_0 : i32, i32
  }
  func.func @transform_6(%arg0: i32) -> (i32, i32) {
    %c0_i32 = arith.constant 0 : i32
    %c0_i32_0 = arith.constant 0 : i32
    %c0_i32_1 = arith.constant 0 : i32
    return %c0_i32, %c0_i32_0 : i32, i32
  }
  func.func @transform_7(%arg0: i32) -> (i32, i32) {
    %c0_i32 = arith.constant 0 : i32
    %c0_i32_0 = arith.constant 0 : i32
    %c0_i32_1 = arith.constant 0 : i32
    return %c0_i32, %c0_i32_0 : i32, i32
  }
  func.func @transform_8(%arg0: i32) -> (i32, i32) {
    %c0_i32 = arith.constant 0 : i32
    %c0_i32_0 = arith.constant 0 : i32
    %c0_i32_1 = arith.constant 0 : i32
    return %c0_i32, %c0_i32_0 : i32, i32
  }
  func.func @transform_9(%arg0: i32) -> (i32, i32) {
    %c0_i32 = arith.constant 0 : i32
    %c0_i32_0 = arith.constant 0 : i32
    %c0_i32_1 = arith.constant 0 : i32
    return %c0_i32, %c0_i32_0 : i32, i32
  }
  func.func @transform_10(%arg0: i32) -> (i32, i32) {
    %c0_i32 = arith.constant 0 : i32
    %c0_i32_0 = arith.constant 0 : i32
    %c0_i32_1 = arith.constant 0 : i32
    return %c0_i32, %c0_i32_0 : i32, i32
  }
  func.func @transform_11(%arg0: i32) -> (i32, i32) {
    %c0_i32 = arith.constant 0 : i32
    %c0_i32_0 = arith.constant 0 : i32
    %c0_i32_1 = arith.constant 0 : i32
    return %c0_i32, %c0_i32_0 : i32, i32
  }
  func.func @transform_12(%arg0: i32) -> (i32, i32) {
    %c0_i32 = arith.constant 0 : i32
    %c0_i32_0 = arith.constant 0 : i32
    %c0_i32_1 = arith.constant 0 : i32
    return %c0_i32, %c0_i32_0 : i32, i32
  }
  func.func @transform_13(%arg0: i32) -> (i32, i32) {
    %c0_i32 = arith.constant 0 : i32
    %c0_i32_0 = arith.constant 0 : i32
    %c0_i32_1 = arith.constant 0 : i32
    return %c0_i32, %c0_i32_0 : i32, i32
  }
  func.func @transform_14(%arg0: i32) -> (i32, i32) {
    %c0_i32 = arith.constant 0 : i32
    %c0_i32_0 = arith.constant 0 : i32
    %c0_i32_1 = arith.constant 0 : i32
    return %c0_i32, %c0_i32_0 : i32, i32
  }
}

module attributes {stable_mosaic.version = 11 : i64} {
  func.func @_mm_bias_act_kernel(%arg0: i32, %arg1: memref<98x256xbf16, #tpu.memory_space<vmem>>, %arg2: memref<256x128xbf16, #tpu.memory_space<vmem>>, %arg3: memref<1x128xf32, #tpu.memory_space<vmem>>, %arg4: memref<98x128xbf16, #tpu.memory_space<vmem>>) attributes {dimension_semantics = [#tpu.dimension_semantics<parallel>], iteration_bounds = array<i64: 1>, scalar_prefetch = 0 : i64, scratch_operands = 0 : i64, tpu.core_type = #tpu.core_type<tc>, window_params = [{transform_indices = @transform_0, window_bounds = array<i64: 98, 256>}, {pipeline_mode = #tpu.pipeline_mode<synchronous>, transform_indices = @transform_1, window_bounds = array<i64: 256, 128>}, {pipeline_mode = #tpu.pipeline_mode<synchronous>, transform_indices = @transform_2, window_bounds = array<i64: 1, 128>}, {transform_indices = @transform_3, window_bounds = array<i64: 98, 128>}]} {
    %c0 = arith.constant 0 : index
    %c0_0 = arith.constant 0 : index
    %0 = vector.load %arg1[%c0, %c0_0] : memref<98x256xbf16, #tpu.memory_space<vmem>>, vector<98x256xbf16>
    %c0_1 = arith.constant 0 : index
    %c0_2 = arith.constant 0 : index
    %1 = vector.load %arg2[%c0_1, %c0_2] : memref<256x128xbf16, #tpu.memory_space<vmem>>, vector<256x128xbf16>
    %cst = arith.constant dense<0.000000e+00> : vector<98x128xf32>
    %2 = tpu.matmul %0, %1, %cst {dimension_numbers = #tpu.dot_dimension_numbers<[1], [0], [0], [1], [0, 0, 1, 1], [], []>} : vector<98x256xbf16>, vector<256x128xbf16>, vector<98x128xf32> -> vector<98x128xf32>
    %c0_3 = arith.constant 0 : index
    %c0_4 = arith.constant 0 : index
    %3 = vector.load %arg3[%c0_3, %c0_4] : memref<1x128xf32, #tpu.memory_space<vmem>>, vector<1x128xf32>
    %4 = vector.broadcast %3 : vector<1x128xf32> to vector<98x128xf32>
    %5 = arith.addf %2, %4 : vector<98x128xf32>
    %cst_5 = arith.constant 0.000000e+00 : f32
    %6 = vector.broadcast %cst_5 : f32 to vector<98x128xf32>
    %7 = arith.maximumf %5, %6 : vector<98x128xf32>
    %8 = arith.truncf %7 : vector<98x128xf32> to vector<98x128xbf16>
    %c0_6 = arith.constant 0 : index
    %c0_7 = arith.constant 0 : index
    %9 = vector.load %arg4[%c0_6, %c0_7] : memref<98x128xbf16, #tpu.memory_space<vmem>>, vector<98x128xbf16>
    tpu.vector_store %arg4[%c0_6, %c0_7], %8 {strides = array<i32>} : memref<98x128xbf16, #tpu.memory_space<vmem>>, vector<98x128xbf16>,
    return
  }
  func.func @transform_0(%arg0: i32) -> (i32, i32) {
    %c0_i32 = arith.constant 0 : i32
    %c0_i32_0 = arith.constant 0 : i32
    return %arg0, %c0_i32 : i32, i32
  }
  func.func @transform_1(%arg0: i32) -> (i32, i32) {
    %c0_i32 = arith.constant 0 : i32
    %c0_i32_0 = arith.constant 0 : i32
    %c0_i32_1 = arith.constant 0 : i32
    return %c0_i32, %c0_i32_0 : i32, i32
  }
  func.func @transform_2(%arg0: i32) -> (i32, i32) {
    %c0_i32 = arith.constant 0 : i32
    %c0_i32_0 = arith.constant 0 : i32
    %c0_i32_1 = arith.constant 0 : i32
    return %c0_i32, %c0_i32_0 : i32, i32
  }
  func.func @transform_3(%arg0: i32) -> (i32, i32) {
    %c0_i32 = arith.constant 0 : i32
    %c0_i32_0 = arith.constant 0 : i32
    return %arg0, %c0_i32 : i32, i32
  }
}

module attributes {stable_mosaic.version = 11 : i64} {
  func.func @_mm_bias_act_kernel(%arg0: i32, %arg1: memref<256x128xbf16, #tpu.memory_space<vmem>>, %arg2: memref<128x4xbf16, #tpu.memory_space<vmem>>, %arg3: memref<1x4xf32, #tpu.memory_space<vmem>>, %arg4: memref<256x4xf32, #tpu.memory_space<vmem>>) attributes {dimension_semantics = [#tpu.dimension_semantics<parallel>], iteration_bounds = array<i64: 2>, scalar_prefetch = 0 : i64, scratch_operands = 0 : i64, tpu.core_type = #tpu.core_type<tc>, window_params = [{transform_indices = @transform_0, window_bounds = array<i64: 256, 128>}, {pipeline_mode = #tpu.pipeline_mode<synchronous>, transform_indices = @transform_1, window_bounds = array<i64: 128, 4>}, {pipeline_mode = #tpu.pipeline_mode<synchronous>, transform_indices = @transform_2, window_bounds = array<i64: 1, 4>}, {transform_indices = @transform_3, window_bounds = array<i64: 256, 4>}]} {
    %c0 = arith.constant 0 : index
    %c0_0 = arith.constant 0 : index
    %0 = vector.load %arg1[%c0, %c0_0] : memref<256x128xbf16, #tpu.memory_space<vmem>>, vector<256x128xbf16>
    %c0_1 = arith.constant 0 : index
    %c0_2 = arith.constant 0 : index
    %1 = vector.load %arg2[%c0_1, %c0_2] : memref<128x4xbf16, #tpu.memory_space<vmem>>, vector<128x4xbf16>
    %cst = arith.constant dense<0.000000e+00> : vector<256x4xf32>
    %2 = tpu.matmul %0, %1, %cst {dimension_numbers = #tpu.dot_dimension_numbers<[1], [0], [0], [1], [0, 0, 1, 1], [], []>} : vector<256x128xbf16>, vector<128x4xbf16>, vector<256x4xf32> -> vector<256x4xf32>
    %c0_3 = arith.constant 0 : index
    %c0_4 = arith.constant 0 : index
    %3 = vector.load %arg3[%c0_3, %c0_4] : memref<1x4xf32, #tpu.memory_space<vmem>>, vector<1x4xf32>
    %4 = vector.broadcast %3 : vector<1x4xf32> to vector<256x4xf32>
    %5 = arith.addf %2, %4 : vector<256x4xf32>
    %6 = math.absf %5 : vector<256x4xf32>
    %cst_5 = arith.constant 0.000000e+00 : f32
    %7 = vector.broadcast %cst_5 : f32 to vector<256x4xf32>
    %8 = arith.subf %7, %6 : vector<256x4xf32>
    %9 = math.exp %8 : vector<256x4xf32>
    %cst_6 = arith.constant 0.000000e+00 : f32
    %10 = vector.broadcast %cst_6 : f32 to vector<256x4xf32>
    %11 = arith.cmpf oge, %5, %10 : vector<256x4xf32>
    %cst_7 = arith.constant 1.000000e+00 : f32
    %12 = vector.broadcast %cst_7 : f32 to vector<256x4xf32>
    %13 = arith.addf %12, %9 : vector<256x4xf32>
    %cst_8 = arith.constant 1.000000e+00 : f32
    %14 = vector.broadcast %cst_8 : f32 to vector<256x4xf32>
    %15 = arith.divf %14, %13 : vector<256x4xf32>
    %cst_9 = arith.constant 1.000000e+00 : f32
    %16 = vector.broadcast %cst_9 : f32 to vector<256x4xf32>
    %17 = arith.addf %16, %9 : vector<256x4xf32>
    %18 = arith.divf %9, %17 : vector<256x4xf32>
    %19 = arith.select %11, %15, %18 : vector<256x4xi1>, vector<256x4xf32>
    %c0_10 = arith.constant 0 : index
    %c0_11 = arith.constant 0 : index
    %20 = vector.load %arg4[%c0_10, %c0_11] : memref<256x4xf32, #tpu.memory_space<vmem>>, vector<256x4xf32>
    tpu.vector_store %arg4[%c0_10, %c0_11], %19 {strides = array<i32>} : memref<256x4xf32, #tpu.memory_space<vmem>>, vector<256x4xf32>,
    return
  }
  func.func @transform_0(%arg0: i32) -> (i32, i32) {
    %c0_i32 = arith.constant 0 : i32
    %c0_i32_0 = arith.constant 0 : i32
    return %arg0, %c0_i32 : i32, i32
  }
  func.func @transform_1(%arg0: i32) -> (i32, i32) {
    %c0_i32 = arith.constant 0 : i32
    %c0_i32_0 = arith.constant 0 : i32
    %c0_i32_1 = arith.constant 0 : i32
    return %c0_i32, %c0_i32_0 : i32, i32
  }
  func.func @transform_2(%arg0: i32) -> (i32, i32) {
    %c0_i32 = arith.constant 0 : i32
    %c0_i32_0 = arith.constant 0 : i32
    %c0_i32_1 = arith.constant 0 : i32
    return %c0_i32, %c0_i32_0 : i32, i32
  }
  func.func @transform_3(%arg0: i32) -> (i32, i32) {
    %c0_i32 = arith.constant 0 : i32
    %c0_i32_0 = arith.constant 0 : i32
    return %arg0, %c0_i32 : i32, i32
  }
}

</mosaic_0001>

<bundles_post_ra>
// kernel: vae_forward.5
= control target key start
LH: loop header
LB: loop body
LE: loop exit
PB: predicated region body
PF: predicated region fallthrough
CT: control target
= control target key end

     0   :  { %8 = vsyncpa [#allocation3], 0  ;;  %s1089_s0 = inlined_call_operand.vmem [shape: bf16[512,9], index: 0, kind: input, shape index: {}]   ;;  %s1090_s1 = inlined_call_operand.hbm [shape: bf16[9,32], index: 1, kind: input, shape index: {}]   ;;  %s1091_s2 = inlined_call_operand.hbm [shape: f32[1,32], index: 2, kind: input, shape index: {}]   ;;  %s1092_s3 = inlined_call_operand.vmem [shape: bf16[512,32], index: 3, kind: output, shape index: {}]  }
   0x1   :  { %9 = vsyncpa [#allocation5], 0  ;;  %s903_s12 = smov 0  }
   0x2 LB: > { %s125_s15 = sshll.u32 %s1090_s1, 4  ;;  %s650_s16 = sadd.s32 4294967295, %s876_s12   ;;  %s876_s12 = sphi %s903_s12, %s15_s12   ;;  %s126_s15 = int_to_ptr.hbm [resolvable:$true] %s125_s15 }
   0x3   : > { %p652_p0 = scmp.ge.s32.totalorder %s876_s12, 1  ;;  %p114_p1 = scmp.lt.s32.totalorder %s876_s12, 3 }
   0x4   : > { %p914_p2 = scmp.eq.s32.totalorder %s650_s16, 0  ;;  %s878_s19 = smov [#allocation2]  }
   0x5   : > { %p918_p3 = pnand %p652_p0, %p114_p1  ;;  %s127_s20 = sshll.u32 %s878_s19, 4  ;;  %s128_s20 = int_to_ptr.vmem [resolvable:$true] %s127_s20 }
   0x6   : > { %s140_s23 = sshll.u32 %s1091_s2, 4  ;;  %s879_s24 = smov [#allocation4]   ;;  %s141_s23 = int_to_ptr.hbm [resolvable:$true] %s140_s23 }
   0x7   : > { %p777_p4 = pneg %p918_p3  ;;  %s142_s25 = sshll.u32 %s879_s24, 4  ;;  %s143_s25 = int_to_ptr.vmem [resolvable:$true] %s142_s25 }
   0x8   : > { %s880_s26 = smov 64   ;;  %s881_s27 = smov 4  }
   0x9   : > { %p778_p5 = pnand %p914_p2, %p777_p4  ;;  %164 = sbr.rel (%p918_p3) target bundleno = 223 (0xdf), region = 32 }
   0xb   : > { %780 = dma.hbm_to_vmem [thread:$0]  (!%p778_p5), %s126_s15, 128, %s128_s20, [#allocation3], %s880_s26, %s880_s26, %s881_s27  }
   0xc   : > { %783 = dma.hbm_to_vmem [thread:$0]  (!%p778_p5), %s141_s23, 16, %s143_s25, [#allocation5]  }
   0xe   : > { %867 = dma.done.wait (%p914_p2), [#allocation3], 128  }
   0xf   : > { %869 = vsyncadd (%p914_p2), [#allocation3], 4294967168 }
  0x10   : > { %871 = dma.done.wait (%p914_p2), [#allocation5], 16  }
  0x11   : > { %873 = vsyncadd (%p914_p2), [#allocation5], 4294967280  ;;  %s659_s28 = sshll.u32 %s650_s16, 5  ;;  %vm379_vm0 = vcmask 1043456   ;;  %vm380_vm1 = vcmask 1044480   ;;  %v882_v0 = vmov 65535  }
  0x12   : > { %p195_p6 = scmp.lt.s32.totalorder %s659_s28, 63  ;;  %v381_v1 = vsel %vm379_vm0, 4294967295, %v882_v0  ;;  %v729_v2 = vld [vmem:[#allocation2] sm:$0xf]  ;;  %v765_v3 = vld [vmem:[#allocation2] sm:$0x10] }
  0x13   : > { %v382_v4 = vsel %vm380_vm1, %v381_v1, 0  ;;  %v730_v5 = vor.u32 %v765_v3, %v729_v2  ;;  %vm330_vm2 = vcmask 72704   ;;  %v981_v23 = vld [vmem:[#allocation4] ss:$0 sm:$0xff]  ;;  %vm539_vm3 = vcmask 257024  }
  0x14   : > { %s1096_s28 = smov (!%p195_p6, %s659_s28), 63 }
  0x15   : > { %s660_s29 = sshll.u32 %s1096_s28, 2  ;;  %v384_v6 = vand.u32 %v730_v5, %v382_v4 }
  0x16   : > { %s947_s5 = scalar_lea.vmem %s1089_s0, %s660_s29  ;;  %s990_s8 = scalar_lea.vmem %s1092_s3, %s660_s29 }
  0x17   : > { %v749_v7 = vld [vmem:[%s947_s5] sm:$0xff]  ;;  %393 = vmatpush.bf16.msra.mxu0 %v384_v6  ;;  %766 = vmatpush.bf16.msra.mxu1 %v384_v6  ;;  %v750_v11 = vld [vmem:[%s947_s5 + $0x8] sm:$0xff]  ;;  %v751_v15 = vld [vmem:[%s947_s5 + $0x10] sm:$0xff] }
  0x18   : > { %v753_v8 = vld [vmem:[%s947_s5 + $0x20] sm:$0xff]  ;;  %767 = vmatpush.bf16.msra.mxu2 %v384_v6  ;;  %768 = vmatpush.bf16.msra.mxu3 %v384_v6  ;;  %v754_v12 = vld [vmem:[%s947_s5 + $0x28] sm:$0xff]  ;;  %v755_v16 = vld [vmem:[%s947_s5 + $0x30] sm:$0xff] }
  0x19   : > { %v757_v9 = vld [vmem:[%s947_s5 + $0x40] sm:$0xff]  ;;  %v758_v13 = vld [vmem:[%s947_s5 + $0x48] sm:$0xff]  ;;  %v759_v17 = vld [vmem:[%s947_s5 + $0x50] sm:$0xff] }
  0x1a   : > { %v761_v10 = vld [vmem:[%s947_s5 + $0x60] sm:$0xff]  ;;  %731 = vmatmul.msk.bf16.vlgmr.msra.gmra.mxu0 %vm330_vm2, %v749_v7  ;;  %735 = vmatmul.msk.bf16.vlgmr.msra.gmra.mxu1 %vm330_vm2, %v753_v8  ;;  %v762_v14 = vld [vmem:[%s947_s5 + $0x68] sm:$0xff]  ;;  %v763_v18 = vld [vmem:[%s947_s5 + $0x70] sm:$0xff] }
  0x1b   : > { %739 = vmatmul.msk.bf16.vlgmr.msra.gmra.mxu2 %vm330_vm2, %v757_v9  ;;  %743 = vmatmul.msk.bf16.vlgmr.msra.gmra.mxu3 %vm330_vm2, %v761_v10  ;;  %v752_v19 = vld [vmem:[%s947_s5 + $0x18] sm:$0xff] }
  0x1c   : > { %v756_v20 = vld [vmem:[%s947_s5 + $0x38] sm:$0xff] }
  0x1d   : > { %v760_v21 = vld [vmem:[%s947_s5 + $0x58] sm:$0xff] }
  0x1e   : > { %v764_v22 = vld [vmem:[%s947_s5 + $0x78] sm:$0xff] }
  0x2a   : > { %732 = vmatmul.msk.bf16.gmra.mxu0 %vm330_vm2, %v750_v11  ;;  %736 = vmatmul.msk.bf16.gmra.mxu1 %vm330_vm2, %v754_v12 }
  0x2b   : > { %740 = vmatmul.msk.bf16.gmra.mxu2 %vm330_vm2, %v758_v13  ;;  %744 = vmatmul.msk.bf16.gmra.mxu3 %vm330_vm2, %v762_v14 }
  0x3a   : > { %733 = vmatmul.msk.bf16.gmra.mxu0 %vm330_vm2, %v751_v15  ;;  %737 = vmatmul.msk.bf16.gmra.mxu1 %vm330_vm2, %v755_v16 }
  0x3b   : > { %741 = vmatmul.msk.bf16.gmra.mxu2 %vm330_vm2, %v759_v17  ;;  %745 = vmatmul.msk.bf16.gmra.mxu3 %vm330_vm2, %v763_v18 }
  0x4a   : > { %734 = vmatmul.msk.bf16.gmra.mxu0 %vm330_vm2, %v752_v19  ;;  %738 = vmatmul.msk.bf16.gmra.mxu1 %vm330_vm2, %v756_v20 }
  0x4b   : > { %742 = vmatmul.msk.bf16.gmra.mxu2 %vm330_vm2, %v760_v21  ;;  %746 = vmatmul.msk.bf16.gmra.mxu3 %vm330_vm2, %v764_v22 }
  0x97   : > { %v395_v24 = vpop.f32.mrf.mxu0  ;;  %v415_v25 = vpop.f32.mrf.mxu1 }
  0x98   : > { %v396_v26 = vadd.f32 %v981_v23, %v395_v24  ;;  %v416_v27 = vadd.f32 %v981_v23, %v415_v25 }
  0x9a   : > { %v475_v28 = vmax.f32 %v396_v26, 0.0  ;;  %v483_v29 = vmax.f32 %v416_v27, 0.0 }
  0x9c   : > { %v507_v30 = vpack.c.bf16 %v475_v28, %v475_v28  ;;  %v515_v31 = vpack.c.bf16 %v483_v29, %v483_v29 }
  0x9e   : > { %540 = vst.msk [vmem:[%s990_s8] sm:$0xf] %vm539_vm3, %v507_v30  ;;  %v435_v32 = vpop.f32.mrf.mxu2  ;;  %v455_v33 = vpop.f32.mrf.mxu3 }
  0x9f   : > { %548 = vst.msk [vmem:[%s990_s8 + $0x20] sm:$0xf] %vm539_vm3, %v515_v31  ;;  %v436_v34 = vadd.f32 %v981_v23, %v435_v32  ;;  %v456_v35 = vadd.f32 %v981_v23, %v455_v33  ;;  %v397_v36 = vpop.f32.mrf.mxu0  ;;  %v417_v37 = vpop.f32.mrf.mxu1 }
  0xa0   : > { %v398_v38 = vadd.f32 %v981_v23, %v397_v36  ;;  %v418_v39 = vadd.f32 %v981_v23, %v417_v37 }
  0xa1   : > { %v491_v40 = vmax.f32 %v436_v34, 0.0  ;;  %v499_v41 = vmax.f32 %v456_v35, 0.0 }
  0xa2   : > { %v476_v42 = vmax.f32 %v398_v38, 0.0  ;;  %v484_v43 = vmax.f32 %v418_v39, 0.0 }
  0xa3   : > { %v523_v44 = vpack.c.bf16 %v491_v40, %v491_v40  ;;  %v531_v45 = vpack.c.bf16 %v499_v41, %v499_v41 }
  0xa4   : > { %v508_v46 = vpack.c.bf16 %v476_v42, %v476_v42  ;;  %v516_v47 = vpack.c.bf16 %v484_v43, %v484_v43 }
  0xa5   : > { %556 = vst.msk [vmem:[%s990_s8 + $0x40] sm:$0xf] %vm539_vm3, %v523_v44 }
  0xa6   : > { %564 = vst.msk [vmem:[%s990_s8 + $0x60] sm:$0xf] %vm539_vm3, %v531_v45  ;;  %v437_v48 = vpop.f32.mrf.mxu2  ;;  %v457_v49 = vpop.f32.mrf.mxu3 }
  0xa7   : > { %541 = vst.msk [vmem:[%s990_s8 + $0x4] sm:$0xf] %vm539_vm3, %v508_v46  ;;  %v438_v50 = vadd.f32 %v981_v23, %v437_v48  ;;  %v458_v51 = vadd.f32 %v981_v23, %v457_v49  ;;  %v400_v52 = vpop.f32.mrf.mxu0  ;;  %v420_v53 = vpop.f32.mrf.mxu1 }
  0xa8   : > { %549 = vst.msk [vmem:[%s990_s8 + $0x24] sm:$0xf] %vm539_vm3, %v516_v47  ;;  %v401_v54 = vadd.f32 %v981_v23, %v400_v52  ;;  %v421_v55 = vadd.f32 %v981_v23, %v420_v53 }
  0xa9   : > { %v492_v56 = vmax.f32 %v438_v50, 0.0  ;;  %v500_v57 = vmax.f32 %v458_v51, 0.0 }
  0xaa   : > { %v477_v58 = vmax.f32 %v401_v54, 0.0  ;;  %v485_v59 = vmax.f32 %v421_v55, 0.0 }
  0xab   : > { %v524_v60 = vpack.c.bf16 %v492_v56, %v492_v56  ;;  %v532_v61 = vpack.c.bf16 %v500_v57, %v500_v57 }
  0xac   : > { %v509_v62 = vpack.c.bf16 %v477_v58, %v477_v58  ;;  %v517_v63 = vpack.c.bf16 %v485_v59, %v485_v59 }
  0xad   : > { %557 = vst.msk [vmem:[%s990_s8 + $0x44] sm:$0xf] %vm539_vm3, %v524_v60 }
  0xae   : > { %565 = vst.msk [vmem:[%s990_s8 + $0x64] sm:$0xf] %vm539_vm3, %v532_v61  ;;  %v440_v0 = vpop.f32.mrf.mxu2  ;;  %v460_v1 = vpop.f32.mrf.mxu3 }
  0xaf   : > { %542 = vst.msk [vmem:[%s990_s8 + $0x8] sm:$0xf] %vm539_vm3, %v509_v62  ;;  %v441_v2 = vadd.f32 %v981_v23, %v440_v0  ;;  %v461_v3 = vadd.f32 %v981_v23, %v460_v1  ;;  %v402_v4 = vpop.f32.mrf.mxu0  ;;  %v422_v5 = vpop.f32.mrf.mxu1 }
  0xb0   : > { %550 = vst.msk [vmem:[%s990_s8 + $0x28] sm:$0xf] %vm539_vm3, %v517_v63  ;;  %v403_v6 = vadd.f32 %v981_v23, %v402_v4  ;;  %v423_v7 = vadd.f32 %v981_v23, %v422_v5 }
  0xb1   : > { %v493_v8 = vmax.f32 %v441_v2, 0.0  ;;  %v501_v9 = vmax.f32 %v461_v3, 0.0 }
  0xb2   : > { %v478_v10 = vmax.f32 %v403_v6, 0.0  ;;  %v486_v11 = vmax.f32 %v423_v7, 0.0 }
  0xb3   : > { %v525_v12 = vpack.c.bf16 %v493_v8, %v493_v8  ;;  %v533_v13 = vpack.c.bf16 %v501_v9, %v501_v9 }
  0xb4   : > { %v510_v14 = vpack.c.bf16 %v478_v10, %v478_v10  ;;  %v518_v15 = vpack.c.bf16 %v486_v11, %v486_v11 }
  0xb5   : > { %558 = vst.msk [vmem:[%s990_s8 + $0x48] sm:$0xf] %vm539_vm3, %v525_v12 }
  0xb6   : > { %566 = vst.msk [vmem:[%s990_s8 + $0x68] sm:$0xf] %vm539_vm3, %v533_v13  ;;  %v442_v16 = vpop.f32.mrf.mxu2  ;;  %v462_v17 = vpop.f32.mrf.mxu3 }
  0xb7   : > { %543 = vst.msk [vmem:[%s990_s8 + $0xc] sm:$0xf] %vm539_vm3, %v510_v14  ;;  %v443_v18 = vadd.f32 %v981_v23, %v442_v16  ;;  %v463_v19 = vadd.f32 %v981_v23, %v462_v17  ;;  %v405_v20 = vpop.f32.mrf.mxu0  ;;  %v425_v21 = vpop.f32.mrf.mxu1 }
  0xb8   : > { %551 = vst.msk [vmem:[%s990_s8 + $0x2c] sm:$0xf] %vm539_vm3, %v518_v15  ;;  %v406_v22 = vadd.f32 %v981_v23, %v405_v20  ;;  %v426_v24 = vadd.f32 %v981_v23, %v425_v21 }
  0xb9   : > { %v494_v25 = vmax.f32 %v443_v18, 0.0  ;;  %v502_v26 = vmax.f32 %v463_v19, 0.0 }
  0xba   : > { %v479_v27 = vmax.f32 %v406_v22, 0.0  ;;  %v487_v28 = vmax.f32 %v426_v24, 0.0 }
  0xbb   : > { %v526_v29 = vpack.c.bf16 %v494_v25, %v494_v25  ;;  %v534_v30 = vpack.c.bf16 %v502_v26, %v502_v26 }
  0xbc   : > { %v511_v31 = vpack.c.bf16 %v479_v27, %v479_v27  ;;  %v519_v32 = vpack.c.bf16 %v487_v28, %v487_v28 }
  0xbd   : > { %559 = vst.msk [vmem:[%s990_s8 + $0x4c] sm:$0xf] %vm539_vm3, %v526_v29 }
  0xbe   : > { %567 = vst.msk [vmem:[%s990_s8 + $0x6c] sm:$0xf] %vm539_vm3, %v534_v30  ;;  %v445_v33 = vpop.f32.mrf.mxu2  ;;  %v465_v34 = vpop.f32.mrf.mxu3 }
  0xbf   : > { %544 = vst.msk [vmem:[%s990_s8 + $0x10] sm:$0xf] %vm539_vm3, %v511_v31  ;;  %v446_v35 = vadd.f32 %v981_v23, %v445_v33  ;;  %v466_v36 = vadd.f32 %v981_v23, %v465_v34  ;;  %v407_v37 = vpop.f32.mrf.mxu0  ;;  %v427_v38 = vpop.f32.mrf.mxu1 }
  0xc0   : > { %552 = vst.msk [vmem:[%s990_s8 + $0x30] sm:$0xf] %vm539_vm3, %v519_v32  ;;  %v408_v39 = vadd.f32 %v981_v23, %v407_v37  ;;  %v428_v40 = vadd.f32 %v981_v23, %v427_v38 }
  0xc1   : > { %v495_v41 = vmax.f32 %v446_v35, 0.0  ;;  %v503_v42 = vmax.f32 %v466_v36, 0.0 }
  0xc2   : > { %v480_v43 = vmax.f32 %v408_v39, 0.0  ;;  %v488_v44 = vmax.f32 %v428_v40, 0.0 }
  0xc3   : > { %v527_v45 = vpack.c.bf16 %v495_v41, %v495_v41  ;;  %v535_v46 = vpack.c.bf16 %v503_v42, %v503_v42 }
  0xc4   : > { %v512_v47 = vpack.c.bf16 %v480_v43, %v480_v43  ;;  %v520_v48 = vpack.c.bf16 %v488_v44, %v488_v44 }
  0xc5   : > { %560 = vst.msk [vmem:[%s990_s8 + $0x50] sm:$0xf] %vm539_vm3, %v527_v45 }
  0xc6   : > { %568 = vst.msk [vmem:[%s990_s8 + $0x70] sm:$0xf] %vm539_vm3, %v535_v46  ;;  %v447_v49 = vpop.f32.mrf.mxu2  ;;  %v467_v50 = vpop.f32.mrf.mxu3 }
  0xc7   : > { %545 = vst.msk [vmem:[%s990_s8 + $0x14] sm:$0xf] %vm539_vm3, %v512_v47  ;;  %v448_v51 = vadd.f32 %v981_v23, %v447_v49  ;;  %v468_v52 = vadd.f32 %v981_v23, %v467_v50  ;;  %v410_v53 = vpop.f32.mrf.mxu0  ;;  %v430_v54 = vpop.f32.mrf.mxu1 }
  0xc8   : > { %553 = vst.msk [vmem:[%s990_s8 + $0x34] sm:$0xf] %vm539_vm3, %v520_v48  ;;  %v411_v55 = vadd.f32 %v981_v23, %v410_v53  ;;  %v431_v56 = vadd.f32 %v981_v23, %v430_v54 }
  0xc9   : > { %v496_v57 = vmax.f32 %v448_v51, 0.0  ;;  %v504_v58 = vmax.f32 %v468_v52, 0.0 }
  0xca   : > { %v481_v59 = vmax.f32 %v411_v55, 0.0  ;;  %v489_v60 = vmax.f32 %v431_v56, 0.0 }
  0xcb   : > { %v528_v61 = vpack.c.bf16 %v496_v57, %v496_v57  ;;  %v536_v62 = vpack.c.bf16 %v504_v58, %v504_v58 }
  0xcc   : > { %v513_v63 = vpack.c.bf16 %v481_v59, %v481_v59  ;;  %v521_v0 = vpack.c.bf16 %v489_v60, %v489_v60 }
  0xcd   : > { %561 = vst.msk [vmem:[%s990_s8 + $0x54] sm:$0xf] %vm539_vm3, %v528_v61 }
  0xce   : > { %569 = vst.msk [vmem:[%s990_s8 + $0x74] sm:$0xf] %vm539_vm3, %v536_v62  ;;  %v450_v1 = vpop.f32.mrf.mxu2  ;;  %v470_v2 = vpop.f32.mrf.mxu3 }
  0xcf   : > { %546 = vst.msk [vmem:[%s990_s8 + $0x18] sm:$0xf] %vm539_vm3, %v513_v63  ;;  %v451_v3 = vadd.f32 %v981_v23, %v450_v1  ;;  %v471_v4 = vadd.f32 %v981_v23, %v470_v2  ;;  %v412_v5 = vpop.f32.mrf.mxu0  ;;  %v432_v6 = vpop.f32.mrf.mxu1 }
  0xd0   : > { %554 = vst.msk [vmem:[%s990_s8 + $0x38] sm:$0xf] %vm539_vm3, %v521_v0  ;;  %v413_v7 = vadd.f32 %v981_v23, %v412_v5  ;;  %v433_v8 = vadd.f32 %v981_v23, %v432_v6 }
  0xd1   : > { %v497_v9 = vmax.f32 %v451_v3, 0.0  ;;  %v505_v10 = vmax.f32 %v471_v4, 0.0 }
  0xd2   : > { %v482_v11 = vmax.f32 %v413_v7, 0.0  ;;  %v490_v12 = vmax.f32 %v433_v8, 0.0 }
  0xd3   : > { %v529_v13 = vpack.c.bf16 %v497_v9, %v497_v9  ;;  %v537_v14 = vpack.c.bf16 %v505_v10, %v505_v10 }
  0xd4   : > { %v514_v15 = vpack.c.bf16 %v482_v11, %v482_v11  ;;  %v522_v16 = vpack.c.bf16 %v490_v12, %v490_v12 }
  0xd5   : > { %562 = vst.msk [vmem:[%s990_s8 + $0x58] sm:$0xf] %vm539_vm3, %v529_v13 }
  0xd6   : > { %570 = vst.msk [vmem:[%s990_s8 + $0x78] sm:$0xf] %vm539_vm3, %v537_v14  ;;  %v452_v17 = vpop.f32.mrf.mxu2  ;;  %v472_v18 = vpop.f32.mrf.mxu3 }
  0xd7   : > { %547 = vst.msk [vmem:[%s990_s8 + $0x1c] sm:$0xf] %vm539_vm3, %v514_v15  ;;  %v453_v19 = vadd.f32 %v981_v23, %v452_v17  ;;  %v473_v20 = vadd.f32 %v981_v23, %v472_v18 }
  0xd8   : > { %555 = vst.msk [vmem:[%s990_s8 + $0x3c] sm:$0xf] %vm539_vm3, %v522_v16 }
  0xd9   : > { %v498_v21 = vmax.f32 %v453_v19, 0.0  ;;  %v506_v22 = vmax.f32 %v473_v20, 0.0 }
  0xdb   : > { %v530_v24 = vpack.c.bf16 %v498_v21, %v498_v21  ;;  %v538_v25 = vpack.c.bf16 %v506_v22, %v506_v22 }
  0xdd   : > { %563 = vst.msk [vmem:[%s990_s8 + $0x5c] sm:$0xf] %vm539_vm3, %v530_v24 }
  0xde   : > { %571 = vst.msk [vmem:[%s990_s8 + $0x7c] sm:$0xf] %vm539_vm3, %v538_v25 }
  0xdf PF: > { %s15_s12 = sadd.s32 1, %s876_s12  }
  0xe0   : > { %p12_p7 = scmp.ge.s32.totalorder %s15_s12, 4  }
  0xe2   :  { %14 = sbr.rel (!%p12_p7) target bundleno = 2 (0x2), region = 71 }
  0xe7   :  { %594 = vsyncpa [#allocation3], 1 }
  0xe8   :  { %596 = vsyncpa [#allocation3 + $0x1], 1 }
  0xe9   :  { %597 = vsyncpa [#allocation5], 1 }

// kernel: vae_forward.6
= control target key start
LH: loop header
LB: loop body
LE: loop exit
PB: predicated region body
PF: predicated region fallthrough
CT: control target
= control target key end

     0   :  { %vm289_vm0 = vcmask 261120   ;;  %vm466_vm1 = vcmask 519168   ;;  %vm479_vm2 = vcmask 516096   ;;  %s962_s1 = inlined_call_operand.vmem [shape: bf16[288,64], index: 1, kind: input, shape index: {}]   ;;  %s963_s0 = inlined_call_operand.vmem [shape: bf16[98,288], index: 0, kind: input, shape index: {}]   ;;  %s964_s2 = inlined_call_operand.vmem [shape: f32[1,64], index: 2, kind: input, shape index: {}]   ;;  %s965_s3 = inlined_call_operand.vmem [shape: bf16[98,64], index: 3, kind: output, shape index: {}]  }
   0x1   :  { %v661_v0 = vld [vmem:[%s962_s1 + $0x38] sm:$0xff]  ;;  %v671_v2 = vld [vmem:[%s962_s1 + $0x88] sm:$0xff]  ;;  %v660_v3 = vld [vmem:[%s962_s1 + $0x30] sm:$0xff] }
   0x2   :  { %v669_v1 = vld [vmem:[%s962_s1 + $0x78] sm:$0xff]  ;;  %311 = vmatpush.bf16.msra.mxu0 %v661_v0  ;;  %672 = vmatpush.bf16.msra.mxu3 %v661_v0  ;;  %v668_v4 = vld [vmem:[%s962_s1 + $0x70] sm:$0xff]  ;;  %v670_v5 = vld [vmem:[%s962_s1 + $0x80] sm:$0xff] }
   0x3   :  { %354 = vmatpush.bf16.msra.mxu1 %v669_v1  ;;  %403 = vmatpush.bf16.msra.mxu2 %v671_v2  ;;  %v495_v6 = vld [vmem:[%s963_s0 + $0x8] sm:$0xf]  ;;  %v638_v7 = vld [vmem:[%s963_s0 + $0x10] sm:$0xf0]  ;;  %v658_v11 = vld [vmem:[%s962_s1 + $0x20] sm:$0xff] }
   0x4   :  { %v496_v8 = vor.u32 %v638_v7, %v495_v6  ;;  %v659_v9 = vld [vmem:[%s962_s1 + $0x28] sm:$0xff]  ;;  %v666_v12 = vld [vmem:[%s962_s1 + $0x60] sm:$0xff]  ;;  %v657_v13 = vld [vmem:[%s962_s1 + $0x18] sm:$0xff] }
   0x5   :  { %v667_v10 = vld [vmem:[%s962_s1 + $0x68] sm:$0xff]  ;;  %v665_v14 = vld [vmem:[%s962_s1 + $0x58] sm:$0xff]  ;;  %v656_v15 = vld [vmem:[%s962_s1 + $0x10] sm:$0xff] }
   0x6   :  { %312 = vmatpush.bf16.msra.mxu0 %v660_v3  ;;  %673 = vmatpush.bf16.msra.mxu3 %v660_v3  ;;  %v664_v16 = vld [vmem:[%s962_s1 + $0x50] sm:$0xff]  ;;  %v507_v17 = vld [vmem:[%s963_s0 + $0x20] sm:$0xf]  ;;  %v641_v18 = vld [vmem:[%s963_s0 + $0x28] sm:$0xf0] }
   0x7   :  { %355 = vmatpush.bf16.msra.mxu1 %v668_v4  ;;  %404 = vmatpush.bf16.msra.mxu2 %v670_v5  ;;  %v508_v19 = vor.u32 %v641_v18, %v507_v17  ;;  %v655_v20 = vld [vmem:[%s962_s1 + $0x8] sm:$0xff]  ;;  %v654_v22 = vld [vmem:[%s962_s1] sm:$0xff]  ;;  %v547_v26 = vld [vmem:[%s963_s0 + $0x78] sm:$0xf] }
   0x8   :  { %v663_v21 = vld [vmem:[%s962_s1 + $0x48] sm:$0xff]  ;;  %v662_v23 = vld [vmem:[%s962_s1 + $0x40] sm:$0xff]  ;;  %v489_v29 = vld [vmem:[%s963_s0 + $0xc] sm:$0xf0] }
   0x9   :  { %v487_v24 = vld [vmem:[%s963_s0] sm:$0xf]  ;;  %v637_v25 = vld [vmem:[%s963_s0 + $0x8] sm:$0xf0]  ;;  %v652_v27 = vld [vmem:[%s963_s0 + $0x80] sm:$0xf0] }
   0xa   :  { %629 = vmatmul.msk.bf16.vlgmr.msra.gmra.mxu2 %vm289_vm0, %v496_v8  ;;  %313 = vmatpush.bf16.msra.mxu0 %v659_v9  ;;  %v636_v28 = vld [vmem:[%s963_s0 + $0x4] sm:$0xf]  ;;  %v488_v30 = vor.u32 %v637_v25, %v487_v24  ;;  %v548_v31 = vor.u32 %v652_v27, %v547_v26  ;;  %v519_v33 = vld [vmem:[%s963_s0 + $0x38] sm:$0xf]  ;;  %v39_v36 = vld [vmem:[%s963_s0 + $0x90] sm:$0x11] }
   0xb   :  { %674 = vmatpush.bf16.msra.mxu3 %v659_v9  ;;  %356 = vmatpush.bf16.msra.mxu1 %v667_v10  ;;  %v492_v32 = vor.u32 %v636_v28, %v489_v29  ;;  %v644_v34 = vld [vmem:[%s963_s0 + $0x40] sm:$0xf0]  ;;  %v499_v37 = vld [vmem:[%s963_s0 + $0x18] sm:$0xf]  ;;  %v143_v39 = vunpack.c.l.b16 %v39_v36  ;;  %v639_v40 = vld [vmem:[%s963_s0 + $0x1c] sm:$0xf]  ;;  %v144_v62 = vunpack.c.h.b16 %v39_v36 }
   0xc   :  { %v520_v35 = vor.u32 %v644_v34, %v519_v33  ;;  %v640_v38 = vld [vmem:[%s963_s0 + $0x20] sm:$0xf0]  ;;  %v501_v41 = vld [vmem:[%s963_s0 + $0x24] sm:$0xf0]  ;;  %v531_v45 = vld [vmem:[%s963_s0 + $0x50] sm:$0xf] }
   0xd   :  { %v500_v42 = vor.u32 %v640_v38, %v499_v37  ;;  %v164_v43 = vpack.c.b16 %v143_v39, %v143_v39  ;;  %v504_v44 = vor.u32 %v639_v40, %v501_v41  ;;  %v647_v46 = vld [vmem:[%s963_s0 + $0x58] sm:$0xf0]  ;;  %v511_v48 = vld [vmem:[%s963_s0 + $0x30] sm:$0xf]  ;;  %v642_v50 = vld [vmem:[%s963_s0 + $0x34] sm:$0xf]  ;;  %v165_v3 = vpack.c.b16 %v144_v62, %v144_v62 }
   0xe   :  { %314 = vmatpush.bf16.msra.mxu0 %v658_v11  ;;  %v532_v47 = vor.u32 %v647_v46, %v531_v45  ;;  %v643_v49 = vld [vmem:[%s963_s0 + $0x38] sm:$0xf0]  ;;  %v513_v51 = vld [vmem:[%s963_s0 + $0x3c] sm:$0xf0]  ;;  %v549_v53 = vld [vmem:[%s963_s0 + $0x84] sm:$0xf0] }
   0xf   :  { %675 = vmatpush.bf16.msra.mxu3 %v658_v11  ;;  %357 = vmatpush.bf16.msra.mxu1 %v666_v12  ;;  %v651_v52 = vld [vmem:[%s963_s0 + $0x7c] sm:$0xf]  ;;  %v512_v54 = vor.u32 %v643_v49, %v511_v48  ;;  %v516_v55 = vor.u32 %v642_v50, %v513_v51  ;;  %v543_v57 = vld [vmem:[%s963_s0 + $0x68] sm:$0xf]  ;;  %v650_v58 = vld [vmem:[%s963_s0 + $0x70] sm:$0xf0] }
  0x10   :  { %v552_v56 = vor.u32 %v651_v52, %v549_v53  ;;  %v544_v59 = vor.u32 %v650_v58, %v543_v57  ;;  %v523_v60 = vld [vmem:[%s963_s0 + $0x48] sm:$0xf]  ;;  %v646_v61 = vld [vmem:[%s963_s0 + $0x50] sm:$0xf0]  ;;  %v645_v63 = vld [vmem:[%s963_s0 + $0x4c] sm:$0xf] }
  0x11   :  { %v525_v0 = vld [vmem:[%s963_s0 + $0x54] sm:$0xf0]  ;;  %v653_v5 = vld [vmem:[%s963_s0 + $0x88] sm:$0xf0]  ;;  %v535_v7 = vld [vmem:[%s963_s0 + $0x60] sm:$0xf] }
  0x12   :  { %315 = vmatpush.bf16.msra.mxu0 %v657_v13  ;;  %v528_v2 = vor.u32 %v645_v63, %v525_v0  ;;  %v649_v8 = vld [vmem:[%s963_s0 + $0x68] sm:$0xf0]  ;;  %v648_v9 = vld [vmem:[%s963_s0 + $0x64] sm:$0xf]  ;;  %v887_v18 = vld [vmem:[%s964_s2] ss:$0 sm:$0xff] }
  0x13   :  { %676 = vmatpush.bf16.msra.mxu3 %v657_v13  ;;  %358 = vmatpush.bf16.msra.mxu1 %v665_v14  ;;  %v536_v11 = vor.u32 %v649_v8, %v535_v7  ;;  %v40_v13 = vld [vmem:[%s963_s0 + $0x98] sm:$0x1] }
  0x16   :  { %316 = vmatpush.bf16.msra.mxu0 %v656_v15 }
  0x17   :  { %677 = vmatpush.bf16.msra.mxu3 %v656_v15  ;;  %359 = vmatpush.bf16.msra.mxu1 %v664_v16 }
  0x1a   :  { %630 = vmatmul.msk.bf16.gmra.mxu2 %vm289_vm0, %v508_v19  ;;  %317 = vmatpush.bf16.msra.mxu0 %v655_v20 }
  0x1b   :  { %678 = vmatpush.bf16.msra.mxu3 %v655_v20  ;;  %360 = vmatpush.bf16.msra.mxu1 %v663_v21 }
  0x1e   :  { %318 = vmatpush.bf16.msra.mxu0 %v654_v22 }
  0x1f   :  { %679 = vmatpush.bf16.msra.mxu3 %v654_v22  ;;  %361 = vmatpush.bf16.msra.mxu1 %v662_v23 }
  0x21   :  { %319 = vmatmul.bf16.vlgmr.msra.gmra.mxu0 %v488_v30 }
  0x22   :  { %344 = vmatmul.bf16.vlgmr.msra.gmra.mxu3 %v548_v31  ;;  %362 = vmatmul.bf16.vlgmr.msra.gmra.mxu1 %v492_v32 }
  0x23   :  { %680 = vmatpush.bf16.msrb.mxu3 %v669_v1  ;;  %v524_v1 = vor.u32 %v646_v61, %v523_v60 }
  0x27   :  { %681 = vmatpush.bf16.msrb.mxu3 %v668_v4  ;;  %v555_v4 = vld [vmem:[%s963_s0 + $0x80] sm:$0xf] }
  0x28   :  { %v556_v6 = vor.u32 %v653_v5, %v555_v4 }
  0x2a   :  { %631 = vmatmul.msk.bf16.gmra.mxu2 %vm289_vm0, %v520_v35 }
  0x2b   :  { %682 = vmatpush.bf16.msrb.mxu3 %v667_v10  ;;  %v537_v10 = vld [vmem:[%s963_s0 + $0x6c] sm:$0xf0] }
  0x2f   :  { %683 = vmatpush.bf16.msrb.mxu3 %v666_v12  ;;  %v540_v12 = vor.u32 %v648_v9, %v537_v10 }
  0x31   :  { %324 = vmatmul.bf16.gmra.mxu0 %v500_v42 }
  0x32   :  { %349 = vmatmul.bf16.gmra.mxu3 %v164_v43  ;;  %367 = vmatmul.bf16.gmra.mxu1 %v504_v44 }
  0x33   :  { %684 = vmatpush.bf16.msrb.mxu3 %v665_v14  ;;  %v145_v14 = vunpack.c.l.b16 %v40_v13 }
  0x35   :  { %v166_v15 = vpack.c.b16 %v145_v14, %v145_v14 }
  0x37   :  { %685 = vmatpush.bf16.msrb.mxu3 %v664_v16 }
  0x3a   :  { %632 = vmatmul.msk.bf16.gmra.mxu2 %vm289_vm0, %v532_v47 }
  0x3b   :  { %686 = vmatpush.bf16.msrb.mxu3 %v663_v21 }
  0x3f   :  { %687 = vmatpush.bf16.msrb.mxu3 %v662_v23 }
  0x41   :  { %329 = vmatmul.bf16.gmra.mxu0 %v512_v54 }
  0x42   :  { %372 = vmatmul.bf16.gmra.mxu1 %v516_v55  ;;  %387 = vmatmul.bf16.vlgmr.msrb.gmra.mxu3 %v552_v56 }
  0x4a   :  { %633 = vmatmul.msk.bf16.gmra.mxu2 %vm289_vm0, %v544_v59 }
  0x51   :  { %334 = vmatmul.bf16.gmra.mxu0 %v524_v1 }
  0x52   :  { %377 = vmatmul.bf16.gmra.mxu1 %v528_v2  ;;  %392 = vmatmul.bf16.gmra.mxu3 %v165_v3 }
  0x5a   :  { %634 = vmatmul.msk.bf16.gmra.mxu2 %vm289_vm0, %v556_v6 }
  0x61   :  { %339 = vmatmul.bf16.gmra.mxu0 %v536_v11 }
  0x62   :  { %382 = vmatmul.bf16.gmra.mxu1 %v540_v12 }
  0x6a   :  { %635 = vmatmul.msk.bf16.gmra.mxu2 %vm289_vm0, %v166_v15 }
  0x8d   :  { %v406_v16 = vpop.f32.mrf.mxu2 }
  0x95   :  { %v408_v17 = vpop.f32.mrf.mxu2 }
  0x9d   :  { %v411_v19 = vpop.f32.mrf.mxu2 }
  0x9e   :  { %v320_v20 = vpop.f32.mrf.mxu0 }
  0x9f   :  { %v321_v21 = vadd.f32 %v887_v18, %v320_v20  ;;  %v363_v22 = vpop.f32.mrf.mxu1 }
  0xa1   :  { %v364_v23 = vadd.f32 %v363_v22, %v321_v21 }
  0xa3   :  { %v407_v24 = vadd.f32 %v406_v16, %v364_v23 }
  0xa5   :  { %v440_v25 = vmax.f32 %v407_v24, 0.0  ;;  %v890_v26 = vpop.f32.mrf.mxu3  ;;  %v413_v27 = vpop.f32.mrf.mxu2 }
  0xa6   :  { %v322_v28 = vpop.f32.mrf.mxu0  ;;  %v346_v24 = vadd.f32 %v887_v18, %v890_v26 }
  0xa7   :  { %v453_v29 = vpack.c.bf16 %v440_v25, %v440_v25  ;;  %v323_v30 = vadd.f32 %v887_v18, %v322_v28  ;;  %v365_v31 = vpop.f32.mrf.mxu1 }
  0xa9   :  { %467 = vst.msk [vmem:[%s965_s3] sm:$0xf] %vm466_vm1, %v453_v29  ;;  %v366_v32 = vadd.f32 %v365_v31, %v323_v30 }
  0xab   :  { %v409_v33 = vadd.f32 %v408_v17, %v366_v32 }
  0xad   :  { %v441_v34 = vmax.f32 %v409_v33, 0.0  ;;  %v897_v35 = vpop.f32.mrf.mxu3  ;;  %v416_v36 = vpop.f32.mrf.mxu2 }
  0xae   :  { %v325_v37 = vpop.f32.mrf.mxu0  ;;  %v348_v26 = vadd.f32 %v887_v18, %v897_v35 }
  0xaf   :  { %v454_v38 = vpack.c.bf16 %v441_v34, %v441_v34  ;;  %v326_v39 = vadd.f32 %v887_v18, %v325_v37  ;;  %v368_v40 = vpop.f32.mrf.mxu1 }
  0xb1   :  { %468 = vst.msk [vmem:[%s965_s3 + $0x4] sm:$0xf] %vm466_vm1, %v454_v38  ;;  %v369_v41 = vadd.f32 %v368_v40, %v326_v39 }
  0xb3   :  { %v412_v42 = vadd.f32 %v411_v19, %v369_v41 }
  0xb5   :  { %v442_v43 = vmax.f32 %v412_v42, 0.0  ;;  %v904_v44 = vpop.f32.mrf.mxu3  ;;  %v418_v45 = vpop.f32.mrf.mxu2 }
  0xb6   :  { %v327_v46 = vpop.f32.mrf.mxu0 }
  0xb7   :  { %v455_v47 = vpack.c.bf16 %v442_v43, %v442_v43  ;;  %v328_v48 = vadd.f32 %v887_v18, %v327_v46  ;;  %v370_v49 = vpop.f32.mrf.mxu1 }
  0xb9   :  { %469 = vst.msk [vmem:[%s965_s3 + $0x8] sm:$0xf] %vm466_vm1, %v455_v47  ;;  %v371_v50 = vadd.f32 %v370_v49, %v328_v48 }
  0xbb   :  { %v414_v51 = vadd.f32 %v413_v27, %v371_v50 }
  0xbd   :  { %v443_v52 = vmax.f32 %v414_v51, 0.0  ;;  %v352_v53 = vpop.f32.mrf.mxu3  ;;  %v421_v54 = vpop.f32.mrf.mxu2  ;;  %v351_v51 = vadd.f32 %v887_v18, %v904_v44 }
  0xbe   :  { %v330_v55 = vpop.f32.mrf.mxu0 }
  0xbf   :  { %v456_v56 = vpack.c.bf16 %v443_v52, %v443_v52  ;;  %v331_v57 = vadd.f32 %v887_v18, %v330_v55  ;;  %v373_v58 = vpop.f32.mrf.mxu1 }
  0xc1   :  { %470 = vst.msk [vmem:[%s965_s3 + $0xc] sm:$0xf] %vm466_vm1, %v456_v56  ;;  %v374_v59 = vadd.f32 %v373_v58, %v331_v57 }
  0xc3   :  { %v417_v60 = vadd.f32 %v416_v36, %v374_v59 }
  0xc5   :  { %v444_v61 = vmax.f32 %v417_v60, 0.0  ;;  %v388_v62 = vpop.f32.mrf.mxu3  ;;  %v423_v63 = vpop.f32.mrf.mxu2 }
  0xc6   :  { %v332_v0 = vpop.f32.mrf.mxu0  ;;  %v389_v27 = vadd.f32 %v388_v62, %v346_v24 }
  0xc7   :  { %v457_v1 = vpack.c.bf16 %v444_v61, %v444_v61  ;;  %v333_v2 = vadd.f32 %v887_v18, %v332_v0  ;;  %v375_v3 = vpop.f32.mrf.mxu1 }
  0xc9   :  { %471 = vst.msk [vmem:[%s965_s3 + $0x10] sm:$0xf] %vm466_vm1, %v457_v1  ;;  %v376_v4 = vadd.f32 %v375_v3, %v333_v2 }
  0xcb   :  { %v419_v5 = vadd.f32 %v418_v45, %v376_v4 }
  0xcd   :  { %v445_v6 = vmax.f32 %v419_v5, 0.0  ;;  %v390_v7 = vpop.f32.mrf.mxu3  ;;  %v426_v8 = vpop.f32.mrf.mxu2 }
  0xce   :  { %v335_v9 = vpop.f32.mrf.mxu0  ;;  %v391_v41 = vadd.f32 %v390_v7, %v348_v26 }
  0xcf   :  { %v458_v10 = vpack.c.bf16 %v445_v6, %v445_v6  ;;  %v336_v11 = vadd.f32 %v887_v18, %v335_v9  ;;  %v378_v12 = vpop.f32.mrf.mxu1 }
  0xd1   :  { %472 = vst.msk [vmem:[%s965_s3 + $0x14] sm:$0xf] %vm466_vm1, %v458_v10  ;;  %v379_v13 = vadd.f32 %v378_v12, %v336_v11 }
  0xd3   :  { %v422_v14 = vadd.f32 %v421_v54, %v379_v13 }
  0xd5   :  { %v446_v15 = vmax.f32 %v422_v14, 0.0  ;;  %v393_v16 = vpop.f32.mrf.mxu3  ;;  %v428_v17 = vpop.f32.mrf.mxu2 }
  0xd6   :  { %v337_v19 = vpop.f32.mrf.mxu0  ;;  %v394_v54 = vadd.f32 %v393_v16, %v351_v51 }
  0xd7   :  { %v459_v20 = vpack.c.bf16 %v446_v15, %v446_v15  ;;  %v338_v21 = vadd.f32 %v887_v18, %v337_v19  ;;  %v380_v22 = vpop.f32.mrf.mxu1 }
  0xd9   :  { %473 = vst.msk [vmem:[%s965_s3 + $0x18] sm:$0xf] %vm466_vm1, %v459_v20  ;;  %v381_v23 = vadd.f32 %v380_v22, %v338_v21 }
  0xdb   :  { %v424_v25 = vadd.f32 %v423_v63, %v381_v23 }
  0xdd   :  { %v447_v28 = vmax.f32 %v424_v25, 0.0  ;;  %v431_v29 = vpop.f32.mrf.mxu2  ;;  %v395_v30 = vpop.f32.mrf.mxu3 }
  0xde   :  { %v432_v31 = vadd.f32 %v431_v29, %v389_v27  ;;  %v340_v32 = vpop.f32.mrf.mxu0 }
  0xdf   :  { %v460_v33 = vpack.c.bf16 %v447_v28, %v447_v28  ;;  %v341_v34 = vadd.f32 %v887_v18, %v340_v32  ;;  %v383_v36 = vpop.f32.mrf.mxu1 }
  0xe0   :  { %v450_v37 = vmax.f32 %v432_v31, 0.0 }
  0xe1   :  { %474 = vst.msk [vmem:[%s965_s3 + $0x1c] sm:$0xf] %vm466_vm1, %v460_v33  ;;  %v384_v38 = vadd.f32 %v383_v36, %v341_v34 }
  0xe2   :  { %v463_v39 = vpack.c.bf16 %v450_v37, %v450_v37 }
  0xe3   :  { %v427_v40 = vadd.f32 %v426_v8, %v384_v38 }
  0xe4   :  { %477 = vst.msk [vmem:[%s965_s3 + $0x28] sm:$0xf] %vm466_vm1, %v463_v39 }
  0xe5   :  { %v448_v42 = vmax.f32 %v427_v40, 0.0  ;;  %v433_v43 = vpop.f32.mrf.mxu2 }
  0xe6   :  { %v434_v45 = vadd.f32 %v433_v43, %v391_v41  ;;  %v342_v46 = vpop.f32.mrf.mxu0 }
  0xe7   :  { %v461_v47 = vpack.c.bf16 %v448_v42, %v448_v42  ;;  %v343_v48 = vadd.f32 %v887_v18, %v342_v46  ;;  %v385_v50 = vpop.f32.mrf.mxu1 }
  0xe8   :  { %v451_v49 = vmax.f32 %v434_v45, 0.0 }
  0xe9   :  { %475 = vst.msk [vmem:[%s965_s3 + $0x20] sm:$0xf] %vm466_vm1, %v461_v47  ;;  %v386_v35 = vadd.f32 %v385_v50, %v343_v48 }
  0xea   :  { %v464_v52 = vpack.c.bf16 %v451_v49, %v451_v49 }
  0xeb   :  { %v429_v53 = vadd.f32 %v428_v17, %v386_v35 }
  0xec   :  { %478 = vst.msk [vmem:[%s965_s3 + $0x2c] sm:$0xf] %vm466_vm1, %v464_v52 }
  0xed   :  { %v449_v55 = vmax.f32 %v429_v53, 0.0  ;;  %v436_v56 = vpop.f32.mrf.mxu2 }
  0xee   :  { %v437_v57 = vadd.f32 %v436_v56, %v394_v54 }
  0xef   :  { %v462_v58 = vpack.c.bf16 %v449_v55, %v449_v55 }
  0xf0   :  { %v452_v59 = vmax.f32 %v437_v57, 0.0 }
  0xf1   :  { %476 = vst.msk [vmem:[%s965_s3 + $0x24] sm:$0xf] %vm466_vm1, %v462_v58 }
  0xf2   :  { %v465_v18 = vpack.c.bf16 %v452_v59, %v452_v59 }
  0xf4   :  { %480 = vst.msk [vmem:[%s965_s3 + $0x30] sm:$0x1] %vm479_vm2, %v465_v18 }
  0xf5   :  { %v438_v44 = vpop.f32.mrf.mxu2 }

// kernel: vae_forward.8
= control target key start
LH: loop header
LB: loop body
LE: loop exit
PB: predicated region body
PF: predicated region fallthrough
CT: control target
= control target key end

     0   :  { %s729_s1 = inlined_call_operand.vmem [shape: bf16[256,128], index: 1, kind: input, shape index: {}]   ;;  %s730_s2 = inlined_call_operand.vmem [shape: f32[1,128], index: 2, kind: input, shape index: {}]   ;;  %s731_s0 = inlined_call_operand.vmem [shape: bf16[98,256], index: 0, kind: input, shape index: {}]   ;;  %s732_s3 = inlined_call_operand.vmem [shape: bf16[98,128], index: 3, kind: output, shape index: {}]  }
   0x1   :  { %v486_v0 = vld [vmem:[%s729_s1 + $0x38] sm:$0xff]  ;;  %v485_v2 = vld [vmem:[%s729_s1 + $0x30] sm:$0xff]  ;;  %v484_v4 = vld [vmem:[%s729_s1 + $0x28] sm:$0xff] }
   0x2   :  { %v494_v1 = vld [vmem:[%s729_s1 + $0x78] sm:$0xff]  ;;  %226 = vmatpush.bf16.msra.mxu0 %v486_v0  ;;  %530 = vmatpush.bf16.msra.mxu2 %v486_v0  ;;  %v493_v3 = vld [vmem:[%s729_s1 + $0x70] sm:$0xff]  ;;  %v492_v5 = vld [vmem:[%s729_s1 + $0x68] sm:$0xff] }
   0x3   :  { %269 = vmatpush.bf16.msra.mxu1 %v494_v1  ;;  %538 = vmatpush.bf16.msra.mxu3 %v494_v1  ;;  %v483_v6 = vld [vmem:[%s729_s1 + $0x20] sm:$0xff]  ;;  %v482_v8 = vld [vmem:[%s729_s1 + $0x18] sm:$0xff]  ;;  %v481_v10 = vld [vmem:[%s729_s1 + $0x10] sm:$0xff] }
   0x4   :  { %v491_v7 = vld [vmem:[%s729_s1 + $0x60] sm:$0xff]  ;;  %v490_v9 = vld [vmem:[%s729_s1 + $0x58] sm:$0xff]  ;;  %v489_v11 = vld [vmem:[%s729_s1 + $0x50] sm:$0xff] }
   0x5   :  { %v480_v12 = vld [vmem:[%s729_s1 + $0x8] sm:$0xff]  ;;  %v479_v14 = vld [vmem:[%s729_s1] sm:$0xff]  ;;  %v381_v18 = vld [vmem:[%s731_s0 + $0x30] sm:$0xf] }
   0x6   :  { %227 = vmatpush.bf16.msra.mxu0 %v485_v2  ;;  %531 = vmatpush.bf16.msra.mxu2 %v485_v2  ;;  %v488_v13 = vld [vmem:[%s729_s1 + $0x48] sm:$0xff]  ;;  %v487_v15 = vld [vmem:[%s729_s1 + $0x40] sm:$0xff]  ;;  %v474_v19 = vld [vmem:[%s731_s0 + $0x34] sm:$0xf0] }
   0x7   :  { %270 = vmatpush.bf16.msra.mxu1 %v493_v3  ;;  %539 = vmatpush.bf16.msra.mxu3 %v493_v3  ;;  %v357_v16 = vld [vmem:[%s731_s0] sm:$0xf]  ;;  %v468_v17 = vld [vmem:[%s731_s0 + $0x4] sm:$0xf0]  ;;  %v467_v20 = vld [vmem:[%s731_s0 + $0x4] sm:$0xf]  ;;  %v382_v25 = vor.u32 %v474_v19, %v381_v18 }
   0x8   :  { %v359_v21 = vld [vmem:[%s731_s0 + $0x8] sm:$0xf0]  ;;  %v475_v22 = vld [vmem:[%s731_s0 + $0x44] sm:$0xf]  ;;  %v358_v24 = vor.u32 %v468_v17, %v357_v16  ;;  %v365_v28 = vld [vmem:[%s731_s0 + $0x10] sm:$0xf] }
   0x9   :  { %v391_v23 = vld [vmem:[%s731_s0 + $0x48] sm:$0xf0]  ;;  %v362_v26 = vor.u32 %v467_v20, %v359_v21  ;;  %v470_v29 = vld [vmem:[%s731_s0 + $0x14] sm:$0xf0]  ;;  %v389_v30 = vld [vmem:[%s731_s0 + $0x40] sm:$0xf] }
   0xa   :  { %228 = vmatpush.bf16.msra.mxu0 %v484_v4  ;;  %532 = vmatpush.bf16.msra.mxu2 %v484_v4  ;;  %v394_v27 = vor.u32 %v475_v22, %v391_v23  ;;  %v476_v31 = vld [vmem:[%s731_s0 + $0x44] sm:$0xf0]  ;;  %v469_v32 = vld [vmem:[%s731_s0 + $0x14] sm:$0xf]  ;;  %v367_v33 = vld [vmem:[%s731_s0 + $0x18] sm:$0xf0]  ;;  %v366_v36 = vor.u32 %v470_v29, %v365_v28 }
   0xb   :  { %271 = vmatpush.bf16.msra.mxu1 %v492_v5  ;;  %540 = vmatpush.bf16.msra.mxu3 %v492_v5  ;;  %v477_v34 = vld [vmem:[%s731_s0 + $0x54] sm:$0xf]  ;;  %v399_v35 = vld [vmem:[%s731_s0 + $0x58] sm:$0xf0]  ;;  %v390_v37 = vor.u32 %v476_v31, %v389_v30  ;;  %v370_v38 = vor.u32 %v469_v32, %v367_v33  ;;  %v26_v40 = vld [vmem:[%s731_s0 + $0x60] sm:$0x11] }
   0xc   :  { %v402_v39 = vor.u32 %v477_v34, %v399_v35  ;;  %v373_v41 = vld [vmem:[%s731_s0 + $0x20] sm:$0xf]  ;;  %v472_v42 = vld [vmem:[%s731_s0 + $0x24] sm:$0xf0]  ;;  %v397_v43 = vld [vmem:[%s731_s0 + $0x50] sm:$0xf]  ;;  %v101_v45 = vunpack.c.h.b16 %v26_v40  ;;  %v100_v52 = vunpack.c.l.b16 %v26_v40 }
   0xd   :  { %v478_v44 = vld [vmem:[%s731_s0 + $0x54] sm:$0xf0]  ;;  %v471_v46 = vld [vmem:[%s731_s0 + $0x24] sm:$0xf]  ;;  %v375_v47 = vld [vmem:[%s731_s0 + $0x28] sm:$0xf0]  ;;  %v374_v48 = vor.u32 %v472_v42, %v373_v41 }
   0xe   :  { %229 = vmatpush.bf16.msra.mxu0 %v483_v6  ;;  %533 = vmatpush.bf16.msra.mxu2 %v483_v6  ;;  %v398_v49 = vor.u32 %v478_v44, %v397_v43  ;;  %v378_v50 = vor.u32 %v471_v46, %v375_v47  ;;  %v115_v51 = vpack.c.b16 %v101_v45, %v101_v45  ;;  %v473_v53 = vld [vmem:[%s731_s0 + $0x34] sm:$0xf]  ;;  %v383_v54 = vld [vmem:[%s731_s0 + $0x38] sm:$0xf0]  ;;  %v693_v58 = vld [vmem:[%s730_s2] ss:$0 sm:$0xff] }
   0xf   :  { %272 = vmatpush.bf16.msra.mxu1 %v491_v7  ;;  %541 = vmatpush.bf16.msra.mxu3 %v491_v7  ;;  %v114_v55 = vpack.c.b16 %v100_v52, %v100_v52  ;;  %v386_v56 = vor.u32 %v473_v53, %v383_v54 }
  0x12   :  { %230 = vmatpush.bf16.msra.mxu0 %v482_v8  ;;  %534 = vmatpush.bf16.msra.mxu2 %v482_v8 }
  0x13   :  { %273 = vmatpush.bf16.msra.mxu1 %v490_v9  ;;  %542 = vmatpush.bf16.msra.mxu3 %v490_v9 }
  0x16   :  { %231 = vmatpush.bf16.msra.mxu0 %v481_v10  ;;  %535 = vmatpush.bf16.msra.mxu2 %v481_v10 }
  0x17   :  { %274 = vmatpush.bf16.msra.mxu1 %v489_v11  ;;  %543 = vmatpush.bf16.msra.mxu3 %v489_v11 }
  0x1a   :  { %232 = vmatpush.bf16.msra.mxu0 %v480_v12  ;;  %536 = vmatpush.bf16.msra.mxu2 %v480_v12 }
  0x1b   :  { %275 = vmatpush.bf16.msra.mxu1 %v488_v13  ;;  %544 = vmatpush.bf16.msra.mxu3 %v488_v13 }
  0x1e   :  { %233 = vmatpush.bf16.msra.mxu0 %v479_v14  ;;  %537 = vmatpush.bf16.msra.mxu2 %v479_v14 }
  0x1f   :  { %276 = vmatpush.bf16.msra.mxu1 %v487_v15  ;;  %545 = vmatpush.bf16.msra.mxu3 %v487_v15 }
  0x21   :  { %234 = vmatmul.bf16.vlgmr.msra.gmra.mxu0 %v358_v24  ;;  %249 = vmatmul.bf16.vlgmr.msra.gmra.mxu2 %v382_v25 }
  0x22   :  { %277 = vmatmul.bf16.vlgmr.msra.gmra.mxu1 %v362_v26  ;;  %297 = vmatmul.bf16.vlgmr.msra.gmra.mxu3 %v394_v27 }
  0x31   :  { %239 = vmatmul.bf16.gmra.mxu0 %v366_v36  ;;  %254 = vmatmul.bf16.gmra.mxu2 %v390_v37 }
  0x32   :  { %282 = vmatmul.bf16.gmra.mxu1 %v370_v38  ;;  %302 = vmatmul.bf16.gmra.mxu3 %v402_v39 }
  0x41   :  { %244 = vmatmul.bf16.gmra.mxu0 %v374_v48  ;;  %259 = vmatmul.bf16.gmra.mxu2 %v398_v49 }
  0x42   :  { %287 = vmatmul.bf16.gmra.mxu1 %v378_v50  ;;  %307 = vmatmul.bf16.gmra.mxu3 %v115_v51 }
  0x51   :  { %264 = vmatmul.bf16.gmra.mxu2 %v114_v55 }
  0x52   :  { %292 = vmatmul.bf16.gmra.mxu1 %v386_v56 }
  0x9e   :  { %v235_v57 = vpop.f32.mrf.mxu0 }
  0x9f   :  { %v278_v59 = vpop.f32.mrf.mxu1  ;;  %v236_v60 = vadd.f32 %v693_v58, %v235_v57 }
  0xa1   :  { %v279_v0 = vadd.f32 %v278_v59, %v236_v60 }
  0xa3   :  { %v312_v4 = vmax.f32 %v279_v0, 0.0 }
  0xa4   :  { %v250_v61 = vpop.f32.mrf.mxu2 }
  0xa5   :  { %v298_v62 = vpop.f32.mrf.mxu3  ;;  %v251_v54 = vadd.f32 %v693_v58, %v250_v61 }
  0xa6   :  { %v237_v63 = vpop.f32.mrf.mxu0 }
  0xa7   :  { %v238_v1 = vadd.f32 %v693_v58, %v237_v63  ;;  %v280_v2 = vpop.f32.mrf.mxu1 }
  0xa9   :  { %v281_v3 = vadd.f32 %v280_v2, %v238_v1 }
  0xab   :  { %v313_v5 = vmax.f32 %v281_v3, 0.0 }
  0xac   :  { %v252_v6 = vpop.f32.mrf.mxu2 }
  0xad   :  { %v498_v7 = vpack.c.bf16 %v313_v5, %v312_v4  ;;  %v300_v8 = vpop.f32.mrf.mxu3  ;;  %v253_v57 = vadd.f32 %v693_v58, %v252_v6 }
  0xae   :  { %v240_v9 = vpop.f32.mrf.mxu0 }
  0xaf   :  { %499 = vst [vmem:[%s732_s3] sm:$0xff] %v498_v7   ;;  %v283_v10 = vpop.f32.mrf.mxu1  ;;  %v241_v11 = vadd.f32 %v693_v58, %v240_v9 }
  0xb1   :  { %v284_v15 = vadd.f32 %v283_v10, %v241_v11 }
  0xb3   :  { %v314_v20 = vmax.f32 %v284_v15, 0.0 }
  0xb4   :  { %v255_v12 = vpop.f32.mrf.mxu2 }
  0xb5   :  { %v303_v13 = vpop.f32.mrf.mxu3  ;;  %v256_v18 = vadd.f32 %v693_v58, %v255_v12 }
  0xb6   :  { %v242_v14 = vpop.f32.mrf.mxu0 }
  0xb7   :  { %v243_v16 = vadd.f32 %v693_v58, %v242_v14  ;;  %v285_v17 = vpop.f32.mrf.mxu1  ;;  %v299_v23 = vadd.f32 %v298_v62, %v256_v18 }
  0xb9   :  { %v286_v19 = vadd.f32 %v285_v17, %v243_v16  ;;  %v320_v30 = vmax.f32 %v299_v23, 0.0 }
  0xbb   :  { %v315_v21 = vmax.f32 %v286_v19, 0.0 }
  0xbc   :  { %v257_v22 = vpop.f32.mrf.mxu2 }
  0xbd   :  { %v503_v24 = vpack.c.bf16 %v315_v21, %v314_v20  ;;  %v258_v25 = vadd.f32 %v693_v58, %v257_v22  ;;  %v305_v26 = vpop.f32.mrf.mxu3 }
  0xbe   :  { %v245_v27 = vpop.f32.mrf.mxu0 }
  0xbf   :  { %525 = vst [vmem:[%s732_s3 + $0x8] sm:$0xff] %v503_v24   ;;  %v301_v28 = vadd.f32 %v300_v8, %v258_v25  ;;  %v288_v29 = vpop.f32.mrf.mxu1  ;;  %v246_v33 = vadd.f32 %v693_v58, %v245_v27 }
  0xc1   :  { %v321_v31 = vmax.f32 %v301_v28, 0.0  ;;  %v289_v37 = vadd.f32 %v288_v29, %v246_v33 }
  0xc3   :  { %v518_v32 = vpack.c.bf16 %v321_v31, %v320_v30  ;;  %v316_v42 = vmax.f32 %v289_v37, 0.0 }
  0xc4   :  { %v260_v34 = vpop.f32.mrf.mxu2 }
  0xc5   :  { %528 = vst [vmem:[%s732_s3 + $0x20] sm:$0xff] %v518_v32   ;;  %v308_v35 = vpop.f32.mrf.mxu3  ;;  %v261_v40 = vadd.f32 %v693_v58, %v260_v34 }
  0xc6   :  { %v247_v36 = vpop.f32.mrf.mxu0 }
  0xc7   :  { %v248_v38 = vadd.f32 %v693_v58, %v247_v36  ;;  %v290_v39 = vpop.f32.mrf.mxu1  ;;  %v304_v45 = vadd.f32 %v303_v13, %v261_v40 }
  0xc9   :  { %v291_v41 = vadd.f32 %v290_v39, %v248_v38  ;;  %v322_v51 = vmax.f32 %v304_v45, 0.0 }
  0xcb   :  { %v317_v43 = vmax.f32 %v291_v41, 0.0 }
  0xcc   :  { %v262_v44 = vpop.f32.mrf.mxu2 }
  0xcd   :  { %v508_v46 = vpack.c.bf16 %v317_v43, %v316_v42  ;;  %v263_v47 = vadd.f32 %v693_v58, %v262_v44  ;;  %v310_v48 = vpop.f32.mrf.mxu3 }
  0xcf   :  { %526 = vst [vmem:[%s732_s3 + $0x10] sm:$0xff] %v508_v46   ;;  %v306_v49 = vadd.f32 %v305_v26, %v263_v47  ;;  %v293_v50 = vpop.f32.mrf.mxu1 }
  0xd0   :  { %v294_v59 = vadd.f32 %v293_v50, %v251_v54 }
  0xd1   :  { %v323_v52 = vmax.f32 %v306_v49, 0.0 }
  0xd2   :  { %v318_v1 = vmax.f32 %v294_v59, 0.0 }
  0xd3   :  { %v523_v53 = vpack.c.bf16 %v323_v52, %v322_v51 }
  0xd4   :  { %v265_v55 = vpop.f32.mrf.mxu2 }
  0xd5   :  { %529 = vst [vmem:[%s732_s3 + $0x28] sm:$0xff] %v523_v53   ;;  %v266_v56 = vadd.f32 %v693_v58, %v265_v55 }
  0xd7   :  { %v309_v60 = vadd.f32 %v308_v35, %v266_v56  ;;  %v295_v62 = vpop.f32.mrf.mxu1 }
  0xd8   :  { %v296_v63 = vadd.f32 %v295_v62, %v253_v57 }
  0xd9   :  { %v324_v0 = vmax.f32 %v309_v60, 0.0 }
  0xda   :  { %v319_v2 = vmax.f32 %v296_v63, 0.0 }
  0xdb   :  { %v337_v3 = vpack.c.bf16 %v324_v0, %v324_v0 }
  0xdc   :  { %v513_v4 = vpack.c.bf16 %v319_v2, %v318_v1  ;;  %v267_v5 = vpop.f32.mrf.mxu2 }
  0xdd   :  { %350 = vst [vmem:[%s732_s3 + $0x30] sm:$0x1] %v337_v3 }
  0xde   :  { %527 = vst [vmem:[%s732_s3 + $0x18] sm:$0xff] %v513_v4  }

// kernel: vae_forward.9
= control target key start
LH: loop header
LB: loop body
LE: loop exit
PB: predicated region body
PF: predicated region fallthrough
CT: control target
= control target key end

     0   :  { %s1605_s12 = smov 0   ;;  %s2419_s0 = inlined_call_operand.vmem [shape: bf16[512,128], index: 0, kind: input, shape index: {}]   ;;  %s2420_s1 = inlined_call_operand.vmem [shape: bf16[128,4], index: 1, kind: input, shape index: {}]   ;;  %s2421_s2 = inlined_call_operand.vmem [shape: f32[1,4], index: 2, kind: input, shape index: {}]   ;;  %s2422_s3 = inlined_call_operand.vmem [shape: f32[512,4], index: 3, kind: output, shape index: {}]  }
   0x1 LB: > { %s1284_s13 = sadd.s32 4294967295, %s1583_s12   ;;  %p1288_p0 = scmp.ge.s32.totalorder %s1583_s12, 1  ;;  %s1583_s12 = sphi %s1605_s12, %s13_s12  }
   0x2   : > { %p138_p1 = scmp.lt.s32.totalorder %s1583_s12, 3 }
   0x4   : > { %p139_p2 = pnand %p1288_p0, %p138_p1 }
   0x5   : > { %s1289_s22 = sshll.u32 (!%p139_p2), %s1284_s13, 5 }
   0x6   : > { %142 = sbr.rel (%p139_p2) target bundleno = 368 (0x170), region = 32  ;;  %p163_p3 = scmp.lt.s32.totalorder (!%p139_p2), %s1289_s22, 63 }
   0xb   : > { %v1414_v0 = vld [vmem:[%s2420_s1 + $0x38] sm:$0xff]  ;;  %v1413_v1 = vld [vmem:[%s2420_s1 + $0x30] sm:$0xff]  ;;  %v1412_v2 = vld [vmem:[%s2420_s1 + $0x28] sm:$0xff]  ;;  %s2452_s22 = smov (!%p163_p3, %s1289_s22), 63  ;;  %vm1195_vm4 = vcmask 31744  }
   0xc   : > { %370 = vmatpush.bf16.msra.mxu0 %v1414_v0  ;;  %1415 = vmatpush.bf16.msra.mxu1 %v1414_v0  ;;  %v1411_v3 = vld [vmem:[%s2420_s1 + $0x20] sm:$0xff]  ;;  %v1410_v4 = vld [vmem:[%s2420_s1 + $0x18] sm:$0xff]  ;;  %v1409_v5 = vld [vmem:[%s2420_s1 + $0x10] sm:$0xff]  ;;  %s1290_s29 = sshll.u32 %s2452_s22, 2  ;;  %s1292_s10 = sshll.u32 %s2452_s22, 3 }
   0xd   : > { %1416 = vmatpush.bf16.msra.mxu2 %v1414_v0  ;;  %1417 = vmatpush.bf16.msra.mxu3 %v1414_v0  ;;  %v1408_v6 = vld [vmem:[%s2420_s1 + $0x8] sm:$0xff]  ;;  %v1407_v7 = vld [vmem:[%s2420_s1] sm:$0xff]  ;;  %s1643_s7 = scalar_lea.vmem %s2419_s0, %s1290_s29  ;;  %s1790_s14 = scalar_lea.vmem %s2422_s3, %s1292_s10 }
   0xe   : > { %v1391_v8 = vld [vmem:[%s1643_s7] sm:$0xff]  ;;  %v1392_v12 = vld [vmem:[%s1643_s7 + $0x8] sm:$0xff]  ;;  %v1393_v16 = vld [vmem:[%s1643_s7 + $0x10] sm:$0xff] }
   0xf   : > { %v1395_v9 = vld [vmem:[%s1643_s7 + $0x20] sm:$0xff]  ;;  %v1396_v13 = vld [vmem:[%s1643_s7 + $0x28] sm:$0xff]  ;;  %v1397_v17 = vld [vmem:[%s1643_s7 + $0x30] sm:$0xff] }
  0x10   : > { %371 = vmatpush.bf16.msra.mxu0 %v1413_v1  ;;  %1418 = vmatpush.bf16.msra.mxu1 %v1413_v1  ;;  %v1399_v10 = vld [vmem:[%s1643_s7 + $0x40] sm:$0xff]  ;;  %v1400_v14 = vld [vmem:[%s1643_s7 + $0x48] sm:$0xff]  ;;  %v1401_v18 = vld [vmem:[%s1643_s7 + $0x50] sm:$0xff] }
  0x11   : > { %1419 = vmatpush.bf16.msra.mxu2 %v1413_v1  ;;  %1420 = vmatpush.bf16.msra.mxu3 %v1413_v1  ;;  %v1403_v11 = vld [vmem:[%s1643_s7 + $0x60] sm:$0xff]  ;;  %v1404_v15 = vld [vmem:[%s1643_s7 + $0x68] sm:$0xff]  ;;  %v1405_v19 = vld [vmem:[%s1643_s7 + $0x70] sm:$0xff] }
  0x12   : > { %v1394_v20 = vld [vmem:[%s1643_s7 + $0x18] sm:$0xff]  ;;  %v1664_v24 = vld [vmem:[%s2421_s2] ss:$0 sm:$0xff] }
  0x13   : > { %v1398_v21 = vld [vmem:[%s1643_s7 + $0x38] sm:$0xff] }
  0x14   : > { %372 = vmatpush.bf16.msra.mxu0 %v1412_v2  ;;  %1421 = vmatpush.bf16.msra.mxu1 %v1412_v2  ;;  %v1402_v22 = vld [vmem:[%s1643_s7 + $0x58] sm:$0xff] }
  0x15   : > { %1422 = vmatpush.bf16.msra.mxu2 %v1412_v2  ;;  %1423 = vmatpush.bf16.msra.mxu3 %v1412_v2  ;;  %v1406_v23 = vld [vmem:[%s1643_s7 + $0x78] sm:$0xff] }
  0x18   : > { %373 = vmatpush.bf16.msra.mxu0 %v1411_v3  ;;  %1424 = vmatpush.bf16.msra.mxu1 %v1411_v3 }
  0x19   : > { %1425 = vmatpush.bf16.msra.mxu2 %v1411_v3  ;;  %1426 = vmatpush.bf16.msra.mxu3 %v1411_v3 }
  0x1c   : > { %374 = vmatpush.bf16.msra.mxu0 %v1410_v4  ;;  %1427 = vmatpush.bf16.msra.mxu1 %v1410_v4 }
  0x1d   : > { %1428 = vmatpush.bf16.msra.mxu2 %v1410_v4  ;;  %1429 = vmatpush.bf16.msra.mxu3 %v1410_v4 }
  0x20   : > { %375 = vmatpush.bf16.msra.mxu0 %v1409_v5  ;;  %1430 = vmatpush.bf16.msra.mxu1 %v1409_v5 }
  0x21   : > { %1431 = vmatpush.bf16.msra.mxu2 %v1409_v5  ;;  %1432 = vmatpush.bf16.msra.mxu3 %v1409_v5 }
  0x24   : > { %376 = vmatpush.bf16.msra.mxu0 %v1408_v6  ;;  %1433 = vmatpush.bf16.msra.mxu1 %v1408_v6 }
  0x25   : > { %1434 = vmatpush.bf16.msra.mxu2 %v1408_v6  ;;  %1435 = vmatpush.bf16.msra.mxu3 %v1408_v6 }
  0x28   : > { %377 = vmatpush.bf16.msra.mxu0 %v1407_v7  ;;  %1436 = vmatpush.bf16.msra.mxu1 %v1407_v7 }
  0x29   : > { %1437 = vmatpush.bf16.msra.mxu2 %v1407_v7  ;;  %1438 = vmatpush.bf16.msra.mxu3 %v1407_v7 }
  0x2b   : > { %378 = vmatmul.bf16.vlgmr.msra.gmra.mxu0 %v1391_v8  ;;  %398 = vmatmul.bf16.vlgmr.msra.gmra.mxu1 %v1395_v9 }
  0x2c   : > { %418 = vmatmul.bf16.vlgmr.msra.gmra.mxu2 %v1399_v10  ;;  %438 = vmatmul.bf16.vlgmr.msra.gmra.mxu3 %v1403_v11 }
  0x3b   : > { %383 = vmatmul.bf16.gmra.mxu0 %v1392_v12  ;;  %403 = vmatmul.bf16.gmra.mxu1 %v1396_v13 }
  0x3c   : > { %423 = vmatmul.bf16.gmra.mxu2 %v1400_v14  ;;  %443 = vmatmul.bf16.gmra.mxu3 %v1404_v15 }
  0x4b   : > { %388 = vmatmul.bf16.gmra.mxu0 %v1393_v16  ;;  %408 = vmatmul.bf16.gmra.mxu1 %v1397_v17 }
  0x4c   : > { %428 = vmatmul.bf16.gmra.mxu2 %v1401_v18  ;;  %448 = vmatmul.bf16.gmra.mxu3 %v1405_v19 }
  0x5b   : > { %393 = vmatmul.bf16.gmra.mxu0 %v1394_v20  ;;  %413 = vmatmul.bf16.gmra.mxu1 %v1398_v21 }
  0x5c   : > { %433 = vmatmul.bf16.gmra.mxu2 %v1402_v22  ;;  %453 = vmatmul.bf16.gmra.mxu3 %v1406_v23 }
  0xa8   : > { %v379_v25 = vpop.f32.mrf.mxu0  ;;  %v399_v26 = vpop.f32.mrf.mxu1 }
  0xa9   : > { %v1667_v27 = vadd.f32 %v1664_v24, %v379_v25  ;;  %v1670_v28 = vadd.f32 %v1664_v24, %v399_v26 }
  0xab   : > { %v459_v29 = vand.u32 2147483647, %v1667_v27  ;;  %v467_v30 = vand.u32 2147483647, %v1670_v28  ;;  %vm587_vm5 = vcmp.ge.f32.partialorder %v1667_v27, 0.0  ;;  %vm595_vm7 = vcmp.ge.f32.partialorder %v1670_v28, 0.0 }
  0xad   : > { %v491_v31 = vsub.f32 0.0, %v459_v29  ;;  %v499_v32 = vsub.f32 0.0, %v467_v30 }
  0xaf   : > { %v523_v33 = vmul.f32 1.442695, %v491_v31  ;;  %v539_v34 = vmul.f32 1.442695, %v499_v32  ;;  %v419_v35 = vpop.f32.mrf.mxu2  ;;  %v439_v36 = vpop.f32.mrf.mxu3 }
  0xb0   : > { %v1675_v37 = vadd.f32 %v1664_v24, %v419_v35  ;;  %v1678_v38 = vadd.f32 %v1664_v24, %v439_v36  ;;  %v381_v39 = vpop.f32.mrf.mxu0  ;;  %v401_v40 = vpop.f32.mrf.mxu1 }
  0xb1   : > { %1448 = vpow2.f32 %v523_v33  ;;  %v1681_v41 = vadd.f32 %v1664_v24, %v381_v39  ;;  %v1684_v42 = vadd.f32 %v1664_v24, %v401_v40 }
  0xb2   : > { %1450 = vpow2.f32 %v539_v34  ;;  %v475_v43 = vand.u32 2147483647, %v1675_v37  ;;  %v483_v44 = vand.u32 2147483647, %v1678_v38  ;;  %vm603_vm15 = vcmp.ge.f32.partialorder %v1675_v37, 0.0 }
  0xb3   : > { %v460_v45 = vand.u32 2147483647, %v1681_v41  ;;  %v468_v46 = vand.u32 2147483647, %v1684_v42 }
  0xb4   : > { %v507_v47 = vsub.f32 0.0, %v475_v43  ;;  %v515_v48 = vsub.f32 0.0, %v483_v44 }
  0xb5   : > { %v492_v49 = vsub.f32 0.0, %v460_v45  ;;  %v500_v50 = vsub.f32 0.0, %v468_v46 }
  0xb6   : > { %v555_v51 = vmul.f32 1.442695, %v507_v47  ;;  %v571_v52 = vmul.f32 1.442695, %v515_v48 }
  0xb7   : > { %v1690_v53 = vpop.eup %1448  ;;  %v421_v54 = vpop.f32.mrf.mxu2  ;;  %v525_v57 = vmul.f32 1.442695, %v492_v49  ;;  %v541_v61 = vmul.f32 1.442695, %v500_v50 }
  0xb8   : > { %v1692_v55 = vpop.eup %1450  ;;  %v1695_v56 = vadd.f32 1.0, %v1690_v53  ;;  %1452 = vpow2.f32 %v555_v51  ;;  %v1698_v58 = vadd.f32 %v1664_v24, %v421_v54  ;;  %v441_v59 = vpop.f32.mrf.mxu3 }
  0xb9   : > { %v1701_v60 = vadd.f32 1.0, %v1692_v55  ;;  %1454 = vpow2.f32 %v571_v52  ;;  %v384_v62 = vpop.f32.mrf.mxu0  ;;  %v1706_v63 = vadd.f32 %v1664_v24, %v441_v59  ;;  %v404_v2 = vpop.f32.mrf.mxu1 }
  0xba   : > { %1456 = vrcp.f32 %v1695_v56  ;;  %v476_v0 = vand.u32 2147483647, %v1698_v58  ;;  %v1710_v1 = vadd.f32 %v1664_v24, %v384_v62  ;;  %v660_v3 = vand.u32 2147483647, %v1695_v56 }
  0xbb   : > { %1458 = vrcp.f32 %v1701_v60  ;;  %v662_v4 = vand.u32 2147483648, %v1695_v56  ;;  %v780_v6 = vand.u32 2147483647, %v1701_v60  ;;  %v782_v7 = vand.u32 2147483648, %v1701_v60 }
  0xbc   : > { %1460 = vpow2.f32 %v525_v57  ;;  %v508_v8 = vsub.f32 0.0, %v476_v0  ;;  %v484_v11 = vand.u32 2147483647, %v1706_v63  ;;  %v1725_v12 = vadd.f32 %v1664_v24, %v404_v2 }
  0xbd   : > { %1462 = vpow2.f32 %v541_v61  ;;  %vm656_vm0 = vweird.f32 %v1695_v56  ;;  %vm776_vm1 = vweird.f32 %v1701_v60  ;;  %v461_v15 = vand.u32 2147483647, %v1710_v1 }
  0xbe   : > { %v1714_v5 = vpop.eup %1452  ;;  %vm1734_vm2 = vcmp.eq.f32.partialorder %v660_v3, 8.507059e+37  ;;  %v663_v19 = vor.u32 1.1754944e-38, %v662_v4  ;;  %vm1742_vm3 = vcmp.eq.f32.partialorder %v780_v6, 8.507059e+37  ;;  %v783_v23 = vor.u32 1.1754944e-38, %v782_v7 }
  0xbf   : > { %v1718_v9 = vpop.eup %1454  ;;  %v1721_v10 = vadd.f32 1.0, %v1714_v5  ;;  %v557_v25 = vmul.f32 1.442695, %v508_v8  ;;  %v516_v30 = vsub.f32 0.0, %v484_v11  ;;  %v469_v31 = vand.u32 2147483647, %v1725_v12 }
  0xc0   : > { %v1457_v13 = vpop.eup %1456  ;;  %v1730_v14 = vadd.f32 1.0, %v1718_v9  ;;  %v1752_v34 = vsub.f32 0.0, %v461_v15 }
  0xc1   : > { %v1459_v16 = vpop.eup %1458  ;;  %v652_v17 = vmul.f32 %v1457_v13, %v1695_v56  ;;  %1464 = vrcp.f32 %v1721_v10  ;;  %vm657_vm6 = vweird.f32 %v1457_v13  ;;  %v900_v33 = vand.u32 2147483647, %v1721_v10 }
  0xc2   : > { %v1739_v20 = vpop.eup %1460  ;;  %v772_v21 = vmul.f32 %v1459_v16, %v1701_v60  ;;  %1466 = vrcp.f32 %v1730_v14  ;;  %v902_v36 = vand.u32 2147483648, %v1721_v10  ;;  %vm777_vm8 = vweird.f32 %v1459_v16  ;;  %vm658_vm10 = vmor %vm656_vm0, %vm657_vm6 }
  0xc3   : > { %v1746_v26 = vpop.eup %1462  ;;  %v653_v29 = vsub.f32 1.0, %v652_v17  ;;  %v1757_v39 = vadd.f32 1.0, %v1739_v20  ;;  %v1020_v44 = vand.u32 2147483647, %v1730_v14  ;;  %1468 = vpow2.f32 %v557_v25  ;;  %vm778_vm13 = vmor %vm776_vm1, %vm777_vm8 }
  0xc4   : > { %v773_v32 = vsub.f32 1.0, %v772_v21  ;;  %v1760_v40 = vadd.f32 1.0, %v1746_v26  ;;  %vm896_vm9 = vweird.f32 %v1721_v10  ;;  %v1022_v47 = vand.u32 2147483648, %v1730_v14 }
  0xc5   : > { %v654_v35 = vmul.f32 %v1457_v13, %v653_v29  ;;  %1470 = vrcp.f32 %v1757_v39  ;;  %vm1771_vm11 = vcmp.eq.f32.partialorder %v900_v33, 8.507059e+37  ;;  %vm1016_vm12 = vweird.f32 %v1730_v14 }
  0xc6   : > { %v774_v43 = vmul.f32 %v1459_v16, %v773_v32  ;;  %v903_v54 = vor.u32 1.1754944e-38, %v902_v36  ;;  %1472 = vrcp.f32 %v1760_v40  ;;  %v573_v56 = vmul.f32 1.442695, %v516_v30 }
  0xc7   : > { %v1465_v45 = vpop.eup %1464  ;;  %v655_v46 = vadd.f32 %v1457_v13, %v654_v35  ;;  %vm1783_vm14 = vcmp.eq.f32.partialorder %v1020_v44, 8.507059e+37  ;;  %v1023_v3 = vor.u32 1.1754944e-38, %v1022_v47  ;;  %v675_v4 = vand.u32 2147483647, %v1757_v39 }
  0xc8   : > { %v775_v48 = vadd.f32 %v1459_v16, %v774_v43  ;;  %v892_v49 = vmul.f32 %v1465_v45, %v1721_v10  ;;  %v1467_v51 = vpop.eup %1466  ;;  %vm897_vm0 = vweird.f32 %v1465_v45  ;;  %vm611_vm1 = vcmp.ge.f32.partialorder %v1678_v38, 0.0 }
  0xc9   : > { %v659_v52 = vsel %vm658_vm10, %v1457_v13, %v655_v46  ;;  %v1012_v62 = vmul.f32 %v1467_v51, %v1730_v14  ;;  %v1797_v6 = vpop.eup %1468  ;;  %1474 = vpow2.f32 %v573_v56  ;;  %vm1817_vm6 = vcmp.eq.f32.partialorder %v675_v4, 8.507059e+37 }
  0xca   : > { %v664_v57 = vsel %vm1734_vm2, %v663_v19, %v659_v52  ;;  %v779_v59 = vsel %vm778_vm13, %v1459_v16, %v775_v48  ;;  %v893_v61 = vsub.f32 1.0, %v892_v49  ;;  %vm1017_vm2 = vweird.f32 %v1467_v51 }
  0xcb   : > { %v1131_v60 = vmul.f32 %v1690_v53, %v664_v57  ;;  %v784_v2 = vsel %vm1742_vm3, %v783_v23, %v779_v59  ;;  %v1013_v11 = vsub.f32 1.0, %v1012_v62  ;;  %v1471_v13 = vpop.eup %1470  ;;  %v1804_v15 = vadd.f32 1.0, %v1797_v6  ;;  %vm898_vm3 = vmor %vm896_vm9, %vm897_vm0 }
  0xcc   : > { %v1139_v7 = vmul.f32 %v1692_v55, %v784_v2  ;;  %v894_v8 = vmul.f32 %v1465_v45, %v893_v61  ;;  %v667_v18 = vmul.f32 %v1471_v13, %v1757_v39  ;;  %v1473_v19 = vpop.eup %1472  ;;  %v677_v28 = vand.u32 2147483648, %v1757_v39 }
  0xcd   : > { %v1163_v53 = vsel %vm587_vm5, %v664_v57, %v1131_v60  ;;  %v1014_v17 = vmul.f32 %v1467_v51, %v1013_v11  ;;  %vm671_vm5 = vweird.f32 %v1757_v39  ;;  %1476 = vrcp.f32 %v1804_v15 }
  0xce   : > { %1196 = vst.msk [vmem:[%s1790_s14] sm:$0xff] %vm1195_vm4, %v1163_v53  ;;  %v1171_v55 = vsel %vm595_vm7, %v784_v2, %v1139_v7  ;;  %v895_v16 = vadd.f32 %v1465_v45, %v894_v8  ;;  %v668_v23 = vsub.f32 1.0, %v667_v18  ;;  %v787_v25 = vmul.f32 %v1473_v19, %v1760_v40  ;;  %vm1018_vm7 = vmor %vm1016_vm12, %vm1017_vm2  ;;  %v406_v53 = vpop.f32.mrf.mxu1 }
  0xcf   : > { %1204 = vst.msk [vmem:[%s1790_s14 + $0x40] sm:$0xff] %vm1195_vm4, %v1171_v55  ;;  %v1015_v22 = vadd.f32 %v1467_v51, %v1014_v17  ;;  %vm588_vm8 = vcmp.ge.f32.partialorder %v1681_v41, 0.0  ;;  %vm672_vm9 = vweird.f32 %v1471_v13  ;;  %vm791_vm10 = vweird.f32 %v1760_v40  ;;  %v1833_v36 = vpop.eup %1474 }
  0xd0   : > { %v899_v21 = vsel %vm898_vm3, %v1465_v45, %v895_v16  ;;  %v795_v10 = vand.u32 2147483647, %v1760_v40  ;;  %v669_v33 = vmul.f32 %v1471_v13, %v668_v23  ;;  %v788_v35 = vsub.f32 1.0, %v787_v25  ;;  %vm673_vm12 = vmor %vm671_vm5, %vm672_vm9 }
  0xd1   : > { %v904_v29 = vsel %vm1771_vm11, %v903_v54, %v899_v21  ;;  %v1019_v32 = vsel %vm1018_vm7, %v1467_v51, %v1015_v22  ;;  %vm792_vm11 = vweird.f32 %v1473_v19  ;;  %v797_v14 = vand.u32 2147483648, %v1760_v40  ;;  %v424_v54 = vpop.f32.mrf.mxu2  ;;  %v444_v40 = vpop.f32.mrf.mxu3 }
  0xd2   : > { %v1147_v30 = vmul.f32 %v1714_v5, %v904_v29  ;;  %v1024_v43 = vsel %vm1783_vm14, %v1023_v3, %v1019_v32  ;;  %v527_v44 = vmul.f32 1.442695, %v1752_v34  ;;  %v670_v5 = vadd.f32 %v1471_v13, %v669_v33  ;;  %vm793_vm13 = vmor %vm791_vm10, %vm792_vm11 }
  0xd3   : > { %v1155_v46 = vmul.f32 %v1718_v9, %v1024_v43  ;;  %v789_v47 = vmul.f32 %v1473_v19, %v788_v35  ;;  %v1477_v48 = vpop.eup %1476  ;;  %v678_v49 = vor.u32 1.1754944e-38, %v677_v28  ;;  %v1848_v50 = vadd.f32 1.0, %v1833_v36 }
  0xd4   : > { %v1179_v45 = vsel %vm603_vm15, %v904_v29, %v1147_v30  ;;  %1478 = vpow2.f32 %v527_v44  ;;  %v501_v37 = vsub.f32 0.0, %v469_v31  ;;  %v674_v34 = vsel %vm673_vm12, %v1471_v13, %v670_v5 }
  0xd5   : > { %1212 = vst.msk [vmem:[%s1790_s14 + $0x80] sm:$0xff] %vm1195_vm4, %v1179_v45  ;;  %v1187_v9 = vsel %vm611_vm1, %v1024_v43, %v1155_v46  ;;  %v790_v51 = vadd.f32 %v1473_v19, %v789_v47  ;;  %v907_v52 = vmul.f32 %v1477_v48, %v1804_v15  ;;  %v679_v39 = vsel %vm1817_vm6, %v678_v49, %v674_v34 }
  0xd6   : > { %1220 = vst.msk [vmem:[%s1790_s14 + $0xc0] sm:$0xff] %vm1195_vm4, %v1187_v9  ;;  %vm796_vm14 = vcmp.eq.f32.partialorder %v795_v10, 8.507059e+37  ;;  %v798_v56 = vor.u32 1.1754944e-38, %v797_v14  ;;  %1480 = vrcp.f32 %v1848_v50  ;;  %v1132_v38 = vmul.f32 %v1739_v20, %v679_v39  ;;  %v386_v20 = vpop.f32.mrf.mxu0 }
  0xd7   : > { %v794_v31 = vsel %vm793_vm13, %v1473_v19, %v790_v51  ;;  %v908_v57 = vsub.f32 1.0, %v907_v52  ;;  %v915_v59 = vand.u32 2147483647, %v1804_v15  ;;  %v917_v62 = vand.u32 2147483648, %v1804_v15 }
  0xd8   : > { %v799_v61 = vsel %vm796_vm14, %v798_v56, %v794_v31  ;;  %v543_v0 = vmul.f32 1.442695, %v501_v37  ;;  %v1867_v60 = vadd.f32 %v1664_v24, %v424_v54  ;;  %v1164_v2 = vsel %vm588_vm8, %v679_v39, %v1132_v38 }
  0xd9   : > { %v1140_v3 = vmul.f32 %v1746_v26, %v799_v61  ;;  %v909_v4 = vmul.f32 %v1477_v48, %v908_v57  ;;  %vm912_vm15 = vweird.f32 %v1477_v48  ;;  %1197 = vst.msk [vmem:[%s1790_s14 + $0x8] sm:$0xff] %vm1195_vm4, %v1164_v2  ;;  %vm596_vm0 = vcmp.ge.f32.partialorder %v1684_v42, 0.0 }
  0xda   : > { %v1872_v7 = vpop.eup %1478  ;;  %vm911_vm1 = vweird.f32 %v1804_v15  ;;  %1482 = vpow2.f32 %v543_v0  ;;  %v477_v8 = vand.u32 2147483647, %v1867_v60  ;;  %v1883_v26 = vadd.f32 %v1664_v24, %v444_v40 }
  0xdb   : > { %v1172_v11 = vsel %vm596_vm0, %v799_v61, %v1140_v3  ;;  %v910_v41 = vadd.f32 %v1477_v48, %v909_v4  ;;  %v1880_v13 = vadd.f32 1.0, %v1872_v7  ;;  %vm913_vm2 = vmor %vm911_vm1, %vm912_vm15  ;;  %v918_v42 = vor.u32 1.1754944e-38, %v917_v62 }
  0xdc   : > { %v1481_v55 = vpop.eup %1480  ;;  %1205 = vst.msk [vmem:[%s1790_s14 + $0x48] sm:$0xff] %vm1195_vm4, %v1172_v11  ;;  %v509_v16 = vsub.f32 0.0, %v477_v8  ;;  %v1889_v15 = vadd.f32 %v1664_v24, %v386_v20  ;;  %vm916_vm3 = vcmp.eq.f32.partialorder %v915_v59, 8.507059e+37  ;;  %v1035_v27 = vand.u32 2147483647, %v1848_v50  ;;  %v446_v59 = vpop.f32.mrf.mxu3 }
  0xdd   : > { %v914_v17 = vsel %vm913_vm2, %v1477_v48, %v910_v41  ;;  %v1027_v18 = vmul.f32 %v1481_v55, %v1848_v50  ;;  %1484 = vrcp.f32 %v1880_v13  ;;  %v1895_v28 = vadd.f32 %v1664_v24, %v406_v53 }
  0xde   : > { %v919_v19 = vsel %vm916_vm3, %v918_v42, %v914_v17  ;;  %v559_v23 = vmul.f32 1.442695, %v509_v16  ;;  %v485_v25 = vand.u32 2147483647, %v1883_v26  ;;  %vm604_vm5 = vcmp.ge.f32.partialorder %v1698_v58, 0.0 }
  0xdf   : > { %v1148_v21 = vmul.f32 %v1797_v6, %v919_v19  ;;  %v1028_v22 = vsub.f32 1.0, %v1027_v18  ;;  %vm1032_vm6 = vweird.f32 %v1481_v55  ;;  %v1037_v10 = vand.u32 2147483648, %v1848_v50  ;;  %v426_v6 = vpop.f32.mrf.mxu2  ;;  %v389_v18 = vpop.f32.mrf.mxu0 }
  0xe0   : > { %v1899_v29 = vpop.eup %1482  ;;  %v462_v30 = vand.u32 2147483647, %v1889_v15  ;;  %1486 = vpow2.f32 %v559_v23  ;;  %vm612_vm7 = vcmp.ge.f32.partialorder %v1706_v63, 0.0  ;;  %v517_v43 = vsub.f32 0.0, %v485_v25 }
  0xe1   : > { %v1180_v32 = vsel %vm604_vm5, %v919_v19, %v1148_v21  ;;  %v1029_v33 = vmul.f32 %v1481_v55, %v1028_v22  ;;  %v1905_v35 = vadd.f32 1.0, %v1899_v29  ;;  %v470_v58 = vand.u32 2147483647, %v1895_v28 }
  0xe2   : > { %1213 = vst.msk [vmem:[%s1790_s14 + $0x88] sm:$0xff] %vm1195_vm4, %v1180_v32  ;;  %v494_v14 = vsub.f32 0.0, %v462_v30  ;;  %vm1031_vm8 = vweird.f32 %v1848_v50  ;;  %vm1036_vm9 = vcmp.eq.f32.partialorder %v1035_v27, 8.507059e+37  ;;  %v1038_v46 = vor.u32 1.1754944e-38, %v1037_v10 }
  0xe3   : > { %v1485_v44 = vpop.eup %1484  ;;  %v1030_v45 = vadd.f32 %v1481_v55, %v1029_v33  ;;  %1488 = vrcp.f32 %v1905_v35  ;;  %vm1033_vm10 = vmor %vm1031_vm8, %vm1032_vm6  ;;  %v575_v47 = vmul.f32 1.442695, %v517_v43  ;;  %v1916_v48 = vadd.f32 %v1664_v24, %v426_v6 }
  0xe4   : > { %v682_v5 = vmul.f32 %v1485_v44, %v1880_v13  ;;  %vm686_vm11 = vweird.f32 %v1880_v13  ;;  %v529_v37 = vmul.f32 1.442695, %v494_v14  ;;  %v502_v9 = vsub.f32 0.0, %v470_v58 }
  0xe5   : > { %v1034_v49 = vsel %vm1033_vm10, %v1481_v55, %v1030_v45  ;;  %v690_v50 = vand.u32 2147483647, %v1880_v13  ;;  %1490 = vpow2.f32 %v575_v47  ;;  %v692_v39 = vand.u32 2147483648, %v1880_v13 }
  0xe6   : > { %v1039_v34 = vsel %vm1036_vm9, %v1038_v46, %v1034_v49  ;;  %v683_v51 = vsub.f32 1.0, %v682_v5  ;;  %v1920_v52 = vpop.eup %1486  ;;  %1492 = vpow2.f32 %v529_v37  ;;  %v545_v56 = vmul.f32 1.442695, %v502_v9  ;;  %v449_v46 = vpop.f32.mrf.mxu3 }
  0xe7   : > { %v1156_v54 = vmul.f32 %v1833_v36, %v1039_v34  ;;  %vm687_vm12 = vweird.f32 %v1485_v44  ;;  %v1925_v31 = vadd.f32 1.0, %v1920_v52  ;;  %v478_v57 = vand.u32 2147483647, %v1916_v48 }
  0xe8   : > { %v684_v38 = vmul.f32 %v1485_v44, %v683_v51  ;;  %v810_v0 = vand.u32 2147483647, %v1905_v35  ;;  %1494 = vpow2.f32 %v545_v56  ;;  %vm589_vm13 = vcmp.ge.f32.partialorder %v1710_v1, 0.0  ;;  %vm688_vm14 = vmor %vm686_vm11, %vm687_vm12 }
  0xe9   : > { %v1489_v61 = vpop.eup %1488  ;;  %v1188_v62 = vsel %vm612_vm7, %v1039_v34, %v1156_v54  ;;  %1496 = vrcp.f32 %v1925_v31  ;;  %v693_v2 = vor.u32 1.1754944e-38, %v692_v39  ;;  %v510_v3 = vsub.f32 0.0, %v478_v57 }
  0xea   : > { %1221 = vst.msk [vmem:[%s1790_s14 + $0xc8] sm:$0xff] %vm1195_vm4, %v1188_v62  ;;  %v685_v36 = vadd.f32 %v1485_v44, %v684_v38  ;;  %v802_v40 = vmul.f32 %v1489_v61, %v1905_v35  ;;  %v1939_v63 = vadd.f32 %v1664_v24, %v446_v59  ;;  %vm691_vm15 = vcmp.eq.f32.partialorder %v690_v50, 8.507059e+37  ;;  %v409_v50 = vpop.f32.mrf.mxu1 }
  0xeb   : > { %v1941_v4 = vpop.eup %1490  ;;  %vm806_vm0 = vweird.f32 %v1905_v35  ;;  %vm597_vm1 = vcmp.ge.f32.partialorder %v1725_v12, 0.0  ;;  %vm1947_vm2 = vcmp.eq.f32.partialorder %v810_v0, 8.507059e+37  ;;  %v812_v53 = vand.u32 2147483648, %v1905_v35 }
  0xec   : > { %v689_v20 = vsel %vm688_vm14, %v1485_v44, %v685_v36  ;;  %v803_v8 = vsub.f32 1.0, %v802_v40  ;;  %v1944_v11 = vpop.eup %1492  ;;  %v1953_v55 = vadd.f32 1.0, %v1941_v4  ;;  %vm807_vm3 = vweird.f32 %v1489_v61 }
  0xed   : > { %v694_v41 = vsel %vm691_vm15, %v693_v2, %v689_v20  ;;  %v1957_v17 = vadd.f32 1.0, %v1944_v11  ;;  %v930_v27 = vand.u32 2147483647, %v1925_v31  ;;  %v561_v21 = vmul.f32 1.442695, %v510_v3  ;;  %vm808_vm5 = vmor %vm806_vm0, %vm807_vm3 }
  0xee   : > { %v1133_v42 = vmul.f32 %v1872_v7, %v694_v41  ;;  %v804_v16 = vmul.f32 %v1489_v61, %v803_v8  ;;  %v1959_v19 = vpop.eup %1494  ;;  %1498 = vrcp.f32 %v1953_v55  ;;  %v486_v22 = vand.u32 2147483647, %v1939_v63 }
  0xef   : > { %v1497_v23 = vpop.eup %1496  ;;  %v932_v10 = vand.u32 2147483648, %v1925_v31  ;;  %1500 = vrcp.f32 %v1957_v17  ;;  %v813_v30 = vor.u32 1.1754944e-38, %v812_v53  ;;  %vm926_vm6 = vweird.f32 %v1925_v31 }
  0xf0   : > { %v1165_v25 = vsel %vm589_vm13, %v694_v41, %v1133_v42  ;;  %v805_v7 = vadd.f32 %v1489_v61, %v804_v16  ;;  %v922_v32 = vmul.f32 %v1497_v23, %v1925_v31  ;;  %v1975_v33 = vadd.f32 %v1664_v24, %v389_v18 }
  0xf1   : > { %1198 = vst.msk [vmem:[%s1790_s14 + $0x10] sm:$0xff] %vm1195_vm4, %v1165_v25  ;;  %v1050_v6 = vand.u32 2147483647, %v1953_v55  ;;  %v1052_v43 = vand.u32 2147483648, %v1953_v55  ;;  %v1980_v14 = vadd.f32 1.0, %v1959_v19  ;;  %1502 = vpow2.f32 %v561_v21 }
  0xf2   : > { %v809_v1 = vsel %vm808_vm5, %v1489_v61, %v805_v7  ;;  %v923_v58 = vsub.f32 1.0, %v922_v32  ;;  %v518_v44 = vsub.f32 0.0, %v486_v22  ;;  %vm605_vm7 = vcmp.ge.f32.partialorder %v1867_v60, 0.0 }
  0xf3   : > { %v814_v35 = vsel %vm1947_vm2, %v813_v30, %v809_v1  ;;  %vm1986_vm8 = vcmp.eq.f32.partialorder %v930_v27, 8.507059e+37  ;;  %v933_v5 = vor.u32 1.1754944e-38, %v932_v10  ;;  %1504 = vrcp.f32 %v1980_v14 }
  0xf4   : > { %v1141_v45 = vmul.f32 %v1899_v29, %v814_v35  ;;  %v1499_v47 = vpop.eup %1498  ;;  %v924_v49 = vmul.f32 %v1497_v23, %v923_v58  ;;  %vm927_vm9 = vweird.f32 %v1497_v23  ;;  %vm1046_vm10 = vweird.f32 %v1953_v55 }
  0xf5   : > { %vm701_vm11 = vweird.f32 %v1957_v17  ;;  %v1501_v37 = vpop.eup %1500  ;;  %v1042_v9 = vmul.f32 %v1499_v47, %v1953_v55  ;;  %vm1996_vm12 = vcmp.eq.f32.partialorder %v1050_v6, 8.507059e+37  ;;  %v577_v51 = vmul.f32 1.442695, %v518_v44  ;;  %vm928_vm13 = vmor %vm926_vm6, %vm927_vm9 }
  0xf6   : > { %v1173_v29 = vsel %vm597_vm1, %v814_v35, %v1141_v45  ;;  %v925_v54 = vadd.f32 %v1497_v23, %v924_v49  ;;  %v1053_v39 = vor.u32 1.1754944e-38, %v1052_v43  ;;  %v697_v56 = vmul.f32 %v1501_v37, %v1957_v17  ;;  %v429_v45 = vpop.f32.mrf.mxu2 }
  0xf7   : > { %1206 = vst.msk [vmem:[%s1790_s14 + $0x50] sm:$0xff] %vm1195_vm4, %v1173_v29  ;;  %v705_v38 = vand.u32 2147483647, %v1957_v17  ;;  %v1043_v12 = vsub.f32 1.0, %v1042_v9  ;;  %v707_v57 = vand.u32 2147483648, %v1957_v17  ;;  %1506 = vpow2.f32 %v577_v51  ;;  %v2008_v61 = vpop.eup %1502 }
  0xf8   : > { %v463_v59 = vand.u32 2147483647, %v1975_v33  ;;  %v929_v62 = vsel %vm928_vm13, %v1497_v23, %v925_v54  ;;  %vm613_vm14 = vcmp.ge.f32.partialorder %v1883_v26, 0.0  ;;  %vm1047_vm15 = vweird.f32 %v1499_v47 }
  0xf9   : > { %v698_v0 = vsub.f32 1.0, %v697_v56  ;;  %v2012_v36 = vadd.f32 %v1664_v24, %v409_v50  ;;  %v1505_v40 = vpop.eup %1504  ;;  %v934_v31 = vsel %vm1986_vm8, %v933_v5, %v929_v62  ;;  %v1044_v2 = vmul.f32 %v1499_v47, %v1043_v12  ;;  %vm1048_vm2 = vmor %vm1046_vm10, %vm1047_vm15 }
  0xfa   : > { %v2017_v3 = vadd.f32 1.0, %v2008_v61  ;;  %v495_v20 = vsub.f32 0.0, %v463_v59  ;;  %v1149_v8 = vmul.f32 %v1920_v52, %v934_v31  ;;  %vm702_vm0 = vweird.f32 %v1501_v37 }
  0xfb   : > { %v699_v41 = vmul.f32 %v1501_v37, %v698_v0  ;;  %v817_v13 = vmul.f32 %v1505_v40, %v1980_v14  ;;  %v1045_v53 = vadd.f32 %v1499_v47, %v1044_v2  ;;  %vm2021_vm1 = vcmp.eq.f32.partialorder %v705_v38, 8.507059e+37  ;;  %vm703_vm3 = vmor %vm701_vm11, %vm702_vm0  ;;  %v411_v38 = vpop.f32.mrf.mxu1 }
  0xfc   : > { %v708_v16 = vor.u32 1.1754944e-38, %v707_v57  ;;  %1508 = vrcp.f32 %v2017_v3  ;;  %v1181_v18 = vsel %vm605_vm7, %v934_v31, %v1149_v8  ;;  %v825_v21 = vand.u32 2147483647, %v1980_v14 }
  0xfd   : > { %v700_v52 = vadd.f32 %v1501_v37, %v699_v41  ;;  %v818_v27 = vsub.f32 1.0, %v817_v13  ;;  %v2032_v22 = vpop.eup %1506  ;;  %1214 = vst.msk [vmem:[%s1790_s14 + $0x90] sm:$0xff] %vm1195_vm4, %v1181_v18  ;;  %v1049_v23 = vsel %vm1048_vm2, %v1499_v47, %v1045_v53  ;;  %v827_v25 = vand.u32 2147483648, %v1980_v14  ;;  %v391_v47 = vpop.f32.mrf.mxu0 }
  0xfe   : > { %v531_v60 = vmul.f32 1.442695, %v495_v20  ;;  %v471_v7 = vand.u32 2147483647, %v2012_v36  ;;  %v1054_v55 = vsel %vm1996_vm12, %v1053_v39, %v1049_v23  ;;  %vm822_vm5 = vweird.f32 %v1505_v40 }
  0xff   : > { %v704_v10 = vsel %vm703_vm3, %v1501_v37, %v700_v52  ;;  %v819_v30 = vmul.f32 %v1505_v40, %v818_v27  ;;  %v1157_v32 = vmul.f32 %v1941_v4, %v1054_v55  ;;  %v2046_v17 = vadd.f32 1.0, %v2032_v22 }
 0x100   : > { %v709_v1 = vsel %vm2021_vm1, %v708_v16, %v704_v10  ;;  %1510 = vpow2.f32 %v531_v60  ;;  %vm821_vm6 = vweird.f32 %v1980_v14  ;;  %v503_v35 = vsub.f32 0.0, %v471_v7  ;;  %v431_v10 = vpop.f32.mrf.mxu2 }
 0x101   : > { %v1134_v6 = vmul.f32 %v1944_v11, %v709_v1  ;;  %v820_v43 = vadd.f32 %v1505_v40, %v819_v30  ;;  %v1189_v44 = vsel %vm613_vm14, %v1054_v55, %v1157_v32  ;;  %vm590_vm7 = vcmp.ge.f32.partialorder %v1889_v15, 0.0  ;;  %vm823_vm8 = vmor %vm821_vm6, %vm822_vm5 }
 0x102   : > { %v1509_v58 = vpop.eup %1508  ;;  %v828_v4 = vor.u32 1.1754944e-38, %v827_v25  ;;  %1512 = vrcp.f32 %v2046_v17  ;;  %1222 = vst.msk [vmem:[%s1790_s14 + $0xd0] sm:$0xff] %vm1195_vm4, %v1189_v44  ;;  %vm826_vm9 = vcmp.eq.f32.partialorder %v825_v21, 8.507059e+37  ;;  %vm598_vm10 = vcmp.ge.f32.partialorder %v1895_v28, 0.0 }
 0x103   : > { %v1166_v11 = vsel %vm590_vm7, %v709_v1, %v1134_v6  ;;  %v824_v5 = vsel %vm823_vm8, %v1505_v40, %v820_v43  ;;  %v937_v14 = vmul.f32 %v1509_v58, %v2017_v3  ;;  %v945_v15 = vand.u32 2147483647, %v2017_v3 }
 0x104   : > { %1199 = vst.msk [vmem:[%s1790_s14 + $0x18] sm:$0xff] %vm1195_vm4, %v1166_v11  ;;  %v829_v26 = vsel %vm826_vm9, %v828_v4, %v824_v5  ;;  %v547_v49 = vmul.f32 1.442695, %v503_v35  ;;  %v2063_v9 = vadd.f32 %v1664_v24, %v429_v45  ;;  %v2066_v34 = vadd.f32 %v1664_v24, %v449_v46  ;;  %v451_v5 = vpop.f32.mrf.mxu3 }
 0x105   : > { %v1142_v37 = vmul.f32 %v1959_v19, %v829_v26  ;;  %v938_v29 = vsub.f32 1.0, %v937_v14  ;;  %vm942_vm11 = vweird.f32 %v1509_v58  ;;  %v947_v50 = vand.u32 2147483648, %v2017_v3 }
 0x106   : > { %v2068_v51 = vpop.eup %1510  ;;  %1514 = vpow2.f32 %v547_v49  ;;  %v2072_v28 = vadd.f32 %v1664_v24, %v391_v47  ;;  %v479_v56 = vand.u32 2147483647, %v2063_v9  ;;  %vm941_vm12 = vweird.f32 %v2017_v3 }
 0x107   : > { %v1174_v54 = vsel %vm598_vm10, %v829_v26, %v1142_v37  ;;  %v939_v39 = vmul.f32 %v1509_v58, %v938_v29  ;;  %v2075_v19 = vadd.f32 1.0, %v2068_v51  ;;  %v487_v57 = vand.u32 2147483647, %v2066_v34  ;;  %vm943_vm14 = vmor %vm941_vm12, %vm942_vm11 }
 0x108   : > { %v1513_v12 = vpop.eup %1512  ;;  %1207 = vst.msk [vmem:[%s1790_s14 + $0x58] sm:$0xff] %vm1195_vm4, %v1174_v54  ;;  %vm946_vm13 = vcmp.eq.f32.partialorder %v945_v15, 8.507059e+37  ;;  %v948_v0 = vor.u32 1.1754944e-38, %v947_v50  ;;  %v1065_v40 = vand.u32 2147483647, %v2046_v17  ;;  %v511_v31 = vsub.f32 0.0, %v479_v56 }
 0x109   : > { %v940_v59 = vadd.f32 %v1509_v58, %v939_v39  ;;  %v1057_v62 = vmul.f32 %v1513_v12, %v2046_v17  ;;  %1516 = vrcp.f32 %v2075_v19  ;;  %v2087_v2 = vadd.f32 %v1664_v24, %v411_v38  ;;  %v394_v38 = vpop.f32.mrf.mxu0 }
 0x10a   : > { %v519_v3 = vsub.f32 0.0, %v487_v57  ;;  %v464_v41 = vand.u32 2147483647, %v2072_v28  ;;  %vm1062_vm15 = vweird.f32 %v1513_v12  ;;  %v1067_v42 = vand.u32 2147483648, %v2046_v17 }
 0x10b   : > { %v944_v20 = vsel %vm943_vm14, %v1509_v58, %v940_v59  ;;  %v1058_v8 = vsub.f32 1.0, %v1057_v62  ;;  %v563_v16 = vmul.f32 1.442695, %v511_v31  ;;  %vm606_vm0 = vcmp.ge.f32.partialorder %v1916_v48, 0.0 }
 0x10c   : > { %v2090_v13 = vpop.eup %1514  ;;  %v949_v53 = vsel %vm946_vm13, %v948_v0, %v944_v20  ;;  %v579_v21 = vmul.f32 1.442695, %v519_v3  ;;  %v496_v23 = vsub.f32 0.0, %v464_v41  ;;  %v472_v25 = vand.u32 2147483647, %v2087_v2 }
 0x10d   : > { %v1150_v18 = vmul.f32 %v2008_v61, %v949_v53  ;;  %v1059_v52 = vmul.f32 %v1513_v12, %v1058_v8  ;;  %v2095_v27 = vadd.f32 1.0, %v2090_v13  ;;  %1518 = vpow2.f32 %v563_v16  ;;  %v2158_v41 = vld [vmem:[%s2421_s2] ss:$0 sm:$0xff] }
 0x10e   : > { %vm1061_vm1 = vweird.f32 %v2046_v17  ;;  %vm614_vm2 = vcmp.ge.f32.partialorder %v1939_v63, 0.0  ;;  %vm1066_vm5 = vcmp.eq.f32.partialorder %v1065_v40, 8.507059e+37  ;;  %v1068_v61 = vor.u32 1.1754944e-38, %v1067_v42  ;;  %v414_v40 = vpop.f32.mrf.mxu1 }
 0x10f   : > { %v1517_v60 = vpop.eup %1516  ;;  %v1182_v7 = vsel %vm606_vm0, %v949_v53, %v1150_v18  ;;  %v1060_v55 = vadd.f32 %v1513_v12, %v1059_v52  ;;  %1520 = vrcp.f32 %v2095_v27  ;;  %vm1063_vm3 = vmor %vm1061_vm1, %vm1062_vm15  ;;  %v533_v32 = vmul.f32 1.442695, %v496_v23 }
 0x110   : > { %1215 = vst.msk [vmem:[%s1790_s14 + $0x98] sm:$0xff] %vm1195_vm4, %v1182_v7  ;;  %v712_v48 = vmul.f32 %v1517_v60, %v2075_v19  ;;  %1522 = vpow2.f32 %v579_v21  ;;  %v504_v1 = vsub.f32 0.0, %v472_v25  ;;  %v720_v17 = vand.u32 2147483647, %v2075_v19 }
 0x111   : > { %v1064_v30 = vsel %vm1063_vm3, %v1513_v12, %v1060_v55  ;;  %v722_v35 = vand.u32 2147483648, %v2075_v19  ;;  %1524 = vpow2.f32 %v533_v32  ;;  %v2110_v4 = vadd.f32 %v1664_v24, %v431_v10 }
 0x112   : > { %v1069_v6 = vsel %vm1066_vm5, %v1068_v61, %v1064_v30  ;;  %v713_v43 = vsub.f32 1.0, %v712_v48  ;;  %v549_v44 = vmul.f32 1.442695, %v504_v1  ;;  %vm716_vm6 = vweird.f32 %v2075_v19 }
 0x113   : > { %v1158_v58 = vmul.f32 %v2032_v22, %v1069_v6  ;;  %v2112_v45 = vpop.eup %1518  ;;  %vm717_vm7 = vweird.f32 %v1517_v60  ;;  %v840_v11 = vand.u32 2147483647, %v2095_v27  ;;  %v842_v22 = vand.u32 2147483648, %v2095_v27 }
 0x114   : > { %v714_v46 = vmul.f32 %v1517_v60, %v713_v43  ;;  %v2120_v26 = vadd.f32 1.0, %v2112_v45  ;;  %1526 = vpow2.f32 %v549_v44  ;;  %vm591_vm8 = vcmp.ge.f32.partialorder %v1975_v33, 0.0  ;;  %vm718_vm9 = vmor %vm716_vm6, %vm717_vm7 }
 0x115   : > { %v1521_v14 = vpop.eup %1520  ;;  %v1190_v47 = vsel %vm614_vm2, %v1069_v6, %v1158_v58  ;;  %v480_v37 = vand.u32 2147483647, %v2110_v4  ;;  %vm721_vm10 = vcmp.eq.f32.partialorder %v720_v17, 8.507059e+37  ;;  %v723_v63 = vor.u32 1.1754944e-38, %v722_v35 }
 0x116   : > { %1223 = vst.msk [vmem:[%s1790_s14 + $0xd8] sm:$0xff] %vm1195_vm4, %v1190_v47  ;;  %v715_v15 = vadd.f32 %v1517_v60, %v714_v46  ;;  %v832_v49 = vmul.f32 %v1521_v14, %v2095_v27  ;;  %v2127_v29 = vpop.eup %1522  ;;  %1528 = vrcp.f32 %v2120_v26  ;;  %v2133_v50 = vadd.f32 %v1664_v24, %v451_v5 }
 0x117   : > { %vm836_vm11 = vweird.f32 %v2095_v27  ;;  %v2137_v56 = vadd.f32 1.0, %v2127_v29  ;;  %v2139_v12 = vpop.eup %1524  ;;  %vm599_vm12 = vcmp.ge.f32.partialorder %v2012_v36, 0.0  ;;  %vm837_vm13 = vweird.f32 %v1521_v14 }
 0x118   : > { %v719_v54 = vsel %vm718_vm9, %v1517_v60, %v715_v15  ;;  %v833_v39 = vsub.f32 1.0, %v832_v49  ;;  %vm2142_vm14 = vcmp.eq.f32.partialorder %v840_v11, 8.507059e+37  ;;  %v843_v24 = vor.u32 1.1754944e-38, %v842_v22  ;;  %vm838_vm15 = vmor %vm836_vm11, %vm837_vm13 }
 0x119   : > { %v724_v57 = vsel %vm721_vm10, %v723_v63, %v719_v54  ;;  %1530 = vrcp.f32 %v2137_v56  ;;  %v512_v0 = vsub.f32 0.0, %v480_v37  ;;  %v960_v20 = vand.u32 2147483647, %v2120_v26 }
 0x11a   : > { %v1135_v59 = vmul.f32 %v2068_v51, %v724_v57  ;;  %v834_v62 = vmul.f32 %v1521_v14, %v833_v39  ;;  %v2148_v31 = vpop.eup %1526  ;;  %v2152_v8 = vadd.f32 1.0, %v2139_v12  ;;  %v488_v3 = vand.u32 2147483647, %v2133_v50 }
 0x11b   : > { %v2161_v51 = vadd.f32 %v2158_v41, %v394_v38  ;;  %v962_v16 = vand.u32 2147483648, %v2120_v26  ;;  %v2167_v18 = vadd.f32 1.0, %v2148_v31  ;;  %v1080_v21 = vand.u32 2147483647, %v2137_v56 }
 0x11c   : > { %v1167_v53 = vsel %vm591_vm8, %v724_v57, %v1135_v59  ;;  %v835_v42 = vadd.f32 %v1521_v14, %v834_v62  ;;  %v1529_v52 = vpop.eup %1528  ;;  %v1082_v23 = vand.u32 2147483648, %v2137_v56  ;;  %1532 = vrcp.f32 %v2152_v8 }
 0x11d   : > { %1200 = vst.msk [vmem:[%s1790_s14 + $0x20] sm:$0xff] %vm1195_vm4, %v1167_v53  ;;  %v2178_v33 = vadd.f32 %v2158_v41, %v414_v40  ;;  %v952_v60 = vmul.f32 %v1529_v52, %v2120_v26  ;;  %vm956_vm0 = vweird.f32 %v2120_v26  ;;  %v565_v7 = vmul.f32 1.442695, %v512_v0 }
 0x11e   : > { %v839_v25 = vsel %vm838_vm15, %v1521_v14, %v835_v42  ;;  %vm2184_vm1 = vcmp.eq.f32.partialorder %v960_v20, 8.507059e+37  ;;  %1534 = vrcp.f32 %v2167_v18  ;;  %v520_v61 = vsub.f32 0.0, %v488_v3 }
 0x11f   : > { %v844_v55 = vsel %vm2142_vm14, %v843_v24, %v839_v25  ;;  %v1531_v48 = vpop.eup %1530  ;;  %v953_v30 = vsub.f32 1.0, %v952_v60  ;;  %v963_v32 = vor.u32 1.1754944e-38, %v962_v16  ;;  %vm1076_vm2 = vweird.f32 %v2137_v56 }
 0x120   : > { %v1143_v10 = vmul.f32 %v2090_v13, %v844_v55  ;;  %vm607_vm3 = vcmp.ge.f32.partialorder %v2063_v9, 0.0  ;;  %vm957_vm5 = vweird.f32 %v1529_v52  ;;  %v1072_v1 = vmul.f32 %v1531_v48, %v2137_v56 }
 0x121   : > { %vm2193_vm6 = vcmp.eq.f32.partialorder %v1080_v21, 8.507059e+37  ;;  %v1083_v43 = vor.u32 1.1754944e-38, %v1082_v23  ;;  %v954_v35 = vmul.f32 %v1529_v52, %v953_v30  ;;  %v735_v13 = vand.u32 2147483647, %v2152_v8  ;;  %vm958_vm10 = vmor %vm956_vm0, %vm957_vm5 }
 0x122   : > { %v1175_v17 = vsel %vm599_vm12, %v844_v55, %v1143_v10  ;;  %1536 = vpow2.f32 %v565_v7  ;;  %v1533_v58 = vpop.eup %1532  ;;  %v1073_v44 = vsub.f32 1.0, %v1072_v1  ;;  %vm731_vm7 = vweird.f32 %v2152_v8 }
 0x123   : > { %1208 = vst.msk [vmem:[%s1790_s14 + $0x60] sm:$0xff] %vm1195_vm4, %v1175_v17  ;;  %v737_v46 = vand.u32 2147483648, %v2152_v8  ;;  %v581_v11 = vmul.f32 1.442695, %v520_v61  ;;  %v955_v5 = vadd.f32 %v1529_v52, %v954_v35  ;;  %vm615_vm8 = vcmp.ge.f32.partialorder %v2066_v34, 0.0  ;;  %v396_v34 = vpop.f32.mrf.mxu0 }
 0x124   : > { %v727_v14 = vmul.f32 %v1533_v58, %v2152_v8  ;;  %vm851_vm9 = vweird.f32 %v2167_v18  ;;  %v855_v36 = vand.u32 2147483647, %v2167_v18  ;;  %v465_v47 = vand.u32 2147483647, %v2161_v51  ;;  %v1535_v22 = vpop.eup %1534  ;;  %v434_v8 = vpop.f32.mrf.mxu2 }
 0x125   : > { %v1074_v15 = vmul.f32 %v1531_v48, %v1073_v44  ;;  %vm1077_vm11 = vweird.f32 %v1531_v48  ;;  %1538 = vpow2.f32 %v581_v11  ;;  %v473_v49 = vand.u32 2147483647, %v2178_v33 }
 0x126   : > { %v959_v37 = vsel %vm958_vm10, %v1529_v52, %v955_v5  ;;  %v728_v63 = vsub.f32 1.0, %v727_v14  ;;  %v847_v54 = vmul.f32 %v1535_v22, %v2167_v18  ;;  %v857_v39 = vand.u32 2147483648, %v2167_v18  ;;  %vm1078_vm13 = vmor %vm1076_vm2, %vm1077_vm11 }
 0x127   : > { %v964_v38 = vsel %vm2184_vm1, %v963_v32, %v959_v37  ;;  %v1075_v57 = vadd.f32 %v1531_v48, %v1074_v15  ;;  %vm732_vm12 = vweird.f32 %v1533_v58  ;;  %v497_v19 = vsub.f32 0.0, %v465_v47  ;;  %v416_v47 = vpop.f32.mrf.mxu1 }
 0x128   : > { %v2217_v26 = vpop.eup %1536  ;;  %v1151_v24 = vmul.f32 %v2112_v45, %v964_v38  ;;  %v729_v59 = vmul.f32 %v1533_v58, %v728_v63  ;;  %v848_v62 = vsub.f32 1.0, %v847_v54  ;;  %v505_v0 = vsub.f32 0.0, %v473_v49  ;;  %vm733_vm15 = vmor %vm731_vm7, %vm732_vm12 }
 0x129   : > { %v1079_v40 = vsel %vm1078_vm13, %v1531_v48, %v1075_v57  ;;  %vm852_vm14 = vweird.f32 %v1535_v22  ;;  %v2223_v20 = vadd.f32 1.0, %v2217_v26  ;;  %v535_v3 = vmul.f32 1.442695, %v497_v19  ;;  %v454_v48 = vpop.f32.mrf.mxu3 }
 0x12a   : > { %v1183_v53 = vsel %vm607_vm3, %v964_v38, %v1151_v24  ;;  %v1084_v42 = vsel %vm2193_vm6, %v1083_v43, %v1079_v40  ;;  %v730_v16 = vadd.f32 %v1533_v58, %v729_v59  ;;  %v849_v45 = vmul.f32 %v1535_v22, %v848_v62  ;;  %vm853_vm1 = vmor %vm851_vm9, %vm852_vm14 }
 0x12b   : > { %v2229_v52 = vpop.eup %1538  ;;  %1216 = vst.msk [vmem:[%s1790_s14 + $0xa0] sm:$0xff] %vm1195_vm4, %v1183_v53  ;;  %v1159_v56 = vmul.f32 %v2127_v29, %v1084_v42  ;;  %vm736_vm0 = vcmp.eq.f32.partialorder %v735_v13, 8.507059e+37  ;;  %v738_v21 = vor.u32 1.1754944e-38, %v737_v46  ;;  %1540 = vrcp.f32 %v2223_v20 }
 0x12c   : > { %v734_v9 = vsel %vm733_vm15, %v1533_v58, %v730_v16  ;;  %v850_v23 = vadd.f32 %v1535_v22, %v849_v45  ;;  %v2239_v25 = vadd.f32 1.0, %v2229_v52  ;;  %v551_v60 = vmul.f32 1.442695, %v505_v0 }
 0x12d   : > { %v1191_v7 = vsel %vm615_vm8, %v1084_v42, %v1159_v56  ;;  %v739_v55 = vsel %vm736_vm0, %v738_v21, %v734_v9  ;;  %v858_v29 = vor.u32 1.1754944e-38, %v857_v39  ;;  %1542 = vpow2.f32 %v535_v3 }
 0x12e   : > { %1224 = vst.msk [vmem:[%s1790_s14 + $0xe0] sm:$0xff] %vm1195_vm4, %v1191_v7  ;;  %v1136_v27 = vmul.f32 %v2139_v12, %v739_v55  ;;  %v854_v61 = vsel %vm853_vm1, %v1535_v22, %v850_v23  ;;  %vm856_vm2 = vcmp.eq.f32.partialorder %v855_v36, 8.507059e+37  ;;  %1544 = vrcp.f32 %v2239_v25  ;;  %v436_v7 = vpop.f32.mrf.mxu2 }
 0x12f   : > { %vm592_vm3 = vcmp.ge.f32.partialorder %v2072_v28, 0.0  ;;  %v859_v10 = vsel %vm856_vm2, %v858_v29, %v854_v61  ;;  %1546 = vpow2.f32 %v551_v60  ;;  %v2253_v32 = vadd.f32 %v2158_v41, %v434_v8 }
 0x130   : > { %v1168_v18 = vsel %vm592_vm3, %v739_v55, %v1136_v27  ;;  %v1144_v30 = vmul.f32 %v2148_v31, %v859_v10  ;;  %vm600_vm5 = vcmp.ge.f32.partialorder %v2087_v2, 0.0  ;;  %v2259_v12 = vadd.f32 %v2158_v41, %v454_v48 }
 0x131   : > { %v1541_v1 = vpop.eup %1540  ;;  %1201 = vst.msk [vmem:[%s1790_s14 + $0x28] sm:$0xff] %vm1195_vm4, %v1168_v18  ;;  %v2262_v6 = vadd.f32 %v2158_v41, %v396_v34  ;;  %v977_v31 = vand.u32 2147483648, %v2223_v20  ;;  %v481_v17 = vand.u32 2147483647, %v2253_v32  ;;  %vm971_vm6 = vweird.f32 %v2223_v20 }
 0x132   : > { %v1176_v28 = vsel %vm600_vm5, %v859_v10, %v1144_v30  ;;  %v967_v43 = vmul.f32 %v1541_v1, %v2223_v20  ;;  %v489_v13 = vand.u32 2147483647, %v2259_v12  ;;  %v975_v5 = vand.u32 2147483647, %v2223_v20 }
 0x133   : > { %v2267_v35 = vpop.eup %1542  ;;  %1209 = vst.msk [vmem:[%s1790_s14 + $0x68] sm:$0xff] %vm1195_vm4, %v1176_v28  ;;  %v513_v46 = vsub.f32 0.0, %v481_v17  ;;  %v466_v11 = vand.u32 2147483647, %v2262_v6  ;;  %vm972_vm7 = vweird.f32 %v1541_v1  ;;  %v978_v49 = vor.u32 1.1754944e-38, %v977_v31 }
 0x134   : > { %v1545_v2 = vpop.eup %1544  ;;  %v968_v58 = vsub.f32 1.0, %v967_v43  ;;  %v2273_v44 = vadd.f32 1.0, %v2267_v35  ;;  %v521_v36 = vsub.f32 0.0, %v489_v13  ;;  %v1097_v63 = vand.u32 2147483648, %v2239_v25  ;;  %vm973_vm8 = vmor %vm971_vm6, %vm972_vm7 }
 0x135   : > { %v1087_v14 = vmul.f32 %v1545_v2, %v2239_v25  ;;  %v2279_v22 = vpop.eup %1546  ;;  %v567_v39 = vmul.f32 1.442695, %v513_v46  ;;  %v498_v19 = vsub.f32 0.0, %v466_v11  ;;  %v2287_v24 = vadd.f32 %v2158_v41, %v416_v47 }
 0x136   : > { %v969_v15 = vmul.f32 %v1541_v1, %v968_v58  ;;  %1548 = vrcp.f32 %v2273_v44  ;;  %v2284_v54 = vadd.f32 1.0, %v2279_v22  ;;  %v583_v57 = vmul.f32 1.442695, %v521_v36  ;;  %v456_v36 = vpop.f32.mrf.mxu3 }
 0x137   : > { %v1088_v37 = vsub.f32 1.0, %v1087_v14  ;;  %vm1092_vm9 = vweird.f32 %v1545_v2  ;;  %v1095_v62 = vand.u32 2147483647, %v2239_v25  ;;  %vm976_vm10 = vcmp.eq.f32.partialorder %v975_v5, 8.507059e+37 }
 0x138   : > { %v970_v38 = vadd.f32 %v1541_v1, %v969_v15  ;;  %1550 = vrcp.f32 %v2284_v54  ;;  %vm1091_vm11 = vweird.f32 %v2239_v25  ;;  %v537_v53 = vmul.f32 1.442695, %v498_v19 }
 0x139   : > { %v1089_v59 = vmul.f32 %v1545_v2, %v1088_v37  ;;  %1552 = vpow2.f32 %v567_v39  ;;  %vm608_vm12 = vcmp.ge.f32.partialorder %v2110_v4, 0.0  ;;  %vm1093_vm13 = vmor %vm1091_vm11, %vm1092_vm9  ;;  %v1098_v16 = vor.u32 1.1754944e-38, %v1097_v63 }
 0x13a   : > { %v974_v0 = vsel %vm973_vm8, %v1541_v1, %v970_v38  ;;  %1554 = vpow2.f32 %v583_v57  ;;  %v474_v45 = vand.u32 2147483647, %v2287_v24  ;;  %vm1096_vm14 = vcmp.eq.f32.partialorder %v1095_v62, 8.507059e+37 }
 0x13b   : > { %v979_v40 = vsel %vm976_vm10, %v978_v49, %v974_v0  ;;  %v1090_v3 = vadd.f32 %v1545_v2, %v1089_v59  ;;  %1556 = vpow2.f32 %v537_v53  ;;  %v752_v25 = vand.u32 2147483648, %v2273_v44 }
 0x13c   : > { %v1549_v42 = vpop.eup %1548  ;;  %v1152_v20 = vmul.f32 %v2217_v26, %v979_v40  ;;  %v506_v60 = vsub.f32 0.0, %v474_v45  ;;  %vm616_vm15 = vcmp.ge.f32.partialorder %v2133_v50, 0.0  ;;  %vm746_vm0 = vweird.f32 %v2273_v44 }
 0x13d   : > { %v1094_v56 = vsel %vm1093_vm13, %v1545_v2, %v1090_v3  ;;  %v742_v21 = vmul.f32 %v1549_v42, %v2273_v44  ;;  %vm747_vm1 = vweird.f32 %v1549_v42  ;;  %v750_v8 = vand.u32 2147483647, %v2273_v44 }
 0x13e   : > { %v1184_v9 = vsel %vm608_vm12, %v979_v40, %v1152_v20  ;;  %v1099_v23 = vsel %vm1096_vm14, %v1098_v16, %v1094_v56  ;;  %v1551_v55 = vpop.eup %1550  ;;  %v553_v61 = vmul.f32 1.442695, %v506_v60  ;;  %v2314_v50 = vadd.f32 %v2158_v41, %v436_v7  ;;  %vm748_vm3 = vmor %vm746_vm0, %vm747_vm1 }
 0x13f   : > { %1217 = vst.msk [vmem:[%s1790_s14 + $0xa8] sm:$0xff] %vm1195_vm4, %v1184_v9  ;;  %v1160_v4 = vmul.f32 %v2229_v52, %v1099_v23  ;;  %v743_v26 = vsub.f32 1.0, %v742_v21  ;;  %v2304_v29 = vpop.eup %1552  ;;  %v862_v27 = vmul.f32 %v1551_v55, %v2284_v54  ;;  %v753_v52 = vor.u32 1.1754944e-38, %v752_v25 }
 0x140   : > { %v2308_v48 = vpop.eup %1554  ;;  %v2311_v18 = vadd.f32 1.0, %v2304_v29  ;;  %1558 = vpow2.f32 %v553_v61  ;;  %vm866_vm2 = vweird.f32 %v2284_v54  ;;  %v872_v31 = vand.u32 2147483648, %v2284_v54 }
 0x141   : > { %v1192_v34 = vsel %vm616_vm15, %v1099_v23, %v1160_v4  ;;  %v744_v10 = vmul.f32 %v1549_v42, %v743_v26  ;;  %v863_v30 = vsub.f32 1.0, %v862_v27  ;;  %v2319_v1 = vadd.f32 1.0, %v2308_v48  ;;  %v2321_v28 = vpop.eup %1556 }
 0x142   : > { %1225 = vst.msk [vmem:[%s1790_s14 + $0xe8] sm:$0xff] %vm1195_vm4, %v1192_v34  ;;  %1560 = vrcp.f32 %v2311_v18  ;;  %vm867_vm5 = vweird.f32 %v1551_v55  ;;  %v870_v13 = vand.u32 2147483647, %v2284_v54  ;;  %vm751_vm6 = vcmp.eq.f32.partialorder %v750_v8, 8.507059e+37 }
 0x143   : > { %v745_v43 = vadd.f32 %v1549_v42, %v744_v10  ;;  %v864_v17 = vmul.f32 %v1551_v55, %v863_v30  ;;  %1562 = vrcp.f32 %v2319_v1  ;;  %v482_v58 = vand.u32 2147483647, %v2314_v50  ;;  %vm868_vm8 = vmor %vm866_vm2, %vm867_vm5 }
 0x144   : > { %v2333_v5 = vadd.f32 1.0, %v2321_v28  ;;  %vm593_vm7 = vcmp.ge.f32.partialorder %v2161_v51, 0.0  ;;  %v873_v14 = vor.u32 1.1754944e-38, %v872_v31  ;;  %vm871_vm9 = vcmp.eq.f32.partialorder %v870_v13, 8.507059e+37 }
 0x145   : > { %v749_v2 = vsel %vm748_vm3, %v1549_v42, %v745_v43  ;;  %v865_v11 = vadd.f32 %v1551_v55, %v864_v17  ;;  %v990_v49 = vand.u32 2147483647, %v2311_v18  ;;  %v992_v19 = vand.u32 2147483648, %v2311_v18 }
 0x146   : > { %v754_v46 = vsel %vm751_vm6, %v753_v52, %v749_v2  ;;  %v2339_v47 = vpop.eup %1558  ;;  %1564 = vrcp.f32 %v2333_v5  ;;  %v2352_v59 = vadd.f32 %v2158_v41, %v456_v36  ;;  %vm601_vm10 = vcmp.ge.f32.partialorder %v2178_v33, 0.0 }
 0x147   : > { %v1137_v44 = vmul.f32 %v2267_v35, %v754_v46  ;;  %v869_v15 = vsel %vm868_vm8, %v1551_v55, %v865_v11  ;;  %v2344_v51 = vadd.f32 1.0, %v2339_v47  ;;  %v514_v35 = vsub.f32 0.0, %v482_v58 }
 0x148   : > { %v1561_v37 = vpop.eup %1560  ;;  %v874_v39 = vsel %vm871_vm9, %v873_v14, %v869_v15  ;;  %v1110_v0 = vand.u32 2147483647, %v2319_v1  ;;  %vm986_vm11 = vweird.f32 %v2311_v18  ;;  %vm609_vm12 = vcmp.ge.f32.partialorder %v2253_v32, 0.0 }
 0x149   : > { %v1169_v63 = vsel %vm593_vm7, %v754_v46, %v1137_v44  ;;  %v1563_v54 = vpop.eup %1562  ;;  %v1145_v38 = vmul.f32 %v2279_v22, %v874_v39  ;;  %v982_v57 = vmul.f32 %v1561_v37, %v2311_v18  ;;  %1566 = vrcp.f32 %v2344_v51 }
 0x14a   : > { %1202 = vst.msk [vmem:[%s1790_s14 + $0x30] sm:$0xff] %vm1195_vm4, %v1169_v63  ;;  %v1102_v62 = vmul.f32 %v1563_v54, %v2319_v1  ;;  %v1112_v22 = vand.u32 2147483648, %v2319_v1  ;;  %vm2363_vm13 = vcmp.eq.f32.partialorder %v990_v49, 8.507059e+37  ;;  %vm1106_vm14 = vweird.f32 %v2319_v1 }
 0x14b   : > { %v1177_v40 = vsel %vm601_vm10, %v874_v39, %v1145_v38  ;;  %v983_v3 = vsub.f32 1.0, %v982_v57  ;;  %v569_v53 = vmul.f32 1.442695, %v514_v35  ;;  %vm987_vm15 = vweird.f32 %v1561_v37 }
 0x14c   : > { %1210 = vst.msk [vmem:[%s1790_s14 + $0x70] sm:$0xff] %vm1195_vm4, %v1177_v40  ;;  %v1103_v33 = vsub.f32 1.0, %v1102_v62  ;;  %v1565_v42 = vpop.eup %1564  ;;  %v993_v16 = vor.u32 1.1754944e-38, %v992_v19  ;;  %vm617_vm0 = vcmp.ge.f32.partialorder %v2259_v12, 0.0  ;;  %v490_v45 = vand.u32 2147483647, %v2352_v59  ;;  %vm988_vm3 = vmor %vm986_vm11, %vm987_vm15 }
 0x14d   : > { %v984_v20 = vmul.f32 %v1561_v37, %v983_v3  ;;  %vm1107_vm1 = vweird.f32 %v1563_v54  ;;  %vm2370_vm2 = vcmp.eq.f32.partialorder %v1110_v0, 8.507059e+37  ;;  %v757_v9 = vmul.f32 %v1565_v42, %v2333_v5 }
 0x14e   : > { %v1104_v56 = vmul.f32 %v1563_v54, %v1103_v33  ;;  %v1113_v25 = vor.u32 1.1754944e-38, %v1112_v22  ;;  %1568 = vpow2.f32 %v569_v53  ;;  %v522_v60 = vsub.f32 0.0, %v490_v45  ;;  %vm1108_vm6 = vmor %vm1106_vm14, %vm1107_vm1 }
 0x14f   : > { %v985_v23 = vadd.f32 %v1561_v37, %v984_v20  ;;  %v1567_v7 = vpop.eup %1566  ;;  %v758_v4 = vsub.f32 1.0, %v757_v9  ;;  %vm761_vm5 = vweird.f32 %v2333_v5  ;;  %v767_v26 = vand.u32 2147483648, %v2333_v5 }
 0x150   : > { %v1105_v55 = vadd.f32 %v1563_v54, %v1104_v56  ;;  %v765_v27 = vand.u32 2147483647, %v2333_v5  ;;  %v877_v61 = vmul.f32 %v1567_v7, %v2344_v51  ;;  %v585_v34 = vmul.f32 1.442695, %v522_v60 }
 0x151   : > { %v989_v8 = vsel %vm988_vm3, %v1561_v37, %v985_v23  ;;  %v759_v52 = vmul.f32 %v1565_v42, %v758_v4  ;;  %vm762_vm7 = vweird.f32 %v1565_v42  ;;  %v768_v13 = vor.u32 1.1754944e-38, %v767_v26 }
 0x152   : > { %v994_v10 = vsel %vm2363_vm13, %v993_v16, %v989_v8  ;;  %v1109_v18 = vsel %vm1108_vm6, %v1563_v54, %v1105_v55  ;;  %v878_v31 = vsub.f32 1.0, %v877_v61  ;;  %1570 = vpow2.f32 %v585_v34  ;;  %vm763_vm8 = vmor %vm761_vm5, %vm762_vm7 }
 0x153   : > { %v1153_v30 = vmul.f32 %v2304_v29, %v994_v10  ;;  %v1114_v43 = vsel %vm2370_vm2, %v1113_v25, %v1109_v18  ;;  %v760_v17 = vadd.f32 %v1565_v42, %v759_v52  ;;  %v887_v2 = vand.u32 2147483648, %v2344_v51 }
 0x154   : > { %v1161_v1 = vmul.f32 %v2308_v48, %v1114_v43  ;;  %v1569_v58 = vpop.eup %1568  ;;  %v879_v29 = vmul.f32 %v1567_v7, %v878_v31  ;;  %vm882_vm9 = vweird.f32 %v1567_v7  ;;  %v885_v11 = vand.u32 2147483647, %v2344_v51 }
 0x155   : > { %v1185_v46 = vsel %vm609_vm12, %v994_v10, %v1153_v30  ;;  %v764_v44 = vsel %vm763_vm8, %v1565_v42, %v760_v17  ;;  %vm766_vm10 = vcmp.eq.f32.partialorder %v765_v27, 8.507059e+37  ;;  %v642_v14 = vadd.f32 1.0, %v1569_v58 }
 0x156   : > { %1218 = vst.msk [vmem:[%s1790_s14 + $0xb0] sm:$0xff] %vm1195_vm4, %v1185_v46  ;;  %v1193_v48 = vsel %vm617_vm0, %v1114_v43, %v1161_v1  ;;  %v769_v32 = vsel %vm766_vm10, %v768_v13, %v764_v44  ;;  %v880_v36 = vadd.f32 %v1567_v7, %v879_v29  ;;  %vm881_vm11 = vweird.f32 %v2344_v51 }
 0x157   : > { %1226 = vst.msk [vmem:[%s1790_s14 + $0xf0] sm:$0xff] %vm1195_vm4, %v1193_v48  ;;  %v1138_v5 = vmul.f32 %v2321_v28, %v769_v32  ;;  %vm883_vm12 = vmor %vm881_vm11, %vm882_vm9  ;;  %v888_v15 = vor.u32 1.1754944e-38, %v887_v2  ;;  %1572 = vrcp.f32 %v642_v14  ;;  %vm594_vm13 = vcmp.ge.f32.partialorder %v2262_v6, 0.0 }
 0x158   : > { %v1571_v49 = vpop.eup %1570  ;;  %v884_v12 = vsel %vm883_vm12, %v1567_v7, %v880_v36  ;;  %vm886_vm14 = vcmp.eq.f32.partialorder %v885_v11, 8.507059e+37  ;;  %vm602_vm15 = vcmp.ge.f32.partialorder %v2287_v24, 0.0  ;;  %v1005_v6 = vand.u32 2147483647, %v642_v14 }
 0x159   : > { %v1170_v37 = vsel %vm594_vm13, %v769_v32, %v1138_v5  ;;  %v889_v63 = vsel %vm886_vm14, %v888_v15, %v884_v12  ;;  %v650_v39 = vadd.f32 1.0, %v1571_v49  ;;  %v1007_v19 = vand.u32 2147483648, %v642_v14 }
 0x15a   : > { %1203 = vst.msk [vmem:[%s1790_s14 + $0x38] sm:$0xff] %vm1195_vm4, %v1170_v37  ;;  %v1146_v35 = vmul.f32 %v2339_v47, %v889_v63  ;;  %vm1001_vm1 = vweird.f32 %v642_v14  ;;  %vm1006_vm3 = vcmp.eq.f32.partialorder %v1005_v6, 8.507059e+37  ;;  %vm610_vm7 = vcmp.ge.f32.partialorder %v2314_v50, 0.0 }
 0x15b   : > { %1574 = vrcp.f32 %v650_v39  ;;  %v1008_v47 = vor.u32 1.1754944e-38, %v1007_v19  ;;  %v1127_v24 = vand.u32 2147483648, %v650_v39  ;;  %v1125_v33 = vand.u32 2147483647, %v650_v39 }
 0x15c   : > { %v1178_v28 = vsel %vm602_vm15, %v889_v63, %v1146_v35  ;;  %vm1121_vm6 = vweird.f32 %v650_v39  ;;  %vm618_vm10 = vcmp.ge.f32.partialorder %v2352_v59, 0.0 }
 0x15d   : > { %v1573_v51 = vpop.eup %1572  ;;  %1211 = vst.msk [vmem:[%s1790_s14 + $0x78] sm:$0xff] %vm1195_vm4, %v1178_v28  ;;  %v1128_v16 = vor.u32 1.1754944e-38, %v1127_v24  ;;  %vm1126_vm9 = vcmp.eq.f32.partialorder %v1125_v33, 8.507059e+37 }
 0x15e   : > { %v997_v54 = vmul.f32 %v1573_v51, %v642_v14  ;;  %vm1002_vm0 = vweird.f32 %v1573_v51 }
 0x15f   : > { %vm1003_vm2 = vmor %vm1001_vm1, %vm1002_vm0 }
 0x160   : > { %v998_v38 = vsub.f32 1.0, %v997_v54 }
 0x161   : > { %v1575_v57 = vpop.eup %1574 }
 0x162   : > { %v999_v62 = vmul.f32 %v1573_v51, %v998_v38  ;;  %v1117_v0 = vmul.f32 %v1575_v57, %v650_v39  ;;  %vm1122_vm5 = vweird.f32 %v1575_v57 }
 0x163   : > { %vm1123_vm8 = vmor %vm1121_vm6, %vm1122_vm5 }
 0x164   : > { %v1000_v40 = vadd.f32 %v1573_v51, %v999_v62  ;;  %v1118_v3 = vsub.f32 1.0, %v1117_v0 }
 0x166   : > { %v1004_v22 = vsel %vm1003_vm2, %v1573_v51, %v1000_v40  ;;  %v1119_v41 = vmul.f32 %v1575_v57, %v1118_v3 }
 0x167   : > { %v1009_v53 = vsel %vm1006_vm3, %v1008_v47, %v1004_v22 }
 0x168   : > { %v1154_v42 = vmul.f32 %v1569_v58, %v1009_v53  ;;  %v1120_v20 = vadd.f32 %v1575_v57, %v1119_v41 }
 0x16a   : > { %v1186_v45 = vsel %vm610_vm7, %v1009_v53, %v1154_v42  ;;  %v1124_v56 = vsel %vm1123_vm8, %v1575_v57, %v1120_v20 }
 0x16b   : > { %1219 = vst.msk [vmem:[%s1790_s14 + $0xb8] sm:$0xff] %vm1195_vm4, %v1186_v45  ;;  %v1129_v21 = vsel %vm1126_vm9, %v1128_v16, %v1124_v56 }
 0x16c   : > { %v1162_v9 = vmul.f32 %v1571_v49, %v1129_v21 }
 0x16e   : > { %v1194_v23 = vsel %vm618_vm10, %v1129_v21, %v1162_v9 }
 0x16f   : > { %1227 = vst.msk [vmem:[%s1790_s14 + $0xf8] sm:$0xff] %vm1195_vm4, %v1194_v23 }
 0x170 PF: > { %s13_s12 = sadd.s32 1, %s1583_s12  }
 0x171   : > { %p10_p4 = scmp.ge.s32.totalorder %s13_s12, 4  }
 0x173   :  { %12 = sbr.rel (!%p10_p4) target bundleno = 1 (0x1), region = 62 }

// kernel: vae_forward.7
= control target key start
LH: loop header
LB: loop body
LE: loop exit
PB: predicated region body
PF: predicated region fallthrough
CT: control target
= control target key end

     0   :  { %20 = vsyncpa [#allocation3], 0  ;;  %s16321_s0 = inlined_call_operand.vmem [shape: bf16[2,3136], index: 0, kind: input, shape index: {}]   ;;  %s16322_s1 = inlined_call_operand.vmem [shape: f32[2,20], index: 1, kind: input, shape index: {}]   ;;  %s16323_s2 = inlined_call_operand.vmem [shape: bf16[3136,256], index: 2, kind: input, shape index: {}]   ;;  %s16324_s3 = inlined_call_operand.vmem [shape: f32[1,256], index: 3, kind: input, shape index: {}]   ;;  %s16325_s4 = inlined_call_operand.vmem [shape: bf16[256,20], index: 4, kind: input, shape index: {}]   ;;  %s16326_s5 = inlined_call_operand.vmem [shape: f32[1,20], index: 5, kind: input, shape index: {}]   ;;  %s16327_s6 = inlined_call_operand.vmem [shape: bf16[256,20], index: 6, kind: input, shape index: {}]   ;;  %s16328_s7 = inlined_call_operand.vmem [shape: f32[1,20], index: 7, kind: input, shape index: {}]   ;;  %s16329_s8 = inlined_call_operand.vmem [shape: bf16[20,256], index: 8, kind: input, shape index: {}]   ;;  %s16330_s9 = inlined_call_operand.vmem [shape: f32[1,256], index: 9, kind: input, shape index: {}]   ;;  %s16331_s10 = inlined_call_operand.vmem [shape: bf16[256,3136], index: 10, kind: input, shape index: {}]   ;;  %s16332_s11 = inlined_call_operand.vmem [shape: f32[1,3136], index: 11, kind: input, shape index: {}]   ;;  %s16333_s12 = inlined_call_operand.vmem [shape: bf16[2,3136], index: 12, kind: output, shape index: {0}]   ;;  %s16334_s13 = inlined_call_operand.hbm [shape: f32[2,20], index: 13, kind: output, shape index: {1}]   ;;  %s16335_s14 = inlined_call_operand.hbm [shape: f32[2,20], index: 14, kind: output, shape index: {2}]  }
   0x1   :  { %v6884_v0 = vld [vmem:[%s16323_s2 + $0x70] sm:$0xf]  ;;  %v10149_v1 = vld [vmem:[%s16323_s2 + $0x74] sm:$0xf0]  ;;  %v6876_v11 = vld [vmem:[%s16323_s2 + $0x60] sm:$0xf] }
   0x2   :  { %v6948_v2 = vld [vmem:[%s16323_s2 + $0xf0] sm:$0xf]  ;;  %v6885_v3 = vor.u32 %v10149_v1, %v6884_v0  ;;  %v10165_v4 = vld [vmem:[%s16323_s2 + $0xf4] sm:$0xf0]  ;;  %v10147_v13 = vld [vmem:[%s16323_s2 + $0x64] sm:$0xf0] }
   0x3   :  { %v7012_v5 = vld [vmem:[%s16323_s2 + $0x170] sm:$0xf]  ;;  %v10181_v6 = vld [vmem:[%s16323_s2 + $0x174] sm:$0xf0]  ;;  %v6949_v7 = vor.u32 %v10165_v4, %v6948_v2  ;;  %v6940_v14 = vld [vmem:[%s16323_s2 + $0xe0] sm:$0xf]  ;;  %v6877_v16 = vor.u32 %v10147_v13, %v6876_v11 }
   0x4   :  { %v7013_v8 = vor.u32 %v10181_v6, %v7012_v5  ;;  %v7076_v9 = vld [vmem:[%s16323_s2 + $0x1f0] sm:$0xf]  ;;  %v10197_v10 = vld [vmem:[%s16323_s2 + $0x1f4] sm:$0xf0]  ;;  %2469 = vmatpush.bf16.msra.mxu0 %v6885_v3  ;;  %v10163_v15 = vld [vmem:[%s16323_s2 + $0xe4] sm:$0xf0] }
   0x5   :  { %v7077_v12 = vor.u32 %v10197_v10, %v7076_v9  ;;  %2482 = vmatpush.bf16.msra.mxu1 %v6949_v7  ;;  %v6941_v17 = vor.u32 %v10163_v15, %v6940_v14  ;;  %v7004_v18 = vld [vmem:[%s16323_s2 + $0x160] sm:$0xf]  ;;  %v10179_v19 = vld [vmem:[%s16323_s2 + $0x164] sm:$0xf0]  ;;  %v6868_v23 = vld [vmem:[%s16323_s2 + $0x50] sm:$0xf] }
   0x6   :  { %2495 = vmatpush.bf16.msra.mxu2 %v7013_v8  ;;  %v7068_v20 = vld [vmem:[%s16323_s2 + $0x1e0] sm:$0xf]  ;;  %v7005_v21 = vor.u32 %v10179_v19, %v7004_v18  ;;  %v10195_v22 = vld [vmem:[%s16323_s2 + $0x1e4] sm:$0xf0]  ;;  %v10145_v24 = vld [vmem:[%s16323_s2 + $0x54] sm:$0xf0] }
   0x7   :  { %2508 = vmatpush.bf16.msra.mxu3 %v7077_v12  ;;  %v7069_v25 = vor.u32 %v10195_v22, %v7068_v20  ;;  %v6932_v26 = vld [vmem:[%s16323_s2 + $0xd0] sm:$0xf]  ;;  %v10161_v27 = vld [vmem:[%s16323_s2 + $0xd4] sm:$0xf0]  ;;  %v6869_v29 = vor.u32 %v10145_v24, %v6868_v23  ;;  %v6860_v35 = vld [vmem:[%s16323_s2 + $0x40] sm:$0xf] }
   0x8   :  { %v6996_v28 = vld [vmem:[%s16323_s2 + $0x150] sm:$0xf]  ;;  %2470 = vmatpush.bf16.msra.mxu0 %v6877_v16  ;;  %v10177_v30 = vld [vmem:[%s16323_s2 + $0x154] sm:$0xf0]  ;;  %v6933_v33 = vor.u32 %v10161_v27, %v6932_v26  ;;  %v10143_v36 = vld [vmem:[%s16323_s2 + $0x44] sm:$0xf0] }
   0x9   :  { %v7060_v31 = vld [vmem:[%s16323_s2 + $0x1d0] sm:$0xf]  ;;  %v10193_v32 = vld [vmem:[%s16323_s2 + $0x1d4] sm:$0xf0]  ;;  %2483 = vmatpush.bf16.msra.mxu1 %v6941_v17  ;;  %v6997_v34 = vor.u32 %v10177_v30, %v6996_v28  ;;  %v6924_v37 = vld [vmem:[%s16323_s2 + $0xc0] sm:$0xf]  ;;  %v6861_v44 = vor.u32 %v10143_v36, %v6860_v35 }
   0xa   :  { %2496 = vmatpush.bf16.msra.mxu2 %v7005_v21  ;;  %v7061_v38 = vor.u32 %v10193_v32, %v7060_v31  ;;  %v10159_v39 = vld [vmem:[%s16323_s2 + $0xc4] sm:$0xf0]  ;;  %v6988_v40 = vld [vmem:[%s16323_s2 + $0x140] sm:$0xf]  ;;  %v6852_v47 = vld [vmem:[%s16323_s2 + $0x30] sm:$0xf] }
   0xb   :  { %2509 = vmatpush.bf16.msra.mxu3 %v7069_v25  ;;  %v10175_v41 = vld [vmem:[%s16323_s2 + $0x144] sm:$0xf0]  ;;  %v7052_v42 = vld [vmem:[%s16323_s2 + $0x1c0] sm:$0xf]  ;;  %v6925_v45 = vor.u32 %v10159_v39, %v6924_v37  ;;  %v10141_v48 = vld [vmem:[%s16323_s2 + $0x34] sm:$0xf0] }
   0xc   :  { %v10191_v43 = vld [vmem:[%s16323_s2 + $0x1c4] sm:$0xf0]  ;;  %2471 = vmatpush.bf16.msra.mxu0 %v6869_v29  ;;  %v6989_v46 = vor.u32 %v10175_v41, %v6988_v40  ;;  %v6916_v49 = vld [vmem:[%s16323_s2 + $0xb0] sm:$0xf]  ;;  %v10157_v51 = vld [vmem:[%s16323_s2 + $0xb4] sm:$0xf0]  ;;  %v6853_v56 = vor.u32 %v10141_v48, %v6852_v47 }
   0xd   :  { %2484 = vmatpush.bf16.msra.mxu1 %v6933_v33  ;;  %v7053_v50 = vor.u32 %v10191_v43, %v7052_v42  ;;  %v6980_v52 = vld [vmem:[%s16323_s2 + $0x130] sm:$0xf]  ;;  %v10173_v53 = vld [vmem:[%s16323_s2 + $0x134] sm:$0xf0]  ;;  %v6917_v57 = vor.u32 %v10157_v51, %v6916_v49  ;;  %v6844_v59 = vld [vmem:[%s16323_s2 + $0x20] sm:$0xf] }
   0xe   :  { %2497 = vmatpush.bf16.msra.mxu2 %v6997_v34  ;;  %v7044_v54 = vld [vmem:[%s16323_s2 + $0x1b0] sm:$0xf]  ;;  %v10189_v55 = vld [vmem:[%s16323_s2 + $0x1b4] sm:$0xf0]  ;;  %v6981_v58 = vor.u32 %v10173_v53, %v6980_v52  ;;  %v10139_v60 = vld [vmem:[%s16323_s2 + $0x24] sm:$0xf0] }
   0xf   :  { %2510 = vmatpush.bf16.msra.mxu3 %v7061_v38  ;;  %v6908_v61 = vld [vmem:[%s16323_s2 + $0xa0] sm:$0xf]  ;;  %v7045_v62 = vor.u32 %v10189_v55, %v7044_v54  ;;  %v10155_v63 = vld [vmem:[%s16323_s2 + $0xa4] sm:$0xf0]  ;;  %v6845_v4 = vor.u32 %v10139_v60, %v6844_v59  ;;  %v6836_v7 = vld [vmem:[%s16323_s2 + $0x10] sm:$0xf] }
  0x10   :  { %2472 = vmatpush.bf16.msra.mxu0 %v6861_v44  ;;  %v6972_v0 = vld [vmem:[%s16323_s2 + $0x120] sm:$0xf]  ;;  %v10171_v1 = vld [vmem:[%s16323_s2 + $0x124] sm:$0xf0]  ;;  %v6909_v5 = vor.u32 %v10155_v63, %v6908_v61  ;;  %v10137_v8 = vld [vmem:[%s16323_s2 + $0x14] sm:$0xf0] }
  0x11   :  { %2485 = vmatpush.bf16.msra.mxu1 %v6925_v45  ;;  %v7036_v2 = vld [vmem:[%s16323_s2 + $0x1a0] sm:$0xf]  ;;  %v10187_v3 = vld [vmem:[%s16323_s2 + $0x1a4] sm:$0xf0]  ;;  %v6973_v6 = vor.u32 %v10171_v1, %v6972_v0  ;;  %v6900_v9 = vld [vmem:[%s16323_s2 + $0x90] sm:$0xf]  ;;  %v6837_v16 = vor.u32 %v10137_v8, %v6836_v7 }
  0x12   :  { %2498 = vmatpush.bf16.msra.mxu2 %v6989_v46  ;;  %v7037_v10 = vor.u32 %v10187_v3, %v7036_v2  ;;  %v10153_v11 = vld [vmem:[%s16323_s2 + $0x94] sm:$0xf0]  ;;  %v6964_v12 = vld [vmem:[%s16323_s2 + $0x110] sm:$0xf]  ;;  %v6828_v17 = vld [vmem:[%s16323_s2] sm:$0xf] }
  0x13   :  { %2511 = vmatpush.bf16.msra.mxu3 %v7053_v50  ;;  %v10169_v13 = vld [vmem:[%s16323_s2 + $0x114] sm:$0xf0]  ;;  %v7028_v14 = vld [vmem:[%s16323_s2 + $0x190] sm:$0xf]  ;;  %v10135_v18 = vld [vmem:[%s16323_s2 + $0x4] sm:$0xf0]  ;;  %v6901_v19 = vor.u32 %v10153_v11, %v6900_v9 }
  0x14   :  { %2473 = vmatpush.bf16.msra.mxu0 %v6853_v56  ;;  %v10185_v15 = vld [vmem:[%s16323_s2 + $0x194] sm:$0xf0]  ;;  %v6965_v20 = vor.u32 %v10169_v13, %v6964_v12  ;;  %v6892_v21 = vld [vmem:[%s16323_s2 + $0x80] sm:$0xf]  ;;  %v10151_v22 = vld [vmem:[%s16323_s2 + $0x84] sm:$0xf0]  ;;  %v6829_v31 = vor.u32 %v10135_v18, %v6828_v17 }
  0x15   :  { %2486 = vmatpush.bf16.msra.mxu1 %v6917_v57  ;;  %v6956_v23 = vld [vmem:[%s16323_s2 + $0x100] sm:$0xf]  ;;  %v7029_v24 = vor.u32 %v10185_v15, %v7028_v14  ;;  %v10167_v25 = vld [vmem:[%s16323_s2 + $0x104] sm:$0xf0]  ;;  %v7140_v28 = vld [vmem:[%s16323_s2 + $0x270] sm:$0xf]  ;;  %v6893_v35 = vor.u32 %v10151_v22, %v6892_v21 }
  0x16   :  { %2499 = vmatpush.bf16.msra.mxu2 %v6981_v58  ;;  %v7020_v26 = vld [vmem:[%s16323_s2 + $0x180] sm:$0xf]  ;;  %v10183_v27 = vld [vmem:[%s16323_s2 + $0x184] sm:$0xf0]  ;;  %v10213_v29 = vld [vmem:[%s16323_s2 + $0x274] sm:$0xf0]  ;;  %v6957_v36 = vor.u32 %v10167_v25, %v6956_v23 }
  0x17   :  { %2512 = vmatpush.bf16.msra.mxu3 %v7045_v62  ;;  %v7204_v30 = vld [vmem:[%s16323_s2 + $0x2f0] sm:$0xf]  ;;  %v10229_v32 = vld [vmem:[%s16323_s2 + $0x2f4] sm:$0xf0]  ;;  %v7021_v39 = vor.u32 %v10183_v27, %v7020_v26  ;;  %v7141_v40 = vor.u32 %v10213_v29, %v7140_v28  ;;  %v7132_v43 = vld [vmem:[%s16323_s2 + $0x260] sm:$0xf] }
  0x18   :  { %2474 = vmatpush.bf16.msra.mxu0 %v6845_v4  ;;  %v7268_v33 = vld [vmem:[%s16323_s2 + $0x370] sm:$0xf]  ;;  %v10245_v34 = vld [vmem:[%s16323_s2 + $0x374] sm:$0xf0]  ;;  %v7205_v41 = vor.u32 %v10229_v32, %v7204_v30  ;;  %v10211_v44 = vld [vmem:[%s16323_s2 + $0x264] sm:$0xf0] }
  0x19   :  { %2487 = vmatpush.bf16.msra.mxu1 %v6909_v5  ;;  %v7332_v37 = vld [vmem:[%s16323_s2 + $0x3f0] sm:$0xf]  ;;  %v10261_v38 = vld [vmem:[%s16323_s2 + $0x3f4] sm:$0xf0]  ;;  %v7269_v42 = vor.u32 %v10245_v34, %v7268_v33  ;;  %v7196_v45 = vld [vmem:[%s16323_s2 + $0x2e0] sm:$0xf]  ;;  %v7133_v52 = vor.u32 %v10211_v44, %v7132_v43 }
  0x1a   :  { %2500 = vmatpush.bf16.msra.mxu2 %v6973_v6  ;;  %v7333_v46 = vor.u32 %v10261_v38, %v7332_v37  ;;  %v10227_v47 = vld [vmem:[%s16323_s2 + $0x2e4] sm:$0xf0]  ;;  %v7260_v48 = vld [vmem:[%s16323_s2 + $0x360] sm:$0xf]  ;;  %v7124_v55 = vld [vmem:[%s16323_s2 + $0x250] sm:$0xf] }
  0x1b   :  { %2513 = vmatpush.bf16.msra.mxu3 %v7037_v10  ;;  %v10243_v49 = vld [vmem:[%s16323_s2 + $0x364] sm:$0xf0]  ;;  %v7324_v50 = vld [vmem:[%s16323_s2 + $0x3e0] sm:$0xf]  ;;  %v7197_v53 = vor.u32 %v10227_v47, %v7196_v45  ;;  %v10209_v56 = vld [vmem:[%s16323_s2 + $0x254] sm:$0xf0] }
  0x1c   :  { %2475 = vmatpush.bf16.msra.mxu0 %v6837_v16  ;;  %v10259_v51 = vld [vmem:[%s16323_s2 + $0x3e4] sm:$0xf0]  ;;  %v7261_v54 = vor.u32 %v10243_v49, %v7260_v48  ;;  %v7188_v57 = vld [vmem:[%s16323_s2 + $0x2d0] sm:$0xf]  ;;  %v10225_v59 = vld [vmem:[%s16323_s2 + $0x2d4] sm:$0xf0]  ;;  %v7125_v0 = vor.u32 %v10209_v56, %v7124_v55 }
  0x1d   :  { %2488 = vmatpush.bf16.msra.mxu1 %v6901_v19  ;;  %v7325_v58 = vor.u32 %v10259_v51, %v7324_v50  ;;  %v7252_v60 = vld [vmem:[%s16323_s2 + $0x350] sm:$0xf]  ;;  %v10241_v61 = vld [vmem:[%s16323_s2 + $0x354] sm:$0xf0]  ;;  %v7116_v1 = vld [vmem:[%s16323_s2 + $0x240] sm:$0xf]  ;;  %v7189_v3 = vor.u32 %v10225_v59, %v7188_v57 }
  0x1e   :  { %2501 = vmatpush.bf16.msra.mxu2 %v6965_v20  ;;  %v7316_v62 = vld [vmem:[%s16323_s2 + $0x3d0] sm:$0xf]  ;;  %v10257_v63 = vld [vmem:[%s16323_s2 + $0x3d4] sm:$0xf0]  ;;  %v47_v2 = vld [vmem:[%s16321_s0] sm:$0xff]  ;;  %v7253_v4 = vor.u32 %v10241_v61, %v7252_v60 }
  0x1f   :  { %2514 = vmatpush.bf16.msra.mxu3 %v7029_v24  ;;  %v10207_v5 = vld [vmem:[%s16323_s2 + $0x244] sm:$0xf0]  ;;  %v7180_v6 = vld [vmem:[%s16323_s2 + $0x2c0] sm:$0xf]  ;;  %450 = vst [vmem:[#allocation1] ss:$9 sm:$0xff] %v47_v2  ;;  %v7317_v7 = vor.u32 %v10257_v63, %v7316_v62 }
  0x20   :  { %2476 = vmatpush.bf16.msra.mxu0 %v6829_v31  ;;  %v10223_v8 = vld [vmem:[%s16323_s2 + $0x2c4] sm:$0xf0]  ;;  %v7244_v9 = vld [vmem:[%s16323_s2 + $0x340] sm:$0xf]  ;;  %v7117_v13 = vor.u32 %v10207_v5, %v7116_v1  ;;  %v7108_v16 = vld [vmem:[%s16323_s2 + $0x230] sm:$0xf] }
  0x21   :  { %2489 = vmatpush.bf16.msra.mxu1 %v6893_v35  ;;  %v10239_v10 = vld [vmem:[%s16323_s2 + $0x344] sm:$0xf0]  ;;  %v7308_v11 = vld [vmem:[%s16323_s2 + $0x3c0] sm:$0xf]  ;;  %v7181_v14 = vor.u32 %v10223_v8, %v7180_v6  ;;  %v10205_v17 = vld [vmem:[%s16323_s2 + $0x234] sm:$0xf0] }
  0x22   :  { %2502 = vmatpush.bf16.msra.mxu2 %v6957_v36  ;;  %v10255_v12 = vld [vmem:[%s16323_s2 + $0x3c4] sm:$0xf0]  ;;  %v7245_v15 = vor.u32 %v10239_v10, %v7244_v9  ;;  %v7172_v18 = vld [vmem:[%s16323_s2 + $0x2b0] sm:$0xf]  ;;  %v10221_v20 = vld [vmem:[%s16323_s2 + $0x2b4] sm:$0xf0]  ;;  %v7109_v26 = vor.u32 %v10205_v17, %v7108_v16 }
  0x23   :  { %2515 = vmatpush.bf16.msra.mxu3 %v7021_v39  ;;  %v7309_v19 = vor.u32 %v10255_v12, %v7308_v11  ;;  %v7236_v21 = vld [vmem:[%s16323_s2 + $0x330] sm:$0xf]  ;;  %v10237_v22 = vld [vmem:[%s16323_s2 + $0x334] sm:$0xf0]  ;;  %v7100_v25 = vld [vmem:[%s16323_s2 + $0x220] sm:$0xf]  ;;  %v7173_v30 = vor.u32 %v10221_v20, %v7172_v18 }
  0x24   :  { %2521 = vmatpush.bf16.msrb.mxu0 %v7141_v40  ;;  %v7300_v23 = vld [vmem:[%s16323_s2 + $0x3b0] sm:$0xf]  ;;  %v10253_v24 = vld [vmem:[%s16323_s2 + $0x3b4] sm:$0xf0]  ;;  %v7237_v31 = vor.u32 %v10237_v22, %v7236_v21  ;;  %v10203_v32 = vld [vmem:[%s16323_s2 + $0x224] sm:$0xf0] }
  0x25   :  { %2534 = vmatpush.bf16.msrb.mxu1 %v7205_v41  ;;  %v7164_v33 = vld [vmem:[%s16323_s2 + $0x2a0] sm:$0xf]  ;;  %v7301_v35 = vor.u32 %v10253_v24, %v7300_v23  ;;  %v10219_v36 = vld [vmem:[%s16323_s2 + $0x2a4] sm:$0xf0]  ;;  %v7101_v41 = vor.u32 %v10203_v32, %v7100_v25  ;;  %v10201_v45 = vld [vmem:[%s16323_s2 + $0x214] sm:$0xf0] }
  0x26   :  { %2547 = vmatpush.bf16.msrb.mxu2 %v7269_v42  ;;  %v11416_v27 = vld [vmem:[#allocation1 + $0x12] sm:$0xff]  ;;  %v11418_v28 = vld [vmem:[#allocation1] sm:$0xff]  ;;  %v11428_v34 = vld [vmem:[#allocation1 + $0x9] sm:$0xff]  ;;  %v7165_v43 = vor.u32 %v10219_v36, %v7164_v33 }
  0x27   :  { %2560 = vmatpush.bf16.msrb.mxu3 %v7333_v46  ;;  %v11420_v29 = vld [vmem:[#allocation1 + $0x1b] sm:$0xff]  ;;  %v10235_v38 = vld [vmem:[%s16323_s2 + $0x324] sm:$0xf0]  ;;  %2503 = vmatmul.bf16.vlgmr.msra.gmra.mxu2 %v11416_v27  ;;  %v7092_v42 = vld [vmem:[%s16323_s2 + $0x210] sm:$0xf] }
  0x28   :  { %2522 = vmatpush.bf16.msrb.mxu0 %v7133_v52  ;;  %v7228_v37 = vld [vmem:[%s16323_s2 + $0x320] sm:$0xf]  ;;  %v10251_v40 = vld [vmem:[%s16323_s2 + $0x3a4] sm:$0xf0]  ;;  %2516 = vmatmul.bf16.vlgmr.msra.gmra.mxu3 %v11420_v29  ;;  %v7156_v46 = vld [vmem:[%s16323_s2 + $0x290] sm:$0xf]  ;;  %v7093_v55 = vor.u32 %v10201_v45, %v7092_v42 }
  0x29   :  { %2535 = vmatpush.bf16.msrb.mxu1 %v7197_v53  ;;  %v7292_v39 = vld [vmem:[%s16323_s2 + $0x3a0] sm:$0xf]  ;;  %2477 = vmatmul.bf16.vlgmr.msra.gmra.mxu0 %v11418_v28  ;;  %v7229_v44 = vor.u32 %v10235_v38, %v7228_v37  ;;  %v10217_v47 = vld [vmem:[%s16323_s2 + $0x294] sm:$0xf0]  ;;  %v7220_v49 = vld [vmem:[%s16323_s2 + $0x310] sm:$0xf] }
  0x2a   :  { %2548 = vmatpush.bf16.msrb.mxu2 %v7261_v54  ;;  %2490 = vmatmul.bf16.vlgmr.msra.gmra.mxu1 %v11428_v34  ;;  %v7293_v48 = vor.u32 %v10251_v40, %v7292_v39  ;;  %v10233_v50 = vld [vmem:[%s16323_s2 + $0x314] sm:$0xf0]  ;;  %v7284_v51 = vld [vmem:[%s16323_s2 + $0x390] sm:$0xf]  ;;  %v7084_v53 = vld [vmem:[%s16323_s2 + $0x200] sm:$0xf]  ;;  %v7157_v62 = vor.u32 %v10217_v47, %v7156_v46 }
  0x2b   :  { %2561 = vmatpush.bf16.msrb.mxu3 %v7325_v58  ;;  %v10249_v52 = vld [vmem:[%s16323_s2 + $0x394] sm:$0xf0]  ;;  %v10199_v54 = vld [vmem:[%s16323_s2 + $0x204] sm:$0xf0]  ;;  %v7148_v56 = vld [vmem:[%s16323_s2 + $0x280] sm:$0xf]  ;;  %v7221_v63 = vor.u32 %v10233_v50, %v7220_v49 }
  0x2c   :  { %2523 = vmatpush.bf16.msrb.mxu0 %v7125_v0  ;;  %v10215_v57 = vld [vmem:[%s16323_s2 + $0x284] sm:$0xf0]  ;;  %v7212_v58 = vld [vmem:[%s16323_s2 + $0x300] sm:$0xf]  ;;  %v11491_v60 = vld [vmem:[#allocation1 + $0x36] sm:$0xff]  ;;  %v7085_v9 = vor.u32 %v10199_v54, %v7084_v53 }
  0x2d   :  { %2536 = vmatpush.bf16.msrb.mxu1 %v7189_v3  ;;  %v10231_v59 = vld [vmem:[%s16323_s2 + $0x304] sm:$0xf0]  ;;  %v11498_v1 = vld [vmem:[#allocation1 + $0x3f] sm:$0xff]  ;;  %v11500_v2 = vld [vmem:[#allocation1 + $0x2d] sm:$0xff]  ;;  %v7285_v3 = vor.u32 %v10249_v52, %v7284_v51 }
  0x2e   :  { %2549 = vmatpush.bf16.msrb.mxu2 %v7253_v4  ;;  %v48_v61 = vld [vmem:[%s16321_s0 + $0x8] sm:$0xff]  ;;  %v7276_v4 = vld [vmem:[%s16323_s2 + $0x380] sm:$0xf]  ;;  %v7396_v6 = vld [vmem:[%s16323_s2 + $0x470] sm:$0xf] }
  0x2f   :  { %2562 = vmatpush.bf16.msrb.mxu3 %v7317_v7  ;;  %v11496_v0 = vld [vmem:[#allocation1 + $0x24] sm:$0xff]  ;;  %v10277_v7 = vld [vmem:[%s16323_s2 + $0x474] sm:$0xf0]  ;;  %v7460_v8 = vld [vmem:[%s16323_s2 + $0x4f0] sm:$0xf] }
  0x30   :  { %2524 = vmatpush.bf16.msrb.mxu0 %v7117_v13  ;;  %v10247_v5 = vld [vmem:[%s16323_s2 + $0x384] sm:$0xf0]  ;;  %460 = vst [vmem:[#allocation1] ss:$9 sm:$0xff] %v48_v61  ;;  %v10293_v10 = vld [vmem:[%s16323_s2 + $0x4f4] sm:$0xf0]  ;;  %v7149_v13 = vor.u32 %v10215_v57, %v7148_v56  ;;  %v7397_v18 = vor.u32 %v10277_v7, %v7396_v6 }
  0x31   :  { %2537 = vmatpush.bf16.msrb.mxu1 %v7181_v14  ;;  %v7524_v11 = vld [vmem:[%s16323_s2 + $0x570] sm:$0xf]  ;;  %v10309_v12 = vld [vmem:[%s16323_s2 + $0x574] sm:$0xf0]  ;;  %v7213_v14 = vor.u32 %v10231_v59, %v7212_v58  ;;  %v7277_v17 = vor.u32 %v10247_v5, %v7276_v4  ;;  %v7388_v21 = vld [vmem:[%s16323_s2 + $0x460] sm:$0xf] }
  0x32   :  { %2550 = vmatpush.bf16.msrb.mxu2 %v7245_v15  ;;  %v7588_v15 = vld [vmem:[%s16323_s2 + $0x5f0] sm:$0xf]  ;;  %v10325_v16 = vld [vmem:[%s16323_s2 + $0x5f4] sm:$0xf0]  ;;  %v7525_v20 = vor.u32 %v10309_v12, %v7524_v11  ;;  %v10275_v22 = vld [vmem:[%s16323_s2 + $0x464] sm:$0xf0] }
  0x33   :  { %2563 = vmatpush.bf16.msrb.mxu3 %v7309_v19  ;;  %v7461_v19 = vor.u32 %v10293_v10, %v7460_v8  ;;  %v7452_v23 = vld [vmem:[%s16323_s2 + $0x4e0] sm:$0xf]  ;;  %v7589_v24 = vor.u32 %v10325_v16, %v7588_v15  ;;  %v10291_v25 = vld [vmem:[%s16323_s2 + $0x4e4] sm:$0xf0]  ;;  %v7389_v33 = vor.u32 %v10275_v22, %v7388_v21  ;;  %v7380_v37 = vld [vmem:[%s16323_s2 + $0x450] sm:$0xf] }
  0x34   :  { %2525 = vmatpush.bf16.msrb.mxu0 %v7109_v26  ;;  %v7516_v26 = vld [vmem:[%s16323_s2 + $0x560] sm:$0xf]  ;;  %v10323_v32 = vld [vmem:[%s16323_s2 + $0x5e4] sm:$0xf0]  ;;  %v10273_v38 = vld [vmem:[%s16323_s2 + $0x454] sm:$0xf0] }
  0x35   :  { %2538 = vmatpush.bf16.msrb.mxu1 %v7173_v30  ;;  %v10307_v30 = vld [vmem:[%s16323_s2 + $0x564] sm:$0xf0]  ;;  %v7444_v39 = vld [vmem:[%s16323_s2 + $0x4d0] sm:$0xf]  ;;  %v10321_v45 = vld [vmem:[%s16323_s2 + $0x5d4] sm:$0xf0]  ;;  %v7381_v46 = vor.u32 %v10273_v38, %v7380_v37 }
  0x36   :  { %2551 = vmatpush.bf16.msrb.mxu2 %v7237_v31  ;;  %v7580_v31 = vld [vmem:[%s16323_s2 + $0x5e0] sm:$0xf]  ;;  %v7517_v36 = vor.u32 %v10307_v30, %v7516_v26  ;;  %v7508_v42 = vld [vmem:[%s16323_s2 + $0x550] sm:$0xf]  ;;  %v10271_v50 = vld [vmem:[%s16323_s2 + $0x444] sm:$0xf0] }
  0x37   :  { %2564 = vmatpush.bf16.msrb.mxu3 %v7301_v35  ;;  %v7453_v35 = vor.u32 %v10291_v25, %v7452_v23  ;;  %v7581_v40 = vor.u32 %v10323_v32, %v7580_v31  ;;  %v7372_v49 = vld [vmem:[%s16323_s2 + $0x440] sm:$0xf]  ;;  %v10287_v53 = vld [vmem:[%s16323_s2 + $0x4c4] sm:$0xf0]  ;;  %v10285_v5 = vld [vmem:[%s16323_s2 + $0x4b4] sm:$0xf0] }
  0x38   :  { %2526 = vmatpush.bf16.msrb.mxu0 %v7101_v41  ;;  %v10289_v41 = vld [vmem:[%s16323_s2 + $0x4d4] sm:$0xf0]  ;;  %v7436_v51 = vld [vmem:[%s16323_s2 + $0x4c0] sm:$0xf]  ;;  %v10319_v57 = vld [vmem:[%s16323_s2 + $0x5c4] sm:$0xf0]  ;;  %v7373_v58 = vor.u32 %v10271_v50, %v7372_v49 }
  0x39   :  { %2539 = vmatpush.bf16.msrb.mxu1 %v7165_v43  ;;  %v10305_v43 = vld [vmem:[%s16323_s2 + $0x554] sm:$0xf0]  ;;  %v7445_v47 = vor.u32 %v10289_v41, %v7444_v39  ;;  %v7500_v54 = vld [vmem:[%s16323_s2 + $0x540] sm:$0xf]  ;;  %v7437_v59 = vor.u32 %v10287_v53, %v7436_v51  ;;  %v7492_v6 = vld [vmem:[%s16323_s2 + $0x530] sm:$0xf] }
  0x3a   :  { %2552 = vmatpush.bf16.msrb.mxu2 %v7229_v44  ;;  %v7572_v44 = vld [vmem:[%s16323_s2 + $0x5d0] sm:$0xf]  ;;  %v7564_v56 = vld [vmem:[%s16323_s2 + $0x5c0] sm:$0xf]  ;;  %v10301_v7 = vld [vmem:[%s16323_s2 + $0x534] sm:$0xf0] }
  0x3b   :  { %2565 = vmatpush.bf16.msrb.mxu3 %v7293_v48  ;;  %v7509_v48 = vor.u32 %v10305_v43, %v7508_v42  ;;  %v7573_v52 = vor.u32 %v10321_v45, %v7572_v44  ;;  %v7565_v4 = vor.u32 %v10319_v57, %v7564_v56  ;;  %v7556_v8 = vld [vmem:[%s16323_s2 + $0x5b0] sm:$0xf]  ;;  %v7493_v12 = vor.u32 %v10301_v7, %v7492_v6  ;;  %v7420_v15 = vld [vmem:[%s16323_s2 + $0x4a0] sm:$0xf]  ;;  %v10315_v21 = vld [vmem:[%s16323_s2 + $0x5a4] sm:$0xf0] }
  0x3c   :  { %2527 = vmatpush.bf16.msrb.mxu0 %v7093_v55  ;;  %v10303_v55 = vld [vmem:[%s16323_s2 + $0x544] sm:$0xf0]  ;;  %v7348_v25 = vld [vmem:[%s16323_s2 + $0x410] sm:$0xf]  ;;  %v10265_v26 = vld [vmem:[%s16323_s2 + $0x414] sm:$0xf0] }
  0x3d   :  { %2540 = vmatpush.bf16.msrb.mxu1 %v7157_v62  ;;  %v7501_v61 = vor.u32 %v10303_v55, %v7500_v54  ;;  %v7364_v62 = vld [vmem:[%s16323_s2 + $0x430] sm:$0xf]  ;;  %v10281_v32 = vld [vmem:[%s16323_s2 + $0x494] sm:$0xf0]  ;;  %v7349_v38 = vor.u32 %v10265_v26, %v7348_v25  ;;  %v7340_v39 = vld [vmem:[%s16323_s2 + $0x400] sm:$0xf] }
  0x3e   :  { %2553 = vmatpush.bf16.msrb.mxu2 %v7221_v63  ;;  %v10269_v63 = vld [vmem:[%s16323_s2 + $0x434] sm:$0xf0]  ;;  %v7412_v30 = vld [vmem:[%s16323_s2 + $0x490] sm:$0xf]  ;;  %v7404_v43 = vld [vmem:[%s16323_s2 + $0x480] sm:$0xf] }
  0x3f   :  { %2566 = vmatpush.bf16.msrb.mxu3 %v7285_v3  ;;  %v7428_v3 = vld [vmem:[%s16323_s2 + $0x4b0] sm:$0xf]  ;;  %v7365_v10 = vor.u32 %v10269_v63, %v7364_v62  ;;  %v10313_v37 = vld [vmem:[%s16323_s2 + $0x594] sm:$0xf0]  ;;  %v7413_v41 = vor.u32 %v10281_v32, %v7412_v30  ;;  %v10279_v44 = vld [vmem:[%s16323_s2 + $0x484] sm:$0xf0] }
  0x40   :  { %2528 = vmatpush.bf16.msrb.mxu0 %v7085_v9  ;;  %v10317_v9 = vld [vmem:[%s16323_s2 + $0x5b4] sm:$0xf0]  ;;  %v7429_v11 = vor.u32 %v10285_v5, %v7428_v3  ;;  %v7468_v45 = vld [vmem:[%s16323_s2 + $0x500] sm:$0xf]  ;;  %v10311_v49 = vld [vmem:[%s16323_s2 + $0x584] sm:$0xf0]  ;;  %v7405_v57 = vor.u32 %v10279_v44, %v7404_v43 }
  0x41   :  { %2541 = vmatpush.bf16.msrb.mxu1 %v7149_v13  ;;  %v7356_v13 = vld [vmem:[%s16323_s2 + $0x420] sm:$0xf]  ;;  %v7557_v16 = vor.u32 %v10317_v9, %v7556_v8  ;;  %v7652_v50 = vld [vmem:[%s16323_s2 + $0x670] sm:$0xf]  ;;  %v10341_v51 = vld [vmem:[%s16323_s2 + $0x674] sm:$0xf0] }
  0x42   :  { %2554 = vmatpush.bf16.msrb.mxu2 %v7213_v14  ;;  %v10267_v14 = vld [vmem:[%s16323_s2 + $0x424] sm:$0xf0]  ;;  %v10357_v54 = vld [vmem:[%s16323_s2 + $0x6f4] sm:$0xf0]  ;;  %v7780_v55 = vld [vmem:[%s16323_s2 + $0x770] sm:$0xf]  ;;  %v7653_v63 = vor.u32 %v10341_v51, %v7652_v50 }
  0x43   :  { %2567 = vmatpush.bf16.msrb.mxu3 %v7277_v17  ;;  %2529 = vmatmul.bf16.vlgmr.msrb.gmra.mxu0 %v11496_v0  ;;  %v10283_v17 = vld [vmem:[%s16323_s2 + $0x4a4] sm:$0xf0]  ;;  %v7357_v22 = vor.u32 %v10267_v14, %v7356_v13  ;;  %v10373_v56 = vld [vmem:[%s16323_s2 + $0x774] sm:$0xf0]  ;;  %v7644_v5 = vld [vmem:[%s16323_s2 + $0x660] sm:$0xf] }
  0x44   :  { %2573 = vmatpush.bf16.msra.mxu0 %v7397_v18  ;;  %2542 = vmatmul.bf16.vlgmr.msrb.gmra.mxu1 %v11500_v2  ;;  %v7484_v18 = vld [vmem:[%s16323_s2 + $0x520] sm:$0xf]  ;;  %v7421_v23 = vor.u32 %v10283_v17, %v7420_v15  ;;  %v10339_v6 = vld [vmem:[%s16323_s2 + $0x664] sm:$0xf0]  ;;  %v11754_v15 = vld [vmem:[#allocation1 + $0x12] sm:$0xff] }
  0x45   :  { %2586 = vmatpush.bf16.msra.mxu1 %v7461_v19  ;;  %2555 = vmatmul.bf16.vlgmr.msrb.gmra.mxu2 %v11491_v60  ;;  %v10299_v19 = vld [vmem:[%s16323_s2 + $0x524] sm:$0xf0]  ;;  %v7708_v7 = vld [vmem:[%s16323_s2 + $0x6e0] sm:$0xf]  ;;  %v10353_v25 = vld [vmem:[%s16323_s2 + $0x6d4] sm:$0xf0] }
  0x46   :  { %2599 = vmatpush.bf16.msra.mxu2 %v7525_v20  ;;  %2568 = vmatmul.bf16.vlgmr.msrb.gmra.mxu3 %v11498_v1  ;;  %v7548_v20 = vld [vmem:[%s16323_s2 + $0x5a0] sm:$0xf]  ;;  %v10355_v9 = vld [vmem:[%s16323_s2 + $0x6e4] sm:$0xf0]  ;;  %v7764_v26 = vld [vmem:[%s16323_s2 + $0x750] sm:$0xf] }
  0x47   :  { %2612 = vmatpush.bf16.msra.mxu3 %v7589_v24  ;;  %v7485_v24 = vor.u32 %v10299_v19, %v7484_v18  ;;  %v7549_v31 = vor.u32 %v10315_v21, %v7548_v20  ;;  %v7836_v13 = vld [vmem:[%s16323_s2 + $0x7e0] sm:$0xf]  ;;  %v10387_v14 = vld [vmem:[%s16323_s2 + $0x7e4] sm:$0xf0]  ;;  %v7645_v18 = vor.u32 %v10339_v6, %v7644_v5  ;;  %v7709_v19 = vor.u32 %v10355_v9, %v7708_v7  ;;  %v7636_v21 = vld [vmem:[%s16323_s2 + $0x650] sm:$0xf] }
  0x48   :  { %2574 = vmatpush.bf16.msra.mxu0 %v7389_v33  ;;  %v7476_v33 = vld [vmem:[%s16323_s2 + $0x510] sm:$0xf]  ;;  %v11758_v17 = vld [vmem:[#allocation1 + $0x1b] sm:$0xff]  ;;  %v10367_v43 = vld [vmem:[%s16323_s2 + $0x744] sm:$0xf0] }
  0x49   :  { %2587 = vmatpush.bf16.msra.mxu1 %v7453_v35  ;;  %v10297_v35 = vld [vmem:[%s16323_s2 + $0x514] sm:$0xf0]  ;;  %v7820_v44 = vld [vmem:[%s16323_s2 + $0x7c0] sm:$0xf] }
  0x4a   :  { %2600 = vmatpush.bf16.msra.mxu2 %v7517_v36  ;;  %v7540_v36 = vld [vmem:[%s16323_s2 + $0x590] sm:$0xf]  ;;  %v7477_v42 = vor.u32 %v10297_v35, %v7476_v33  ;;  %v10369_v30 = vld [vmem:[%s16323_s2 + $0x754] sm:$0xf0]  ;;  %v7628_v35 = vld [vmem:[%s16323_s2 + $0x640] sm:$0xf] }
  0x4b   :  { %2613 = vmatpush.bf16.msra.mxu3 %v7581_v40  ;;  %v10263_v40 = vld [vmem:[%s16323_s2 + $0x404] sm:$0xf0]  ;;  %v10385_v32 = vld [vmem:[%s16323_s2 + $0x7d4] sm:$0xf0] }
  0x4c   :  { %2575 = vmatpush.bf16.msra.mxu0 %v7381_v46  ;;  %v7541_v46 = vor.u32 %v10313_v37, %v7540_v36  ;;  %v7341_v53 = vor.u32 %v10263_v40, %v7340_v39  ;;  %v10335_v36 = vld [vmem:[%s16323_s2 + $0x644] sm:$0xf0]  ;;  %v7692_v39 = vld [vmem:[%s16323_s2 + $0x6c0] sm:$0xf] }
  0x4d   :  { %2588 = vmatpush.bf16.msra.mxu1 %v7445_v47  ;;  %v10295_v47 = vld [vmem:[%s16323_s2 + $0x504] sm:$0xf0] }
  0x4e   :  { %2601 = vmatpush.bf16.msra.mxu2 %v7509_v48  ;;  %v7532_v48 = vld [vmem:[%s16323_s2 + $0x580] sm:$0xf]  ;;  %v10351_v40 = vld [vmem:[%s16323_s2 + $0x6c4] sm:$0xf0] }
  0x4f   :  { %2614 = vmatpush.bf16.msra.mxu3 %v7573_v52  ;;  %v7716_v52 = vld [vmem:[%s16323_s2 + $0x6f0] sm:$0xf]  ;;  %v7533_v62 = vor.u32 %v10311_v49, %v7532_v48 }
  0x50   :  { %2576 = vmatpush.bf16.msra.mxu0 %v7373_v58  ;;  %v7469_v58 = vor.u32 %v10295_v47, %v7468_v45  ;;  %v7717_v3 = vor.u32 %v10357_v54, %v7716_v52  ;;  %v10383_v45 = vld [vmem:[%s16323_s2 + $0x7c4] sm:$0xf0] }
  0x51   :  { %2589 = vmatpush.bf16.msra.mxu1 %v7437_v59  ;;  %v7844_v59 = vld [vmem:[%s16323_s2 + $0x7f0] sm:$0xf] }
  0x52   :  { %2602 = vmatpush.bf16.msra.mxu2 %v7501_v61  ;;  %v10389_v61 = vld [vmem:[%s16323_s2 + $0x7f4] sm:$0xf0] }
  0x53   :  { %2615 = vmatpush.bf16.msra.mxu3 %v7565_v4  ;;  %v7781_v4 = vor.u32 %v10373_v56, %v7780_v55  ;;  %v7845_v8 = vor.u32 %v10389_v61, %v7844_v59 }
  0x54   :  { %2577 = vmatpush.bf16.msra.mxu0 %v7365_v10  ;;  %v7772_v10 = vld [vmem:[%s16323_s2 + $0x760] sm:$0xf] }
  0x55   :  { %2590 = vmatpush.bf16.msra.mxu1 %v7429_v11  ;;  %v10371_v11 = vld [vmem:[%s16323_s2 + $0x764] sm:$0xf0] }
  0x56   :  { %2603 = vmatpush.bf16.msra.mxu2 %v7493_v12  ;;  %v11746_v12 = vld [vmem:[#allocation1] sm:$0xff]  ;;  %v7773_v20 = vor.u32 %v10371_v11, %v7772_v10 }
  0x57   :  { %2616 = vmatpush.bf16.msra.mxu3 %v7557_v16  ;;  %v11756_v16 = vld [vmem:[#allocation1 + $0x9] sm:$0xff] }
  0x58   :  { %2578 = vmatpush.bf16.msra.mxu0 %v7357_v22  ;;  %v10337_v22 = vld [vmem:[%s16323_s2 + $0x654] sm:$0xf0] }
  0x59   :  { %2591 = vmatpush.bf16.msra.mxu1 %v7421_v23  ;;  %v7700_v23 = vld [vmem:[%s16323_s2 + $0x6d0] sm:$0xf]  ;;  %v7637_v33 = vor.u32 %v10337_v22, %v7636_v21 }
  0x5a   :  { %2604 = vmatpush.bf16.msra.mxu2 %v7485_v24  ;;  %v7837_v24 = vor.u32 %v10387_v14, %v7836_v13  ;;  %v7701_v37 = vor.u32 %v10353_v25, %v7700_v23 }
  0x5b   :  { %2617 = vmatpush.bf16.msra.mxu3 %v7549_v31  ;;  %v7828_v31 = vld [vmem:[%s16323_s2 + $0x7d0] sm:$0xf] }
  0x5c   :  { %2579 = vmatpush.bf16.msra.mxu0 %v7349_v38  ;;  %v7765_v38 = vor.u32 %v10369_v30, %v7764_v26 }
  0x5d   :  { %2592 = vmatpush.bf16.msra.mxu1 %v7413_v41  ;;  %v7756_v41 = vld [vmem:[%s16323_s2 + $0x740] sm:$0xf] }
  0x5e   :  { %2605 = vmatpush.bf16.msra.mxu2 %v7477_v42  ;;  %v7829_v42 = vor.u32 %v10385_v32, %v7828_v31 }
  0x5f   :  { %2618 = vmatpush.bf16.msra.mxu3 %v7541_v46  ;;  %v7629_v46 = vor.u32 %v10335_v36, %v7628_v35 }
  0x60   :  { %2580 = vmatpush.bf16.msra.mxu0 %v7341_v53 }
  0x61   :  { %2593 = vmatpush.bf16.msra.mxu1 %v7405_v57 }
  0x62   :  { %2606 = vmatpush.bf16.msra.mxu2 %v7469_v58 }
  0x63   :  { %2619 = vmatpush.bf16.msra.mxu3 %v7533_v62  ;;  %2581 = vmatmul.bf16.vlgmr.msra.gmra.mxu0 %v11746_v12 }
  0x64   :  { %2625 = vmatpush.bf16.msrb.mxu0 %v7653_v63  ;;  %2594 = vmatmul.bf16.vlgmr.msra.gmra.mxu1 %v11756_v16 }
  0x65   :  { %2638 = vmatpush.bf16.msrb.mxu1 %v7717_v3  ;;  %2607 = vmatmul.bf16.vlgmr.msra.gmra.mxu2 %v11754_v15 }
  0x66   :  { %2651 = vmatpush.bf16.msrb.mxu2 %v7781_v4  ;;  %2620 = vmatmul.bf16.vlgmr.msra.gmra.mxu3 %v11758_v17 }
  0x67   :  { %2664 = vmatpush.bf16.msrb.mxu3 %v7845_v8 }
  0x68   :  { %2626 = vmatpush.bf16.msrb.mxu0 %v7645_v18 }
  0x69   :  { %2639 = vmatpush.bf16.msrb.mxu1 %v7709_v19 }
  0x6a   :  { %2652 = vmatpush.bf16.msrb.mxu2 %v7773_v20 }
  0x6b   :  { %2665 = vmatpush.bf16.msrb.mxu3 %v7837_v24 }
  0x6c   :  { %2627 = vmatpush.bf16.msrb.mxu0 %v7637_v33 }
  0x6d   :  { %21 = vsyncpa [#allocation5], 0  ;;  %2640 = vmatpush.bf16.msrb.mxu1 %v7701_v37  ;;  %v7693_v47 = vor.u32 %v10351_v40, %v7692_v39  ;;  %v7757_v48 = vor.u32 %v10367_v43, %v7756_v41  ;;  %v7620_v49 = vld [vmem:[%s16323_s2 + $0x630] sm:$0xf]  ;;  %v10333_v50 = vld [vmem:[%s16323_s2 + $0x634] sm:$0xf0]  ;;  %v7821_v52 = vor.u32 %v10383_v45, %v7820_v44 }
  0x6e   :  { %2653 = vmatpush.bf16.msrb.mxu2 %v7765_v38  ;;  %v7684_v51 = vld [vmem:[%s16323_s2 + $0x6b0] sm:$0xf]  ;;  %v10349_v53 = vld [vmem:[%s16323_s2 + $0x6b4] sm:$0xf0]  ;;  %v7621_v58 = vor.u32 %v10333_v50, %v7620_v49  ;;  %v7612_v62 = vld [vmem:[%s16323_s2 + $0x620] sm:$0xf] }
  0x6f   :  { %2666 = vmatpush.bf16.msrb.mxu3 %v7829_v42  ;;  %v7748_v54 = vld [vmem:[%s16323_s2 + $0x730] sm:$0xf]  ;;  %v10365_v55 = vld [vmem:[%s16323_s2 + $0x734] sm:$0xf0]  ;;  %v7685_v59 = vor.u32 %v10349_v53, %v7684_v51  ;;  %v10331_v63 = vld [vmem:[%s16323_s2 + $0x624] sm:$0xf0] }
  0x70   :  { %v7812_v56 = vld [vmem:[%s16323_s2 + $0x7b0] sm:$0xf]  ;;  %v10381_v57 = vld [vmem:[%s16323_s2 + $0x7b4] sm:$0xf0]  ;;  %2628 = vmatpush.bf16.msrb.mxu0 %v7629_v46  ;;  %v7749_v61 = vor.u32 %v10365_v55, %v7748_v54  ;;  %v7676_v3 = vld [vmem:[%s16323_s2 + $0x6a0] sm:$0xf]  ;;  %v7613_v10 = vor.u32 %v10331_v63, %v7612_v62 }
  0x71   :  { %2641 = vmatpush.bf16.msrb.mxu1 %v7693_v47  ;;  %v7813_v4 = vor.u32 %v10381_v57, %v7812_v56  ;;  %v10347_v5 = vld [vmem:[%s16323_s2 + $0x6a4] sm:$0xf0]  ;;  %v7740_v6 = vld [vmem:[%s16323_s2 + $0x720] sm:$0xf]  ;;  %v7604_v11 = vld [vmem:[%s16323_s2 + $0x610] sm:$0xf] }
  0x72   :  { %2654 = vmatpush.bf16.msrb.mxu2 %v7757_v48  ;;  %v10363_v7 = vld [vmem:[%s16323_s2 + $0x724] sm:$0xf0]  ;;  %v7804_v8 = vld [vmem:[%s16323_s2 + $0x7a0] sm:$0xf]  ;;  %v7677_v13 = vor.u32 %v10347_v5, %v7676_v3  ;;  %v10329_v18 = vld [vmem:[%s16323_s2 + $0x614] sm:$0xf0] }
  0x73   :  { %2667 = vmatpush.bf16.msrb.mxu3 %v7821_v52  ;;  %v10379_v9 = vld [vmem:[%s16323_s2 + $0x7a4] sm:$0xf0]  ;;  %v7741_v14 = vor.u32 %v10363_v7, %v7740_v6  ;;  %v7668_v19 = vld [vmem:[%s16323_s2 + $0x690] sm:$0xf]  ;;  %v10345_v20 = vld [vmem:[%s16323_s2 + $0x694] sm:$0xf0]  ;;  %v7605_v31 = vor.u32 %v10329_v18, %v7604_v11 }
  0x74   :  { %2629 = vmatpush.bf16.msrb.mxu0 %v7621_v58  ;;  %v7805_v21 = vor.u32 %v10379_v9, %v7804_v8  ;;  %v7732_v22 = vld [vmem:[%s16323_s2 + $0x710] sm:$0xf]  ;;  %v10361_v23 = vld [vmem:[%s16323_s2 + $0x714] sm:$0xf0]  ;;  %v7596_v26 = vld [vmem:[%s16323_s2 + $0x600] sm:$0xf]  ;;  %v7669_v37 = vor.u32 %v10345_v20, %v7668_v19 }
  0x75   :  { %2642 = vmatpush.bf16.msrb.mxu1 %v7685_v59  ;;  %v7796_v24 = vld [vmem:[%s16323_s2 + $0x790] sm:$0xf]  ;;  %v10377_v25 = vld [vmem:[%s16323_s2 + $0x794] sm:$0xf0]  ;;  %v10327_v30 = vld [vmem:[%s16323_s2 + $0x604] sm:$0xf0]  ;;  %v7733_v38 = vor.u32 %v10361_v23, %v7732_v22 }
  0x76   :  { %2655 = vmatpush.bf16.msrb.mxu2 %v7749_v61  ;;  %v7660_v32 = vld [vmem:[%s16323_s2 + $0x680] sm:$0xf]  ;;  %v10343_v33 = vld [vmem:[%s16323_s2 + $0x684] sm:$0xf0]  ;;  %v7908_v41 = vld [vmem:[%s16323_s2 + $0x870] sm:$0xf]  ;;  %v7797_v43 = vor.u32 %v10377_v25, %v7796_v24  ;;  %v7597_v51 = vor.u32 %v10327_v30, %v7596_v26 }
  0x77   :  { %2668 = vmatpush.bf16.msrb.mxu3 %v7813_v4  ;;  %v7724_v35 = vld [vmem:[%s16323_s2 + $0x700] sm:$0xf]  ;;  %v10359_v36 = vld [vmem:[%s16323_s2 + $0x704] sm:$0xf0]  ;;  %v10405_v42 = vld [vmem:[%s16323_s2 + $0x874] sm:$0xf0]  ;;  %v7661_v54 = vor.u32 %v10343_v33, %v7660_v32 }
  0x78   :  { %2630 = vmatpush.bf16.msrb.mxu0 %v7613_v10  ;;  %v7788_v39 = vld [vmem:[%s16323_s2 + $0x780] sm:$0xf]  ;;  %v10375_v40 = vld [vmem:[%s16323_s2 + $0x784] sm:$0xf0]  ;;  %v7972_v44 = vld [vmem:[%s16323_s2 + $0x8f0] sm:$0xf]  ;;  %v7725_v55 = vor.u32 %v10359_v36, %v7724_v35  ;;  %v7909_v59 = vor.u32 %v10405_v42, %v7908_v41 }
  0x79   :  { %2643 = vmatpush.bf16.msrb.mxu1 %v7677_v13  ;;  %v10421_v45 = vld [vmem:[%s16323_s2 + $0x8f4] sm:$0xf0]  ;;  %v11920_v46 = vld [vmem:[#allocation1 + $0x24] sm:$0xff]  ;;  %v11924_v48 = vld [vmem:[#allocation1 + $0x2d] sm:$0xff]  ;;  %v7789_v58 = vor.u32 %v10375_v40, %v7788_v39  ;;  %vm2466_vm0 = vcmask 523264   ;;  %vm3474_vm1 = vcmask 1041408  }
  0x7a   :  { %2656 = vmatpush.bf16.msrb.mxu2 %v7741_v14  ;;  %v11922_v47 = vld [vmem:[#allocation1 + $0x36] sm:$0xff]  ;;  %v11926_v49 = vld [vmem:[#allocation1 + $0x3f] sm:$0xff]  ;;  %v8036_v52 = vld [vmem:[%s16323_s2 + $0x970] sm:$0xf]  ;;  %v7973_v61 = vor.u32 %v10421_v45, %v7972_v44  ;;  %vm6787_vm2 = vcmask 156672   ;;  %vm3470_vm3 = vcmask 162816  }
  0x7b   :  { %2669 = vmatpush.bf16.msrb.mxu3 %v7805_v21  ;;  %v49_v50 = vld [vmem:[%s16321_s0 + $0x10] sm:$0xff]  ;;  %v10437_v53 = vld [vmem:[%s16323_s2 + $0x974] sm:$0xf0]  ;;  %v7900_v63 = vld [vmem:[%s16323_s2 + $0x860] sm:$0xf]  ;;  %vm6724_vm4 = vcmask 1040384  }
  0x7c   :  { %2631 = vmatpush.bf16.msrb.mxu0 %v7605_v31  ;;  %470 = vst [vmem:[#allocation1] ss:$9 sm:$0xff] %v49_v50  ;;  %v8100_v56 = vld [vmem:[%s16323_s2 + $0x9f0] sm:$0xf]  ;;  %v10453_v57 = vld [vmem:[%s16323_s2 + $0x9f4] sm:$0xf0]  ;;  %v8037_v62 = vor.u32 %v10437_v53, %v8036_v52 }
  0x7d   :  { %2644 = vmatpush.bf16.msrb.mxu1 %v7669_v37  ;;  %v10403_v3 = vld [vmem:[%s16323_s2 + $0x864] sm:$0xf0]  ;;  %v7964_v4 = vld [vmem:[%s16323_s2 + $0x8e0] sm:$0xf]  ;;  %v8101_v5 = vor.u32 %v10453_v57, %v8100_v56  ;;  %v7892_v18 = vld [vmem:[%s16323_s2 + $0x850] sm:$0xf] }
  0x7e   :  { %2657 = vmatpush.bf16.msrb.mxu2 %v7733_v38  ;;  %v10419_v6 = vld [vmem:[%s16323_s2 + $0x8e4] sm:$0xf0]  ;;  %v8028_v7 = vld [vmem:[%s16323_s2 + $0x960] sm:$0xf]  ;;  %v7901_v11 = vor.u32 %v10403_v3, %v7900_v63  ;;  %v10401_v19 = vld [vmem:[%s16323_s2 + $0x854] sm:$0xf0] }
  0x7f   :  { %2670 = vmatpush.bf16.msrb.mxu3 %v7797_v43  ;;  %v10435_v8 = vld [vmem:[%s16323_s2 + $0x964] sm:$0xf0]  ;;  %v8092_v9 = vld [vmem:[%s16323_s2 + $0x9e0] sm:$0xf]  ;;  %v7965_v13 = vor.u32 %v10419_v6, %v7964_v4  ;;  %v7956_v20 = vld [vmem:[%s16323_s2 + $0x8d0] sm:$0xf]  ;;  %v7893_v30 = vor.u32 %v10401_v19, %v7892_v18 }
  0x80   :  { %2632 = vmatpush.bf16.msrb.mxu0 %v7597_v51  ;;  %v10451_v10 = vld [vmem:[%s16323_s2 + $0x9e4] sm:$0xf0]  ;;  %v8029_v14 = vor.u32 %v10435_v8, %v8028_v7  ;;  %v10417_v22 = vld [vmem:[%s16323_s2 + $0x8d4] sm:$0xf0]  ;;  %v8020_v23 = vld [vmem:[%s16323_s2 + $0x950] sm:$0xf] }
  0x81   :  { %2645 = vmatpush.bf16.msrb.mxu1 %v7661_v54  ;;  %v8093_v21 = vor.u32 %v10451_v10, %v8092_v9  ;;  %v10433_v24 = vld [vmem:[%s16323_s2 + $0x954] sm:$0xf0]  ;;  %v8084_v25 = vld [vmem:[%s16323_s2 + $0x9d0] sm:$0xf]  ;;  %v7957_v31 = vor.u32 %v10417_v22, %v7956_v20  ;;  %v7884_v33 = vld [vmem:[%s16323_s2 + $0x840] sm:$0xf] }
  0x82   :  { %2658 = vmatpush.bf16.msrb.mxu2 %v7725_v55  ;;  %v10449_v26 = vld [vmem:[%s16323_s2 + $0x9d4] sm:$0xf0]  ;;  %v8021_v32 = vor.u32 %v10433_v24, %v8020_v23  ;;  %v10399_v35 = vld [vmem:[%s16323_s2 + $0x844] sm:$0xf0]  ;;  %v7948_v36 = vld [vmem:[%s16323_s2 + $0x8c0] sm:$0xf] }
  0x83   :  { %2671 = vmatpush.bf16.msrb.mxu3 %v7789_v58  ;;  %2633 = vmatmul.bf16.vlgmr.msrb.gmra.mxu0 %v11920_v46  ;;  %v8085_v37 = vor.u32 %v10449_v26, %v8084_v25  ;;  %v10415_v38 = vld [vmem:[%s16323_s2 + $0x8c4] sm:$0xf0]  ;;  %v8012_v39 = vld [vmem:[%s16323_s2 + $0x940] sm:$0xf]  ;;  %v7885_v43 = vor.u32 %v10399_v35, %v7884_v33  ;;  %v7876_v50 = vld [vmem:[%s16323_s2 + $0x830] sm:$0xf] }
  0x84   :  { %2677 = vmatpush.bf16.msra.mxu0 %v7909_v59  ;;  %2646 = vmatmul.bf16.vlgmr.msrb.gmra.mxu1 %v11924_v48  ;;  %v10431_v40 = vld [vmem:[%s16323_s2 + $0x944] sm:$0xf0]  ;;  %v8076_v41 = vld [vmem:[%s16323_s2 + $0x9c0] sm:$0xf]  ;;  %v7949_v44 = vor.u32 %v10415_v38, %v7948_v36  ;;  %v10397_v51 = vld [vmem:[%s16323_s2 + $0x834] sm:$0xf0] }
  0x85   :  { %2690 = vmatpush.bf16.msra.mxu1 %v7973_v61  ;;  %2659 = vmatmul.bf16.vlgmr.msrb.gmra.mxu2 %v11922_v47  ;;  %v10447_v42 = vld [vmem:[%s16323_s2 + $0x9c4] sm:$0xf0]  ;;  %v8013_v45 = vor.u32 %v10431_v40, %v8012_v39  ;;  %v7940_v52 = vld [vmem:[%s16323_s2 + $0x8b0] sm:$0xf]  ;;  %v10413_v54 = vld [vmem:[%s16323_s2 + $0x8b4] sm:$0xf0]  ;;  %v7877_v59 = vor.u32 %v10397_v51, %v7876_v50 }
  0x86   :  { %2703 = vmatpush.bf16.msra.mxu2 %v8037_v62  ;;  %2672 = vmatmul.bf16.vlgmr.msrb.gmra.mxu3 %v11926_v49  ;;  %v8077_v53 = vor.u32 %v10447_v42, %v8076_v41  ;;  %v8004_v55 = vld [vmem:[%s16323_s2 + $0x930] sm:$0xf]  ;;  %v10429_v56 = vld [vmem:[%s16323_s2 + $0x934] sm:$0xf0]  ;;  %v7941_v61 = vor.u32 %v10413_v54, %v7940_v52  ;;  %v7868_v63 = vld [vmem:[%s16323_s2 + $0x820] sm:$0xf] }
  0x87   :  { %2716 = vmatpush.bf16.msra.mxu3 %v8101_v5  ;;  %v8068_v57 = vld [vmem:[%s16323_s2 + $0x9b0] sm:$0xf]  ;;  %v10445_v58 = vld [vmem:[%s16323_s2 + $0x9b4] sm:$0xf0]  ;;  %v8005_v62 = vor.u32 %v10429_v56, %v8004_v55  ;;  %v10395_v3 = vld [vmem:[%s16323_s2 + $0x824] sm:$0xf0] }
  0x88   :  { %2678 = vmatpush.bf16.msra.mxu0 %v7901_v11  ;;  %v7932_v4 = vld [vmem:[%s16323_s2 + $0x8a0] sm:$0xf]  ;;  %v8069_v5 = vor.u32 %v10445_v58, %v8068_v57  ;;  %v10411_v6 = vld [vmem:[%s16323_s2 + $0x8a4] sm:$0xf0]  ;;  %v7869_v11 = vor.u32 %v10395_v3, %v7868_v63  ;;  %v7860_v18 = vld [vmem:[%s16323_s2 + $0x810] sm:$0xf] }
  0x89   :  { %2691 = vmatpush.bf16.msra.mxu1 %v7965_v13  ;;  %v7996_v7 = vld [vmem:[%s16323_s2 + $0x920] sm:$0xf]  ;;  %v10427_v8 = vld [vmem:[%s16323_s2 + $0x924] sm:$0xf0]  ;;  %v7933_v13 = vor.u32 %v10411_v6, %v7932_v4  ;;  %v10393_v19 = vld [vmem:[%s16323_s2 + $0x814] sm:$0xf0] }
  0x8a   :  { %2704 = vmatpush.bf16.msra.mxu2 %v8029_v14  ;;  %v8060_v9 = vld [vmem:[%s16323_s2 + $0x9a0] sm:$0xf]  ;;  %v10443_v10 = vld [vmem:[%s16323_s2 + $0x9a4] sm:$0xf0]  ;;  %v7997_v14 = vor.u32 %v10427_v8, %v7996_v7  ;;  %v7924_v20 = vld [vmem:[%s16323_s2 + $0x890] sm:$0xf] }
  0x8b   :  { %2717 = vmatpush.bf16.msra.mxu3 %v8093_v21  ;;  %v8061_v21 = vor.u32 %v10443_v10, %v8060_v9  ;;  %v10409_v22 = vld [vmem:[%s16323_s2 + $0x894] sm:$0xf0]  ;;  %v7988_v23 = vld [vmem:[%s16323_s2 + $0x910] sm:$0xf]  ;;  %v7916_v36 = vld [vmem:[%s16323_s2 + $0x880] sm:$0xf] }
  0x8c   :  { %2679 = vmatpush.bf16.msra.mxu0 %v7893_v30  ;;  %v10425_v24 = vld [vmem:[%s16323_s2 + $0x914] sm:$0xf0]  ;;  %v8052_v25 = vld [vmem:[%s16323_s2 + $0x990] sm:$0xf]  ;;  %v7861_v30 = vor.u32 %v10393_v19, %v7860_v18  ;;  %v7925_v33 = vor.u32 %v10409_v22, %v7924_v20  ;;  %v7980_v38 = vld [vmem:[%s16323_s2 + $0x900] sm:$0xf] }
  0x8d   :  { %2692 = vmatpush.bf16.msra.mxu1 %v7957_v31  ;;  %v10441_v26 = vld [vmem:[%s16323_s2 + $0x994] sm:$0xf0]  ;;  %v7852_v31 = vld [vmem:[%s16323_s2 + $0x800] sm:$0xf]  ;;  %v7989_v35 = vor.u32 %v10425_v24, %v7988_v23  ;;  %v10423_v40 = vld [vmem:[%s16323_s2 + $0x904] sm:$0xf0] }
  0x8e   :  { %2705 = vmatpush.bf16.msra.mxu2 %v8021_v32  ;;  %v10391_v32 = vld [vmem:[%s16323_s2 + $0x804] sm:$0xf0]  ;;  %v8053_v39 = vor.u32 %v10441_v26, %v8052_v25  ;;  %v8044_v41 = vld [vmem:[%s16323_s2 + $0x980] sm:$0xf]  ;;  %v10485_v51 = vld [vmem:[%s16323_s2 + $0xaf4] sm:$0xf0]  ;;  %v7981_v55 = vor.u32 %v10423_v40, %v7980_v38 }
  0x8f   :  { %2718 = vmatpush.bf16.msra.mxu3 %v8085_v37  ;;  %v10407_v37 = vld [vmem:[%s16323_s2 + $0x884] sm:$0xf0]  ;;  %v7853_v50 = vor.u32 %v10391_v32, %v7852_v31  ;;  %v8292_v52 = vld [vmem:[%s16323_s2 + $0xb70] sm:$0xf]  ;;  %v10517_v57 = vld [vmem:[%s16323_s2 + $0xbf4] sm:$0xf0] }
  0x90   :  { %2680 = vmatpush.bf16.msra.mxu0 %v7885_v43  ;;  %v10439_v42 = vld [vmem:[%s16323_s2 + $0x984] sm:$0xf0]  ;;  %v8164_v43 = vld [vmem:[%s16323_s2 + $0xa70] sm:$0xf]  ;;  %v7917_v54 = vor.u32 %v10407_v37, %v7916_v36  ;;  %v8156_v63 = vld [vmem:[%s16323_s2 + $0xa60] sm:$0xf] }
  0x91   :  { %2693 = vmatpush.bf16.msra.mxu1 %v7949_v44  ;;  %v10469_v44 = vld [vmem:[%s16323_s2 + $0xa74] sm:$0xf0]  ;;  %v8356_v56 = vld [vmem:[%s16323_s2 + $0xbf0] sm:$0xf]  ;;  %v8045_v58 = vor.u32 %v10439_v42, %v8044_v41  ;;  %v10467_v3 = vld [vmem:[%s16323_s2 + $0xa64] sm:$0xf0] }
  0x92   :  { %2706 = vmatpush.bf16.msra.mxu2 %v8013_v45  ;;  %v8228_v45 = vld [vmem:[%s16323_s2 + $0xaf0] sm:$0xf]  ;;  %v8220_v4 = vld [vmem:[%s16323_s2 + $0xae0] sm:$0xf]  ;;  %v10483_v6 = vld [vmem:[%s16323_s2 + $0xae4] sm:$0xf0]  ;;  %v8157_v19 = vor.u32 %v10467_v3, %v8156_v63 }
  0x93   :  { %2719 = vmatpush.bf16.msra.mxu3 %v8077_v53  ;;  %v10501_v53 = vld [vmem:[%s16323_s2 + $0xb74] sm:$0xf0]  ;;  %v8284_v7 = vld [vmem:[%s16323_s2 + $0xb60] sm:$0xf]  ;;  %v10499_v8 = vld [vmem:[%s16323_s2 + $0xb64] sm:$0xf0]  ;;  %v8221_v20 = vor.u32 %v10483_v6, %v8220_v4 }
  0x94   :  { %2681 = vmatpush.bf16.msra.mxu0 %v7877_v59  ;;  %v8165_v59 = vor.u32 %v10469_v44, %v8164_v43  ;;  %v12157_v9 = vld [vmem:[#allocation1] sm:$0xff]  ;;  %v8148_v22 = vld [vmem:[%s16323_s2 + $0xa50] sm:$0xf]  ;;  %v10465_v23 = vld [vmem:[%s16323_s2 + $0xa54] sm:$0xf0]  ;;  %vm6728_vm5 = vcmask 1042434  }
  0x95   :  { %2694 = vmatpush.bf16.msra.mxu1 %v7941_v61  ;;  %v8229_v61 = vor.u32 %v10485_v51, %v8228_v45  ;;  %v8348_v10 = vld [vmem:[%s16323_s2 + $0xbe0] sm:$0xf]  ;;  %v8212_v24 = vld [vmem:[%s16323_s2 + $0xad0] sm:$0xf]  ;;  %v10481_v26 = vld [vmem:[%s16323_s2 + $0xad4] sm:$0xf0] }
  0x96   :  { %2707 = vmatpush.bf16.msra.mxu2 %v8005_v62  ;;  %v8293_v62 = vor.u32 %v10501_v53, %v8292_v52  ;;  %v12169_v18 = vld [vmem:[#allocation1 + $0x1b] sm:$0xff]  ;;  %v8340_v32 = vld [vmem:[%s16323_s2 + $0xbd0] sm:$0xf]  ;;  %v8213_v36 = vor.u32 %v10481_v26, %v8212_v24  ;;  %v10479_v42 = vld [vmem:[%s16323_s2 + $0xac4] sm:$0xf0]  ;;  %vm6733_vm6 = vcmask 1044484  }
  0x97   :  { %2720 = vmatpush.bf16.msra.mxu3 %v8069_v5  ;;  %v8357_v5 = vor.u32 %v10517_v57, %v8356_v56  ;;  %v10497_v31 = vld [vmem:[%s16323_s2 + $0xb54] sm:$0xf0]  ;;  %v8140_v38 = vld [vmem:[%s16323_s2 + $0xa40] sm:$0xf]  ;;  %v10495_v44 = vld [vmem:[%s16323_s2 + $0xb44] sm:$0xf0] }
  0x98   :  { %2682 = vmatpush.bf16.msra.mxu0 %v7869_v11  ;;  %v10515_v11 = vld [vmem:[%s16323_s2 + $0xbe4] sm:$0xf0]  ;;  %v8204_v40 = vld [vmem:[%s16323_s2 + $0xac0] sm:$0xf]  ;;  %v8132_v51 = vld [vmem:[%s16323_s2 + $0xa30] sm:$0xf] }
  0x99   :  { %2695 = vmatpush.bf16.msra.mxu1 %v7933_v13  ;;  %v12165_v13 = vld [vmem:[#allocation1 + $0x12] sm:$0xff]  ;;  %v8349_v25 = vor.u32 %v10515_v11, %v8348_v10  ;;  %v8268_v43 = vld [vmem:[%s16323_s2 + $0xb40] sm:$0xf]  ;;  %v8205_v56 = vor.u32 %v10479_v42, %v8204_v40  ;;  %v12247_v3 = vld [vmem:[#allocation1 + $0x24] sm:$0xff]  ;;  %vm6737_vm7 = vcmask 1046534   ;;  %vm6741_vm8 = vcmask 1045508  }
  0x9a   :  { %2708 = vmatpush.bf16.msra.mxu2 %v7997_v14  ;;  %v12167_v14 = vld [vmem:[#allocation1 + $0x9] sm:$0xff]  ;;  %v8332_v45 = vld [vmem:[%s16323_s2 + $0xbc0] sm:$0xf]  ;;  %v10461_v53 = vld [vmem:[%s16323_s2 + $0xa34] sm:$0xf0]  ;;  %v8269_v57 = vor.u32 %v10495_v44, %v8268_v43  ;;  %vm6743_vm9 = vcmask 1043456  }
  0x9b   :  { %2721 = vmatpush.bf16.msra.mxu3 %v8061_v21  ;;  %v8285_v21 = vor.u32 %v10499_v8, %v8284_v7  ;;  %v10509_v63 = vld [vmem:[%s16323_s2 + $0xbb4] sm:$0xf0]  ;;  %v12253_v6 = vld [vmem:[#allocation1 + $0x3f] sm:$0xff]  ;;  %v8133_v8 = vor.u32 %v10461_v53, %v8132_v51  ;;  %v8244_v42 = vld [vmem:[%s16323_s2 + $0xb10] sm:$0xf]  ;;  %s11021_s16 = smov [#allocation2]  }
  0x9c   :  { %2683 = vmatpush.bf16.msra.mxu0 %v7861_v30  ;;  %v8276_v30 = vld [vmem:[%s16323_s2 + $0xb50] sm:$0xf]  ;;  %v12249_v4 = vld [vmem:[#allocation1 + $0x36] sm:$0xff]  ;;  %v8124_v10 = vld [vmem:[%s16323_s2 + $0xa20] sm:$0xf]  ;;  %s6797_s17 = sshll.u32 %s11021_s16, 4  ;;  %s6798_s17 = int_to_ptr.vmem [resolvable:$true] %s6797_s17 }
  0x9d   :  { %2696 = vmatpush.bf16.msra.mxu1 %v7925_v33  ;;  %v10513_v33 = vld [vmem:[%s16323_s2 + $0xbd4] sm:$0xf0]  ;;  %v8277_v37 = vor.u32 %v10497_v31, %v8276_v30  ;;  %v8252_v24 = vld [vmem:[%s16323_s2 + $0xb20] sm:$0xf]  ;;  %v10507_v31 = vld [vmem:[%s16323_s2 + $0xba4] sm:$0xf0] }
  0x9e   :  { %2709 = vmatpush.bf16.msra.mxu2 %v7989_v35  ;;  %v8149_v35 = vor.u32 %v10465_v23, %v8148_v22  ;;  %v8341_v41 = vor.u32 %v10513_v33, %v8340_v32  ;;  %v50_v7 = vld [vmem:[%s16321_s0 + $0x18] sm:$0x1]  ;;  %v10475_v22 = vld [vmem:[%s16323_s2 + $0xaa4] sm:$0xf0]  ;;  %v443_v26 = vld [vmem:[%s16324_s3] sm:$0x3] }
  0x9f   :  { %2722 = vmatpush.bf16.msra.mxu3 %v8053_v39  ;;  %v10463_v39 = vld [vmem:[%s16323_s2 + $0xa44] sm:$0xf0]  ;;  %v8316_v30 = vld [vmem:[%s16323_s2 + $0xba0] sm:$0xf]  ;;  %v8116_v33 = vld [vmem:[%s16323_s2 + $0xa10] sm:$0xf] }
  0xa0   :  { %2684 = vmatpush.bf16.msra.mxu0 %v7853_v50  ;;  %v10511_v50 = vld [vmem:[%s16323_s2 + $0xbc4] sm:$0xf0]  ;;  %v8141_v52 = vor.u32 %v10463_v39, %v8140_v38  ;;  %v8180_v38 = vld [vmem:[%s16323_s2 + $0xa90] sm:$0xf]  ;;  %v445_v39 = vperm.slane %v443_v26, 0  ;;  %v8317_v40 = vor.u32 %v10507_v31, %v8316_v30  ;;  %s6799_s19 = sshll.u32 %s16334_s13, 4  ;;  %s6800_s19 = int_to_ptr.hbm [resolvable:$true] %s6799_s19 }
  0xa1   :  { %2697 = vmatpush.bf16.msra.mxu1 %v7917_v54  ;;  %v8196_v54 = vld [vmem:[%s16323_s2 + $0xab0] sm:$0xf]  ;;  %v10489_v43 = vld [vmem:[%s16323_s2 + $0xb14] sm:$0xf0]  ;;  %v8108_v51 = vld [vmem:[%s16323_s2 + $0xa00] sm:$0xf] }
  0xa2   :  { %2710 = vmatpush.bf16.msra.mxu2 %v7981_v55  ;;  %v10477_v55 = vld [vmem:[%s16323_s2 + $0xab4] sm:$0xf0]  ;;  %v8308_v44 = vld [vmem:[%s16323_s2 + $0xb90] sm:$0xf]  ;;  %v10196_v30 = vld [vmem:[%s16323_s2 + $0x1f4] sm:$0xf] }
  0xa3   :  { %2723 = vmatpush.bf16.msra.mxu3 %v8045_v58  ;;  %2685 = vmatmul.bf16.vlgmr.msra.gmra.mxu0 %v12157_v9  ;;  %v8260_v58 = vld [vmem:[%s16323_s2 + $0xb30] sm:$0xf]  ;;  %v8197_v11 = vor.u32 %v10477_v55, %v8196_v54  ;;  %v8245_v55 = vor.u32 %v10489_v43, %v8244_v42  ;;  %v7078_v31 = vld [vmem:[%s16323_s2 + $0x1f8] sm:$0xf0]  ;;  %v10146_v42 = vld [vmem:[%s16323_s2 + $0x64] sm:$0xf] }
  0xa4   :  { %2729 = vmatpush.bf16.msrb.mxu0 %v8165_v59  ;;  %2698 = vmatmul.bf16.vlgmr.msra.gmra.mxu1 %v12167_v14  ;;  %v10493_v59 = vld [vmem:[%s16323_s2 + $0xb34] sm:$0xf0]  ;;  %v7081_v43 = vor.u32 %v10196_v30, %v7078_v31  ;;  %v10142_v30 = vld [vmem:[%s16323_s2 + $0x44] sm:$0xf]  ;;  %v6862_v31 = vld [vmem:[%s16323_s2 + $0x48] sm:$0xf0] }
  0xa5   :  { %2742 = vmatpush.bf16.msrb.mxu1 %v8229_v61  ;;  %2711 = vmatmul.bf16.vlgmr.msra.gmra.mxu2 %v12165_v13  ;;  %v8324_v61 = vld [vmem:[%s16323_s2 + $0xbb0] sm:$0xf]  ;;  %s11022_s20 = smov [#allocation4]   ;;  %s6810_s22 = sshll.u32 %s16335_s14, 4  ;;  %vm6785_vm10 = vcmask 516096   ;;  %s6811_s22 = int_to_ptr.hbm [resolvable:$true] %s6810_s22 }
  0xa6   :  { %2755 = vmatpush.bf16.msrb.mxu2 %v8293_v62  ;;  %2724 = vmatmul.bf16.vlgmr.msra.gmra.mxu3 %v12169_v18  ;;  %v8333_v62 = vor.u32 %v10511_v50, %v8332_v45  ;;  %v8325_v23 = vor.u32 %v10509_v63, %v8324_v61  ;;  %v10505_v45 = vld [vmem:[%s16323_s2 + $0xb94] sm:$0xf0]  ;;  %v2478_v53 = vpop.f32.mrf.mxu0  ;;  %v10487_v63 = vld [vmem:[%s16323_s2 + $0xb04] sm:$0xf0] }
  0xa7   :  { %2768 = vmatpush.bf16.msrb.mxu3 %v8357_v5  ;;  %v12251_v5 = vld [vmem:[#allocation1 + $0x2d] sm:$0xff]  ;;  %v2491_v61 = vpop.f32.mrf.mxu1 }
  0xa8   :  { %2730 = vmatpush.bf16.msrb.mxu0 %v8157_v19  ;;  %480 = vst [vmem:[#allocation1] ss:$9 sm:$0xff] %v50_v7  ;;  %v8261_v19 = vor.u32 %v10493_v59, %v8260_v58  ;;  %v8236_v58 = vld [vmem:[%s16323_s2 + $0xb00] sm:$0xf]  ;;  %v2479_v59 = vadd.f32 %v2478_v53, %v445_v39  ;;  %v10194_v53 = vld [vmem:[%s16323_s2 + $0x1e4] sm:$0xf] }
  0xa9   :  { %2743 = vmatpush.bf16.msrb.mxu1 %v8221_v20  ;;  %v10459_v20 = vld [vmem:[%s16323_s2 + $0xa24] sm:$0xf0]  ;;  %v8300_v7 = vld [vmem:[%s16323_s2 + $0xb80] sm:$0xf]  ;;  %v8237_v26 = vor.u32 %v10487_v63, %v8236_v58 }
  0xaa   :  { %2756 = vmatpush.bf16.msrb.mxu2 %v8285_v21  ;;  %v8188_v21 = vld [vmem:[%s16323_s2 + $0xaa0] sm:$0xf]  ;;  %v8125_v32 = vor.u32 %v10459_v20, %v8124_v10  ;;  %v8388_v10 = vld [vmem:[%s16323_s2 + $0xc30] sm:$0xf]  ;;  %v2492_v20 = vadd.f32 %v2491_v61, %v2479_v59  ;;  %v10521_v61 = vld [vmem:[%s16323_s2 + $0xc14] sm:$0xf0] }
  0xab   :  { %2769 = vmatpush.bf16.msrb.mxu3 %v8349_v25  ;;  %v10491_v25 = vld [vmem:[%s16323_s2 + $0xb24] sm:$0xf0]  ;;  %v8372_v59 = vld [vmem:[%s16323_s2 + $0xc10] sm:$0xf] }
  0xac   :  { %2731 = vmatpush.bf16.msrb.mxu0 %v8149_v35  ;;  %v8189_v35 = vor.u32 %v10475_v22, %v8188_v21  ;;  %v6886_v22 = vld [vmem:[%s16323_s2 + $0x78] sm:$0xf0] }
  0xad   :  { %2744 = vmatpush.bf16.msrb.mxu1 %v8213_v36  ;;  %v8253_v36 = vor.u32 %v10491_v25, %v8252_v24  ;;  %v7014_v24 = vld [vmem:[%s16323_s2 + $0x178] sm:$0xf0] }
  0xae   :  { %2757 = vmatpush.bf16.msrb.mxu2 %v8277_v37  ;;  %v10457_v37 = vld [vmem:[%s16323_s2 + $0xa14] sm:$0xf0] }
  0xaf   :  { %2770 = vmatpush.bf16.msrb.mxu3 %v8341_v41  ;;  %v10473_v41 = vld [vmem:[%s16323_s2 + $0xa94] sm:$0xf0]  ;;  %v8117_v50 = vor.u32 %v10457_v37, %v8116_v33  ;;  %v2517_v37 = vpop.f32.mrf.mxu3 }
  0xb0   :  { %2732 = vmatpush.bf16.msrb.mxu0 %v8141_v52  ;;  %v10455_v52 = vld [vmem:[%s16323_s2 + $0xa04] sm:$0xf0]  ;;  %v8181_v54 = vor.u32 %v10473_v41, %v8180_v38 }
  0xb1   :  { %2745 = vmatpush.bf16.msrb.mxu1 %v8205_v56  ;;  %v8172_v56 = vld [vmem:[%s16323_s2 + $0xa80] sm:$0xf]  ;;  %v8109_v21 = vor.u32 %v10455_v52, %v8108_v51  ;;  %v10523_v41 = vld [vmem:[%s16323_s2 + $0xc24] sm:$0xf0]  ;;  %v2480_v52 = vpop.f32.mrf.mxu0 }
  0xb2   :  { %2758 = vmatpush.bf16.msrb.mxu2 %v8269_v57  ;;  %v10471_v57 = vld [vmem:[%s16323_s2 + $0xa84] sm:$0xf0] }
  0xb3   :  { %2771 = vmatpush.bf16.msrb.mxu3 %v8333_v62  ;;  %v8309_v62 = vor.u32 %v10505_v45, %v8308_v44  ;;  %v8173_v25 = vor.u32 %v10471_v57, %v8172_v56  ;;  %v6878_v44 = vld [vmem:[%s16323_s2 + $0x68] sm:$0xf0]  ;;  %v10178_v45 = vld [vmem:[%s16323_s2 + $0x164] sm:$0xf] }
  0xb4   :  { %2733 = vmatpush.bf16.msrb.mxu0 %v8133_v8  ;;  %v10503_v8 = vld [vmem:[%s16323_s2 + $0xb84] sm:$0xf0]  ;;  %v6881_v57 = vor.u32 %v10146_v42, %v6878_v44  ;;  %v6865_v42 = vor.u32 %v10142_v30, %v6862_v31  ;;  %v10140_v44 = vld [vmem:[%s16323_s2 + $0x34] sm:$0xf]  ;;  %v6934_v30 = vld [vmem:[%s16323_s2 + $0xd8] sm:$0xf0] }
  0xb5   :  { %2746 = vmatpush.bf16.msrb.mxu1 %v8197_v11  ;;  %v10525_v11 = vld [vmem:[%s16323_s2 + $0xc34] sm:$0xf0]  ;;  %v8301_v33 = vor.u32 %v10503_v8, %v8300_v7  ;;  %v6870_v7 = vld [vmem:[%s16323_s2 + $0x58] sm:$0xf0]  ;;  %v10176_v8 = vld [vmem:[%s16323_s2 + $0x154] sm:$0xf] }
  0xb6   :  { %2759 = vmatpush.bf16.msrb.mxu2 %v8261_v19  ;;  %v10148_v19 = vld [vmem:[%s16323_s2 + $0x74] sm:$0xf]  ;;  %v481_v31 = vld [vmem:[#allocation1] sm:$0xff] }
  0xb7   :  { %2772 = vmatpush.bf16.msrb.mxu3 %v8325_v23  ;;  %v10180_v23 = vld [vmem:[%s16323_s2 + $0x174] sm:$0xf]  ;;  %v6889_v38 = vor.u32 %v10148_v19, %v6886_v22  ;;  %v7062_v19 = vld [vmem:[%s16323_s2 + $0x1d8] sm:$0xf0]  ;;  %v8364_v22 = vld [vmem:[%s16323_s2 + $0xc00] sm:$0xf] }
  0xb8   :  { %2734 = vmatpush.bf16.msrb.mxu0 %v8125_v32  ;;  %v2504_v32 = vpop.f32.mrf.mxu2  ;;  %v7017_v39 = vor.u32 %v10180_v23, %v7014_v24  ;;  %v2519_v23 = vpop.f32.mrf.mxu3 }
  0xb9   :  { %2747 = vmatpush.bf16.msrb.mxu1 %v8189_v35  ;;  %v8389_v35 = vor.u32 %v10525_v11, %v8388_v10  ;;  %v6998_v10 = vld [vmem:[%s16323_s2 + $0x158] sm:$0xf0]  ;;  %v10192_v11 = vld [vmem:[%s16323_s2 + $0x1d4] sm:$0xf] }
  0xba   :  { %2760 = vmatpush.bf16.msrb.mxu2 %v8253_v36  ;;  %v2505_v36 = vadd.f32 %v2504_v32, %v2492_v20  ;;  %v7065_v32 = vor.u32 %v10192_v11, %v7062_v19 }
  0xbb   :  { %2773 = vmatpush.bf16.msrb.mxu3 %v8317_v40  ;;  %v8380_v40 = vld [vmem:[%s16323_s2 + $0xc20] sm:$0xf] }
  0xbc   :  { %2735 = vmatpush.bf16.msrb.mxu0 %v8117_v50  ;;  %v7006_v50 = vld [vmem:[%s16323_s2 + $0x168] sm:$0xf0]  ;;  %v2518_v51 = vadd.f32 %v2517_v37, %v2505_v36  ;;  %v8381_v56 = vor.u32 %v10523_v41, %v8380_v40  ;;  %v10190_v36 = vld [vmem:[%s16323_s2 + $0x1c4] sm:$0xf] }
  0xbd   :  { %2748 = vmatpush.bf16.msrb.mxu1 %v8181_v54  ;;  %v7070_v54 = vld [vmem:[%s16323_s2 + $0x1e8] sm:$0xf0]  ;;  %v7009_v58 = vor.u32 %v10178_v45, %v7006_v50  ;;  %v6854_v45 = vld [vmem:[%s16323_s2 + $0x38] sm:$0xf0] }
  0xbe   :  { %2761 = vmatpush.bf16.msrb.mxu2 %v8245_v55  ;;  %v2493_v55 = vpop.f32.mrf.mxu1  ;;  %v7073_v63 = vor.u32 %v10194_v53, %v7070_v54  ;;  %v7054_v37 = vld [vmem:[%s16323_s2 + $0x1c8] sm:$0xf0] }
  0xbf   :  { %2774 = vmatpush.bf16.msrb.mxu3 %v8309_v62  ;;  %v10144_v62 = vld [vmem:[%s16323_s2 + $0x54] sm:$0xf]  ;;  %v7057_v53 = vor.u32 %v10190_v36, %v7054_v37 }
  0xc0   :  { %2736 = vmatpush.bf16.msrb.mxu0 %v8109_v21  ;;  %v2506_v20 = vpop.f32.mrf.mxu2  ;;  %v8373_v21 = vor.u32 %v10521_v61, %v8372_v59  ;;  %v6873_v24 = vor.u32 %v10144_v62, %v6870_v7  ;;  %v2530_v41 = vpop.f32.mrf.mxu0  ;;  %v10172_v55 = vld [vmem:[%s16323_s2 + $0x134] sm:$0xf]  ;;  %v6942_v59 = vld [vmem:[%s16323_s2 + $0xe8] sm:$0xf0]  ;;  %v6857_v62 = vor.u32 %v10140_v44, %v6854_v45  ;;  %v10138_v7 = vld [vmem:[%s16323_s2 + $0x24] sm:$0xf] }
  0xc1   :  { %2749 = vmatpush.bf16.msrb.mxu1 %v8173_v25  ;;  %v7001_v25 = vor.u32 %v10176_v8, %v6998_v10  ;;  %v2531_v50 = vadd.f32 %v2530_v41, %v2518_v51  ;;  %v7046_v51 = vld [vmem:[%s16323_s2 + $0x1b8] sm:$0xf0]  ;;  %v6846_v8 = vld [vmem:[%s16323_s2 + $0x28] sm:$0xf0]  ;;  %v10170_v20 = vld [vmem:[%s16323_s2 + $0x124] sm:$0xf] }
  0xc2   :  { %2762 = vmatpush.bf16.msrb.mxu2 %v8237_v26  ;;  %v10519_v26 = vld [vmem:[%s16323_s2 + $0xc04] sm:$0xf0]  ;;  %v10136_v37 = vld [vmem:[%s16323_s2 + $0x14] sm:$0xf]  ;;  %v7030_v45 = vld [vmem:[%s16323_s2 + $0x198] sm:$0xf0] }
  0xc3   :  { %2775 = vmatpush.bf16.msrb.mxu3 %v8301_v33  ;;  %2737 = vmatmul.bf16.vlgmr.msrb.gmra.mxu0 %v12247_v3  ;;  %v10174_v33 = vld [vmem:[%s16323_s2 + $0x144] sm:$0xf]  ;;  %v8365_v40 = vor.u32 %v10519_v26, %v8364_v22  ;;  %v10160_v26 = vld [vmem:[%s16323_s2 + $0xd4] sm:$0xf] }
  0xc4   :  { %2833 = vmatpush.bf16.msra.mxu0 %v7081_v43  ;;  %2750 = vmatmul.bf16.vlgmr.msrb.gmra.mxu1 %v12251_v5  ;;  %v10186_v22 = vld [vmem:[%s16323_s2 + $0x1a4] sm:$0xf]  ;;  %v6937_v41 = vor.u32 %v10160_v26, %v6934_v30  ;;  %v10184_v44 = vld [vmem:[%s16323_s2 + $0x194] sm:$0xf] }
  0xc5   :  { %2794 = vmatpush.bf16.msra.mxu1 %v6889_v38  ;;  %2763 = vmatmul.bf16.vlgmr.msrb.gmra.mxu2 %v12249_v4  ;;  %v10164_v38 = vld [vmem:[%s16323_s2 + $0xf4] sm:$0xf] }
  0xc6   :  { %2785 = vmatpush.bf16.msra.mxu2 %v8389_v35  ;;  %2776 = vmatmul.bf16.vlgmr.msrb.gmra.mxu3 %v12253_v6  ;;  %v6990_v35 = vld [vmem:[%s16323_s2 + $0x148] sm:$0xf0]  ;;  %v2543_v52 = vpop.f32.mrf.mxu1 }
  0xc7   :  { %2820 = vmatpush.bf16.msra.mxu3 %v7017_v39  ;;  %v6950_v39 = vld [vmem:[%s16323_s2 + $0xf8] sm:$0xf0]  ;;  %v6993_v43 = vor.u32 %v10174_v33, %v6990_v35  ;;  %v2544_v61 = vadd.f32 %v2543_v52, %v2531_v50  ;;  %v6849_v35 = vor.u32 %v10138_v7, %v6846_v8  ;;  %v10158_v50 = vld [vmem:[%s16323_s2 + $0xc4] sm:$0xf]  ;;  %v6926_v52 = vld [vmem:[%s16323_s2 + $0xc8] sm:$0xf0] }
  0xc8   :  { %2834 = vmatpush.bf16.msra.mxu0 %v7073_v63  ;;  %v6953_v54 = vor.u32 %v10164_v38, %v6950_v39  ;;  %v2556_v10 = vpop.f32.mrf.mxu2  ;;  %v2532_v33 = vpop.f32.mrf.mxu0  ;;  %v6838_v38 = vld [vmem:[%s16323_s2 + $0x18] sm:$0xf0]  ;;  %v10156_v8 = vld [vmem:[%s16323_s2 + $0xb4] sm:$0xf] }
  0xc9   :  { %2795 = vmatpush.bf16.msra.mxu1 %v6881_v57  ;;  %v10188_v57 = vld [vmem:[%s16323_s2 + $0x1b4] sm:$0xf]  ;;  %v2557_v23 = vadd.f32 %v2556_v10, %v2544_v61  ;;  %v6958_v61 = vld [vmem:[%s16323_s2 + $0x108] sm:$0xf0]  ;;  %v6918_v10 = vld [vmem:[%s16323_s2 + $0xb8] sm:$0xf0] }
  0xca   :  { %2786 = vmatpush.bf16.msra.mxu2 %v8381_v56  ;;  %v6982_v56 = vld [vmem:[%s16323_s2 + $0x138] sm:$0xf0]  ;;  %v7049_v11 = vor.u32 %v10188_v57, %v7046_v51  ;;  %v10166_v57 = vld [vmem:[%s16323_s2 + $0x104] sm:$0xf]  ;;  %v6921_v30 = vor.u32 %v10156_v8, %v6918_v10 }
  0xcb   :  { %2821 = vmatpush.bf16.msra.mxu3 %v7009_v58  ;;  %v10162_v58 = vld [vmem:[%s16323_s2 + $0xe4] sm:$0xf]  ;;  %v6985_v63 = vor.u32 %v10172_v55, %v6982_v56  ;;  %v6830_v56 = vld [vmem:[%s16323_s2 + $0x8] sm:$0xf0] }
  0xcc   :  { %2835 = vmatpush.bf16.msra.mxu0 %v7065_v32  ;;  %v6945_v19 = vor.u32 %v10162_v58, %v6942_v59  ;;  %v10134_v55 = vld [vmem:[%s16323_s2 + $0x4] sm:$0xf]  ;;  %v7033_v58 = vor.u32 %v10184_v44, %v7030_v45  ;;  %v6929_v59 = vor.u32 %v10158_v50, %v6926_v52  ;;  %v10152_v52 = vld [vmem:[%s16323_s2 + $0x94] sm:$0xf] }
  0xcd   :  { %2796 = vmatpush.bf16.msra.mxu1 %v6873_v24  ;;  %v2569_v24 = vpop.f32.mrf.mxu3  ;;  %v10238_v10 = vld [vmem:[%s16323_s2 + $0x344] sm:$0xf] }
  0xce   :  { %2787 = vmatpush.bf16.msra.mxu2 %v8373_v21  ;;  %v6974_v21 = vld [vmem:[%s16323_s2 + $0x128] sm:$0xf0]  ;;  %v12487_v32 = vadd.f32 %v2569_v24, %v2557_v23  ;;  %v2545_v39 = vpop.f32.mrf.mxu1  ;;  %v6961_v23 = vor.u32 %v10166_v57, %v6958_v61  ;;  %v10260_v24 = vld [vmem:[%s16323_s2 + $0x3f4] sm:$0xf] }
  0xcf   :  { %2822 = vmatpush.bf16.msra.mxu3 %v7001_v25  ;;  %v7038_v25 = vld [vmem:[%s16323_s2 + $0x1a8] sm:$0xf0]  ;;  %v6977_v36 = vor.u32 %v10170_v20, %v6974_v21  ;;  %v10244_v20 = vld [vmem:[%s16323_s2 + $0x374] sm:$0xf]  ;;  %v7270_v21 = vld [vmem:[%s16323_s2 + $0x378] sm:$0xf0] }
  0xd0   :  { %2836 = vmatpush.bf16.msra.mxu0 %v7057_v53  ;;  %v6841_v53 = vor.u32 %v10136_v37, %v6838_v38  ;;  %v2558_v51 = vpop.f32.mrf.mxu2  ;;  %v7273_v33 = vor.u32 %v10244_v20, %v7270_v21  ;;  %v10210_v37 = vld [vmem:[%s16323_s2 + $0x264] sm:$0xf]  ;;  %v7134_v39 = vld [vmem:[%s16323_s2 + $0x268] sm:$0xf0]  ;;  %v10240_v57 = vld [vmem:[%s16323_s2 + $0x354] sm:$0xf] }
  0xd1   :  { %2797 = vmatpush.bf16.msra.mxu1 %v6865_v42  ;;  %v10168_v42 = vld [vmem:[%s16323_s2 + $0x114] sm:$0xf]  ;;  %v7137_v45 = vor.u32 %v10210_v37, %v7134_v39  ;;  %v7254_v51 = vld [vmem:[%s16323_s2 + $0x358] sm:$0xf0]  ;;  %v7310_v21 = vld [vmem:[%s16323_s2 + $0x3c8] sm:$0xf0] }
  0xd2   :  { %2788 = vmatpush.bf16.msra.mxu2 %v8365_v40  ;;  %v7041_v40 = vor.u32 %v10186_v22, %v7038_v25  ;;  %v6833_v22 = vor.u32 %v10134_v55, %v6830_v56  ;;  %v7334_v25 = vld [vmem:[%s16323_s2 + $0x3f8] sm:$0xf0] }
  0xd3   :  { %2823 = vmatpush.bf16.msra.mxu3 %v6993_v43  ;;  %v6966_v43 = vld [vmem:[%s16323_s2 + $0x118] sm:$0xf0]  ;;  %v7337_v38 = vor.u32 %v10260_v24, %v7334_v25 }
  0xd4   :  { %2837 = vmatpush.bf16.msra.mxu0 %v7049_v11  ;;  %v10212_v11 = vld [vmem:[%s16323_s2 + $0x274] sm:$0xf]  ;;  %v7126_v56 = vld [vmem:[%s16323_s2 + $0x258] sm:$0xf0] }
  0xd5   :  { %2798 = vmatpush.bf16.msra.mxu1 %v6857_v62  ;;  %8394 = vmatmul.msk.bf16.vlgmr.msra.gmra.mxu2 %vm2466_vm0, %v481_v31  ;;  %v10182_v62 = vld [vmem:[%s16323_s2 + $0x184] sm:$0xf]  ;;  %v2571_v7 = vpop.f32.mrf.mxu3  ;;  %v7238_v39 = vld [vmem:[%s16323_s2 + $0x338] sm:$0xf0] }
  0xd6   :  { %2807 = vmatpush.bf16.msrb.mxu2 %v6953_v54  ;;  %v6969_v54 = vor.u32 %v10168_v42, %v6966_v43  ;;  %v10258_v42 = vld [vmem:[%s16323_s2 + $0x3e4] sm:$0xf]  ;;  %v7326_v43 = vld [vmem:[%s16323_s2 + $0x3e8] sm:$0xf0] }
  0xd7   :  { %2824 = vmatpush.bf16.msra.mxu3 %v6985_v63  ;;  %v7022_v63 = vld [vmem:[%s16323_s2 + $0x188] sm:$0xf0]  ;;  %v7329_v55 = vor.u32 %v10258_v42, %v7326_v43  ;;  %v10226_v42 = vld [vmem:[%s16323_s2 + $0x2e4] sm:$0xf] }
  0xd8   :  { %2838 = vmatpush.bf16.msra.mxu0 %v7041_v40  ;;  %v7025_v26 = vor.u32 %v10182_v62, %v7022_v63  ;;  %v10242_v40 = vld [vmem:[%s16323_s2 + $0x364] sm:$0xf]  ;;  %v7257_v63 = vor.u32 %v10240_v57, %v7254_v51  ;;  %v6894_v7 = vld [vmem:[%s16323_s2 + $0x88] sm:$0xf0] }
  0xd9   :  { %2799 = vmatpush.bf16.msra.mxu1 %v6849_v35  ;;  %v10154_v35 = vld [vmem:[%s16323_s2 + $0xa4] sm:$0xf]  ;;  %v7198_v43 = vld [vmem:[%s16323_s2 + $0x2e8] sm:$0xf0] }
  0xda   :  { %2808 = vmatpush.bf16.msrb.mxu2 %v6945_v19  ;;  %v7142_v19 = vld [vmem:[%s16323_s2 + $0x278] sm:$0xf0]  ;;  %v10150_v62 = vld [vmem:[%s16323_s2 + $0x84] sm:$0xf]  ;;  %v7230_v57 = vld [vmem:[%s16323_s2 + $0x328] sm:$0xf0] }
  0xdb   :  { %2825 = vmatpush.bf16.msra.mxu3 %v6977_v36  ;;  %v7145_v31 = vor.u32 %v10212_v11, %v7142_v19  ;;  %v6910_v36 = vld [vmem:[%s16323_s2 + $0xa8] sm:$0xf0]  ;;  %v10254_v19 = vld [vmem:[%s16323_s2 + $0x3c4] sm:$0xf]  ;;  %v6897_v25 = vor.u32 %v10150_v62, %v6894_v7  ;;  %v10224_v62 = vld [vmem:[%s16323_s2 + $0x2d4] sm:$0xf] }
  0xdc   :  { %2839 = vmatpush.bf16.msra.mxu0 %v7033_v58  ;;  %v6913_v44 = vor.u32 %v10154_v35, %v6910_v36  ;;  %v10256_v58 = vld [vmem:[%s16323_s2 + $0x3d4] sm:$0xf]  ;;  %v7246_v11 = vld [vmem:[%s16323_s2 + $0x348] sm:$0xf0]  ;;  %v7110_v35 = vld [vmem:[%s16323_s2 + $0x238] sm:$0xf0]  ;;  %v7313_v36 = vor.u32 %v10254_v19, %v7310_v21 }
  0xdd   :  { %2800 = vmatpush.bf16.msra.mxu1 %v6841_v53  ;;  %v6902_v53 = vld [vmem:[%s16323_s2 + $0x98] sm:$0xf0]  ;;  %v10250_v51 = vld [vmem:[%s16323_s2 + $0x3a4] sm:$0xf] }
  0xde   :  { %2809 = vmatpush.bf16.msrb.mxu2 %v6937_v41  ;;  %v7262_v41 = vld [vmem:[%s16323_s2 + $0x368] sm:$0xf0]  ;;  %v6905_v61 = vor.u32 %v10152_v52, %v6902_v53  ;;  %v7222_v21 = vld [vmem:[%s16323_s2 + $0x318] sm:$0xf0] }
  0xdf   :  { %2826 = vmatpush.bf16.msra.mxu3 %v6969_v54  ;;  %v7265_v50 = vor.u32 %v10242_v40, %v7262_v41  ;;  %v10208_v54 = vld [vmem:[%s16323_s2 + $0x254] sm:$0xf]  ;;  %v7302_v41 = vld [vmem:[%s16323_s2 + $0x3b8] sm:$0xf0]  ;;  %v7102_v52 = vld [vmem:[%s16323_s2 + $0x228] sm:$0xf0] }
  0xe0   :  { %2840 = vmatpush.bf16.msra.mxu0 %v7025_v26  ;;  %v2582_v20 = vpop.f32.mrf.mxu0  ;;  %v10252_v40 = vld [vmem:[%s16323_s2 + $0x3b4] sm:$0xf] }
  0xe1   :  { %2801 = vmatpush.bf16.msra.mxu1 %v6833_v22  ;;  %v10228_v22 = vld [vmem:[%s16323_s2 + $0x2f4] sm:$0xf]  ;;  %v2583_v24 = vadd.f32 %v2582_v20, %v12487_v32  ;;  %v2595_v26 = vpop.f32.mrf.mxu1  ;;  %v7305_v53 = vor.u32 %v10252_v40, %v7302_v41 }
  0xe2   :  { %2810 = vmatpush.bf16.msrb.mxu2 %v6929_v59  ;;  %v7318_v59 = vld [vmem:[%s16323_s2 + $0x3d8] sm:$0xf0]  ;;  %v10236_v32 = vld [vmem:[%s16323_s2 + $0x334] sm:$0xf] }
  0xe3   :  { %2827 = vmatpush.bf16.msra.mxu3 %v6961_v23  ;;  %2841 = vmatmul.bf16.vlgmr.msra.gmra.mxu0 %v11420_v29  ;;  %v7118_v29 = vld [vmem:[%s16323_s2 + $0x248] sm:$0xf0]  ;;  %v7321_v8 = vor.u32 %v10256_v58, %v7318_v59  ;;  %v7206_v23 = vld [vmem:[%s16323_s2 + $0x2f8] sm:$0xf0]  ;;  %v2596_v37 = vadd.f32 %v2595_v26, %v2583_v24  ;;  %v10232_v20 = vld [vmem:[%s16323_s2 + $0x314] sm:$0xf] }
  0xe4   :  { %2885 = vmatpush.bf16.msrb.mxu0 %v7337_v38  ;;  %2802 = vmatmul.bf16.vlgmr.msra.gmra.mxu1 %v11418_v28  ;;  %v10206_v28 = vld [vmem:[%s16323_s2 + $0x244] sm:$0xf]  ;;  %v7209_v38 = vor.u32 %v10228_v22, %v7206_v23  ;;  %v10248_v22 = vld [vmem:[%s16323_s2 + $0x394] sm:$0xf]  ;;  %v7286_v23 = vld [vmem:[%s16323_s2 + $0x398] sm:$0xf0] }
  0xe5   :  { %2846 = vmatpush.bf16.msrb.mxu1 %v7145_v31  ;;  %v7249_v31 = vor.u32 %v10238_v10, %v7246_v11  ;;  %v10200_v10 = vld [vmem:[%s16323_s2 + $0x214] sm:$0xf]  ;;  %v7094_v11 = vld [vmem:[%s16323_s2 + $0x218] sm:$0xf0]  ;;  %v10222_v24 = vld [vmem:[%s16323_s2 + $0x2c4] sm:$0xf] }
  0xe6   :  { %2811 = vmatpush.bf16.msrb.mxu2 %v6921_v30  ;;  %2828 = vmatmul.bf16.vlgmr.msra.gmra.mxu3 %v11416_v27  ;;  %v7129_v27 = vor.u32 %v10208_v54, %v7126_v56  ;;  %v7121_v30 = vor.u32 %v10206_v28, %v7118_v29  ;;  %v10234_v56 = vld [vmem:[%s16323_s2 + $0x324] sm:$0xf]  ;;  %v7097_v26 = vor.u32 %v10200_v10, %v7094_v11  ;;  %v10220_v41 = vld [vmem:[%s16323_s2 + $0x2b4] sm:$0xf]  ;;  %v7582_v11 = vld [vmem:[%s16323_s2 + $0x5e8] sm:$0xf0] }
  0xe7   :  { %2872 = vmatpush.bf16.msrb.mxu3 %v7273_v33  ;;  %v10204_v33 = vld [vmem:[%s16323_s2 + $0x234] sm:$0xf]  ;;  %v10322_v10 = vld [vmem:[%s16323_s2 + $0x5e4] sm:$0xf] }
  0xe8   :  { %2886 = vmatpush.bf16.msrb.mxu0 %v7329_v55  ;;  %v2608_v54 = vpop.f32.mrf.mxu2  ;;  %v7201_v55 = vor.u32 %v10226_v42, %v7198_v43  ;;  %v7174_v42 = vld [vmem:[%s16323_s2 + $0x2b8] sm:$0xf0]  ;;  %v10276_v43 = vld [vmem:[%s16323_s2 + $0x474] sm:$0xf] }
  0xe9   :  { %2847 = vmatpush.bf16.msrb.mxu1 %v7137_v45  ;;  %v7241_v45 = vor.u32 %v10236_v32, %v7238_v39  ;;  %v2609_v58 = vadd.f32 %v2608_v54, %v2596_v37  ;;  %v2621_v59 = vpop.f32.mrf.mxu3  ;;  %v2597_v7 = vpop.f32.mrf.mxu1  ;;  %v10246_v32 = vld [vmem:[%s16323_s2 + $0x384] sm:$0xf]  ;;  %v7278_v39 = vld [vmem:[%s16323_s2 + $0x388] sm:$0xf0] }
  0xea   :  { %2812 = vmatpush.bf16.msrb.mxu2 %v6913_v44  ;;  %v7113_v44 = vor.u32 %v10204_v33, %v7110_v35  ;;  %v7086_v33 = vld [vmem:[%s16323_s2 + $0x208] sm:$0xf0]  ;;  %v10230_v35 = vld [vmem:[%s16323_s2 + $0x304] sm:$0xf] }
  0xeb   :  { %2873 = vmatpush.bf16.msrb.mxu3 %v7265_v50  ;;  %v10202_v50 = vld [vmem:[%s16323_s2 + $0x224] sm:$0xf]  ;;  %v12687_v28 = vadd.f32 %v2621_v59, %v2609_v58  ;;  %v7390_v7 = vld [vmem:[%s16323_s2 + $0x468] sm:$0xf0] }
  0xec   :  { %2887 = vmatpush.bf16.msrb.mxu0 %v7321_v8  ;;  %v7105_v29 = vor.u32 %v10202_v50, %v7102_v52  ;;  %v7233_v8 = vor.u32 %v10234_v56, %v7230_v57  ;;  %v10308_v50 = vld [vmem:[%s16323_s2 + $0x574] sm:$0xf]  ;;  %v7526_v52 = vld [vmem:[%s16323_s2 + $0x578] sm:$0xf0]  ;;  %v7281_v57 = vor.u32 %v10246_v32, %v7278_v39  ;;  %v10302_v39 = vld [vmem:[%s16323_s2 + $0x544] sm:$0xf] }
  0xed   :  { %2848 = vmatpush.bf16.msrb.mxu1 %v7129_v27  ;;  %v7190_v27 = vld [vmem:[%s16323_s2 + $0x2d8] sm:$0xf0]  ;;  %v7529_v59 = vor.u32 %v10308_v50, %v7526_v52 }
  0xee   :  { %2813 = vmatpush.bf16.msrb.mxu2 %v6905_v61  ;;  %v7294_v61 = vld [vmem:[%s16323_s2 + $0x3a8] sm:$0xf0]  ;;  %v7590_v56 = vld [vmem:[%s16323_s2 + $0x5f8] sm:$0xf0] }
  0xef   :  { %2874 = vmatpush.bf16.msrb.mxu3 %v7257_v63  ;;  %v2584_v63 = vpop.f32.mrf.mxu0  ;;  %v7297_v19 = vor.u32 %v10250_v51, %v7294_v61  ;;  %v7177_v51 = vor.u32 %v10220_v41, %v7174_v42  ;;  %v10218_v61 = vld [vmem:[%s16323_s2 + $0x2a4] sm:$0xf] }
  0xf0   :  { %2888 = vmatpush.bf16.msrb.mxu0 %v7313_v36  ;;  %v7289_v36 = vor.u32 %v10248_v22, %v7286_v23  ;;  %v2610_v40 = vpop.f32.mrf.mxu2  ;;  %v7158_v22 = vld [vmem:[%s16323_s2 + $0x298] sm:$0xf0]  ;;  %v10272_v23 = vld [vmem:[%s16323_s2 + $0x454] sm:$0xf]  ;;  %v10318_v41 = vld [vmem:[%s16323_s2 + $0x5c4] sm:$0xf] }
  0xf1   :  { %2849 = vmatpush.bf16.msrb.mxu1 %v7121_v30  ;;  %v7225_v30 = vor.u32 %v10232_v20, %v7222_v21  ;;  %v10216_v21 = vld [vmem:[%s16323_s2 + $0x294] sm:$0xf]  ;;  %v7502_v40 = vld [vmem:[%s16323_s2 + $0x548] sm:$0xf0] }
  0xf2   :  { %2814 = vmatpush.bf16.msrb.mxu2 %v6897_v25  ;;  %v7182_v25 = vld [vmem:[%s16323_s2 + $0x2c8] sm:$0xf0] }
  0xf3   :  { %2875 = vmatpush.bf16.msrb.mxu3 %v7249_v31  ;;  %v10198_v31 = vld [vmem:[%s16323_s2 + $0x204] sm:$0xf]  ;;  %v7185_v37 = vor.u32 %v10222_v24, %v7182_v25  ;;  %v7585_v24 = vor.u32 %v10322_v10, %v7582_v11  ;;  %v7382_v25 = vld [vmem:[%s16323_s2 + $0x458] sm:$0xf0]  ;;  %v7358_v11 = vld [vmem:[%s16323_s2 + $0x428] sm:$0xf0] }
  0xf4   :  { %2889 = vmatpush.bf16.msrb.mxu0 %v7305_v53  ;;  %v7089_v53 = vor.u32 %v10198_v31, %v7086_v33  ;;  %v10320_v31 = vld [vmem:[%s16323_s2 + $0x5d4] sm:$0xf]  ;;  %v7574_v33 = vld [vmem:[%s16323_s2 + $0x5d8] sm:$0xf0]  ;;  %v10266_v10 = vld [vmem:[%s16323_s2 + $0x424] sm:$0xf] }
  0xf5   :  { %2815 = vmatmul.bf16.vlgmr.msrb.gmra.mxu2 %v11428_v34  ;;  %2850 = vmatpush.bf16.msrb.mxu1 %v7113_v44  ;;  %v7193_v34 = vor.u32 %v10224_v62, %v7190_v27  ;;  %v2623_v44 = vpop.f32.mrf.mxu3  ;;  %v7166_v62 = vld [vmem:[%s16323_s2 + $0x2a8] sm:$0xf0]  ;;  %v10274_v27 = vld [vmem:[%s16323_s2 + $0x464] sm:$0xf]  ;;  %v7577_v32 = vor.u32 %v10320_v31, %v7574_v33  ;;  %v7446_v31 = vld [vmem:[%s16323_s2 + $0x4d8] sm:$0xf0] }
  0xf6   :  { %2859 = vmatpush.bf16.msra.mxu2 %v7209_v38  ;;  %v7214_v38 = vld [vmem:[%s16323_s2 + $0x308] sm:$0xf0]  ;;  %v10292_v44 = vld [vmem:[%s16323_s2 + $0x4f4] sm:$0xf] }
  0xf7   :  { %2876 = vmatpush.bf16.msrb.mxu3 %v7241_v45  ;;  %v7398_v45 = vld [vmem:[%s16323_s2 + $0x478] sm:$0xf0]  ;;  %v7217_v54 = vor.u32 %v10230_v35, %v7214_v38  ;;  %v7161_v35 = vor.u32 %v10216_v21, %v7158_v22  ;;  %v7150_v38 = vld [vmem:[%s16323_s2 + $0x288] sm:$0xf0]  ;;  %v10298_v21 = vld [vmem:[%s16323_s2 + $0x524] sm:$0xf] }
  0xf8   :  { %2890 = vmatpush.bf16.msrb.mxu0 %v7297_v19  ;;  %v7401_v58 = vor.u32 %v10276_v43, %v7398_v45  ;;  %v7169_v19 = vor.u32 %v10218_v61, %v7166_v62  ;;  %v7566_v43 = vld [vmem:[%s16323_s2 + $0x5c8] sm:$0xf0]  ;;  %v7462_v45 = vld [vmem:[%s16323_s2 + $0x4f8] sm:$0xf0]  ;;  %v10316_v62 = vld [vmem:[%s16323_s2 + $0x5b4] sm:$0xf] }
  0xf9   :  { %2851 = vmatpush.bf16.msrb.mxu1 %v7105_v29  ;;  %v10306_v29 = vld [vmem:[%s16323_s2 + $0x564] sm:$0xf]  ;;  %v7494_v61 = vld [vmem:[%s16323_s2 + $0x538] sm:$0xf0]  ;;  %v7486_v22 = vld [vmem:[%s16323_s2 + $0x528] sm:$0xf0] }
  0xfa   :  { %2860 = vmatpush.bf16.msra.mxu2 %v7201_v55  ;;  %v10324_v55 = vld [vmem:[%s16323_s2 + $0x5f4] sm:$0xf] }
  0xfb   :  { %2877 = vmatpush.bf16.msrb.mxu3 %v7233_v8  ;;  %v7593_v63 = vor.u32 %v10324_v55, %v7590_v56  ;;  %v7518_v8 = vld [vmem:[%s16323_s2 + $0x568] sm:$0xf0]  ;;  %v7505_v55 = vor.u32 %v10302_v39, %v7502_v40  ;;  %v10268_v56 = vld [vmem:[%s16323_s2 + $0x434] sm:$0xf]  ;;  %v7478_v39 = vld [vmem:[%s16323_s2 + $0x518] sm:$0xf0] }
  0xfc   :  { %2891 = vmatpush.bf16.msrb.mxu0 %v7289_v36  ;;  %v7521_v20 = vor.u32 %v10306_v29, %v7518_v8  ;;  %v10214_v36 = vld [vmem:[%s16323_s2 + $0x284] sm:$0xf]  ;;  %v10312_v40 = vld [vmem:[%s16323_s2 + $0x594] sm:$0xf] }
  0xfd   :  { %2852 = vmatpush.bf16.msrb.mxu1 %v7097_v26  ;;  %v10304_v26 = vld [vmem:[%s16323_s2 + $0x554] sm:$0xf]  ;;  %v7153_v52 = vor.u32 %v10214_v36, %v7150_v38  ;;  %v7350_v38 = vld [vmem:[%s16323_s2 + $0x418] sm:$0xf0] }
  0xfe   :  { %2861 = vmatpush.bf16.msra.mxu2 %v7193_v34  ;;  %v7393_v34 = vor.u32 %v10274_v27, %v7390_v7  ;;  %v7558_v27 = vld [vmem:[%s16323_s2 + $0x5b8] sm:$0xf0]  ;;  %v7454_v7 = vld [vmem:[%s16323_s2 + $0x4e8] sm:$0xf0] }
  0xff   :  { %2878 = vmatpush.bf16.msrb.mxu3 %v7225_v30  ;;  %v7510_v30 = vld [vmem:[%s16323_s2 + $0x558] sm:$0xf0] }
 0x100   :  { %2892 = vmatpush.bf16.msrb.mxu0 %v7281_v57  ;;  %v2634_v42 = vpop.f32.mrf.mxu0  ;;  %v7366_v57 = vld [vmem:[%s16323_s2 + $0x438] sm:$0xf0] }
 0x101   :  { %2853 = vmatpush.bf16.msrb.mxu1 %v7089_v53  ;;  %v2635_v50 = vadd.f32 %v2634_v42, %v12687_v28  ;;  %v2647_v53 = vpop.f32.mrf.mxu1  ;;  %v10300_v28 = vld [vmem:[%s16323_s2 + $0x534] sm:$0xf]  ;;  %v7369_v29 = vor.u32 %v10268_v56, %v7366_v57  ;;  %v10286_v42 = vld [vmem:[%s16323_s2 + $0x4c4] sm:$0xf]  ;;  %v7470_v56 = vld [vmem:[%s16323_s2 + $0x508] sm:$0xf0] }
 0x102   :  { %2862 = vmatpush.bf16.msra.mxu2 %v7185_v37  ;;  %v7513_v37 = vor.u32 %v10304_v26, %v7510_v30  ;;  %v7497_v8 = vor.u32 %v10300_v28, %v7494_v61  ;;  %v7550_v26 = vld [vmem:[%s16323_s2 + $0x5a8] sm:$0xf0]  ;;  %v10288_v30 = vld [vmem:[%s16323_s2 + $0x4d4] sm:$0xf]  ;;  %v10310_v57 = vld [vmem:[%s16323_s2 + $0x584] sm:$0xf] }
 0x103   :  { %2879 = vmatpush.bf16.msrb.mxu3 %v7217_v54  ;;  %2893 = vmatmul.bf16.vlgmr.msrb.gmra.mxu0 %v11498_v1  ;;  %v7374_v1 = vld [vmem:[%s16323_s2 + $0x448] sm:$0xf0]  ;;  %v7430_v28 = vld [vmem:[%s16323_s2 + $0x4b8] sm:$0xf0]  ;;  %v10340_v61 = vld [vmem:[%s16323_s2 + $0x674] sm:$0xf] }
 0x104   :  { %2937 = vmatpush.bf16.msra.mxu0 %v7593_v63  ;;  %2854 = vmatmul.bf16.vlgmr.msrb.gmra.mxu1 %v11496_v0  ;;  %v7385_v0 = vor.u32 %v10272_v23, %v7382_v25  ;;  %v10290_v63 = vld [vmem:[%s16323_s2 + $0x4e4] sm:$0xf] }
 0x105   :  { %2898 = vmatpush.bf16.msra.mxu1 %v7401_v58  ;;  %v2648_v58 = vadd.f32 %v2647_v53, %v2635_v50  ;;  %v10314_v23 = vld [vmem:[%s16323_s2 + $0x5a4] sm:$0xf] }
 0x106   :  { %2863 = vmatpush.bf16.msra.mxu2 %v7177_v51  ;;  %2880 = vmatmul.bf16.vlgmr.msrb.gmra.mxu3 %v11491_v60  ;;  %v10270_v60 = vld [vmem:[%s16323_s2 + $0x444] sm:$0xf]  ;;  %v7569_v51 = vor.u32 %v10318_v41, %v7566_v43  ;;  %v7542_v41 = vld [vmem:[%s16323_s2 + $0x598] sm:$0xf0]  ;;  %v7438_v43 = vld [vmem:[%s16323_s2 + $0x4c8] sm:$0xf0] }
 0x107   :  { %2924 = vmatpush.bf16.msra.mxu3 %v7529_v59  ;;  %v7377_v54 = vor.u32 %v10270_v60, %v7374_v1  ;;  %v7465_v59 = vor.u32 %v10292_v44, %v7462_v45  ;;  %v7553_v60 = vor.u32 %v10314_v23, %v7550_v26  ;;  %v7449_v1 = vor.u32 %v10288_v30, %v7446_v31  ;;  %v10262_v50 = vld [vmem:[%s16323_s2 + $0x404] sm:$0xf]  ;;  %v7422_v23 = vld [vmem:[%s16323_s2 + $0x4a8] sm:$0xf0] }
 0x108   :  { %2938 = vmatpush.bf16.msra.mxu0 %v7585_v24  ;;  %v2636_v33 = vpop.f32.mrf.mxu0  ;;  %v10294_v53 = vld [vmem:[%s16323_s2 + $0x504] sm:$0xf]  ;;  %v7646_v26 = vld [vmem:[%s16323_s2 + $0x668] sm:$0xf0] }
 0x109   :  { %2899 = vmatpush.bf16.msra.mxu1 %v7393_v34  ;;  %v2660_v34 = vpop.f32.mrf.mxu2  ;;  %v2673_v25 = vpop.f32.mrf.mxu3  ;;  %v10370_v30 = vld [vmem:[%s16323_s2 + $0x764] sm:$0xf]  ;;  %v7774_v31 = vld [vmem:[%s16323_s2 + $0x768] sm:$0xf0] }
 0x10a   :  { %2864 = vmatpush.bf16.msra.mxu2 %v7169_v19  ;;  %v7561_v19 = vor.u32 %v10316_v62, %v7558_v27  ;;  %v2661_v24 = vadd.f32 %v2660_v34, %v2648_v58  ;;  %v7654_v27 = vld [vmem:[%s16323_s2 + $0x678] sm:$0xf0]  ;;  %v10386_v33 = vld [vmem:[%s16323_s2 + $0x7e4] sm:$0xf] }
 0x10b   :  { %2925 = vmatpush.bf16.msra.mxu3 %v7521_v20  ;;  %v7457_v20 = vor.u32 %v10290_v63, %v7454_v7  ;;  %v10372_v63 = vld [vmem:[%s16323_s2 + $0x774] sm:$0xf]  ;;  %v7782_v7 = vld [vmem:[%s16323_s2 + $0x778] sm:$0xf0] }
 0x10c   :  { %2939 = vmatpush.bf16.msra.mxu0 %v7577_v32  ;;  %v12886_v36 = vadd.f32 %v2673_v25, %v2661_v24  ;;  %v10296_v32 = vld [vmem:[%s16323_s2 + $0x514] sm:$0xf]  ;;  %v10338_v24 = vld [vmem:[%s16323_s2 + $0x664] sm:$0xf] }
 0x10d   :  { %2900 = vmatpush.bf16.msra.mxu1 %v7385_v0  ;;  %v7489_v0 = vor.u32 %v10298_v21, %v7486_v22  ;;  %v7481_v45 = vor.u32 %v10296_v32, %v7478_v39  ;;  %v7785_v21 = vor.u32 %v10372_v63, %v7782_v7  ;;  %v10282_v22 = vld [vmem:[%s16323_s2 + $0x4a4] sm:$0xf]  ;;  %v7638_v39 = vld [vmem:[%s16323_s2 + $0x658] sm:$0xf0]  ;;  %v10332_v7 = vld [vmem:[%s16323_s2 + $0x634] sm:$0xf] }
 0x10e   :  { %2865 = vmatpush.bf16.msra.mxu2 %v7161_v35  ;;  %v2649_v35 = vpop.f32.mrf.mxu1 }
 0x10f   :  { %2926 = vmatpush.bf16.msra.mxu3 %v7513_v37  ;;  %v10264_v37 = vld [vmem:[%s16323_s2 + $0x414] sm:$0xf]  ;;  %v7838_v35 = vld [vmem:[%s16323_s2 + $0x7e8] sm:$0xf0] }
 0x110   :  { %2940 = vmatpush.bf16.msra.mxu0 %v7569_v51  ;;  %v7353_v44 = vor.u32 %v10264_v37, %v7350_v38  ;;  %v7534_v51 = vld [vmem:[%s16323_s2 + $0x588] sm:$0xf0]  ;;  %v7777_v37 = vor.u32 %v10370_v30, %v7774_v31  ;;  %v10280_v38 = vld [vmem:[%s16323_s2 + $0x494] sm:$0xf]  ;;  %v7841_v32 = vor.u32 %v10386_v33, %v7838_v35  ;;  %v10362_v35 = vld [vmem:[%s16323_s2 + $0x724] sm:$0xf] }
 0x111   :  { %2901 = vmatpush.bf16.msra.mxu1 %v7377_v54  ;;  %v7545_v54 = vor.u32 %v10312_v40, %v7542_v41  ;;  %v2662_v58 = vpop.f32.mrf.mxu2  ;;  %v2675_v62 = vpop.f32.mrf.mxu3  ;;  %v10368_v40 = vld [vmem:[%s16323_s2 + $0x754] sm:$0xf]  ;;  %v7766_v41 = vld [vmem:[%s16323_s2 + $0x758] sm:$0xf0] }
 0x112   :  { %2866 = vmatpush.bf16.msra.mxu2 %v7153_v52  ;;  %v7342_v52 = vld [vmem:[%s16323_s2 + $0x408] sm:$0xf0]  ;;  %v10356_v58 = vld [vmem:[%s16323_s2 + $0x6f4] sm:$0xf] }
 0x113   :  { %2927 = vmatpush.bf16.msra.mxu3 %v7505_v55  ;;  %v7441_v55 = vor.u32 %v10286_v42, %v7438_v43  ;;  %v10384_v42 = vld [vmem:[%s16323_s2 + $0x7d4] sm:$0xf] }
 0x114   :  { %2941 = vmatpush.bf16.msra.mxu0 %v7561_v19  ;;  %v7537_v19 = vor.u32 %v10310_v57, %v7534_v51  ;;  %v7822_v51 = vld [vmem:[%s16323_s2 + $0x7c8] sm:$0xf0] }
 0x115   :  { %2867 = vmatmul.bf16.vlgmr.msra.gmra.mxu2 %v11500_v2  ;;  %2902 = vmatpush.bf16.msra.mxu1 %v7369_v29  ;;  %v7361_v2 = vor.u32 %v10266_v10, %v7358_v11  ;;  %v7345_v29 = vor.u32 %v10262_v50, %v7342_v52  ;;  %v10388_v10 = vld [vmem:[%s16323_s2 + $0x7f4] sm:$0xf]  ;;  %v7846_v11 = vld [vmem:[%s16323_s2 + $0x7f8] sm:$0xf0]  ;;  %v7769_v50 = vor.u32 %v10368_v40, %v7766_v41  ;;  %v7406_v52 = vld [vmem:[%s16323_s2 + $0x488] sm:$0xf0] }
 0x116   :  { %2911 = vmatpush.bf16.msrb.mxu2 %v7465_v59  ;;  %v10284_v59 = vld [vmem:[%s16323_s2 + $0x4b4] sm:$0xf]  ;;  %v7849_v25 = vor.u32 %v10388_v10, %v7846_v11 }
 0x117   :  { %2928 = vmatpush.bf16.msra.mxu3 %v7497_v8  ;;  %v7473_v8 = vor.u32 %v10294_v53, %v7470_v56  ;;  %v7433_v34 = vor.u32 %v10284_v59, %v7430_v28  ;;  %v10382_v56 = vld [vmem:[%s16323_s2 + $0x7c4] sm:$0xf]  ;;  %v7718_v59 = vld [vmem:[%s16323_s2 + $0x6f8] sm:$0xf0] }
 0x118   :  { %2942 = vmatpush.bf16.msra.mxu0 %v7553_v60  ;;  %v7414_v60 = vld [vmem:[%s16323_s2 + $0x498] sm:$0xf0]  ;;  %v7721_v11 = vor.u32 %v10356_v58, %v7718_v59  ;;  %v10358_v58 = vld [vmem:[%s16323_s2 + $0x704] sm:$0xf] }
 0x119   :  { %2903 = vmatpush.bf16.msra.mxu1 %v7361_v2  ;;  %v7425_v2 = vor.u32 %v10282_v22, %v7422_v23  ;;  %v7417_v43 = vor.u32 %v10280_v38, %v7414_v60  ;;  %v7710_v22 = vld [vmem:[%s16323_s2 + $0x6e8] sm:$0xf0] }
 0x11a   :  { %2912 = vmatpush.bf16.msrb.mxu2 %v7457_v20  ;;  %v7657_v20 = vor.u32 %v10340_v61, %v7654_v27  ;;  %v7806_v60 = vld [vmem:[%s16323_s2 + $0x7a8] sm:$0xf0] }
 0x11b   :  { %2929 = vmatpush.bf16.msra.mxu3 %v7489_v0  ;;  %v7649_v0 = vor.u32 %v10338_v24, %v7646_v26  ;;  %v7614_v26 = vld [vmem:[%s16323_s2 + $0x628] sm:$0xf0] }
 0x11c   :  { %2943 = vmatpush.bf16.msra.mxu0 %v7545_v54  ;;  %v10366_v54 = vld [vmem:[%s16323_s2 + $0x744] sm:$0xf] }
 0x11d   :  { %2904 = vmatpush.bf16.msra.mxu1 %v7353_v44  ;;  %v10278_v44 = vld [vmem:[%s16323_s2 + $0x484] sm:$0xf] }
 0x11e   :  { %2913 = vmatpush.bf16.msrb.mxu2 %v7449_v1  ;;  %v10336_v1 = vld [vmem:[%s16323_s2 + $0x654] sm:$0xf]  ;;  %v7409_v61 = vor.u32 %v10278_v44, %v7406_v52  ;;  %v7734_v52 = vld [vmem:[%s16323_s2 + $0x718] sm:$0xf0] }
 0x11f   :  { %2930 = vmatpush.bf16.msra.mxu3 %v7481_v45  ;;  %v7641_v45 = vor.u32 %v10336_v1, %v7638_v39  ;;  %v10352_v1 = vld [vmem:[%s16323_s2 + $0x6d4] sm:$0xf] }
 0x120   :  { %2944 = vmatpush.bf16.msra.mxu0 %v7537_v19  ;;  %v2686_v57 = vpop.f32.mrf.mxu0  ;;  %v7750_v19 = vld [vmem:[%s16323_s2 + $0x738] sm:$0xf0] }
 0x121   :  { %2905 = vmatpush.bf16.msra.mxu1 %v7345_v29  ;;  %v2687_v28 = vadd.f32 %v2686_v57, %v12886_v36  ;;  %v2699_v62 = vpop.f32.mrf.mxu1  ;;  %v7622_v29 = vld [vmem:[%s16323_s2 + $0x638] sm:$0xf0]  ;;  %v10364_v36 = vld [vmem:[%s16323_s2 + $0x734] sm:$0xf]  ;;  %v10326_v57 = vld [vmem:[%s16323_s2 + $0x604] sm:$0xf] }
 0x122   :  { %2914 = vmatpush.bf16.msrb.mxu2 %v7441_v55  ;;  %v7758_v55 = vld [vmem:[%s16323_s2 + $0x748] sm:$0xf0]  ;;  %v7625_v23 = vor.u32 %v10332_v7, %v7622_v29  ;;  %v7753_v24 = vor.u32 %v10364_v36, %v7750_v19  ;;  %v10348_v7 = vld [vmem:[%s16323_s2 + $0x6b4] sm:$0xf]  ;;  %v7686_v29 = vld [vmem:[%s16323_s2 + $0x6b8] sm:$0xf0] }
 0x123   :  { %2931 = vmatpush.bf16.msra.mxu3 %v7473_v8  ;;  %2945 = vmatmul.bf16.vlgmr.msra.gmra.mxu0 %v11758_v17  ;;  %v7630_v17 = vld [vmem:[%s16323_s2 + $0x648] sm:$0xf0]  ;;  %v7761_v63 = vor.u32 %v10366_v54, %v7758_v55  ;;  %v7825_v8 = vor.u32 %v10382_v56, %v7822_v51  ;;  %v2700_v10 = vadd.f32 %v2699_v62, %v2687_v28  ;;  %v10374_v62 = vld [vmem:[%s16323_s2 + $0x784] sm:$0xf]  ;;  %v10436_v36 = vld [vmem:[%s16323_s2 + $0x974] sm:$0xf] }
 0x124   :  { %2989 = vmatpush.bf16.msrb.mxu0 %v7849_v25  ;;  %2906 = vmatmul.bf16.vlgmr.msra.gmra.mxu1 %v11746_v12  ;;  %v7830_v12 = vld [vmem:[%s16323_s2 + $0x7d8] sm:$0xf0]  ;;  %v10330_v25 = vld [vmem:[%s16323_s2 + $0x624] sm:$0xf]  ;;  %v7694_v54 = vld [vmem:[%s16323_s2 + $0x6c8] sm:$0xf0] }
 0x125   :  { %2950 = vmatpush.bf16.msrb.mxu1 %v7657_v20  ;;  %v7833_v53 = vor.u32 %v10384_v42, %v7830_v12  ;;  %v7814_v20 = vld [vmem:[%s16323_s2 + $0x7b8] sm:$0xf0]  ;;  %v10328_v12 = vld [vmem:[%s16323_s2 + $0x614] sm:$0xf]  ;;  %v7598_v51 = vld [vmem:[%s16323_s2 + $0x608] sm:$0xf0] }
 0x126   :  { %2915 = vmatpush.bf16.msrb.mxu2 %v7433_v34  ;;  %2932 = vmatmul.bf16.vlgmr.msra.gmra.mxu3 %v11754_v15  ;;  %v10334_v15 = vld [vmem:[%s16323_s2 + $0x644] sm:$0xf]  ;;  %v10380_v34 = vld [vmem:[%s16323_s2 + $0x7b4] sm:$0xf]  ;;  %v8038_v19 = vld [vmem:[%s16323_s2 + $0x978] sm:$0xf0] }
 0x127   :  { %2976 = vmatpush.bf16.msrb.mxu3 %v7785_v21  ;;  %v7633_v27 = vor.u32 %v10334_v15, %v7630_v17  ;;  %v10354_v21 = vld [vmem:[%s16323_s2 + $0x6e4] sm:$0xf]  ;;  %v7817_v30 = vor.u32 %v10380_v34, %v7814_v20  ;;  %v10376_v15 = vld [vmem:[%s16323_s2 + $0x794] sm:$0xf]  ;;  %v7798_v17 = vld [vmem:[%s16323_s2 + $0x798] sm:$0xf0]  ;;  %v7601_v34 = vor.u32 %v10326_v57, %v7598_v51 }
 0x128   :  { %2990 = vmatpush.bf16.msrb.mxu0 %v7841_v32  ;;  %v2712_v31 = vpop.f32.mrf.mxu2  ;;  %v7713_v33 = vor.u32 %v10354_v21, %v7710_v22  ;;  %v7702_v32 = vld [vmem:[%s16323_s2 + $0x6d8] sm:$0xf0]  ;;  %v2688_v39 = vpop.f32.mrf.mxu0  ;;  %v7801_v59 = vor.u32 %v10376_v15, %v7798_v17  ;;  %v10452_v21 = vld [vmem:[%s16323_s2 + $0x9f4] sm:$0xf]  ;;  %v10342_v15 = vld [vmem:[%s16323_s2 + $0x684] sm:$0xf] }
 0x129   :  { %2951 = vmatpush.bf16.msrb.mxu1 %v7649_v0  ;;  %v10378_v0 = vld [vmem:[%s16323_s2 + $0x7a4] sm:$0xf]  ;;  %v2725_v38 = vpop.f32.mrf.mxu3  ;;  %v2701_v40 = vpop.f32.mrf.mxu1  ;;  %v8102_v22 = vld [vmem:[%s16323_s2 + $0x9f8] sm:$0xf0]  ;;  %v8014_v57 = vld [vmem:[%s16323_s2 + $0x948] sm:$0xf0] }
 0x12a   :  { %2916 = vmatpush.bf16.msrb.mxu2 %v7425_v2  ;;  %v7742_v2 = vld [vmem:[%s16323_s2 + $0x728] sm:$0xf0]  ;;  %v7809_v44 = vor.u32 %v10378_v0, %v7806_v60  ;;  %v10434_v0 = vld [vmem:[%s16323_s2 + $0x964] sm:$0xf]  ;;  %v10344_v40 = vld [vmem:[%s16323_s2 + $0x694] sm:$0xf] }
 0x12b   :  { %2977 = vmatpush.bf16.msrb.mxu3 %v7777_v37  ;;  %v2713_v37 = vadd.f32 %v2712_v31, %v2700_v10  ;;  %v7745_v42 = vor.u32 %v10362_v35, %v7742_v2  ;;  %v7678_v31 = vld [vmem:[%s16323_s2 + $0x6a8] sm:$0xf0]  ;;  %v8105_v35 = vor.u32 %v10452_v21, %v8102_v22  ;;  %v10446_v51 = vld [vmem:[%s16323_s2 + $0x9c4] sm:$0xf]  ;;  %v8070_v21 = vld [vmem:[%s16323_s2 + $0x9b8] sm:$0xf0] }
 0x12c   :  { %2991 = vmatpush.bf16.msrb.mxu0 %v7833_v53  ;;  %v10350_v53 = vld [vmem:[%s16323_s2 + $0x6c4] sm:$0xf]  ;;  %v7902_v2 = vld [vmem:[%s16323_s2 + $0x868] sm:$0xf0] }
 0x12d   :  { %2952 = vmatpush.bf16.msrb.mxu1 %v7641_v45  ;;  %v13085_v41 = vadd.f32 %v2725_v38, %v2713_v37  ;;  %v7705_v45 = vor.u32 %v10352_v1, %v7702_v32  ;;  %v7697_v28 = vor.u32 %v10350_v53, %v7694_v54  ;;  %v8030_v37 = vld [vmem:[%s16323_s2 + $0x968] sm:$0xf0]  ;;  %v10450_v38 = vld [vmem:[%s16323_s2 + $0x9e4] sm:$0xf] }
 0x12e   :  { %2917 = vmatpush.bf16.msrb.mxu2 %v7417_v43  ;;  %v7606_v43 = vld [vmem:[%s16323_s2 + $0x618] sm:$0xf0]  ;;  %v8094_v60 = vld [vmem:[%s16323_s2 + $0x9e8] sm:$0xf0]  ;;  %v8033_v39 = vor.u32 %v10434_v0, %v8030_v37  ;;  %v10418_v22 = vld [vmem:[%s16323_s2 + $0x8e4] sm:$0xf] }
 0x12f   :  { %2978 = vmatpush.bf16.msrb.mxu3 %v7769_v50  ;;  %v10360_v50 = vld [vmem:[%s16323_s2 + $0x714] sm:$0xf]  ;;  %v7609_v55 = vor.u32 %v10328_v12, %v7606_v43  ;;  %v8097_v12 = vor.u32 %v10450_v38, %v8094_v60  ;;  %v7894_v43 = vld [vmem:[%s16323_s2 + $0x858] sm:$0xf0]  ;;  %v7662_v54 = vld [vmem:[%s16323_s2 + $0x688] sm:$0xf0] }
 0x130   :  { %2992 = vmatpush.bf16.msrb.mxu0 %v7825_v8  ;;  %v7737_v56 = vor.u32 %v10360_v50, %v7734_v52  ;;  %v10404_v8 = vld [vmem:[%s16323_s2 + $0x874] sm:$0xf]  ;;  %v10426_v0 = vld [vmem:[%s16323_s2 + $0x924] sm:$0xf]  ;;  %v7998_v37 = vld [vmem:[%s16323_s2 + $0x928] sm:$0xf0] }
 0x131   :  { %2953 = vmatpush.bf16.msrb.mxu1 %v7633_v27  ;;  %v7790_v27 = vld [vmem:[%s16323_s2 + $0x788] sm:$0xf0]  ;;  %v2727_v10 = vpop.f32.mrf.mxu3  ;;  %v10448_v50 = vld [vmem:[%s16323_s2 + $0x9d4] sm:$0xf]  ;;  %v10442_v38 = vld [vmem:[%s16323_s2 + $0x9a4] sm:$0xf] }
 0x132   :  { %2918 = vmatpush.bf16.msrb.mxu2 %v7409_v61  ;;  %v7726_v61 = vld [vmem:[%s16323_s2 + $0x708] sm:$0xf0]  ;;  %v7878_v10 = vld [vmem:[%s16323_s2 + $0x838] sm:$0xf0] }
 0x133   :  { %2979 = vmatpush.bf16.msrb.mxu3 %v7761_v63  ;;  %v2714_v63 = vpop.f32.mrf.mxu2  ;;  %v7729_v20 = vor.u32 %v10358_v58, %v7726_v61  ;;  %v8078_v58 = vld [vmem:[%s16323_s2 + $0x9c8] sm:$0xf0] }
 0x134   :  { %2993 = vmatpush.bf16.msrb.mxu0 %v7817_v30  ;;  %v10346_v30 = vld [vmem:[%s16323_s2 + $0x6a4] sm:$0xf] }
 0x135   :  { %2919 = vmatmul.bf16.vlgmr.msrb.gmra.mxu2 %v11756_v16  ;;  %2954 = vmatpush.bf16.msrb.mxu1 %v7625_v23  ;;  %v7617_v16 = vor.u32 %v10330_v25, %v7614_v26  ;;  %v7793_v23 = vor.u32 %v10374_v62, %v7790_v27  ;;  %v8041_v26 = vor.u32 %v10436_v36, %v8038_v19  ;;  %v10428_v19 = vld [vmem:[%s16323_s2 + $0x934] sm:$0xf] }
 0x136   :  { %2963 = vmatpush.bf16.msra.mxu2 %v7721_v11  ;;  %v7910_v11 = vld [vmem:[%s16323_s2 + $0x878] sm:$0xf0]  ;;  %v7681_v1 = vor.u32 %v10346_v30, %v7678_v31  ;;  %v7665_v62 = vor.u32 %v10342_v15, %v7662_v54  ;;  %v10394_v30 = vld [vmem:[%s16323_s2 + $0x824] sm:$0xf]  ;;  %v7870_v31 = vld [vmem:[%s16323_s2 + $0x828] sm:$0xf0] }
 0x137   :  { %2980 = vmatpush.bf16.msrb.mxu3 %v7753_v24  ;;  %v7689_v24 = vor.u32 %v10348_v7, %v7686_v29  ;;  %v7913_v25 = vor.u32 %v10404_v8, %v7910_v11  ;;  %v10396_v8 = vld [vmem:[%s16323_s2 + $0x834] sm:$0xf]  ;;  %v8081_v11 = vor.u32 %v10446_v51, %v8078_v58  ;;  %v7950_v54 = vld [vmem:[%s16323_s2 + $0x8c8] sm:$0xf0]  ;;  %v10422_v51 = vld [vmem:[%s16323_s2 + $0x904] sm:$0xf] }
 0x138   :  { %2994 = vmatpush.bf16.msrb.mxu0 %v7809_v44  ;;  %v10432_v44 = vld [vmem:[%s16323_s2 + $0x954] sm:$0xf] }
 0x139   :  { %2955 = vmatpush.bf16.msrb.mxu1 %v7617_v16  ;;  %v7670_v16 = vld [vmem:[%s16323_s2 + $0x698] sm:$0xf0]  ;;  %v10440_v15 = vld [vmem:[%s16323_s2 + $0x994] sm:$0xf] }
 0x13a   :  { %2964 = vmatpush.bf16.msra.mxu2 %v7713_v33  ;;  %v10402_v33 = vld [vmem:[%s16323_s2 + $0x864] sm:$0xf]  ;;  %v7673_v52 = vor.u32 %v10344_v40, %v7670_v16 }
 0x13b   :  { %2981 = vmatpush.bf16.msrb.mxu3 %v7745_v42  ;;  %v7905_v32 = vor.u32 %v10402_v33, %v7902_v2  ;;  %v10400_v42 = vld [vmem:[%s16323_s2 + $0x854] sm:$0xf] }
 0x13c   :  { %2995 = vmatpush.bf16.msrb.mxu0 %v7801_v59  ;;  %v7897_v17 = vor.u32 %v10400_v42, %v7894_v43  ;;  %v10420_v59 = vld [vmem:[%s16323_s2 + $0x8f4] sm:$0xf] }
 0x13d   :  { %2956 = vmatpush.bf16.msrb.mxu1 %v7609_v55  ;;  %v10392_v43 = vld [vmem:[%s16323_s2 + $0x814] sm:$0xf] }
 0x13e   :  { %2965 = vmatpush.bf16.msra.mxu2 %v7705_v45  ;;  %v8022_v45 = vld [vmem:[%s16323_s2 + $0x958] sm:$0xf0] }
 0x13f   :  { %2982 = vmatpush.bf16.msrb.mxu3 %v7737_v56  ;;  %v8025_v53 = vor.u32 %v10432_v44, %v8022_v45  ;;  %v10430_v56 = vld [vmem:[%s16323_s2 + $0x944] sm:$0xf]  ;;  %v7862_v44 = vld [vmem:[%s16323_s2 + $0x818] sm:$0xf0] }
 0x140   :  { %2996 = vmatpush.bf16.msrb.mxu0 %v7793_v23  ;;  %v2738_v61 = vpop.f32.mrf.mxu0  ;;  %v8017_v29 = vor.u32 %v10430_v56, %v8014_v57  ;;  %v7966_v23 = vld [vmem:[%s16323_s2 + $0x8e8] sm:$0xf0]  ;;  %v10390_v56 = vld [vmem:[%s16323_s2 + $0x804] sm:$0xf] }
 0x141   :  { %2957 = vmatpush.bf16.msrb.mxu1 %v7601_v34  ;;  %v2751_v27 = vpop.f32.mrf.mxu1  ;;  %v2739_v63 = vadd.f32 %v2738_v61, %v13085_v41  ;;  %v8006_v41 = vld [vmem:[%s16323_s2 + $0x938] sm:$0xf0]  ;;  %v10444_v34 = vld [vmem:[%s16323_s2 + $0x9b4] sm:$0xf]  ;;  %v7969_v2 = vor.u32 %v10418_v22, %v7966_v23  ;;  %v7854_v57 = vld [vmem:[%s16323_s2 + $0x808] sm:$0xf0] }
 0x142   :  { %2966 = vmatpush.bf16.msra.mxu2 %v7697_v28  ;;  %v7974_v28 = vld [vmem:[%s16323_s2 + $0x8f8] sm:$0xf0]  ;;  %v8073_v33 = vor.u32 %v10444_v34, %v8070_v21  ;;  %v10438_v61 = vld [vmem:[%s16323_s2 + $0x984] sm:$0xf] }
 0x143   :  { %2983 = vmatpush.bf16.msrb.mxu3 %v7729_v20  ;;  %2997 = vmatmul.bf16.vlgmr.msrb.gmra.mxu0 %v11926_v49  ;;  %v7886_v49 = vld [vmem:[%s16323_s2 + $0x848] sm:$0xf0]  ;;  %v7977_v36 = vor.u32 %v10420_v59, %v7974_v28  ;;  %v2752_v20 = vadd.f32 %v2751_v27, %v2739_v63  ;;  %v10412_v27 = vld [vmem:[%s16323_s2 + $0x8b4] sm:$0xf]  ;;  %v7942_v63 = vld [vmem:[%s16323_s2 + $0x8b8] sm:$0xf0] }
 0x144   :  { %3041 = vmatpush.bf16.msra.mxu0 %v8105_v35  ;;  %2958 = vmatmul.bf16.vlgmr.msrb.gmra.mxu1 %v11920_v46  ;;  %v8086_v46 = vld [vmem:[%s16323_s2 + $0x9d8] sm:$0xf0]  ;;  %v7982_v28 = vld [vmem:[%s16323_s2 + $0x908] sm:$0xf0]  ;;  %v7945_v21 = vor.u32 %v10412_v27, %v7942_v63 }
 0x145   :  { %3002 = vmatpush.bf16.msra.mxu1 %v7913_v25  ;;  %v8089_v55 = vor.u32 %v10448_v50, %v8086_v46  ;;  %v8009_v25 = vor.u32 %v10428_v19, %v8006_v41  ;;  %v10424_v46 = vld [vmem:[%s16323_s2 + $0x914] sm:$0xf]  ;;  %v7985_v19 = vor.u32 %v10422_v51, %v7982_v28  ;;  %v8358_v34 = vld [vmem:[%s16323_s2 + $0xbf8] sm:$0xf0] }
 0x146   :  { %2967 = vmatpush.bf16.msra.mxu2 %v7689_v24  ;;  %2984 = vmatmul.bf16.vlgmr.msrb.gmra.mxu3 %v11922_v47  ;;  %v10398_v47 = vld [vmem:[%s16323_s2 + $0x844] sm:$0xf]  ;;  %v7881_v24 = vor.u32 %v10396_v8, %v7878_v10  ;;  %v8166_v8 = vld [vmem:[%s16323_s2 + $0xa78] sm:$0xf0]  ;;  %v10500_v10 = vld [vmem:[%s16323_s2 + $0xb74] sm:$0xf] }
 0x147   :  { %3028 = vmatpush.bf16.msra.mxu3 %v8041_v26  ;;  %v7889_v7 = vor.u32 %v10398_v47, %v7886_v49  ;;  %v7865_v47 = vor.u32 %v10392_v43, %v7862_v44  ;;  %v10516_v41 = vld [vmem:[%s16323_s2 + $0xbf4] sm:$0xf]  ;;  %v8278_v43 = vld [vmem:[%s16323_s2 + $0xb58] sm:$0xf0] }
 0x148   :  { %3042 = vmatpush.bf16.msra.mxu0 %v8097_v12  ;;  %v2764_v26 = vpop.f32.mrf.mxu2  ;;  %v2740_v42 = vpop.f32.mrf.mxu0  ;;  %v8001_v12 = vor.u32 %v10426_v0, %v7998_v37  ;;  %v8350_v0 = vld [vmem:[%s16323_s2 + $0xbe8] sm:$0xf0]  ;;  %v10512_v44 = vld [vmem:[%s16323_s2 + $0xbd4] sm:$0xf] }
 0x149   :  { %3003 = vmatpush.bf16.msra.mxu1 %v7905_v32  ;;  %v2765_v35 = vadd.f32 %v2764_v26, %v2752_v20  ;;  %v2777_v60 = vpop.f32.mrf.mxu3  ;;  %v10416_v32 = vld [vmem:[%s16323_s2 + $0x8d4] sm:$0xf]  ;;  %v2753_v16 = vpop.f32.mrf.mxu1  ;;  %v10466_v26 = vld [vmem:[%s16323_s2 + $0xa64] sm:$0xf] }
 0x14a   :  { %2968 = vmatpush.bf16.msra.mxu2 %v7681_v1  ;;  %v8062_v1 = vld [vmem:[%s16323_s2 + $0x9a8] sm:$0xf0]  ;;  %v10464_v16 = vld [vmem:[%s16323_s2 + $0xa54] sm:$0xf] }
 0x14b   :  { %3029 = vmatpush.bf16.msra.mxu3 %v8033_v39  ;;  %v7958_v39 = vld [vmem:[%s16323_s2 + $0x8d8] sm:$0xf0]  ;;  %v13284_v40 = vadd.f32 %v2777_v60, %v2765_v35  ;;  %v8065_v45 = vor.u32 %v10442_v38, %v8062_v1  ;;  %v8286_v35 = vld [vmem:[%s16323_s2 + $0xb68] sm:$0xf0] }
 0x14c   :  { %3043 = vmatpush.bf16.msra.mxu0 %v8089_v55  ;;  %v7961_v50 = vor.u32 %v10416_v32, %v7958_v39  ;;  %v10408_v32 = vld [vmem:[%s16323_s2 + $0x894] sm:$0xf]  ;;  %v7926_v39 = vld [vmem:[%s16323_s2 + $0x898] sm:$0xf0] }
 0x14d   :  { %3004 = vmatpush.bf16.msra.mxu1 %v7897_v17  ;;  %v8054_v17 = vld [vmem:[%s16323_s2 + $0x998] sm:$0xf0] }
 0x14e   :  { %2969 = vmatpush.bf16.msra.mxu2 %v7673_v52  ;;  %v7990_v52 = vld [vmem:[%s16323_s2 + $0x918] sm:$0xf0]  ;;  %v8057_v58 = vor.u32 %v10440_v15, %v8054_v17  ;;  %v7918_v15 = vld [vmem:[%s16323_s2 + $0x888] sm:$0xf0] }
 0x14f   :  { %3030 = vmatpush.bf16.msra.mxu3 %v8025_v53  ;;  %v10414_v53 = vld [vmem:[%s16323_s2 + $0x8c4] sm:$0xf]  ;;  %v7993_v49 = vor.u32 %v10424_v46, %v7990_v52 }
 0x150   :  { %3044 = vmatpush.bf16.msra.mxu0 %v8081_v11  ;;  %v2766_v55 = vpop.f32.mrf.mxu2  ;;  %v7953_v59 = vor.u32 %v10414_v53, %v7950_v54  ;;  %v8294_v11 = vld [vmem:[%s16323_s2 + $0xb78] sm:$0xf0]  ;;  %v10494_v53 = vld [vmem:[%s16323_s2 + $0xb44] sm:$0xf]  ;;  %v8270_v54 = vld [vmem:[%s16323_s2 + $0xb48] sm:$0xf0] }
 0x151   :  { %3005 = vmatpush.bf16.msra.mxu1 %v7889_v7  ;;  %v10468_v7 = vld [vmem:[%s16323_s2 + $0xa74] sm:$0xf]  ;;  %v8297_v23 = vor.u32 %v10500_v10, %v8294_v11  ;;  %v8273_v28 = vor.u32 %v10494_v53, %v8270_v54  ;;  %v8326_v10 = vld [vmem:[%s16323_s2 + $0xbb8] sm:$0xf0]  ;;  %v10482_v11 = vld [vmem:[%s16323_s2 + $0xae4] sm:$0xf] }
 0x152   :  { %2970 = vmatpush.bf16.msra.mxu2 %v7665_v62  ;;  %v8046_v62 = vld [vmem:[%s16323_s2 + $0x988] sm:$0xf0]  ;;  %v8169_v22 = vor.u32 %v10468_v7, %v8166_v8  ;;  %v10484_v55 = vld [vmem:[%s16323_s2 + $0xaf4] sm:$0xf]  ;;  %v10502_v54 = vld [vmem:[%s16323_s2 + $0xb84] sm:$0xf] }
 0x153   :  { %3031 = vmatpush.bf16.msra.mxu3 %v8017_v29  ;;  %v2779_v29 = vpop.f32.mrf.mxu3  ;;  %v8049_v20 = vor.u32 %v10438_v61, %v8046_v62  ;;  %v10460_v61 = vld [vmem:[%s16323_s2 + $0xa34] sm:$0xf]  ;;  %v8134_v62 = vld [vmem:[%s16323_s2 + $0xa38] sm:$0xf0]  ;;  %v8238_v53 = vld [vmem:[%s16323_s2 + $0xb08] sm:$0xf0] }
 0x154   :  { %3045 = vmatpush.bf16.msra.mxu0 %v8073_v33  ;;  %v10498_v33 = vld [vmem:[%s16323_s2 + $0xb64] sm:$0xf]  ;;  %v10492_v7 = vld [vmem:[%s16323_s2 + $0xb34] sm:$0xf]  ;;  %v8262_v29 = vld [vmem:[%s16323_s2 + $0xb38] sm:$0xf0] }
 0x155   :  { %2971 = vmatmul.bf16.vlgmr.msra.gmra.mxu2 %v11924_v48  ;;  %3006 = vmatpush.bf16.msra.mxu1 %v7881_v24  ;;  %v7873_v48 = vor.u32 %v10394_v30, %v7870_v31  ;;  %v10410_v24 = vld [vmem:[%s16323_s2 + $0x8a4] sm:$0xf]  ;;  %v8361_v30 = vor.u32 %v10516_v41, %v8358_v34  ;;  %v8158_v31 = vld [vmem:[%s16323_s2 + $0xa68] sm:$0xf0]  ;;  %v8289_v1 = vor.u32 %v10498_v33, %v8286_v35  ;;  %v10508_v8 = vld [vmem:[%s16323_s2 + $0xbb4] sm:$0xf] }
 0x156   :  { %3015 = vmatpush.bf16.msrb.mxu2 %v7977_v36  ;;  %v7857_v36 = vor.u32 %v10390_v56, %v7854_v57  ;;  %v8161_v60 = vor.u32 %v10466_v26, %v8158_v31  ;;  %v8230_v56 = vld [vmem:[%s16323_s2 + $0xaf8] sm:$0xf0]  ;;  %v8265_v41 = vor.u32 %v10492_v7, %v8262_v29  ;;  %v10458_v34 = vld [vmem:[%s16323_s2 + $0xa24] sm:$0xf]  ;;  %v10480_v31 = vld [vmem:[%s16323_s2 + $0xad4] sm:$0xf] }
 0x157   :  { %3032 = vmatpush.bf16.msra.mxu3 %v8009_v25  ;;  %v7934_v25 = vld [vmem:[%s16323_s2 + $0x8a8] sm:$0xf0]  ;;  %v8233_v63 = vor.u32 %v10484_v55, %v8230_v56  ;;  %v10506_v26 = vld [vmem:[%s16323_s2 + $0xba4] sm:$0xf]  ;;  %v8214_v33 = vld [vmem:[%s16323_s2 + $0xad8] sm:$0xf0] }
 0x158   :  { %3046 = vmatpush.bf16.msra.mxu0 %v8065_v45  ;;  %v13376_v37 = vpop.f32.mrf.mxu2  ;;  %v7937_v38 = vor.u32 %v10410_v24, %v7934_v25  ;;  %v7929_v45 = vor.u32 %v10408_v32, %v7926_v39  ;;  %v10490_v24 = vld [vmem:[%s16323_s2 + $0xb24] sm:$0xf]  ;;  %v8254_v25 = vld [vmem:[%s16323_s2 + $0xb28] sm:$0xf0]  ;;  %v8217_v39 = vor.u32 %v10480_v31, %v8214_v33  ;;  %v8198_v55 = vld [vmem:[%s16323_s2 + $0xab8] sm:$0xf0] }
 0x159   :  { %3007 = vmatpush.bf16.msra.mxu1 %v7873_v48  ;;  %v8150_v48 = vld [vmem:[%s16323_s2 + $0xa58] sm:$0xf0]  ;;  %v10474_v29 = vld [vmem:[%s16323_s2 + $0xaa4] sm:$0xf]  ;;  %v8174_v33 = vld [vmem:[%s16323_s2 + $0xa88] sm:$0xf0] }
 0x15a   :  { %3016 = vmatpush.bf16.msrb.mxu2 %v7969_v2  ;;  %v10514_v2 = vld [vmem:[%s16323_s2 + $0xbe4] sm:$0xf]  ;;  %v8153_v46 = vor.u32 %v10464_v16, %v8150_v48  ;;  %v8246_v16 = vld [vmem:[%s16323_s2 + $0xb18] sm:$0xf0] }
 0x15b   :  { %3033 = vmatpush.bf16.msra.mxu3 %v8001_v12  ;;  %v8353_v42 = vor.u32 %v10514_v2, %v8350_v0  ;;  %v10496_v12 = vld [vmem:[%s16323_s2 + $0xb54] sm:$0xf]  ;;  %v8310_v48 = vld [vmem:[%s16323_s2 + $0xb98] sm:$0xf0]  ;;  %v10470_v31 = vld [vmem:[%s16323_s2 + $0xa84] sm:$0xf] }
 0x15c   :  { %3047 = vmatpush.bf16.msra.mxu0 %v8057_v58  ;;  %v8281_v52 = vor.u32 %v10496_v12, %v8278_v43  ;;  %v10478_v12 = vld [vmem:[%s16323_s2 + $0xac4] sm:$0xf]  ;;  %v8206_v43 = vld [vmem:[%s16323_s2 + $0xac8] sm:$0xf0] }
 0x15d   :  { %3008 = vmatpush.bf16.msra.mxu1 %v7865_v47  ;;  %v10510_v47 = vld [vmem:[%s16323_s2 + $0xbc4] sm:$0xf] }
 0x15e   :  { %3017 = vmatpush.bf16.msrb.mxu2 %v7961_v50  ;;  %v10406_v50 = vld [vmem:[%s16323_s2 + $0x884] sm:$0xf] }
 0x15f   :  { %3034 = vmatpush.bf16.msra.mxu3 %v7993_v49  ;;  %v8334_v49 = vld [vmem:[%s16323_s2 + $0xbc8] sm:$0xf0]  ;;  %v7921_v57 = vor.u32 %v10406_v50, %v7918_v15 }
 0x160   :  { %3048 = vmatpush.bf16.msra.mxu0 %v8049_v20  ;;  %v2792_v51 = vpop.f32.mrf.mxu2  ;;  %v8337_v27 = vor.u32 %v10510_v47, %v8334_v49  ;;  %v8126_v20 = vld [vmem:[%s16323_s2 + $0xa28] sm:$0xf0]  ;;  %v13488_v35 = vpop.f32.mrf.mxu0  ;;  %v10476_v49 = vld [vmem:[%s16323_s2 + $0xab4] sm:$0xf] }
 0x161   :  { %3009 = vmatpush.bf16.msra.mxu1 %v7857_v36  ;;  %v13435_v58 = vpop.f32.mrf.mxu1  ;;  %v8222_v36 = vld [vmem:[%s16323_s2 + $0xae8] sm:$0xf0]  ;;  %v8129_v0 = vor.u32 %v10458_v34, %v8126_v20  ;;  %v10524_v51 = vld [vmem:[%s16323_s2 + $0xc34] sm:$0xf] }
 0x162   :  { %3018 = vmatpush.bf16.msrb.mxu2 %v7953_v59  ;;  %v8302_v47 = vld [vmem:[%s16323_s2 + $0xb88] sm:$0xf0]  ;;  %v10548_v34 = vld [vmem:[%s16327_s6 + $0x30] sm:$0xff] }
 0x163   :  { %3035 = vmatpush.bf16.msra.mxu3 %v7985_v19  ;;  %3049 = vmatmul.bf16.vlgmr.msra.gmra.mxu0 %v12169_v18  ;;  %v8142_v18 = vld [vmem:[%s16323_s2 + $0xa48] sm:$0xf0]  ;;  %v8137_v19 = vor.u32 %v10460_v61, %v8134_v62  ;;  %v8305_v62 = vor.u32 %v10502_v54, %v8302_v47 }
 0x164   :  { %3093 = vmatpush.bf16.msrb.mxu0 %v8361_v30  ;;  %3010 = vmatmul.bf16.vlgmr.msra.gmra.mxu1 %v12157_v9  ;;  %v8342_v9 = vld [vmem:[%s16323_s2 + $0xbd8] sm:$0xf0]  ;;  %v8318_v30 = vld [vmem:[%s16323_s2 + $0xba8] sm:$0xf0] }
 0x165   :  { %3054 = vmatpush.bf16.msrb.mxu1 %v8169_v22  ;;  %v8345_v17 = vor.u32 %v10512_v44, %v8342_v9  ;;  %v8329_v22 = vor.u32 %v10508_v8, %v8326_v10  ;;  %v8321_v32 = vor.u32 %v10506_v26, %v8318_v30  ;;  %v10967_v44 = vld [vmem:[%s16324_s3] sm:$0x3]  ;;  %v8190_v8 = vld [vmem:[%s16323_s2 + $0xaa8] sm:$0xf0] }
 0x166   :  { %3019 = vmatpush.bf16.msrb.mxu2 %v7945_v21  ;;  %3036 = vmatmul.bf16.vlgmr.msra.gmra.mxu3 %v12165_v13  ;;  %v10462_v13 = vld [vmem:[%s16323_s2 + $0xa44] sm:$0xf]  ;;  %v446_v9 = vperm.slane %v10967_v44, 1  ;;  %v10531_v44 = vld [vmem:[%s16325_s4 + $0x28] sm:$0xff] }
 0x167   :  { %3080 = vmatpush.bf16.msrb.mxu3 %v8297_v23  ;;  %v8145_v59 = vor.u32 %v10462_v13, %v8142_v18  ;;  %v8225_v23 = vor.u32 %v10482_v11, %v8222_v36  ;;  %v8209_v18 = vor.u32 %v10478_v12, %v8206_v43  ;;  %v10522_v11 = vld [vmem:[%s16323_s2 + $0xc24] sm:$0xf]  ;;  %v8382_v36 = vld [vmem:[%s16323_s2 + $0xc28] sm:$0xf0]  ;;  %v10544_v43 = vld [vmem:[%s16327_s6 + $0x10] sm:$0xff] }
 0x168   :  { %3094 = vmatpush.bf16.msrb.mxu0 %v8353_v42  ;;  %v10504_v42 = vld [vmem:[%s16323_s2 + $0xb94] sm:$0xf]  ;;  %v2804_v56 = vadd.f32 %v13435_v58, %v446_v9  ;;  %v10549_v58 = vld [vmem:[%s16327_s6 + $0x38] sm:$0xff]  ;;  %v8385_v20 = vor.u32 %v10522_v11, %v8382_v36  ;;  %v10968_v9 = vld [vmem:[#allocation1] sm:$0xff] }
 0x169   :  { %3055 = vmatpush.bf16.msrb.mxu1 %v8161_v60  ;;  %v13467_v21 = vpop.f32.mrf.mxu3  ;;  %v2805_v2 = vpop.f32.mrf.mxu1  ;;  %v8118_v60 = vld [vmem:[%s16323_s2 + $0xa18] sm:$0xf0]  ;;  %v8313_v13 = vor.u32 %v10504_v42, %v8310_v48  ;;  %v10527_v47 = vld [vmem:[%s16325_s4 + $0x8] sm:$0xff] }
 0x16a   :  { %3020 = vmatpush.bf16.msrb.mxu2 %v7937_v38  ;;  %v8257_v38 = vor.u32 %v10490_v24, %v8254_v25  ;;  %v10520_v24 = vld [vmem:[%s16323_s2 + $0xc14] sm:$0xf]  ;;  %v8374_v25 = vld [vmem:[%s16323_s2 + $0xc18] sm:$0xf0] }
 0x16b   :  { %3081 = vmatpush.bf16.msrb.mxu3 %v8289_v1  ;;  %v10488_v1 = vld [vmem:[%s16323_s2 + $0xb14] sm:$0xf] }
 0x16c   :  { %3095 = vmatpush.bf16.msrb.mxu0 %v8345_v17  ;;  %v8249_v50 = vor.u32 %v10488_v1, %v8246_v16  ;;  %v10486_v17 = vld [vmem:[%s16323_s2 + $0xb04] sm:$0xf]  ;;  %v10533_v1 = vld [vmem:[%s16325_s4 + $0x38] sm:$0xff]  ;;  %v10532_v16 = vld [vmem:[%s16325_s4 + $0x30] sm:$0xff] }
 0x16d   :  { %3056 = vmatpush.bf16.msrb.mxu1 %v8153_v46  ;;  %v10454_v46 = vld [vmem:[%s16323_s2 + $0xa04] sm:$0xf]  ;;  %v8241_v61 = vor.u32 %v10486_v17, %v8238_v53 }
 0x16e   :  { %3021 = vmatpush.bf16.msrb.mxu2 %v7929_v45 }
 0x16f   :  { %3082 = vmatpush.bf16.msrb.mxu3 %v8281_v52  ;;  %v8110_v52 = vld [vmem:[%s16323_s2 + $0xa08] sm:$0xf0] }
 0x170   :  { %3096 = vmatpush.bf16.msrb.mxu0 %v8337_v27  ;;  %v8201_v27 = vor.u32 %v10476_v49, %v8198_v55 }
 0x171   :  { %3057 = vmatpush.bf16.msrb.mxu1 %v8145_v59  ;;  %v2831_v15 = vpop.f32.mrf.mxu3  ;;  %v8390_v59 = vld [vmem:[%s16323_s2 + $0xc38] sm:$0xf0] }
 0x172   :  { %3022 = vmatpush.bf16.msrb.mxu2 %v7921_v57  ;;  %v2844_v57 = vpop.f32.mrf.mxu0  ;;  %v8393_v7 = vor.u32 %v10524_v51, %v8390_v59  ;;  %v10529_v15 = vld [vmem:[%s16325_s4 + $0x18] sm:$0xff] }
 0x173   :  { %3083 = vmatpush.bf16.msrb.mxu3 %v8273_v28  ;;  %v8113_v28 = vor.u32 %v10454_v46, %v8110_v52  ;;  %v10542_v52 = vld [vmem:[%s16327_s6] sm:$0xff] }
 0x174   :  { %3097 = vmatpush.bf16.msrb.mxu0 %v8329_v22  ;;  %v10472_v22 = vld [vmem:[%s16323_s2 + $0xa94] sm:$0xf] }
 0x175   :  { %3023 = vmatmul.bf16.vlgmr.msrb.gmra.mxu2 %v12167_v14  ;;  %3058 = vmatpush.bf16.msrb.mxu1 %v8137_v19  ;;  %v10456_v14 = vld [vmem:[%s16323_s2 + $0xa14] sm:$0xf] }
 0x176   :  { %3067 = vmatpush.bf16.msra.mxu2 %v8233_v63  ;;  %v8121_v45 = vor.u32 %v10456_v14, %v8118_v60  ;;  %v10546_v60 = vld [vmem:[%s16327_s6 + $0x20] sm:$0xff] }
 0x177   :  { %3084 = vmatpush.bf16.msrb.mxu3 %v8265_v41  ;;  %v8193_v41 = vor.u32 %v10474_v29, %v8190_v8 }
 0x178   :  { %3098 = vmatpush.bf16.msrb.mxu0 %v8321_v32  ;;  %v2816_v63 = vpop.f32.mrf.mxu2 }
 0x179   :  { %3059 = vmatpush.bf16.msrb.mxu1 %v8129_v0  ;;  %v2817_v10 = vadd.f32 %v2816_v63, %v2804_v56  ;;  %v8177_v0 = vor.u32 %v10470_v31, %v8174_v33  ;;  %v10526_v56 = vld [vmem:[%s16325_s4] sm:$0xff]  ;;  %v10539_v33 = vld [vmem:[%s16325_s4 + $0x68] sm:$0xff] }
 0x17a   :  { %3068 = vmatpush.bf16.msra.mxu2 %v8225_v23  ;;  %v8182_v23 = vld [vmem:[%s16323_s2 + $0xa98] sm:$0xf0] }
 0x17b   :  { %3085 = vmatpush.bf16.msrb.mxu3 %v8257_v38  ;;  %v2830_v19 = vadd.f32 %v13467_v21, %v2817_v10  ;;  %v8185_v26 = vor.u32 %v10472_v22, %v8182_v23 }
 0x17c   :  { %3099 = vmatpush.bf16.msrb.mxu0 %v8313_v13 }
 0x17d   :  { %3060 = vmatpush.bf16.msrb.mxu1 %v8121_v45  ;;  %v2843_v21 = vadd.f32 %v13488_v35, %v2830_v19  ;;  %v8366_v35 = vld [vmem:[%s16323_s2 + $0xc08] sm:$0xf0]  ;;  %v10530_v45 = vld [vmem:[%s16325_s4 + $0x20] sm:$0xff] }
 0x17e   :  { %3069 = vmatpush.bf16.msra.mxu2 %v8217_v39  ;;  %v10545_v39 = vld [vmem:[%s16327_s6 + $0x18] sm:$0xff] }
 0x17f   :  { %3086 = vmatpush.bf16.msrb.mxu3 %v8249_v50  ;;  %v2791_v50 = vadd.f32 %v13376_v37, %v13284_v40  ;;  %v10528_v40 = vld [vmem:[%s16325_s4 + $0x10] sm:$0xff] }
 0x180   :  { %3100 = vmatpush.bf16.msrb.mxu0 %v8305_v62  ;;  %v2818_v30 = vpop.f32.mrf.mxu2  ;;  %v2894_v14 = vpop.f32.mrf.mxu0 }
 0x181   :  { %3061 = vmatpush.bf16.msrb.mxu1 %v8113_v28  ;;  %v2855_v2 = vpop.f32.mrf.mxu1  ;;  %v3119_v13 = vmax.f32 %v2791_v50, 0.0 }
 0x182   :  { %3070 = vmatpush.bf16.msra.mxu2 %v8209_v18  ;;  %v2856_v38 = vadd.f32 %v2855_v2, %v2843_v21 }
 0x183   :  { %3087 = vmatpush.bf16.msrb.mxu3 %v8241_v61  ;;  %3101 = vmatmul.bf16.vlgmr.msrb.gmra.mxu0 %v12253_v6  ;;  %v10518_v6 = vld [vmem:[%s16323_s2 + $0xc04] sm:$0xf]  ;;  %v3121_v37 = vpack.c.bf16 %v3119_v13, %v3119_v13 }
 0x184   :  { %3413 = vmatpush.bf16.msra.mxu0 %v10549_v58  ;;  %3062 = vmatmul.bf16.vlgmr.msrb.gmra.mxu1 %v12247_v3  ;;  %v10547_v3 = vld [vmem:[%s16327_s6 + $0x28] sm:$0xff]  ;;  %v8369_v32 = vor.u32 %v10518_v6, %v8366_v35 }
 0x185   :  { %v10555_v6 = vld [vmem:[%s16327_s6 + $0x68] sm:$0xff] }
 0x186   :  { %3071 = vmatpush.bf16.msra.mxu2 %v8201_v27  ;;  %3088 = vmatmul.bf16.vlgmr.msrb.gmra.mxu3 %v12249_v4  ;;  %v8377_v4 = vor.u32 %v10520_v24, %v8374_v25  ;;  %v10541_v25 = vld [vmem:[%s16325_s4 + $0x78] sm:$0xff] }
 0x187   :  { %3110 = vmatpush.bf16.msra.mxu3 %v8393_v7 }
 0x188   :  { %3414 = vmatpush.bf16.msra.mxu0 %v10548_v34  ;;  %v2896_v12 = vpop.f32.mrf.mxu0 }
 0x189   :  { %v2881_v42 = vpop.f32.mrf.mxu3  ;;  %v2857_v48 = vpop.f32.mrf.mxu1  ;;  %v10551_v12 = vld [vmem:[%s16327_s6 + $0x48] sm:$0xff] }
 0x18a   :  { %3072 = vmatpush.bf16.msra.mxu2 %v8193_v41  ;;  %v10535_v48 = vld [vmem:[%s16325_s4 + $0x48] sm:$0xff] }
 0x18b   :  { %3111 = vmatpush.bf16.msra.mxu3 %v8385_v20 }
 0x18c   :  { %3415 = vmatpush.bf16.msra.mxu0 %v10547_v3  ;;  %v10540_v3 = vld [vmem:[%s16325_s4 + $0x70] sm:$0xff] }
 0x18e   :  { %3073 = vmatpush.bf16.msra.mxu2 %v8185_v26  ;;  %v10557_v26 = vld [vmem:[%s16327_s6 + $0x78] sm:$0xff] }
 0x18f   :  { %3112 = vmatpush.bf16.msra.mxu3 %v8377_v4  ;;  %3426 = vmatpush.bf16.msra.mxu1 %v10557_v26  ;;  %v10556_v4 = vld [vmem:[%s16327_s6 + $0x70] sm:$0xff] }
 0x190   :  { %3416 = vmatpush.bf16.msra.mxu0 %v10546_v60  ;;  %v10537_v60 = vld [vmem:[%s16325_s4 + $0x58] sm:$0xff] }
 0x191   :  { %v2883_v46 = vpop.f32.mrf.mxu3 }
 0x192   :  { %3074 = vmatpush.bf16.msra.mxu2 %v8177_v0  ;;  %v10538_v0 = vld [vmem:[%s16325_s4 + $0x60] sm:$0xff] }
 0x193   :  { %3113 = vmatpush.bf16.msra.mxu3 %v8369_v32  ;;  %3427 = vmatpush.bf16.msra.mxu1 %v10556_v4  ;;  %v9238_v4 = vld [vmem:[%s16331_s10 + $0x5dc] sm:$0xf0] }
 0x194   :  { %3417 = vmatpush.bf16.msra.mxu0 %v10545_v39  ;;  %v10536_v39 = vld [vmem:[%s16325_s4 + $0x50] sm:$0xff] }
 0x195   :  { %3075 = vmatmul.bf16.vlgmr.msra.gmra.mxu2 %v12251_v5  ;;  %v10543_v5 = vld [vmem:[%s16327_s6 + $0x8] sm:$0xff] }
 0x196   :  { %3255 = vmatpush.bf16.msrb.mxu2 %v10533_v1  ;;  %8395 = vmatmul.msk.bf16.vlgmr.msra.gmra.mxu3 %vm2466_vm0, %v10968_v9  ;;  %v10553_v1 = vld [vmem:[%s16327_s6 + $0x58] sm:$0xff] }
 0x197   :  { %3268 = vmatpush.bf16.msrb.mxu3 %v10541_v25  ;;  %3428 = vmatpush.bf16.msra.mxu1 %v10555_v6  ;;  %v10036_v25 = vld [vmem:[%s16331_s10 + $0xbb8] sm:$0xf]  ;;  %v10935_v6 = vld [vmem:[%s16331_s10 + $0xbbc] sm:$0xf] }
 0x198   :  { %3418 = vmatpush.bf16.msra.mxu0 %v10544_v43  ;;  %v2868_v18 = vpop.f32.mrf.mxu2  ;;  %v10534_v43 = vld [vmem:[%s16325_s4 + $0x40] sm:$0xff] }
 0x199   :  { %v2869_v17 = vadd.f32 %v2868_v18, %v2856_v38  ;;  %v10554_v38 = vld [vmem:[%s16327_s6 + $0x60] sm:$0xff] }
 0x19a   :  { %3256 = vmatpush.bf16.msrb.mxu2 %v10532_v16  ;;  %v10552_v16 = vld [vmem:[%s16327_s6 + $0x50] sm:$0xff] }
 0x19b   :  { %v2882_v53 = vadd.f32 %v2881_v42, %v2869_v17  ;;  %3269 = vmatpush.bf16.msrb.mxu3 %v10540_v3  ;;  %3429 = vmatpush.bf16.msra.mxu1 %v10554_v38  ;;  %v10735_v3 = vld [vmem:[%s16331_s10 + $0x57c] sm:$0xf]  ;;  %v10722_v38 = vld [vmem:[%s16331_s10 + $0x510] sm:$0xf0] }
 0x19c   :  { %3419 = vmatpush.bf16.msra.mxu0 %v10543_v5 }
 0x19d   :  { %v2895_v54 = vadd.f32 %v2894_v14, %v2882_v53 }
 0x19e   :  { %3257 = vmatpush.bf16.msrb.mxu2 %v10531_v44  ;;  %v10550_v44 = vld [vmem:[%s16327_s6 + $0x40] sm:$0xff] }
 0x19f   :  { %3270 = vmatpush.bf16.msrb.mxu3 %v10539_v33  ;;  %3430 = vmatpush.bf16.msra.mxu1 %v10553_v1  ;;  %v9241_v33 = vor.u32 %v10735_v3, %v9238_v4  ;;  %v10822_v3 = vld [vmem:[%s16331_s10 + $0x830] sm:$0xf0] }
 0x1a0   :  { %3420 = vmatpush.bf16.msra.mxu0 %v10542_v52  ;;  %v2870_v49 = vpop.f32.mrf.mxu2  ;;  %v2946_v51 = vpop.f32.mrf.mxu0 }
 0x1a1   :  { %v2907_v55 = vpop.f32.mrf.mxu1 }
 0x1a2   :  { %3258 = vmatpush.bf16.msrb.mxu2 %v10530_v45  ;;  %v2908_v57 = vadd.f32 %v2907_v55, %v2895_v54 }
 0x1a3   :  { %3421 = vmatmul.bf16.vlgmr.msra.gmra.mxu0 %v3121_v37  ;;  %3271 = vmatpush.bf16.msrb.mxu3 %v10538_v0 }
 0x1a4   :  { %3431 = vmatpush.bf16.msra.mxu1 %v10552_v16  ;;  %v9138_v16 = vld [vmem:[%s16331_s10 + $0x514] sm:$0xf0] }
 0x1a6   :  { %3259 = vmatpush.bf16.msrb.mxu2 %v10529_v15 }
 0x1a7   :  { %3272 = vmatpush.bf16.msrb.mxu3 %v10537_v60  ;;  %v10922_v60 = vld [vmem:[%s16331_s10 + $0xb50] sm:$0xf0] }
 0x1a8   :  { %v2948_v61 = vpop.f32.mrf.mxu0  ;;  %3432 = vmatpush.bf16.msra.mxu1 %v10551_v12 }
 0x1a9   :  { %v2933_v59 = vpop.f32.mrf.mxu3  ;;  %v2909_v28 = vpop.f32.mrf.mxu1 }
 0x1aa   :  { %3260 = vmatpush.bf16.msrb.mxu2 %v10528_v40 }
 0x1ab   :  { %3273 = vmatpush.bf16.msrb.mxu3 %v10536_v39  ;;  %v10710_v39 = vld [vmem:[%s16331_s10 + $0x4b4] sm:$0xf] }
 0x1ac   :  { %3433 = vmatpush.bf16.msra.mxu1 %v10550_v44  ;;  %v9141_v12 = vor.u32 %v10710_v39, %v9138_v16  ;;  %v9036_v44 = vld [vmem:[%s16331_s10 + $0x3e8] sm:$0xf]  ;;  %v10597_v16 = vld [vmem:[%s16331_s10 + $0x128] sm:$0xf0] }
 0x1ae   :  { %3261 = vmatpush.bf16.msrb.mxu2 %v10527_v47 }
 0x1af   :  { %3274 = vmatpush.bf16.msrb.mxu3 %v10535_v48  ;;  %v10962_v48 = vld [vmem:[%s16328_s7] ss:$0 sm:$0xff] }
 0x1b1   :  { %v2935_v62 = vpop.f32.mrf.mxu3 }
 0x1b2   :  { %3262 = vmatpush.bf16.msrb.mxu2 %v10526_v56 }
 0x1b3   :  { %3275 = vmatpush.bf16.msrb.mxu3 %v10534_v43  ;;  %v9938_v43 = vld [vmem:[%s16331_s10 + $0xb54] sm:$0xf0] }
 0x1b5   :  { %3263 = vmatmul.bf16.vlgmr.msrb.gmra.mxu2 %v3121_v37 }
 0x1b8   :  { %v2920_v27 = vpop.f32.mrf.mxu2 }
 0x1b9   :  { %v2921_v63 = vadd.f32 %v2920_v27, %v2908_v57 }
 0x1bb   :  { %v2934_v58 = vadd.f32 %v2933_v59, %v2921_v63 }
 0x1bd   :  { %v2947_v7 = vadd.f32 %v2946_v51, %v2934_v58  ;;  %v3448_v58 = vld [vmem:[%s16329_s8 + $0x10] sm:$0x33] }
 0x1c0   :  { %v2922_v29 = vpop.f32.mrf.mxu2  ;;  %v2998_v10 = vpop.f32.mrf.mxu0 }
 0x1c1   :  { %v2959_v8 = vpop.f32.mrf.mxu1  ;;  %v3463_v29 = vunpack.c.h.b16 %v3448_v58 }
 0x1c2   :  { %v2960_v34 = vadd.f32 %v2959_v8, %v2947_v7  ;;  %v3462_v7 = vunpack.c.l.b16 %v3448_v58 }
 0x1c4   :  { %v3466_v8 = vpack.c.b16 %v3462_v7, %v3462_v7 }
 0x1c8   :  { %v3000_v19 = vpop.f32.mrf.mxu0 }
 0x1c9   :  { %v2985_v11 = vpop.f32.mrf.mxu3  ;;  %v2961_v36 = vpop.f32.mrf.mxu1  ;;  %v8526_v19 = vld [vmem:[%s16329_s8] sm:$0xf] }
 0x1d1   :  { %v2987_v41 = vpop.f32.mrf.mxu3 }
 0x1d2   :  { %v10559_v41 = vld [vmem:[%s16329_s8 + $0x4] sm:$0xf0] }
 0x1d8   :  { %v2972_v20 = vpop.f32.mrf.mxu2 }
 0x1d9   :  { %v2973_v22 = vadd.f32 %v2972_v20, %v2960_v34  ;;  %v10558_v34 = vld [vmem:[%s16329_s8 + $0x4] sm:$0xf]  ;;  %v8527_v20 = vor.u32 %v10559_v41, %v8526_v19  ;;  %v10635_v19 = vld [vmem:[%s16331_s10 + $0x25c] sm:$0xf]  ;;  %v8838_v41 = vld [vmem:[%s16331_s10 + $0x2bc] sm:$0xf0] }
 0x1db   :  { %v2986_v23 = vadd.f32 %v2985_v11, %v2973_v22  ;;  %v3476_v11 = vsel %vm3474_vm1, %v3466_v8, 0  ;;  %v8528_v22 = vld [vmem:[%s16329_s8 + $0x8] sm:$0xf0]  ;;  %v9636_v8 = vld [vmem:[%s16331_s10 + $0x898] sm:$0xf] }
 0x1dc   :  { %3487 = vmatpush.bf16.msra.mxu2 %v3476_v11 }
 0x1dd   :  { %v2999_v21 = vadd.f32 %v2998_v10, %v2986_v23  ;;  %v3467_v10 = vpack.c.b16 %v3463_v29, %v3463_v29  ;;  %v8531_v23 = vor.u32 %v10558_v34, %v8528_v22  ;;  %v8836_v29 = vld [vmem:[%s16331_s10 + $0x258] sm:$0xf]  ;;  %v10835_v34 = vld [vmem:[%s16331_s10 + $0x89c] sm:$0xf] }
 0x1df   :  { %v3479_v36 = vsel %vm3474_vm1, %v3467_v10, 0 }
 0x1e0   :  { %v2974_v24 = vpop.f32.mrf.mxu2  ;;  %v3050_v31 = vpop.f32.mrf.mxu0  ;;  %3500 = vmatpush.bf16.msra.mxu3 %v3479_v36  ;;  %3488 = vmatpush.bf16.msra.mxu2 %v8527_v20  ;;  %v10847_v36 = vld [vmem:[%s16331_s10 + $0x8f8] sm:$0xf0]  ;;  %v9638_v20 = vld [vmem:[%s16331_s10 + $0x8fc] sm:$0xf0] }
 0x1e1   :  { %v3011_v30 = vpop.f32.mrf.mxu1  ;;  %v10747_v24 = vld [vmem:[%s16331_s10 + $0x5d8] sm:$0xf0] }
 0x1e2   :  { %v3012_v50 = vadd.f32 %v3011_v30, %v2999_v21  ;;  %v9236_v21 = vld [vmem:[%s16331_s10 + $0x578] sm:$0xf]  ;;  %v10947_v30 = vld [vmem:[%s16331_s10 + $0xc18] sm:$0xf0] }
 0x1e3   :  { %v9237_v26 = vor.u32 %v10747_v24, %v9236_v21  ;;  %v8736_v21 = vld [vmem:[%s16331_s10 + $0x190] sm:$0xf]  ;;  %v9637_v24 = vor.u32 %v10847_v36, %v9636_v8  ;;  %v10936_v8 = vld [vmem:[%s16331_s10 + $0xbc4] sm:$0xf] }
 0x1e4   :  { %3501 = vmatpush.bf16.msra.mxu3 %v8531_v23  ;;  %6027 = vmatpush.bf16.msrb.mxu2 %v9241_v33  ;;  %v9641_v33 = vor.u32 %v10835_v34, %v9638_v20  ;;  %v9144_v20 = vld [vmem:[%s16331_s10 + $0x4b8] sm:$0xf] }
 0x1e5   :  { %6001 = vmatpush.bf16.msrb.mxu0 %v9237_v26  ;;  %v10622_v26 = vld [vmem:[%s16331_s10 + $0x1f0] sm:$0xf0] }
 0x1e8   :  { %v3052_v14 = vpop.f32.mrf.mxu0  ;;  %6028 = vmatpush.bf16.msrb.mxu2 %v9141_v12 }
 0x1e9   :  { %v3037_v35 = vpop.f32.mrf.mxu3  ;;  %v3013_v2 = vpop.f32.mrf.mxu1  ;;  %v9936_v14 = vld [vmem:[%s16331_s10 + $0xaf0] sm:$0xf] }
 0x1ea   :  { %v9136_v2 = vld [vmem:[%s16331_s10 + $0x4b0] sm:$0xf] }
 0x1eb   :  { %v9137_v1 = vor.u32 %v10722_v38, %v9136_v2 }
 0x1ed   :  { %6002 = vmatpush.bf16.msrb.mxu0 %v9137_v1 }
 0x1f1   :  { %v3039_v32 = vpop.f32.mrf.mxu3 }
 0x1f2   :  { %v9937_v32 = vor.u32 %v10922_v60, %v9936_v14  ;;  %v8737_v14 = vor.u32 %v10622_v26, %v8736_v21  ;;  %v8636_v60 = vld [vmem:[%s16331_s10 + $0xc8] sm:$0xf]  ;;  %v9146_v26 = vld [vmem:[%s16331_s10 + $0x51c] sm:$0xf0] }
 0x1f8   :  { %v3024_v42 = vpop.f32.mrf.mxu2 }
 0x1f9   :  { %v3025_v52 = vadd.f32 %v3024_v42, %v3012_v50  ;;  %v10910_v42 = vld [vmem:[%s16331_s10 + $0xaf4] sm:$0xf]  ;;  %v10897_v50 = vld [vmem:[%s16331_s10 + $0xa88] sm:$0xf0] }
 0x1fb   :  { %v3038_v18 = vadd.f32 %v3037_v35, %v3025_v52  ;;  %v10038_v35 = vld [vmem:[%s16331_s10 + $0xc1c] sm:$0xf0] }
 0x1fc   :  { %v10041_v0 = vor.u32 %v10935_v6, %v10038_v35  ;;  %v10610_v6 = vld [vmem:[%s16331_s10 + $0x194] sm:$0xf]  ;;  %v8738_v35 = vld [vmem:[%s16331_s10 + $0x1f4] sm:$0xf0] }
 0x1fd   :  { %v3051_v53 = vadd.f32 %v3050_v31, %v3038_v18  ;;  %v10037_v31 = vor.u32 %v10947_v30, %v10036_v25  ;;  %v9838_v18 = vld [vmem:[%s16331_s10 + $0xa8c] sm:$0xf0]  ;;  %v8841_v25 = vor.u32 %v10635_v19, %v8838_v41  ;;  %v8741_v39 = vor.u32 %v10610_v6, %v8738_v35  ;;  %v10698_v35 = vld [vmem:[%s16331_s10 + $0x450] sm:$0xf0] }
 0x1fe   :  { %v9536_v30 = vld [vmem:[%s16331_s10 + $0x7d0] sm:$0xf] }
 0x1ff   :  { %6014 = vmatpush.bf16.msrb.mxu1 %v10037_v31  ;;  %v9044_v6 = vld [vmem:[%s16331_s10 + $0x3f0] sm:$0xf] }
 0x200   :  { %v3026_v9 = vpop.f32.mrf.mxu2  ;;  %v3102_v45 = vpop.f32.mrf.mxu0 }
 0x201   :  { %v3063_v5 = vpop.f32.mrf.mxu1  ;;  %v10697_v9 = vld [vmem:[%s16331_s10 + $0x448] sm:$0xf0] }
 0x202   :  { %v3064_v40 = vadd.f32 %v3063_v5, %v3051_v53  ;;  %v9941_v5 = vor.u32 %v10910_v42, %v9938_v43  ;;  %v9037_v52 = vor.u32 %v10697_v9, %v9036_v44  ;;  %v9436_v42 = vld [vmem:[%s16331_s10 + $0x708] sm:$0xf]  ;;  %v10585_v43 = vld [vmem:[%s16331_s10 + $0xcc] sm:$0xf]  ;;  %v8638_v44 = vld [vmem:[%s16331_s10 + $0x12c] sm:$0xf0] }
 0x203   :  { %6015 = vmatpush.bf16.msrb.mxu1 %v9937_v32  ;;  %v9537_v32 = vor.u32 %v10822_v3, %v9536_v30  ;;  %v10785_v9 = vld [vmem:[%s16331_s10 + $0x70c] sm:$0xf]  ;;  %v10911_v30 = vld [vmem:[%s16331_s10 + $0xafc] sm:$0xf]  ;;  %v9946_v3 = vld [vmem:[%s16331_s10 + $0xb5c] sm:$0xf0] }
 0x204   :  { %6003 = vmatpush.bf16.msrb.mxu0 %v9037_v52  ;;  %v8641_v52 = vor.u32 %v10585_v43, %v8638_v44  ;;  %v10873_v44 = vld [vmem:[%s16331_s10 + $0x9c8] sm:$0xf0] }
 0x208   :  { %v3104_v13 = vpop.f32.mrf.mxu0 }
 0x209   :  { %v3089_v46 = vpop.f32.mrf.mxu3  ;;  %v3065_v15 = vpop.f32.mrf.mxu1  ;;  %v10885_v13 = vld [vmem:[%s16331_s10 + $0xa2c] sm:$0xf] }
 0x20a   :  { %v9038_v15 = vld [vmem:[%s16331_s10 + $0x44c] sm:$0xf0] }
 0x211   :  { %v3091_v17 = vpop.f32.mrf.mxu3 }
 0x218   :  { %v3076_v37 = vpop.f32.mrf.mxu2 }
 0x219   :  { %v3077_v54 = vadd.f32 %v3076_v37, %v3064_v40  ;;  %v3115_v49 = vpop.f32.mrf.mxu3  ;;  %v8936_v40 = vld [vmem:[%s16331_s10 + $0x320] sm:$0xf]  ;;  %v10672_v37 = vld [vmem:[%s16331_s10 + $0x380] sm:$0xf0] }
 0x21b   :  { %v3090_v47 = vadd.f32 %v3089_v46, %v3077_v54  ;;  %v10685_v46 = vld [vmem:[%s16331_s10 + $0x3ec] sm:$0xf]  ;;  %v9736_v54 = vld [vmem:[%s16331_s10 + $0x960] sm:$0xf] }
 0x21c   :  { %v9041_v53 = vor.u32 %v10685_v46, %v9038_v15  ;;  %v8536_v15 = vld [vmem:[%s16331_s10] sm:$0xf] }
 0x21d   :  { %v3103_v55 = vadd.f32 %v3102_v45, %v3090_v47  ;;  %v9836_v45 = vld [vmem:[%s16331_s10 + $0xa28] sm:$0xf]  ;;  %v9841_v47 = vor.u32 %v10885_v13, %v9838_v18  ;;  %v10572_v13 = vld [vmem:[%s16331_s10 + $0x60] sm:$0xf0] }
 0x21e   :  { %v9837_v17 = vor.u32 %v10897_v50, %v9836_v45  ;;  %6029 = vmatpush.bf16.msrb.mxu2 %v9041_v53  ;;  %v3439_v45 = vld [vmem:[%s16322_s1] sm:$0x3]  ;;  %v8637_v50 = vor.u32 %v10597_v16, %v8636_v60  ;;  %v10886_v60 = vld [vmem:[%s16331_s10 + $0xa34] sm:$0xf] }
 0x21f   :  { %v3116_v56 = vadd.f32 %v3115_v49, %v3103_v55  ;;  %v10872_v49 = vld [vmem:[%s16331_s10 + $0x9c0] sm:$0xf0]  ;;  %v9336_v53 = vld [vmem:[%s16331_s10 + $0x640] sm:$0xf] }
 0x220   :  { %v3078_v57 = vpop.f32.mrf.mxu2  ;;  %v13689_v28 = vpop.f32.mrf.mxu0  ;;  %v10660_v55 = vld [vmem:[%s16331_s10 + $0x324] sm:$0xf]  ;;  %6016 = vmatpush.bf16.msrb.mxu1 %v9837_v17  ;;  %v9737_v58 = vor.u32 %v10872_v49, %v9736_v54  ;;  %v8538_v49 = vld [vmem:[%s16331_s10 + $0x64] sm:$0xf0] }
 0x221   :  { %v3120_v51 = vmax.f32 %v3116_v56, 0.0  ;;  %v3117_v61 = vpop.f32.mrf.mxu3  ;;  %v8938_v56 = vld [vmem:[%s16331_s10 + $0x384] sm:$0xf0]  ;;  %v10860_v57 = vld [vmem:[%s16331_s10 + $0x964] sm:$0xf] }
 0x222   :  { %v10963_v61 = vld [vmem:[%s16326_s5] ss:$0 sm:$0xff]  ;;  %v8941_v7 = vor.u32 %v10660_v55, %v8938_v56  ;;  %v10760_v55 = vld [vmem:[%s16331_s10 + $0x644] sm:$0xf]  ;;  %v9338_v56 = vld [vmem:[%s16331_s10 + $0x6a4] sm:$0xf0] }
 0x223   :  { %v3122_v59 = vpack.c.bf16 %v3120_v51, %v3120_v51  ;;  %v9738_v51 = vld [vmem:[%s16331_s10 + $0x9c4] sm:$0xf0]  ;;  %v9341_v36 = vor.u32 %v10760_v55, %v9338_v56 }
 0x224   :  { %v9741_v11 = vor.u32 %v10860_v57, %v9738_v51  ;;  %6017 = vmatpush.bf16.msrb.mxu1 %v9737_v58  ;;  %6030 = vmatpush.bf16.msrb.mxu2 %v8941_v7  ;;  %v8537_v57 = vor.u32 %v10572_v13, %v8536_v15  ;;  %v9244_v51 = vld [vmem:[%s16331_s10 + $0x580] sm:$0xf]  ;;  %v10736_v58 = vld [vmem:[%s16331_s10 + $0x584] sm:$0xf]  ;;  %v9246_v7 = vld [vmem:[%s16331_s10 + $0x5e4] sm:$0xf0] }
 0x225   :  { %3276 = vmatmul.bf16.vlgmr.msrb.gmra.mxu3 %v3122_v59  ;;  %3434 = vmatmul.bf16.vlgmr.msra.gmra.mxu1 %v3122_v59  ;;  %v3423_v59 = vadd.f32 %v10962_v48, %v13689_v28  ;;  %v10647_v28 = vld [vmem:[%s16331_s10 + $0x2b8] sm:$0xf0]  ;;  %v10797_v48 = vld [vmem:[%s16331_s10 + $0x768] sm:$0xf0]  ;;  %v9249_v34 = vor.u32 %v10736_v58, %v9246_v7  ;;  %v8844_v13 = vld [vmem:[%s16331_s10 + $0x260] sm:$0xf] }
 0x226   :  { %6040 = vmatpush.bf16.msrb.mxu3 %v10041_v0  ;;  %v8837_v23 = vor.u32 %v10647_v28, %v8836_v29  ;;  %v10810_v0 = vld [vmem:[%s16331_s10 + $0x7d4] sm:$0xf]  ;;  %v9437_v46 = vor.u32 %v10797_v48, %v9436_v42  ;;  %v8944_v42 = vld [vmem:[%s16331_s10 + $0x328] sm:$0xf]  ;;  %v10673_v48 = vld [vmem:[%s16331_s10 + $0x388] sm:$0xf0] }
 0x227   :  { %v10611_v58 = vld [vmem:[%s16331_s10 + $0x19c] sm:$0xf]  ;;  %v8746_v7 = vld [vmem:[%s16331_s10 + $0x1fc] sm:$0xf0] }
 0x228   :  { %v3424_v62 = vpop.f32.mrf.mxu0  ;;  %6018 = vmatpush.bf16.msrb.mxu1 %v9637_v24  ;;  %6031 = vmatpush.bf16.msrb.mxu2 %v8841_v25  ;;  %v10923_v24 = vld [vmem:[%s16331_s10 + $0xb58] sm:$0xf0] }
 0x229   :  { %v8937_v62 = vor.u32 %v10672_v37, %v8936_v40  ;;  %v10772_v40 = vld [vmem:[%s16331_s10 + $0x6a0] sm:$0xf0]  ;;  %v10711_v25 = vld [vmem:[%s16331_s10 + $0x4bc] sm:$0xf] }
 0x22a   :  { %6041 = vmatpush.bf16.msrb.mxu3 %v9941_v5  ;;  %v9438_v5 = vld [vmem:[%s16331_s10 + $0x76c] sm:$0xf0]  ;;  %v10560_v37 = vld [vmem:[%s16331_s10 + $0x4] sm:$0xf]  ;;  %v9337_v29 = vor.u32 %v10772_v40, %v9336_v53 }
 0x22b   :  { %6004 = vmatpush.bf16.msrb.mxu0 %v8937_v62  ;;  %v9441_v17 = vor.u32 %v10785_v9, %v9438_v5  ;;  %v8541_v28 = vor.u32 %v10560_v37, %v8538_v49  ;;  %v10661_v9 = vld [vmem:[%s16331_s10 + $0x32c] sm:$0xf]  ;;  %v8946_v5 = vld [vmem:[%s16331_s10 + $0x38c] sm:$0xf0]  ;;  %v10848_v40 = vld [vmem:[%s16331_s10 + $0x900] sm:$0xf0] }
 0x22c   :  { %6019 = vmatpush.bf16.msrb.mxu1 %v9537_v32  ;;  %6032 = vmatpush.bf16.msrb.mxu2 %v8741_v39  ;;  %v9045_v32 = vor.u32 %v10698_v35, %v9044_v6  ;;  %v8949_v15 = vor.u32 %v10661_v9, %v8946_v5  ;;  %v10636_v37 = vld [vmem:[%s16331_s10 + $0x264] sm:$0xf]  ;;  %v9646_v49 = vld [vmem:[%s16331_s10 + $0x904] sm:$0xf0]  ;;  %v10773_v35 = vld [vmem:[%s16331_s10 + $0x6a8] sm:$0xf0] }
 0x22d   :  { %v10749_v9 = vld [vmem:[%s16331_s10 + $0x5e8] sm:$0xf0]  ;;  %v10052_v5 = vld [vmem:[%s16331_s10 + $0xbc8] sm:$0xf] }
 0x22e   :  { %6042 = vmatpush.bf16.msrb.mxu3 %v9841_v47 }
 0x22f   :  { %6005 = vmatpush.bf16.msrb.mxu0 %v8837_v23  ;;  %v9944_v23 = vld [vmem:[%s16331_s10 + $0xaf8] sm:$0xf] }
 0x230   :  { %6020 = vmatpush.bf16.msrb.mxu1 %v9437_v46  ;;  %6033 = vmatpush.bf16.msrb.mxu2 %v8641_v52  ;;  %v8945_v46 = vor.u32 %v10673_v48, %v8944_v42 }
 0x232   :  { %6043 = vmatpush.bf16.msrb.mxu3 %v9741_v11 }
 0x233   :  { %6006 = vmatpush.bf16.msrb.mxu0 %v8737_v14  ;;  %v9046_v14 = vld [vmem:[%s16331_s10 + $0x454] sm:$0xf0] }
 0x234   :  { %6021 = vmatpush.bf16.msrb.mxu1 %v9337_v29  ;;  %6034 = vmatpush.bf16.msrb.mxu2 %v8541_v28  ;;  %v10811_v29 = vld [vmem:[%s16331_s10 + $0x7dc] sm:$0xf]  ;;  %v9546_v28 = vld [vmem:[%s16331_s10 + $0x83c] sm:$0xf0] }
 0x236   :  { %6044 = vmatpush.bf16.msrb.mxu3 %v9641_v33  ;;  %v9149_v33 = vor.u32 %v10711_v25, %v9146_v26  ;;  %v10786_v25 = vld [vmem:[%s16331_s10 + $0x714] sm:$0xf]  ;;  %v9446_v26 = vld [vmem:[%s16331_s10 + $0x774] sm:$0xf0] }
 0x237   :  { %6007 = vmatpush.bf16.msrb.mxu0 %v8637_v50  ;;  %v9746_v50 = vld [vmem:[%s16331_s10 + $0x9cc] sm:$0xf0] }
 0x238   :  { %v13691_v27 = vpop.f32.mrf.mxu2 }
 0x239   :  { %v3265_v4 = vadd.f32 %v10963_v61, %v13691_v27  ;;  %v9538_v27 = vld [vmem:[%s16331_s10 + $0x834] sm:$0xf0]  ;;  %v10044_v61 = vld [vmem:[%s16331_s10 + $0xbc0] sm:$0xf] }
 0x23a   :  { %v9541_v12 = vor.u32 %v10810_v0, %v9538_v27  ;;  %v9949_v0 = vor.u32 %v10911_v30, %v9946_v3  ;;  %v10898_v27 = vld [vmem:[%s16331_s10 + $0xa90] sm:$0xf0]  ;;  %v9449_v3 = vor.u32 %v10786_v25, %v9446_v26 }
 0x23b   :  { %6008 = vmatpush.bf16.msrb.mxu0 %v8537_v57  ;;  %v10674_v25 = vld [vmem:[%s16331_s10 + $0x390] sm:$0xf0] }
 0x23c   :  { %6045 = vmatpush.bf16.msrb.mxu3 %v9541_v12  ;;  %v9744_v12 = vld [vmem:[%s16331_s10 + $0x968] sm:$0xf] }
 0x23d   :  { %v9745_v52 = vor.u32 %v10873_v44, %v9744_v12  ;;  %v9252_v44 = vld [vmem:[%s16331_s10 + $0x588] sm:$0xf] }
 0x240   :  { %v3266_v63 = vpop.f32.mrf.mxu2  ;;  %6046 = vmatpush.bf16.msrb.mxu3 %v9441_v17  ;;  %v9644_v17 = vld [vmem:[%s16331_s10 + $0x8a0] sm:$0xf] }
 0x241   :  { %v9645_v56 = vor.u32 %v10848_v40, %v9644_v17  ;;  %v9253_v40 = vor.u32 %v10749_v9, %v9252_v44  ;;  %v8752_v44 = vld [vmem:[%s16331_s10 + $0x1a0] sm:$0xf]  ;;  %v10624_v9 = vld [vmem:[%s16331_s10 + $0x200] sm:$0xf0] }
 0x244   :  { %6047 = vmatpush.bf16.msrb.mxu3 %v9341_v36  ;;  %v9549_v36 = vor.u32 %v10811_v29, %v9546_v28  ;;  %v9052_v28 = vld [vmem:[%s16331_s10 + $0x3f8] sm:$0xf] }
 0x2a2   :  { %v3435_v63 = vpop.f32.mrf.mxu1 }
 0x2a3   :  { %v3436_v10 = vadd.f32 %v3435_v63, %v3423_v59  ;;  %v10748_v59 = vld [vmem:[%s16331_s10 + $0x5e0] sm:$0xf0] }
 0x2a4   :  { %v10948_v63 = vld [vmem:[%s16331_s10 + $0xc20] sm:$0xf0]  ;;  %v9245_v19 = vor.u32 %v10748_v59, %v9244_v51  ;;  %v8744_v51 = vld [vmem:[%s16331_s10 + $0x198] sm:$0xf]  ;;  %v10623_v59 = vld [vmem:[%s16331_s10 + $0x1f8] sm:$0xf0] }
 0x2a5   :  { %v3440_v22 = vmul.f32 0.5, %v3436_v10  ;;  %6789 = vst.msk [vmem:[#allocation4] sm:$0x3] %vm6787_vm2, %v3436_v10  ;;  %v10046_v10 = vld [vmem:[%s16331_s10 + $0xc24] sm:$0xf0]  ;;  %v10045_v41 = vor.u32 %v10948_v63, %v10044_v61 }
 0x2a6   :  { %v10049_v21 = vor.u32 %v10936_v8, %v10046_v10  ;;  %6053 = vmatpush.bf16.msra.mxu0 %v9245_v19  ;;  %v9544_v61 = vld [vmem:[%s16331_s10 + $0x7d8] sm:$0xf]  ;;  %v10823_v63 = vld [vmem:[%s16331_s10 + $0x838] sm:$0xf0]  ;;  %v8745_v8 = vor.u32 %v10623_v59, %v8744_v51  ;;  %v8644_v19 = vld [vmem:[%s16331_s10 + $0xd0] sm:$0xf] }
 0x2a7   :  { %v3441_v31 = vmul.f32 1.442695, %v3440_v22  ;;  %v10723_v22 = vld [vmem:[%s16331_s10 + $0x518] sm:$0xf0]  ;;  %6066 = vmatpush.bf16.msra.mxu1 %v10045_v41  ;;  %v9545_v10 = vor.u32 %v10823_v63, %v9544_v61  ;;  %v10598_v41 = vld [vmem:[%s16331_s10 + $0x130] sm:$0xf0] }
 0x2a8   :  { %v3277_v2 = vpop.f32.mrf.mxu3  ;;  %v10712_v51 = vld [vmem:[%s16331_s10 + $0x4c4] sm:$0xf]  ;;  %v9154_v59 = vld [vmem:[%s16331_s10 + $0x524] sm:$0xf0] }
 0x2a9   :  { %10965 = vpow2.f32 %v3441_v31  ;;  %v3278_v38 = vadd.f32 %v3277_v2, %v3265_v4  ;;  %v9145_v4 = vor.u32 %v10723_v22, %v9144_v20  ;;  %v9945_v31 = vor.u32 %v10923_v24, %v9944_v23  ;;  %v9844_v2 = vld [vmem:[%s16331_s10 + $0xa30] sm:$0xf]  ;;  %v10798_v22 = vld [vmem:[%s16331_s10 + $0x770] sm:$0xf0]  ;;  %v8646_v24 = vld [vmem:[%s16331_s10 + $0x134] sm:$0xf0] }
 0x2aa   :  { %v3437_v1 = vpop.f32.mrf.mxu1  ;;  %v9845_v39 = vor.u32 %v10898_v27, %v9844_v2  ;;  %v9444_v20 = vld [vmem:[%s16331_s10 + $0x710] sm:$0xf]  ;;  %v10586_v23 = vld [vmem:[%s16331_s10 + $0xd4] sm:$0xf]  ;;  %v10561_v2 = vld [vmem:[%s16331_s10 + $0xc] sm:$0xf] }
 0x2ab   :  { %6788 = vst.msk [vmem:[#allocation2] sm:$0x3] %vm6787_vm2, %v3278_v38  ;;  %v9846_v1 = vld [vmem:[%s16331_s10 + $0xa94] sm:$0xf0]  ;;  %6054 = vmatpush.bf16.msra.mxu0 %v9145_v4  ;;  %6067 = vmatpush.bf16.msra.mxu1 %v9945_v31  ;;  %v8649_v30 = vor.u32 %v10586_v23, %v8646_v24  ;;  %v8544_v4 = vld [vmem:[%s16331_s10 + $0x8] sm:$0xf] }
 0x2ac   :  { %v9849_v43 = vor.u32 %v10886_v60, %v9846_v1  ;;  %v10573_v31 = vld [vmem:[%s16331_s10 + $0x68] sm:$0xf0]  ;;  %v9346_v60 = vld [vmem:[%s16331_s10 + $0x6ac] sm:$0xf0]  ;;  %v10912_v61 = vld [vmem:[%s16331_s10 + $0xb04] sm:$0xf] }
 0x2ad   :  { %v8545_v6 = vor.u32 %v10573_v31, %v8544_v4  ;;  %v8952_v24 = vld [vmem:[%s16331_s10 + $0x330] sm:$0xf]  ;;  %v10874_v4 = vld [vmem:[%s16331_s10 + $0x9d0] sm:$0xf0]  ;;  %6802 = dma.vmem_to_hbm [thread:$0]  %s6798_s17, 32, %s6800_s19, [#allocation3]  }
 0x2ae   :  { %v10662_v31 = vld [vmem:[%s16331_s10 + $0x334] sm:$0xf] }
 0x2af   :  { %v10966_v18 = vpop.eup %10965  ;;  %6055 = vmatpush.bf16.msra.mxu0 %v9045_v32  ;;  %6068 = vmatpush.bf16.msra.mxu1 %v9845_v39  ;;  %v3449_v32 = vld [vmem:[%s16330_s9] sm:$0x3]  ;;  %s6808_s9 = sshll.u32 %s11022_s20, 4  ;;  %s6809_s9 = int_to_ptr.vmem [resolvable:$true] %s6808_s9 }
 0x2b0   :  { %v3443_v54 = vmul.f32 %v10966_v18, %v3439_v45  ;;  %v3279_v47 = vpop.f32.mrf.mxu3  ;;  %v10861_v45 = vld [vmem:[%s16331_s10 + $0x96c] sm:$0xf]  ;;  %v10648_v18 = vld [vmem:[%s16331_s10 + $0x2c0] sm:$0xf0]  ;;  %v3451_v39 = vperm.slane %v3449_v32, 0 }
 0x2b1   :  { %v9749_v53 = vor.u32 %v10861_v45, %v9746_v50  ;;  %v10836_v47 = vld [vmem:[%s16331_s10 + $0x8a4] sm:$0xf]  ;;  %v8845_v55 = vor.u32 %v10648_v18, %v8844_v13  ;;  %v10949_v45 = vld [vmem:[%s16331_s10 + $0xc28] sm:$0xf0]  ;;  %v10054_v18 = vld [vmem:[%s16331_s10 + $0xc2c] sm:$0xf0] }
 0x2b2   :  { %v3444_v62 = vadd.f32 %v3443_v54, %v3278_v38  ;;  %v10686_v38 = vld [vmem:[%s16331_s10 + $0x3f4] sm:$0xf]  ;;  %v8846_v54 = vld [vmem:[%s16331_s10 + $0x2c4] sm:$0xf0]  ;;  %v10737_v50 = vld [vmem:[%s16331_s10 + $0x58c] sm:$0xf] }
 0x2b3   :  { %v9049_v16 = vor.u32 %v10686_v38, %v9046_v14  ;;  %6056 = vmatpush.bf16.msra.mxu0 %v8945_v46  ;;  %6069 = vmatpush.bf16.msra.mxu1 %v9745_v52  ;;  %v8849_v57 = vor.u32 %v10636_v37, %v8846_v54  ;;  %v10761_v14 = vld [vmem:[%s16331_s10 + $0x64c] sm:$0xf]  ;;  %v9254_v46 = vld [vmem:[%s16331_s10 + $0x5ec] sm:$0xf0]  ;;  %v10053_v37 = vor.u32 %v10949_v45, %v10052_v5  ;;  %v9152_v54 = vld [vmem:[%s16331_s10 + $0x4c0] sm:$0xf] }
 0x2b4   :  { %v3445_v11 = vpack.c.bf16 %v3444_v62, %v3444_v62  ;;  %v9649_v62 = vor.u32 %v10836_v47, %v9646_v49  ;;  %v9349_v1 = vor.u32 %v10761_v14, %v9346_v60  ;;  %v10937_v13 = vld [vmem:[%s16331_s10 + $0xbcc] sm:$0xf]  ;;  %v10724_v47 = vld [vmem:[%s16331_s10 + $0x520] sm:$0xf0]  ;;  %v9257_v49 = vor.u32 %v10737_v50, %v9254_v46  ;;  %v9552_v50 = vld [vmem:[%s16331_s10 + $0x7e0] sm:$0xf] }
 0x2b5   :  { %v10824_v46 = vld [vmem:[%s16331_s10 + $0x840] sm:$0xf0]  ;;  %6813 = dma.vmem_to_hbm [thread:$0]  %s6809_s9, 32, %s6811_s22, [#allocation5]  }
 0x2b6   :  { %8532 = vmatmul.msk.bf16.vlgmr.msra.gmra.mxu2 %vm3470_vm3, %v3445_v11  ;;  %8533 = vmatmul.msk.bf16.vlgmr.msra.gmra.mxu3 %vm3470_vm3, %v3445_v11  ;;  %v8749_v11 = vor.u32 %v10611_v58, %v8746_v7  ;;  %v9153_v7 = vor.u32 %v10724_v47, %v9152_v54  ;;  %v8652_v54 = vld [vmem:[%s16331_s10 + $0xd8] sm:$0xf]  ;;  %v10599_v47 = vld [vmem:[%s16331_s10 + $0x138] sm:$0xf0] }
 0x2b7   :  { %6079 = vmatpush.bf16.msra.mxu2 %v9249_v34  ;;  %6092 = vmatpush.bf16.msra.mxu3 %v10049_v21  ;;  %v8645_v34 = vor.u32 %v10598_v41, %v8644_v19  ;;  %v9445_v21 = vor.u32 %v10798_v22, %v9444_v20  ;;  %v10899_v19 = vld [vmem:[%s16331_s10 + $0xa98] sm:$0xf0]  ;;  %v9854_v22 = vld [vmem:[%s16331_s10 + $0xa9c] sm:$0xf0] }
 0x2b8   :  { %6057 = vmatpush.bf16.msra.mxu0 %v8845_v55  ;;  %6070 = vmatpush.bf16.msra.mxu1 %v9645_v56  ;;  %v10057_v55 = vor.u32 %v10937_v13, %v10054_v18  ;;  %v9952_v56 = vld [vmem:[%s16331_s10 + $0xb00] sm:$0xf]  ;;  %v10687_v41 = vld [vmem:[%s16331_s10 + $0x3fc] sm:$0xf]  ;;  %v10812_v13 = vld [vmem:[%s16331_s10 + $0x7e4] sm:$0xf] }
 0x2b9   :  { %v10887_v20 = vld [vmem:[%s16331_s10 + $0xa3c] sm:$0xf]  ;;  %v9554_v18 = vld [vmem:[%s16331_s10 + $0x844] sm:$0xf0] }
 0x2bb   :  { %6080 = vmatpush.bf16.msra.mxu2 %v9149_v33  ;;  %6093 = vmatpush.bf16.msra.mxu3 %v9949_v0  ;;  %v9344_v33 = vld [vmem:[%s16331_s10 + $0x648] sm:$0xf]  ;;  %v8546_v0 = vld [vmem:[%s16331_s10 + $0x6c] sm:$0xf0] }
 0x2bc   :  { %6058 = vmatpush.bf16.msra.mxu0 %v8745_v8  ;;  %6071 = vmatpush.bf16.msra.mxu1 %v9545_v10  ;;  %v9345_v27 = vor.u32 %v10773_v35, %v9344_v33  ;;  %v8549_v38 = vor.u32 %v10561_v2, %v8546_v0  ;;  %v10699_v8 = vld [vmem:[%s16331_s10 + $0x458] sm:$0xf0]  ;;  %v9157_v10 = vor.u32 %v10712_v51, %v9154_v59  ;;  %v8954_v33 = vld [vmem:[%s16331_s10 + $0x394] sm:$0xf0]  ;;  %v8654_v59 = vld [vmem:[%s16331_s10 + $0x13c] sm:$0xf0] }
 0x2bd   :  { %v9053_v23 = vor.u32 %v10699_v8, %v9052_v28  ;;  %v9754_v35 = vld [vmem:[%s16331_s10 + $0x9d4] sm:$0xf0]  ;;  %v8953_v2 = vor.u32 %v10674_v25, %v8952_v24  ;;  %v8957_v14 = vor.u32 %v10662_v31, %v8954_v33  ;;  %v10587_v51 = vld [vmem:[%s16331_s10 + $0xdc] sm:$0xf]  ;;  %v9352_v28 = vld [vmem:[%s16331_s10 + $0x650] sm:$0xf] }
 0x2be   :  { %v10774_v8 = vld [vmem:[%s16331_s10 + $0x6b0] sm:$0xf0] }
 0x2bf   :  { %6081 = vmatpush.bf16.msra.mxu2 %v9049_v16  ;;  %6094 = vmatpush.bf16.msra.mxu3 %v9849_v43  ;;  %v3452_v16 = vperm.slane %v3449_v32, 1  ;;  %v10849_v32 = vld [vmem:[%s16331_s10 + $0x908] sm:$0xf0]  ;;  %v10738_v24 = vld [vmem:[%s16331_s10 + $0x594] sm:$0xf] }
 0x2c0   :  { %6059 = vmatpush.bf16.msra.mxu0 %v8645_v34  ;;  %6072 = vmatpush.bf16.msra.mxu1 %v9445_v21  ;;  %v9054_v34 = vld [vmem:[%s16331_s10 + $0x45c] sm:$0xf0] }
 0x2c1   :  { %v9057_v26 = vor.u32 %v10687_v41, %v9054_v34  ;;  %v10762_v41 = vld [vmem:[%s16331_s10 + $0x654] sm:$0xf]  ;;  %v9354_v34 = vld [vmem:[%s16331_s10 + $0x6b4] sm:$0xf0] }
 0x2c2   :  { %v9357_v33 = vor.u32 %v10762_v41, %v9354_v34 }
 0x2c3   :  { %6082 = vmatpush.bf16.msra.mxu2 %v8949_v15  ;;  %6095 = vmatpush.bf16.msra.mxu3 %v9749_v53 }
 0x2c4   :  { %6060 = vmatpush.bf16.msra.mxu0 %v8545_v6  ;;  %6073 = vmatpush.bf16.msra.mxu1 %v9345_v27  ;;  %v10862_v6 = vld [vmem:[%s16331_s10 + $0x974] sm:$0xf]  ;;  %v8852_v27 = vld [vmem:[%s16331_s10 + $0x268] sm:$0xf] }
 0x2c5   :  { %v9757_v60 = vor.u32 %v10862_v6, %v9754_v35 }
 0x2c7   :  { %6083 = vmatpush.bf16.msra.mxu2 %v8849_v57  ;;  %6096 = vmatpush.bf16.msra.mxu3 %v9649_v62  ;;  %v10924_v57 = vld [vmem:[%s16331_s10 + $0xb60] sm:$0xf0]  ;;  %v9954_v62 = vld [vmem:[%s16331_s10 + $0xb64] sm:$0xf0] }
 0x2c8   :  { %v9953_v29 = vor.u32 %v10924_v57, %v9952_v56  ;;  %v9452_v56 = vld [vmem:[%s16331_s10 + $0x718] sm:$0xf]  ;;  %v10799_v57 = vld [vmem:[%s16331_s10 + $0x778] sm:$0xf0] }
 0x2cb   :  { %6084 = vmatpush.bf16.msra.mxu2 %v8749_v11  ;;  %6097 = vmatpush.bf16.msra.mxu3 %v9549_v36  ;;  %v9957_v11 = vor.u32 %v10912_v61, %v9954_v62  ;;  %v9852_v36 = vld [vmem:[%s16331_s10 + $0xa38] sm:$0xf]  ;;  %v10787_v61 = vld [vmem:[%s16331_s10 + $0x71c] sm:$0xf]  ;;  %v9454_v62 = vld [vmem:[%s16331_s10 + $0x77c] sm:$0xf0] }
 0x2cc   :  { %v9853_v21 = vor.u32 %v10899_v19, %v9852_v36  ;;  %v10562_v36 = vld [vmem:[%s16331_s10 + $0x14] sm:$0xf]  ;;  %v8554_v19 = vld [vmem:[%s16331_s10 + $0x74] sm:$0xf0] }
 0x2cd   :  { %v8557_v31 = vor.u32 %v10562_v36, %v8554_v19  ;;  %v10838_v36 = vld [vmem:[%s16331_s10 + $0x8b4] sm:$0xf]  ;;  %v9662_v19 = vld [vmem:[%s16331_s10 + $0x914] sm:$0xf0] }
 0x2cf   :  { %6085 = vmatpush.bf16.msra.mxu2 %v8649_v30  ;;  %6098 = vmatpush.bf16.msra.mxu3 %v9449_v3  ;;  %v9857_v30 = vor.u32 %v10887_v20, %v9854_v22  ;;  %v9752_v3 = vld [vmem:[%s16331_s10 + $0x970] sm:$0xf]  ;;  %v10750_v22 = vld [vmem:[%s16331_s10 + $0x5f0] sm:$0xf0] }
 0x2d0   :  { %v9753_v0 = vor.u32 %v10874_v4, %v9752_v3  ;;  %v9260_v20 = vld [vmem:[%s16331_s10 + $0x590] sm:$0xf]  ;;  %v10938_v3 = vld [vmem:[%s16331_s10 + $0xbd4] sm:$0xf]  ;;  %v10062_v4 = vld [vmem:[%s16331_s10 + $0xc34] sm:$0xf0] }
 0x2d1   :  { %v9261_v6 = vor.u32 %v10750_v22, %v9260_v20  ;;  %v8760_v20 = vld [vmem:[%s16331_s10 + $0x1a8] sm:$0xf]  ;;  %v10625_v22 = vld [vmem:[%s16331_s10 + $0x208] sm:$0xf0] }
 0x2d3   :  { %6086 = vmatpush.bf16.msra.mxu2 %v8549_v38  ;;  %6099 = vmatpush.bf16.msra.mxu3 %v9349_v1  ;;  %v10649_v38 = vld [vmem:[%s16331_s10 + $0x2c8] sm:$0xf0]  ;;  %v9652_v1 = vld [vmem:[%s16331_s10 + $0x8a8] sm:$0xf] }
 0x339   :  { %v3490_v42 = vpop.f32.mrf.mxu2  ;;  %v3503_v48 = vpop.f32.mrf.mxu3 }
 0x33a   :  { %v3491_v12 = vadd.f32 %v3490_v42, %v3451_v39  ;;  %v3504_v43 = vadd.f32 %v3503_v48, %v3452_v16  ;;  %v10637_v39 = vld [vmem:[%s16331_s10 + $0x26c] sm:$0xf]  ;;  %v8854_v16 = vld [vmem:[%s16331_s10 + $0x2cc] sm:$0xf0] }
 0x33b   :  { %v10837_v42 = vld [vmem:[%s16331_s10 + $0x8ac] sm:$0xf]  ;;  %v9654_v48 = vld [vmem:[%s16331_s10 + $0x90c] sm:$0xf0]  ;;  %v8857_v5 = vor.u32 %v10637_v39, %v8854_v16 }
 0x33c   :  { %v3507_v52 = vmax.f32 %v3491_v12, 0.0  ;;  %v3508_v15 = vmax.f32 %v3504_v43, 0.0  ;;  %v8853_v12 = vor.u32 %v10649_v38, %v8852_v27  ;;  %v9653_v43 = vor.u32 %v10849_v32, %v9652_v1  ;;  %v10713_v1 = vld [vmem:[%s16331_s10 + $0x4cc] sm:$0xf]  ;;  %v9162_v32 = vld [vmem:[%s16331_s10 + $0x52c] sm:$0xf0] }
 0x33d   :  { %v9657_v45 = vor.u32 %v10837_v42, %v9654_v48  ;;  %v10065_v38 = vor.u32 %v10938_v3, %v10062_v4  ;;  %v10913_v39 = vld [vmem:[%s16331_s10 + $0xb0c] sm:$0xf]  ;;  %v9962_v16 = vld [vmem:[%s16331_s10 + $0xb6c] sm:$0xf0] }
 0x33e   :  { %v14136_v17 = vpack.c.bf16 %v3507_v52, %v3507_v52  ;;  %v14138_v53 = vpack.c.bf16 %v3508_v15, %v3508_v15  ;;  %v10612_v52 = vld [vmem:[%s16331_s10 + $0x1a4] sm:$0xf]  ;;  %v8754_v15 = vld [vmem:[%s16331_s10 + $0x204] sm:$0xf0]  ;;  %v10813_v3 = vld [vmem:[%s16331_s10 + $0x7ec] sm:$0xf] }
 0x33f   :  { %v9562_v4 = vld [vmem:[%s16331_s10 + $0x84c] sm:$0xf0] }
 0x340   :  { %6009 = vmatmul.bf16.vlgmr.msrb.gmra.mxu0 %v14136_v17  ;;  %6022 = vmatmul.bf16.vlgmr.msrb.gmra.mxu1 %v14138_v53 }
 0x341   :  { %6035 = vmatmul.bf16.vlgmr.msrb.gmra.mxu2 %v14136_v17  ;;  %6048 = vmatmul.bf16.vlgmr.msrb.gmra.mxu3 %v14138_v53  ;;  %v3492_v63 = vpop.f32.mrf.mxu2  ;;  %v3505_v58 = vpop.f32.mrf.mxu3 }
 0x342   :  { %6105 = vmatpush.bf16.msrb.mxu0 %v9253_v40  ;;  %6118 = vmatpush.bf16.msrb.mxu1 %v10053_v37  ;;  %v8753_v40 = vor.u32 %v10624_v9, %v8752_v44  ;;  %v9553_v37 = vor.u32 %v10824_v46, %v9552_v50  ;;  %v8552_v63 = vld [vmem:[%s16331_s10 + $0x10] sm:$0xf]  ;;  %v8653_v58 = vor.u32 %v10599_v47, %v8652_v54  ;;  %v10688_v50 = vld [vmem:[%s16331_s10 + $0x404] sm:$0xf]  ;;  %v9062_v46 = vld [vmem:[%s16331_s10 + $0x464] sm:$0xf0] }
 0x343   :  { %6131 = vmatpush.bf16.msrb.mxu2 %v9257_v49  ;;  %6144 = vmatpush.bf16.msrb.mxu3 %v10057_v55  ;;  %v8757_v49 = vor.u32 %v10612_v52, %v8754_v15  ;;  %v9557_v55 = vor.u32 %v10812_v13, %v9554_v18  ;;  %v9165_v44 = vor.u32 %v10713_v1, %v9162_v32  ;;  %v10888_v52 = vld [vmem:[%s16331_s10 + $0xa44] sm:$0xf]  ;;  %v9862_v15 = vld [vmem:[%s16331_s10 + $0xaa4] sm:$0xf0] }
 0x344   :  { %v9965_v9 = vor.u32 %v10913_v39, %v9962_v16  ;;  %v9065_v54 = vor.u32 %v10688_v50, %v9062_v46  ;;  %v9865_v47 = vor.u32 %v10888_v52, %v9862_v15  ;;  %v10788_v1 = vld [vmem:[%s16331_s10 + $0x724] sm:$0xf]  ;;  %v9462_v32 = vld [vmem:[%s16331_s10 + $0x784] sm:$0xf0]  ;;  %v8560_v39 = vld [vmem:[%s16331_s10 + $0x18] sm:$0xf] }
 0x345   :  { %v10763_v50 = vld [vmem:[%s16331_s10 + $0x65c] sm:$0xf]  ;;  %v9362_v46 = vld [vmem:[%s16331_s10 + $0x6bc] sm:$0xf0]  ;;  %v9268_v52 = vld [vmem:[%s16331_s10 + $0x598] sm:$0xf] }
 0x346   :  { %6106 = vmatpush.bf16.msrb.mxu0 %v9153_v7  ;;  %6119 = vmatpush.bf16.msrb.mxu1 %v9953_v29  ;;  %v9453_v7 = vor.u32 %v10799_v57, %v9452_v56  ;;  %v10574_v29 = vld [vmem:[%s16331_s10 + $0x70] sm:$0xf0]  ;;  %v10663_v56 = vld [vmem:[%s16331_s10 + $0x33c] sm:$0xf]  ;;  %v8962_v57 = vld [vmem:[%s16331_s10 + $0x39c] sm:$0xf0] }
 0x347   :  { %6132 = vmatpush.bf16.msrb.mxu2 %v9157_v10  ;;  %6145 = vmatpush.bf16.msrb.mxu3 %v9957_v11  ;;  %v8657_v10 = vor.u32 %v10587_v51, %v8654_v59  ;;  %v9457_v11 = vor.u32 %v10787_v61, %v9454_v62  ;;  %v8553_v25 = vor.u32 %v10574_v29, %v8552_v63  ;;  %v10863_v51 = vld [vmem:[%s16331_s10 + $0x97c] sm:$0xf]  ;;  %v9762_v59 = vld [vmem:[%s16331_s10 + $0x9dc] sm:$0xf0]  ;;  %v8860_v63 = vld [vmem:[%s16331_s10 + $0x270] sm:$0xf] }
 0x348   :  { %v9765_v29 = vor.u32 %v10863_v51, %v9762_v59  ;;  %v10751_v15 = vld [vmem:[%s16331_s10 + $0x5f8] sm:$0xf0] }
 0x349   :  { %v9269_v51 = vor.u32 %v10751_v15, %v9268_v52  ;;  %v8768_v52 = vld [vmem:[%s16331_s10 + $0x1b0] sm:$0xf]  ;;  %v10626_v15 = vld [vmem:[%s16331_s10 + $0x210] sm:$0xf0] }
 0x34a   :  { %6107 = vmatpush.bf16.msrb.mxu0 %v9053_v23  ;;  %6120 = vmatpush.bf16.msrb.mxu1 %v9853_v21  ;;  %v10060_v23 = vld [vmem:[%s16331_s10 + $0xbd0] sm:$0xf]  ;;  %v10950_v21 = vld [vmem:[%s16331_s10 + $0xc30] sm:$0xf0] }
 0x34b   :  { %6133 = vmatpush.bf16.msrb.mxu2 %v9057_v26  ;;  %6146 = vmatpush.bf16.msrb.mxu3 %v9857_v30  ;;  %v9353_v26 = vor.u32 %v10774_v8, %v9352_v28  ;;  %v9262_v30 = vld [vmem:[%s16331_s10 + $0x5f4] sm:$0xf0]  ;;  %v10061_v35 = vor.u32 %v10950_v21, %v10060_v23  ;;  %v9660_v28 = vld [vmem:[%s16331_s10 + $0x8b0] sm:$0xf]  ;;  %v10850_v8 = vld [vmem:[%s16331_s10 + $0x910] sm:$0xf0]  ;;  %v9665_v21 = vor.u32 %v10838_v36, %v9662_v19 }
 0x34c   :  { %v9265_v27 = vor.u32 %v10738_v24, %v9262_v30  ;;  %v9661_v34 = vor.u32 %v10850_v8, %v9660_v28  ;;  %v9560_v24 = vld [vmem:[%s16331_s10 + $0x7e8] sm:$0xf]  ;;  %v8762_v30 = vld [vmem:[%s16331_s10 + $0x20c] sm:$0xf0]  ;;  %v10714_v28 = vld [vmem:[%s16331_s10 + $0x4d4] sm:$0xf] }
 0x34d   :  { %v9170_v8 = vld [vmem:[%s16331_s10 + $0x534] sm:$0xf0] }
 0x34e   :  { %6108 = vmatpush.bf16.msrb.mxu0 %v8953_v2  ;;  %6121 = vmatpush.bf16.msrb.mxu1 %v9753_v0  ;;  %v9160_v2 = vld [vmem:[%s16331_s10 + $0x4c8] sm:$0xf]  ;;  %v10725_v0 = vld [vmem:[%s16331_s10 + $0x528] sm:$0xf0] }
 0x34f   :  { %6134 = vmatpush.bf16.msrb.mxu2 %v8957_v14  ;;  %6147 = vmatpush.bf16.msrb.mxu3 %v9757_v60  ;;  %v9960_v14 = vld [vmem:[%s16331_s10 + $0xb08] sm:$0xf]  ;;  %v10925_v60 = vld [vmem:[%s16331_s10 + $0xb68] sm:$0xf0]  ;;  %v9161_v42 = vor.u32 %v10725_v0, %v9160_v2  ;;  %v9565_v0 = vor.u32 %v10813_v3, %v9562_v4 }
 0x350   :  { %6061 = vmatmul.bf16.vlgmr.msra.gmra.mxu0 %v14136_v17  ;;  %6074 = vmatmul.bf16.vlgmr.msra.gmra.mxu1 %v14138_v53  ;;  %v9961_v48 = vor.u32 %v10925_v60, %v9960_v14  ;;  %v10588_v14 = vld [vmem:[%s16331_s10 + $0xe4] sm:$0xf]  ;;  %v8662_v60 = vld [vmem:[%s16331_s10 + $0x144] sm:$0xf0] }
 0x351   :  { %6087 = vmatmul.bf16.vlgmr.msra.gmra.mxu2 %v14136_v17  ;;  %6100 = vmatmul.bf16.vlgmr.msra.gmra.mxu3 %v14138_v53 }
 0x352   :  { %6109 = vmatpush.bf16.msrb.mxu0 %v8853_v12  ;;  %6122 = vmatpush.bf16.msrb.mxu1 %v9653_v43  ;;  %v9060_v12 = vld [vmem:[%s16331_s10 + $0x400] sm:$0xf]  ;;  %v10700_v43 = vld [vmem:[%s16331_s10 + $0x460] sm:$0xf0] }
 0x353   :  { %6135 = vmatpush.bf16.msrb.mxu2 %v8857_v5  ;;  %6148 = vmatpush.bf16.msrb.mxu3 %v9657_v45  ;;  %v9860_v5 = vld [vmem:[%s16331_s10 + $0xa40] sm:$0xf]  ;;  %v10900_v45 = vld [vmem:[%s16331_s10 + $0xaa0] sm:$0xf0]  ;;  %v9061_v13 = vor.u32 %v10700_v43, %v9060_v12  ;;  %v9360_v12 = vld [vmem:[%s16331_s10 + $0x658] sm:$0xf] }
 0x354   :  { %v9861_v18 = vor.u32 %v10900_v45, %v9860_v5  ;;  %v10775_v43 = vld [vmem:[%s16331_s10 + $0x6b8] sm:$0xf0]  ;;  %v8562_v45 = vld [vmem:[%s16331_s10 + $0x7c] sm:$0xf0] }
 0x355   :  { %v10563_v5 = vld [vmem:[%s16331_s10 + $0x1c] sm:$0xf] }
 0x356   :  { %6110 = vmatpush.bf16.msrb.mxu0 %v8753_v40  ;;  %6123 = vmatpush.bf16.msrb.mxu1 %v9553_v37  ;;  %v8960_v40 = vld [vmem:[%s16331_s10 + $0x338] sm:$0xf]  ;;  %v10675_v37 = vld [vmem:[%s16331_s10 + $0x398] sm:$0xf0] }
 0x357   :  { %6136 = vmatpush.bf16.msrb.mxu2 %v8757_v49  ;;  %6149 = vmatpush.bf16.msrb.mxu3 %v9557_v55  ;;  %v9760_v49 = vld [vmem:[%s16331_s10 + $0x978] sm:$0xf]  ;;  %v10875_v55 = vld [vmem:[%s16331_s10 + $0x9d8] sm:$0xf0]  ;;  %v8961_v61 = vor.u32 %v10675_v37, %v8960_v40 }
 0x358   :  { %v9761_v62 = vor.u32 %v10875_v55, %v9760_v49  ;;  %v10739_v40 = vld [vmem:[%s16331_s10 + $0x59c] sm:$0xf]  ;;  %v10070_v55 = vld [vmem:[%s16331_s10 + $0xc3c] sm:$0xf0] }
 0x359   :  { %v10939_v49 = vld [vmem:[%s16331_s10 + $0xbdc] sm:$0xf] }
 0x35a   :  { %6111 = vmatpush.bf16.msrb.mxu0 %v8653_v58  ;;  %6124 = vmatpush.bf16.msrb.mxu1 %v9453_v7  ;;  %v10650_v58 = vld [vmem:[%s16331_s10 + $0x2d0] sm:$0xf0]  ;;  %v8965_v7 = vor.u32 %v10663_v56, %v8962_v57  ;;  %v8565_v56 = vor.u32 %v10563_v5, %v8562_v45  ;;  %v9365_v57 = vor.u32 %v10763_v50, %v9362_v46  ;;  %v10839_v5 = vld [vmem:[%s16331_s10 + $0x8bc] sm:$0xf]  ;;  %v9670_v45 = vld [vmem:[%s16331_s10 + $0x91c] sm:$0xf0] }
 0x35b   :  { %6137 = vmatpush.bf16.msrb.mxu2 %v8657_v10  ;;  %6150 = vmatpush.bf16.msrb.mxu3 %v9457_v11  ;;  %v10638_v10 = vld [vmem:[%s16331_s10 + $0x274] sm:$0xf]  ;;  %v8862_v11 = vld [vmem:[%s16331_s10 + $0x2d4] sm:$0xf0]  ;;  %v8861_v41 = vor.u32 %v10650_v58, %v8860_v63  ;;  %v10073_v58 = vor.u32 %v10939_v49, %v10070_v55 }
 0x35c   :  { %v8865_v23 = vor.u32 %v10638_v10, %v8862_v11  ;;  %v10914_v10 = vld [vmem:[%s16331_s10 + $0xb14] sm:$0xf]  ;;  %v9970_v11 = vld [vmem:[%s16331_s10 + $0xb74] sm:$0xf0] }
 0x35d   :  { %v10814_v49 = vld [vmem:[%s16331_s10 + $0x7f4] sm:$0xf]  ;;  %v9570_v55 = vld [vmem:[%s16331_s10 + $0x854] sm:$0xf0] }
 0x35e   :  { %6112 = vmatpush.bf16.msrb.mxu0 %v8553_v25  ;;  %6125 = vmatpush.bf16.msrb.mxu1 %v9353_v26  ;;  %v10825_v25 = vld [vmem:[%s16331_s10 + $0x848] sm:$0xf0] }
 0x35f   :  { %6138 = vmatpush.bf16.msrb.mxu2 %v8557_v31  ;;  %6151 = vmatpush.bf16.msrb.mxu3 %v9357_v33  ;;  %v10613_v26 = vld [vmem:[%s16331_s10 + $0x1ac] sm:$0xf]  ;;  %v8761_v31 = vor.u32 %v10625_v22, %v8760_v20  ;;  %v9561_v33 = vor.u32 %v10825_v25, %v9560_v24  ;;  %v9173_v20 = vor.u32 %v10714_v28, %v9170_v8  ;;  %v9070_v25 = vld [vmem:[%s16331_s10 + $0x46c] sm:$0xf0] }
 0x360   :  { %v8765_v2 = vor.u32 %v10613_v26, %v8762_v30  ;;  %v9973_v22 = vor.u32 %v10914_v10, %v9970_v11  ;;  %v10689_v24 = vld [vmem:[%s16331_s10 + $0x40c] sm:$0xf]  ;;  %v9870_v30 = vld [vmem:[%s16331_s10 + $0xaac] sm:$0xf0]  ;;  %v8568_v10 = vld [vmem:[%s16331_s10 + $0x20] sm:$0xf] }
 0x361   :  { %6113 = vmatmul.bf16.vlgmr.msrb.gmra.mxu0 %v14136_v17  ;;  %6126 = vmatmul.bf16.vlgmr.msrb.gmra.mxu1 %v14138_v53  ;;  %v10889_v26 = vld [vmem:[%s16331_s10 + $0xa4c] sm:$0xf]  ;;  %v9470_v8 = vld [vmem:[%s16331_s10 + $0x78c] sm:$0xf0] }
 0x362   :  { %6157 = vmatpush.bf16.msra.mxu0 %v9261_v6  ;;  %6170 = vmatpush.bf16.msra.mxu1 %v10061_v35  ;;  %v8660_v6 = vld [vmem:[%s16331_s10 + $0xe0] sm:$0xf]  ;;  %v10600_v35 = vld [vmem:[%s16331_s10 + $0x140] sm:$0xf0]  ;;  %v10789_v28 = vld [vmem:[%s16331_s10 + $0x72c] sm:$0xf] }
 0x363   :  { %6183 = vmatpush.bf16.msra.mxu2 %v9265_v27  ;;  %6196 = vmatpush.bf16.msra.mxu3 %v10065_v38  ;;  %v9460_v27 = vld [vmem:[%s16331_s10 + $0x720] sm:$0xf]  ;;  %v10800_v38 = vld [vmem:[%s16331_s10 + $0x780] sm:$0xf0]  ;;  %v8661_v16 = vor.u32 %v10600_v35, %v8660_v6  ;;  %v9073_v6 = vor.u32 %v10689_v24, %v9070_v25  ;;  %v9873_v35 = vor.u32 %v10889_v26, %v9870_v30  ;;  %v9370_v25 = vld [vmem:[%s16331_s10 + $0x6c4] sm:$0xf0] }
 0x364   :  { %6139 = vmatmul.bf16.vlgmr.msrb.gmra.mxu2 %v14136_v17  ;;  %6152 = vmatmul.bf16.vlgmr.msrb.gmra.mxu3 %v14138_v53  ;;  %v10764_v24 = vld [vmem:[%s16331_s10 + $0x664] sm:$0xf]  ;;  %v9276_v26 = vld [vmem:[%s16331_s10 + $0x5a0] sm:$0xf] }
 0x365   :  { %v10752_v30 = vld [vmem:[%s16331_s10 + $0x600] sm:$0xf0] }
 0x366   :  { %6158 = vmatpush.bf16.msra.mxu0 %v9161_v42  ;;  %6171 = vmatpush.bf16.msra.mxu1 %v9961_v48  ;;  %v9461_v42 = vor.u32 %v10800_v38, %v9460_v27  ;;  %v10575_v48 = vld [vmem:[%s16331_s10 + $0x78] sm:$0xf0]  ;;  %v10664_v27 = vld [vmem:[%s16331_s10 + $0x344] sm:$0xf]  ;;  %v8970_v38 = vld [vmem:[%s16331_s10 + $0x3a4] sm:$0xf0] }
 0x367   :  { %6184 = vmatpush.bf16.msra.mxu2 %v9165_v44  ;;  %6197 = vmatpush.bf16.msra.mxu3 %v9965_v9  ;;  %v8665_v44 = vor.u32 %v10588_v14, %v8662_v60  ;;  %v9465_v9 = vor.u32 %v10788_v1, %v9462_v32  ;;  %v8561_v37 = vor.u32 %v10575_v48, %v8560_v39  ;;  %v10864_v14 = vld [vmem:[%s16331_s10 + $0x984] sm:$0xf]  ;;  %v9770_v60 = vld [vmem:[%s16331_s10 + $0x9e4] sm:$0xf0]  ;;  %v8868_v39 = vld [vmem:[%s16331_s10 + $0x278] sm:$0xf] }
 0x368   :  { %v9773_v48 = vor.u32 %v10864_v14, %v9770_v60  ;;  %v9277_v14 = vor.u32 %v10752_v30, %v9276_v26  ;;  %v8776_v26 = vld [vmem:[%s16331_s10 + $0x1b8] sm:$0xf]  ;;  %v10627_v30 = vld [vmem:[%s16331_s10 + $0x218] sm:$0xf0] }
 0x36a   :  { %6159 = vmatpush.bf16.msra.mxu0 %v9061_v13  ;;  %6172 = vmatpush.bf16.msra.mxu1 %v9861_v18  ;;  %v10068_v13 = vld [vmem:[%s16331_s10 + $0xbd8] sm:$0xf]  ;;  %v10951_v18 = vld [vmem:[%s16331_s10 + $0xc38] sm:$0xf0] }
 0x36b   :  { %6185 = vmatpush.bf16.msra.mxu2 %v9065_v54  ;;  %6198 = vmatpush.bf16.msra.mxu3 %v9865_v47  ;;  %v9361_v54 = vor.u32 %v10775_v43, %v9360_v12  ;;  %v9270_v47 = vld [vmem:[%s16331_s10 + $0x5fc] sm:$0xf0]  ;;  %v10069_v59 = vor.u32 %v10951_v18, %v10068_v13  ;;  %v9668_v12 = vld [vmem:[%s16331_s10 + $0x8b8] sm:$0xf]  ;;  %v10851_v43 = vld [vmem:[%s16331_s10 + $0x918] sm:$0xf0]  ;;  %v9673_v18 = vor.u32 %v10839_v5, %v9670_v45 }
 0x36c   :  { %v9273_v63 = vor.u32 %v10739_v40, %v9270_v47  ;;  %v9669_v46 = vor.u32 %v10851_v43, %v9668_v12  ;;  %v9568_v40 = vld [vmem:[%s16331_s10 + $0x7f0] sm:$0xf]  ;;  %v8770_v47 = vld [vmem:[%s16331_s10 + $0x214] sm:$0xf0]  ;;  %v10715_v12 = vld [vmem:[%s16331_s10 + $0x4dc] sm:$0xf] }
 0x36d   :  { %v9178_v43 = vld [vmem:[%s16331_s10 + $0x53c] sm:$0xf0] }
 0x36e   :  { %6160 = vmatpush.bf16.msra.mxu0 %v8961_v61  ;;  %6173 = vmatpush.bf16.msra.mxu1 %v9761_v62  ;;  %v9168_v61 = vld [vmem:[%s16331_s10 + $0x4d0] sm:$0xf]  ;;  %v10726_v62 = vld [vmem:[%s16331_s10 + $0x530] sm:$0xf0] }
 0x36f   :  { %6186 = vmatpush.bf16.msra.mxu2 %v8965_v7  ;;  %6199 = vmatpush.bf16.msra.mxu3 %v9765_v29  ;;  %v9968_v7 = vld [vmem:[%s16331_s10 + $0xb10] sm:$0xf]  ;;  %v10926_v29 = vld [vmem:[%s16331_s10 + $0xb70] sm:$0xf0]  ;;  %v9169_v36 = vor.u32 %v10726_v62, %v9168_v61  ;;  %v9573_v62 = vor.u32 %v10814_v49, %v9570_v55 }
 0x370   :  { %v9969_v19 = vor.u32 %v10926_v29, %v9968_v7  ;;  %v10589_v7 = vld [vmem:[%s16331_s10 + $0xec] sm:$0xf]  ;;  %v8670_v29 = vld [vmem:[%s16331_s10 + $0x14c] sm:$0xf0] }
 0x372   :  { %6161 = vmatpush.bf16.msra.mxu0 %v8861_v41  ;;  %6174 = vmatpush.bf16.msra.mxu1 %v9661_v34  ;;  %v9068_v41 = vld [vmem:[%s16331_s10 + $0x408] sm:$0xf]  ;;  %v10701_v34 = vld [vmem:[%s16331_s10 + $0x468] sm:$0xf0] }
 0x373   :  { %6187 = vmatpush.bf16.msra.mxu2 %v8865_v23  ;;  %6200 = vmatpush.bf16.msra.mxu3 %v9665_v21  ;;  %v9868_v23 = vld [vmem:[%s16331_s10 + $0xa48] sm:$0xf]  ;;  %v10901_v21 = vld [vmem:[%s16331_s10 + $0xaa8] sm:$0xf0]  ;;  %v9069_v3 = vor.u32 %v10701_v34, %v9068_v41  ;;  %v9368_v41 = vld [vmem:[%s16331_s10 + $0x660] sm:$0xf] }
 0x374   :  { %v9869_v4 = vor.u32 %v10901_v21, %v9868_v23  ;;  %v10776_v34 = vld [vmem:[%s16331_s10 + $0x6c0] sm:$0xf0]  ;;  %v8570_v21 = vld [vmem:[%s16331_s10 + $0x84] sm:$0xf0] }
 0x375   :  { %v10564_v23 = vld [vmem:[%s16331_s10 + $0x24] sm:$0xf] }
 0x376   :  { %6162 = vmatpush.bf16.msra.mxu0 %v8761_v31  ;;  %6175 = vmatpush.bf16.msra.mxu1 %v9561_v33  ;;  %v8968_v31 = vld [vmem:[%s16331_s10 + $0x340] sm:$0xf]  ;;  %v10676_v33 = vld [vmem:[%s16331_s10 + $0x3a0] sm:$0xf0] }
 0x377   :  { %6188 = vmatpush.bf16.msra.mxu2 %v8765_v2  ;;  %6201 = vmatpush.bf16.msra.mxu3 %v9565_v0  ;;  %v9768_v2 = vld [vmem:[%s16331_s10 + $0x980] sm:$0xf]  ;;  %v10876_v0 = vld [vmem:[%s16331_s10 + $0x9e0] sm:$0xf0]  ;;  %v8969_v1 = vor.u32 %v10676_v33, %v8968_v31 }
 0x378   :  { %v9769_v32 = vor.u32 %v10876_v0, %v9768_v2  ;;  %v10740_v31 = vld [vmem:[%s16331_s10 + $0x5a4] sm:$0xf]  ;;  %v10078_v0 = vld [vmem:[%s16331_s10 + $0xc44] sm:$0xf0] }
 0x379   :  { %v10940_v2 = vld [vmem:[%s16331_s10 + $0xbe4] sm:$0xf] }
 0x37a   :  { %6163 = vmatpush.bf16.msra.mxu0 %v8661_v16  ;;  %6176 = vmatpush.bf16.msra.mxu1 %v9461_v42  ;;  %v10651_v16 = vld [vmem:[%s16331_s10 + $0x2d8] sm:$0xf0]  ;;  %v8973_v42 = vor.u32 %v10664_v27, %v8970_v38  ;;  %v8573_v27 = vor.u32 %v10564_v23, %v8570_v21  ;;  %v9373_v38 = vor.u32 %v10764_v24, %v9370_v25  ;;  %v10840_v23 = vld [vmem:[%s16331_s10 + $0x8c4] sm:$0xf]  ;;  %v9678_v21 = vld [vmem:[%s16331_s10 + $0x924] sm:$0xf0] }
 0x37b   :  { %6189 = vmatpush.bf16.msra.mxu2 %v8665_v44  ;;  %6202 = vmatpush.bf16.msra.mxu3 %v9465_v9  ;;  %v10639_v44 = vld [vmem:[%s16331_s10 + $0x27c] sm:$0xf]  ;;  %v8870_v9 = vld [vmem:[%s16331_s10 + $0x2dc] sm:$0xf0]  ;;  %v8869_v50 = vor.u32 %v10651_v16, %v8868_v39  ;;  %v10081_v16 = vor.u32 %v10940_v2, %v10078_v0 }
 0x37c   :  { %v8873_v13 = vor.u32 %v10639_v44, %v8870_v9  ;;  %v10915_v44 = vld [vmem:[%s16331_s10 + $0xb1c] sm:$0xf]  ;;  %v9978_v9 = vld [vmem:[%s16331_s10 + $0xb7c] sm:$0xf0] }
 0x37d   :  { %v10815_v2 = vld [vmem:[%s16331_s10 + $0x7fc] sm:$0xf]  ;;  %v9578_v0 = vld [vmem:[%s16331_s10 + $0x85c] sm:$0xf0] }
 0x37e   :  { %6164 = vmatpush.bf16.msra.mxu0 %v8561_v37  ;;  %6177 = vmatpush.bf16.msra.mxu1 %v9361_v54  ;;  %v10826_v37 = vld [vmem:[%s16331_s10 + $0x850] sm:$0xf0] }
 0x37f   :  { %6190 = vmatpush.bf16.msra.mxu2 %v8565_v56  ;;  %6203 = vmatpush.bf16.msra.mxu3 %v9365_v57  ;;  %v10614_v54 = vld [vmem:[%s16331_s10 + $0x1b4] sm:$0xf]  ;;  %v8769_v56 = vor.u32 %v10626_v15, %v8768_v52  ;;  %v9569_v57 = vor.u32 %v10826_v37, %v9568_v40  ;;  %v9181_v52 = vor.u32 %v10715_v12, %v9178_v43  ;;  %v9078_v37 = vld [vmem:[%s16331_s10 + $0x474] sm:$0xf0] }
 0x380   :  { %v8773_v61 = vor.u32 %v10614_v54, %v8770_v47  ;;  %v9981_v15 = vor.u32 %v10915_v44, %v9978_v9  ;;  %v10690_v40 = vld [vmem:[%s16331_s10 + $0x414] sm:$0xf]  ;;  %v9878_v47 = vld [vmem:[%s16331_s10 + $0xab4] sm:$0xf0]  ;;  %v8576_v44 = vld [vmem:[%s16331_s10 + $0x28] sm:$0xf] }
 0x381   :  { %6165 = vmatmul.bf16.vlgmr.msra.gmra.mxu0 %v14136_v17  ;;  %6178 = vmatmul.bf16.vlgmr.msra.gmra.mxu1 %v14138_v53  ;;  %v10890_v54 = vld [vmem:[%s16331_s10 + $0xa54] sm:$0xf]  ;;  %v9478_v43 = vld [vmem:[%s16331_s10 + $0x794] sm:$0xf0] }
 0x382   :  { %6209 = vmatpush.bf16.msrb.mxu0 %v9269_v51  ;;  %6222 = vmatpush.bf16.msrb.mxu1 %v10069_v59  ;;  %v8668_v51 = vld [vmem:[%s16331_s10 + $0xe8] sm:$0xf]  ;;  %v10601_v59 = vld [vmem:[%s16331_s10 + $0x148] sm:$0xf0]  ;;  %v10790_v12 = vld [vmem:[%s16331_s10 + $0x734] sm:$0xf] }
 0x383   :  { %6235 = vmatpush.bf16.msrb.mxu2 %v9273_v63  ;;  %6248 = vmatpush.bf16.msrb.mxu3 %v10073_v58  ;;  %v9468_v63 = vld [vmem:[%s16331_s10 + $0x728] sm:$0xf]  ;;  %v10801_v58 = vld [vmem:[%s16331_s10 + $0x788] sm:$0xf0]  ;;  %v8669_v11 = vor.u32 %v10601_v59, %v8668_v51  ;;  %v9081_v51 = vor.u32 %v10690_v40, %v9078_v37  ;;  %v9881_v59 = vor.u32 %v10890_v54, %v9878_v47  ;;  %v9378_v37 = vld [vmem:[%s16331_s10 + $0x6cc] sm:$0xf0] }
 0x384   :  { %6191 = vmatmul.bf16.vlgmr.msra.gmra.mxu2 %v14136_v17  ;;  %6204 = vmatmul.bf16.vlgmr.msra.gmra.mxu3 %v14138_v53  ;;  %v10765_v40 = vld [vmem:[%s16331_s10 + $0x66c] sm:$0xf]  ;;  %v9284_v54 = vld [vmem:[%s16331_s10 + $0x5a8] sm:$0xf] }
 0x385   :  { %v10753_v47 = vld [vmem:[%s16331_s10 + $0x608] sm:$0xf0] }
 0x386   :  { %6210 = vmatpush.bf16.msrb.mxu0 %v9169_v36  ;;  %6223 = vmatpush.bf16.msrb.mxu1 %v9969_v19  ;;  %v9469_v36 = vor.u32 %v10801_v58, %v9468_v63  ;;  %v10576_v19 = vld [vmem:[%s16331_s10 + $0x80] sm:$0xf0]  ;;  %v10665_v63 = vld [vmem:[%s16331_s10 + $0x34c] sm:$0xf]  ;;  %v8978_v58 = vld [vmem:[%s16331_s10 + $0x3ac] sm:$0xf0] }
 0x387   :  { %6236 = vmatpush.bf16.msrb.mxu2 %v9173_v20  ;;  %6249 = vmatpush.bf16.msrb.mxu3 %v9973_v22  ;;  %v8673_v20 = vor.u32 %v10589_v7, %v8670_v29  ;;  %v9473_v22 = vor.u32 %v10789_v28, %v9470_v8  ;;  %v8569_v33 = vor.u32 %v10576_v19, %v8568_v10  ;;  %v10865_v7 = vld [vmem:[%s16331_s10 + $0x98c] sm:$0xf]  ;;  %v9778_v29 = vld [vmem:[%s16331_s10 + $0x9ec] sm:$0xf0]  ;;  %v8876_v10 = vld [vmem:[%s16331_s10 + $0x280] sm:$0xf] }
 0x388   :  { %v9781_v19 = vor.u32 %v10865_v7, %v9778_v29  ;;  %v9285_v7 = vor.u32 %v10753_v47, %v9284_v54  ;;  %v10853_v54 = vld [vmem:[%s16331_s10 + $0x928] sm:$0xf0] }
 0x389   :  { %v10641_v47 = vld [vmem:[%s16331_s10 + $0x28c] sm:$0xf] }
 0x38a   :  { %6211 = vmatpush.bf16.msrb.mxu0 %v9069_v3  ;;  %6224 = vmatpush.bf16.msrb.mxu1 %v9869_v4  ;;  %v10076_v3 = vld [vmem:[%s16331_s10 + $0xbe0] sm:$0xf]  ;;  %v10952_v4 = vld [vmem:[%s16331_s10 + $0xc40] sm:$0xf0] }
 0x38b   :  { %6237 = vmatpush.bf16.msrb.mxu2 %v9073_v6  ;;  %6250 = vmatpush.bf16.msrb.mxu3 %v9873_v35  ;;  %v9369_v6 = vor.u32 %v10776_v34, %v9368_v41  ;;  %v9278_v35 = vld [vmem:[%s16331_s10 + $0x604] sm:$0xf0]  ;;  %v10077_v60 = vor.u32 %v10952_v4, %v10076_v3  ;;  %v9676_v41 = vld [vmem:[%s16331_s10 + $0x8c0] sm:$0xf]  ;;  %v10852_v34 = vld [vmem:[%s16331_s10 + $0x920] sm:$0xf0]  ;;  %v9681_v4 = vor.u32 %v10840_v23, %v9678_v21 }
 0x38c   :  { %v9281_v39 = vor.u32 %v10740_v31, %v9278_v35  ;;  %v9677_v25 = vor.u32 %v10852_v34, %v9676_v41  ;;  %v9576_v31 = vld [vmem:[%s16331_s10 + $0x7f8] sm:$0xf]  ;;  %v8778_v35 = vld [vmem:[%s16331_s10 + $0x21c] sm:$0xf0]  ;;  %v10716_v41 = vld [vmem:[%s16331_s10 + $0x4e4] sm:$0xf] }
 0x38d   :  { %v14946_v34 = vld [vmem:[%s16332_s11] sm:$0xff]  ;;  %v9986_v23 = vld [vmem:[%s16331_s10 + $0xb84] sm:$0xf0] }
 0x38e   :  { %6212 = vmatpush.bf16.msrb.mxu0 %v8969_v1  ;;  %6225 = vmatpush.bf16.msrb.mxu1 %v9769_v32  ;;  %v9176_v1 = vld [vmem:[%s16331_s10 + $0x4d8] sm:$0xf]  ;;  %v10727_v32 = vld [vmem:[%s16331_s10 + $0x538] sm:$0xf0] }
 0x38f   :  { %6238 = vmatpush.bf16.msrb.mxu2 %v8973_v42  ;;  %6251 = vmatpush.bf16.msrb.mxu3 %v9773_v48  ;;  %v9976_v42 = vld [vmem:[%s16331_s10 + $0xb18] sm:$0xf]  ;;  %v10927_v48 = vld [vmem:[%s16331_s10 + $0xb78] sm:$0xf0]  ;;  %v9177_v5 = vor.u32 %v10727_v32, %v9176_v1  ;;  %v9581_v32 = vor.u32 %v10815_v2, %v9578_v0  ;;  %v9886_v0 = vld [vmem:[%s16331_s10 + $0xabc] sm:$0xf0] }
 0x390   :  { %v9977_v45 = vor.u32 %v10927_v48, %v9976_v42  ;;  %v10590_v42 = vld [vmem:[%s16331_s10 + $0xf4] sm:$0xf]  ;;  %v8678_v48 = vld [vmem:[%s16331_s10 + $0x154] sm:$0xf0]  ;;  %v10891_v2 = vld [vmem:[%s16331_s10 + $0xa5c] sm:$0xf] }
 0x392   :  { %6213 = vmatpush.bf16.msrb.mxu0 %v8869_v50  ;;  %6226 = vmatpush.bf16.msrb.mxu1 %v9669_v46  ;;  %v9076_v50 = vld [vmem:[%s16331_s10 + $0x410] sm:$0xf]  ;;  %v10702_v46 = vld [vmem:[%s16331_s10 + $0x470] sm:$0xf0] }
 0x393   :  { %6239 = vmatpush.bf16.msrb.mxu2 %v8873_v13  ;;  %6252 = vmatpush.bf16.msrb.mxu3 %v9673_v18  ;;  %v9876_v13 = vld [vmem:[%s16331_s10 + $0xa50] sm:$0xf]  ;;  %v10902_v18 = vld [vmem:[%s16331_s10 + $0xab0] sm:$0xf0]  ;;  %v9077_v49 = vor.u32 %v10702_v46, %v9076_v50  ;;  %v9376_v50 = vld [vmem:[%s16331_s10 + $0x668] sm:$0xf] }
 0x394   :  { %v9877_v55 = vor.u32 %v10902_v18, %v9876_v13  ;;  %v10777_v46 = vld [vmem:[%s16331_s10 + $0x6c8] sm:$0xf0]  ;;  %v8578_v18 = vld [vmem:[%s16331_s10 + $0x8c] sm:$0xf0] }
 0x395   :  { %v10565_v13 = vld [vmem:[%s16331_s10 + $0x2c] sm:$0xf] }
 0x396   :  { %6214 = vmatpush.bf16.msrb.mxu0 %v8769_v56  ;;  %6227 = vmatpush.bf16.msrb.mxu1 %v9569_v57  ;;  %v8976_v56 = vld [vmem:[%s16331_s10 + $0x348] sm:$0xf]  ;;  %v10677_v57 = vld [vmem:[%s16331_s10 + $0x3a8] sm:$0xf0] }
 0x397   :  { %6240 = vmatpush.bf16.msrb.mxu2 %v8773_v61  ;;  %6253 = vmatpush.bf16.msrb.mxu3 %v9573_v62  ;;  %v9776_v61 = vld [vmem:[%s16331_s10 + $0x988] sm:$0xf]  ;;  %v10877_v62 = vld [vmem:[%s16331_s10 + $0x9e8] sm:$0xf0]  ;;  %v8977_v28 = vor.u32 %v10677_v57, %v8976_v56 }
 0x398   :  { %v9777_v8 = vor.u32 %v10877_v62, %v9776_v61  ;;  %v10741_v56 = vld [vmem:[%s16331_s10 + $0x5ac] sm:$0xf]  ;;  %v10086_v62 = vld [vmem:[%s16331_s10 + $0xc4c] sm:$0xf0] }
 0x399   :  { %v10941_v61 = vld [vmem:[%s16331_s10 + $0xbec] sm:$0xf] }
 0x39a   :  { %6215 = vmatpush.bf16.msrb.mxu0 %v8669_v11  ;;  %6228 = vmatpush.bf16.msrb.mxu1 %v9469_v36  ;;  %v10652_v11 = vld [vmem:[%s16331_s10 + $0x2e0] sm:$0xf0]  ;;  %v8981_v36 = vor.u32 %v10665_v63, %v8978_v58  ;;  %v8581_v63 = vor.u32 %v10565_v13, %v8578_v18  ;;  %v9381_v58 = vor.u32 %v10765_v40, %v9378_v37  ;;  %v10653_v13 = vld [vmem:[%s16331_s10 + $0x2e8] sm:$0xf0]  ;;  %v9684_v37 = vld [vmem:[%s16331_s10 + $0x8c8] sm:$0xf] }
 0x39b   :  { %6241 = vmatpush.bf16.msrb.mxu2 %v8673_v20  ;;  %6254 = vmatpush.bf16.msrb.mxu3 %v9473_v22  ;;  %v10640_v20 = vld [vmem:[%s16331_s10 + $0x284] sm:$0xf]  ;;  %v8878_v22 = vld [vmem:[%s16331_s10 + $0x2e4] sm:$0xf0]  ;;  %v8877_v24 = vor.u32 %v10652_v11, %v8876_v10  ;;  %v9984_v10 = vld [vmem:[%s16331_s10 + $0xb20] sm:$0xf] }
 0x39c   :  { %v8881_v3 = vor.u32 %v10640_v20, %v8878_v22  ;;  %v9186_v20 = vld [vmem:[%s16331_s10 + $0x544] sm:$0xf0]  ;;  %v10916_v22 = vld [vmem:[%s16331_s10 + $0xb24] sm:$0xf] }
 0x39e   :  { %6216 = vmatpush.bf16.msrb.mxu0 %v8569_v33  ;;  %6229 = vmatpush.bf16.msrb.mxu1 %v9369_v6  ;;  %v10827_v33 = vld [vmem:[%s16331_s10 + $0x858] sm:$0xf0] }
 0x39f   :  { %6242 = vmatpush.bf16.msrb.mxu2 %v8573_v27  ;;  %6255 = vmatpush.bf16.msrb.mxu3 %v9373_v38  ;;  %v10615_v6 = vld [vmem:[%s16331_s10 + $0x1bc] sm:$0xf]  ;;  %v8777_v27 = vor.u32 %v10627_v30, %v8776_v26  ;;  %v9577_v38 = vor.u32 %v10827_v33, %v9576_v31  ;;  %v3935_v30 = vperm.slane %v14946_v34, 0  ;;  %v9884_v31 = vld [vmem:[%s16331_s10 + $0xa58] sm:$0xf] }
 0x3a0   :  { %v8781_v1 = vor.u32 %v10615_v6, %v8778_v35  ;;  %v10703_v26 = vld [vmem:[%s16331_s10 + $0x478] sm:$0xf0]  ;;  %v9086_v35 = vld [vmem:[%s16331_s10 + $0x47c] sm:$0xf0] }
 0x3a1   :  { %6217 = vmatmul.bf16.vlgmr.msrb.gmra.mxu0 %v14136_v17  ;;  %6230 = vmatmul.bf16.vlgmr.msrb.gmra.mxu1 %v14138_v53  ;;  %v10903_v33 = vld [vmem:[%s16331_s10 + $0xab8] sm:$0xf0] }
 0x3a2   :  { %6261 = vmatpush.bf16.msra.mxu0 %v9277_v14  ;;  %6274 = vmatpush.bf16.msra.mxu1 %v10077_v60  ;;  %v8676_v14 = vld [vmem:[%s16331_s10 + $0xf0] sm:$0xf]  ;;  %v10602_v60 = vld [vmem:[%s16331_s10 + $0x150] sm:$0xf0]  ;;  %v10691_v6 = vld [vmem:[%s16331_s10 + $0x41c] sm:$0xf] }
 0x3a3   :  { %6287 = vmatpush.bf16.msra.mxu2 %v9281_v39  ;;  %6300 = vmatpush.bf16.msra.mxu3 %v10081_v16  ;;  %v9476_v39 = vld [vmem:[%s16331_s10 + $0x730] sm:$0xf]  ;;  %v10802_v16 = vld [vmem:[%s16331_s10 + $0x790] sm:$0xf0]  ;;  %v8677_v9 = vor.u32 %v10602_v60, %v8676_v14  ;;  %v9885_v60 = vor.u32 %v10903_v33, %v9884_v31  ;;  %v9484_v33 = vld [vmem:[%s16331_s10 + $0x738] sm:$0xf] }
 0x3a4   :  { %6243 = vmatmul.bf16.vlgmr.msrb.gmra.mxu2 %v14136_v17  ;;  %6256 = vmatmul.bf16.vlgmr.msrb.gmra.mxu3 %v14138_v53 }
 0x3a6   :  { %6262 = vmatpush.bf16.msra.mxu0 %v9177_v5  ;;  %6275 = vmatpush.bf16.msra.mxu1 %v9977_v45  ;;  %v9477_v5 = vor.u32 %v10802_v16, %v9476_v39  ;;  %v10577_v45 = vld [vmem:[%s16331_s10 + $0x88] sm:$0xf0]  ;;  %v10678_v39 = vld [vmem:[%s16331_s10 + $0x3b0] sm:$0xf0]  ;;  %v9089_v16 = vor.u32 %v10691_v6, %v9086_v35  ;;  %v10803_v6 = vld [vmem:[%s16331_s10 + $0x798] sm:$0xf0] }
 0x3a7   :  { %6288 = vmatpush.bf16.msra.mxu2 %v9181_v52  ;;  %6301 = vmatpush.bf16.msra.mxu3 %v9981_v15  ;;  %v8681_v52 = vor.u32 %v10590_v42, %v8678_v48  ;;  %v9481_v15 = vor.u32 %v10790_v12, %v9478_v43  ;;  %v8577_v57 = vor.u32 %v10577_v45, %v8576_v44  ;;  %v9784_v48 = vld [vmem:[%s16331_s10 + $0x990] sm:$0xf]  ;;  %v10878_v12 = vld [vmem:[%s16331_s10 + $0x9f0] sm:$0xf0]  ;;  %v9786_v45 = vld [vmem:[%s16331_s10 + $0x9f4] sm:$0xf0] }
 0x3a8   :  { %v9889_v42 = vor.u32 %v10891_v2, %v9886_v0  ;;  %v10666_v43 = vld [vmem:[%s16331_s10 + $0x354] sm:$0xf]  ;;  %v10591_v35 = vld [vmem:[%s16331_s10 + $0xfc] sm:$0xf] }
 0x3aa   :  { %6263 = vmatpush.bf16.msra.mxu0 %v9077_v49  ;;  %6276 = vmatpush.bf16.msra.mxu1 %v9877_v55  ;;  %v10084_v49 = vld [vmem:[%s16331_s10 + $0xbe8] sm:$0xf]  ;;  %v10953_v55 = vld [vmem:[%s16331_s10 + $0xc48] sm:$0xf0] }
 0x3ab   :  { %6289 = vmatpush.bf16.msra.mxu2 %v9081_v51  ;;  %6302 = vmatpush.bf16.msra.mxu3 %v9881_v59  ;;  %v9377_v51 = vor.u32 %v10777_v46, %v9376_v50  ;;  %v9286_v59 = vld [vmem:[%s16331_s10 + $0x60c] sm:$0xf0]  ;;  %v10085_v29 = vor.u32 %v10953_v55, %v10084_v49  ;;  %v3936_v50 = vperm.slane %v14946_v34, 1 }
 0x3ac   :  { %v9289_v11 = vor.u32 %v10741_v56, %v9286_v59  ;;  %v8886_v56 = vld [vmem:[%s16331_s10 + $0x2ec] sm:$0xf0] }
 0x3ae   :  { %6264 = vmatpush.bf16.msra.mxu0 %v8977_v28  ;;  %6277 = vmatpush.bf16.msra.mxu1 %v9777_v8  ;;  %v9184_v28 = vld [vmem:[%s16331_s10 + $0x4e0] sm:$0xf]  ;;  %v10728_v8 = vld [vmem:[%s16331_s10 + $0x540] sm:$0xf0] }
 0x3af   :  { %6290 = vmatpush.bf16.msra.mxu2 %v8981_v36  ;;  %6303 = vmatpush.bf16.msra.mxu3 %v9781_v19  ;;  %v10089_v36 = vor.u32 %v10941_v61, %v10086_v62  ;;  %v10928_v19 = vld [vmem:[%s16331_s10 + $0xb80] sm:$0xf0]  ;;  %v9185_v21 = vor.u32 %v10728_v8, %v9184_v28  ;;  %v8889_v8 = vor.u32 %v10641_v47, %v8886_v56  ;;  %v10942_v47 = vld [vmem:[%s16331_s10 + $0xbf4] sm:$0xf] }
 0x3b2   :  { %6265 = vmatpush.bf16.msra.mxu0 %v8877_v24  ;;  %6278 = vmatpush.bf16.msra.mxu1 %v9677_v25  ;;  %v9985_v24 = vor.u32 %v10928_v19, %v9984_v10  ;;  %v9084_v25 = vld [vmem:[%s16331_s10 + $0x418] sm:$0xf]  ;;  %v10616_v19 = vld [vmem:[%s16331_s10 + $0x1c4] sm:$0xf] }
 0x3b3   :  { %6291 = vmatpush.bf16.msra.mxu2 %v8881_v3  ;;  %6304 = vmatpush.bf16.msra.mxu3 %v9681_v4  ;;  %v9189_v3 = vor.u32 %v10716_v41, %v9186_v20  ;;  %v9989_v4 = vor.u32 %v10916_v22, %v9986_v23  ;;  %v9085_v14 = vor.u32 %v10703_v26, %v9084_v25  ;;  %v8786_v41 = vld [vmem:[%s16331_s10 + $0x224] sm:$0xf0]  ;;  %v10816_v20 = vld [vmem:[%s16331_s10 + $0x804] sm:$0xf]  ;;  %v8684_v26 = vld [vmem:[%s16331_s10 + $0xf8] sm:$0xf] }
 0x3b4   :  { %v9586_v22 = vld [vmem:[%s16331_s10 + $0x864] sm:$0xf0] }
 0x3b5   :  { %v9589_v31 = vor.u32 %v10816_v20, %v9586_v22 }
 0x3b6   :  { %6266 = vmatpush.bf16.msra.mxu0 %v8777_v27  ;;  %6279 = vmatpush.bf16.msra.mxu1 %v9577_v38 }
 0x3b7   :  { %6292 = vmatpush.bf16.msra.mxu2 %v8781_v1  ;;  %6305 = vmatpush.bf16.msra.mxu3 %v9581_v32  ;;  %v8984_v32 = vld [vmem:[%s16331_s10 + $0x350] sm:$0xf] }
 0x3b8   :  { %v8985_v46 = vor.u32 %v10678_v39, %v8984_v32  ;;  %v8584_v32 = vld [vmem:[%s16331_s10 + $0x30] sm:$0xf] }
 0x3ba   :  { %6267 = vmatpush.bf16.msra.mxu0 %v8677_v9  ;;  %6280 = vmatpush.bf16.msra.mxu1 %v9477_v5  ;;  %v8986_v9 = vld [vmem:[%s16331_s10 + $0x3b4] sm:$0xf0]  ;;  %v10866_v5 = vld [vmem:[%s16331_s10 + $0x994] sm:$0xf] }
 0x3bb   :  { %6293 = vmatpush.bf16.msra.mxu2 %v8681_v52  ;;  %6306 = vmatpush.bf16.msra.mxu3 %v9481_v15  ;;  %v9785_v52 = vor.u32 %v10878_v12, %v9784_v48  ;;  %v8884_v15 = vld [vmem:[%s16331_s10 + $0x288] sm:$0xf]  ;;  %v8989_v18 = vor.u32 %v10666_v43, %v8986_v9  ;;  %v9789_v40 = vor.u32 %v10866_v5, %v9786_v45  ;;  %v9384_v48 = vld [vmem:[%s16331_s10 + $0x670] sm:$0xf]  ;;  %v10778_v12 = vld [vmem:[%s16331_s10 + $0x6d0] sm:$0xf0] }
 0x3bc   :  { %v10566_v9 = vld [vmem:[%s16331_s10 + $0x34] sm:$0xf]  ;;  %v8586_v5 = vld [vmem:[%s16331_s10 + $0x94] sm:$0xf0] }
 0x3bd   :  { %v6010_v27 = vpop.f32.mrf.mxu0  ;;  %v6023_v38 = vpop.f32.mrf.mxu1  ;;  %v10766_v45 = vld [vmem:[%s16331_s10 + $0x674] sm:$0xf] }
 0x3be   :  { %6268 = vmatpush.bf16.msra.mxu0 %v8577_v57  ;;  %6281 = vmatpush.bf16.msra.mxu1 %v9377_v51  ;;  %v6011_v1 = vadd.f32 %v6010_v27, %v3935_v30  ;;  %v10841_v57 = vld [vmem:[%s16331_s10 + $0x8cc] sm:$0xf]  ;;  %v9686_v51 = vld [vmem:[%s16331_s10 + $0x92c] sm:$0xf0]  ;;  %v10603_v30 = vld [vmem:[%s16331_s10 + $0x158] sm:$0xf0] }
 0x3bf   :  { %6294 = vmatpush.bf16.msra.mxu2 %v8581_v63  ;;  %6307 = vmatpush.bf16.msra.mxu3 %v9381_v58  ;;  %v8885_v63 = vor.u32 %v10653_v13, %v8884_v15  ;;  %v9685_v58 = vor.u32 %v10853_v54, %v9684_v37  ;;  %v9689_v10 = vor.u32 %v10841_v57, %v9686_v51  ;;  %v8686_v27 = vld [vmem:[%s16331_s10 + $0x15c] sm:$0xf0]  ;;  %v10092_v15 = vld [vmem:[%s16331_s10 + $0xbf0] sm:$0xf]  ;;  %v10954_v13 = vld [vmem:[%s16331_s10 + $0xc50] sm:$0xf0] }
 0x3c0   :  { %v6024_v44 = vadd.f32 %v6023_v38, %v6011_v1  ;;  %v10791_v38 = vld [vmem:[%s16331_s10 + $0x73c] sm:$0xf]  ;;  %v8685_v39 = vor.u32 %v10603_v30, %v8684_v26  ;;  %v8689_v43 = vor.u32 %v10591_v35, %v8686_v27  ;;  %v9385_v37 = vor.u32 %v10778_v12, %v9384_v48  ;;  %v9294_v54 = vld [vmem:[%s16331_s10 + $0x614] sm:$0xf0]  ;;  %v9892_v26 = vld [vmem:[%s16331_s10 + $0xa60] sm:$0xf] }
 0x3c1   :  { %6269 = vmatmul.bf16.vlgmr.msra.gmra.mxu0 %v14136_v17  ;;  %6282 = vmatmul.bf16.vlgmr.msra.gmra.mxu1 %v14138_v53  ;;  %v10093_v51 = vor.u32 %v10954_v13, %v10092_v15  ;;  %v10904_v30 = vld [vmem:[%s16331_s10 + $0xac0] sm:$0xf0]  ;;  %v10667_v48 = vld [vmem:[%s16331_s10 + $0x35c] sm:$0xf]  ;;  %v8994_v12 = vld [vmem:[%s16331_s10 + $0x3bc] sm:$0xf0] }
 0x3c2   :  { %6313 = vmatpush.bf16.msrb.mxu0 %v9285_v7  ;;  %6326 = vmatpush.bf16.msrb.mxu1 %v10085_v29  ;;  %v8784_v7 = vld [vmem:[%s16331_s10 + $0x1c0] sm:$0xf]  ;;  %v10628_v29 = vld [vmem:[%s16331_s10 + $0x220] sm:$0xf0]  ;;  %v6651_v23 = vmax.f32 %v6024_v44, 0.0  ;;  %v8997_v15 = vor.u32 %v10667_v48, %v8994_v12 }
 0x3c3   :  { %6339 = vmatpush.bf16.msrb.mxu2 %v9289_v11  ;;  %6352 = vmatpush.bf16.msrb.mxu3 %v10089_v36  ;;  %v9584_v11 = vld [vmem:[%s16331_s10 + $0x800] sm:$0xf]  ;;  %v10828_v36 = vld [vmem:[%s16331_s10 + $0x860] sm:$0xf0]  ;;  %v10767_v48 = vld [vmem:[%s16331_s10 + $0x67c] sm:$0xf] }
 0x3c4   :  { %6295 = vmatmul.bf16.vlgmr.msra.gmra.mxu2 %v14136_v17  ;;  %6308 = vmatmul.bf16.vlgmr.msra.gmra.mxu3 %v14138_v53  ;;  %v6036_v49 = vpop.f32.mrf.mxu2  ;;  %v6049_v55 = vpop.f32.mrf.mxu3  ;;  %v9585_v25 = vor.u32 %v10828_v36, %v9584_v11  ;;  %v10717_v11 = vld [vmem:[%s16331_s10 + $0x4ec] sm:$0xf]  ;;  %v9194_v36 = vld [vmem:[%s16331_s10 + $0x54c] sm:$0xf0] }
 0x3c5   :  { %v6037_v59 = vadd.f32 %v6036_v49, %v3936_v50  ;;  %v6012_v61 = vpop.f32.mrf.mxu0  ;;  %v6025_v62 = vpop.f32.mrf.mxu1  ;;  %v9386_v50 = vld [vmem:[%s16331_s10 + $0x6d4] sm:$0xf0] }
 0x3c6   :  { %6314 = vmatpush.bf16.msrb.mxu0 %v9185_v21  ;;  %6327 = vmatpush.bf16.msrb.mxu1 %v9985_v24  ;;  %v8785_v24 = vor.u32 %v10628_v29, %v8784_v7  ;;  %v10094_v49 = vld [vmem:[%s16331_s10 + $0xc54] sm:$0xf0]  ;;  %v9389_v56 = vor.u32 %v10766_v45, %v9386_v50  ;;  %v9192_v62 = vld [vmem:[%s16331_s10 + $0x4e8] sm:$0xf] }
 0x3c7   :  { %6340 = vmatpush.bf16.msrb.mxu2 %v9189_v3  ;;  %6353 = vmatpush.bf16.msrb.mxu3 %v9989_v4  ;;  %v6050_v28 = vadd.f32 %v6049_v55, %v6037_v59  ;;  %v8789_v4 = vor.u32 %v10616_v19, %v8786_v41  ;;  %v8589_v55 = vor.u32 %v10566_v9, %v8586_v5  ;;  %v10917_v19 = vld [vmem:[%s16331_s10 + $0xb2c] sm:$0xf]  ;;  %v9994_v41 = vld [vmem:[%s16331_s10 + $0xb8c] sm:$0xf0] }
 0x3c8   :  { %v10097_v7 = vor.u32 %v10942_v47, %v10094_v49  ;;  %v10842_v47 = vld [vmem:[%s16331_s10 + $0x8d4] sm:$0xf]  ;;  %v9694_v49 = vld [vmem:[%s16331_s10 + $0x934] sm:$0xf0] }
 0x3c9   :  { %v6652_v21 = vmax.f32 %v6050_v28, 0.0 }
 0x3ca   :  { %6315 = vmatpush.bf16.msrb.mxu0 %v9085_v14  ;;  %6328 = vmatpush.bf16.msrb.mxu1 %v9885_v60  ;;  %v9486_v14 = vld [vmem:[%s16331_s10 + $0x79c] sm:$0xf0] }
 0x3cb   :  { %6341 = vmatpush.bf16.msrb.mxu2 %v9089_v16  ;;  %6354 = vmatpush.bf16.msrb.mxu3 %v9889_v42  ;;  %v15065_v3 = vpack.c.bf16 %v6652_v21, %v6651_v23  ;;  %v9485_v16 = vor.u32 %v10803_v6, %v9484_v33  ;;  %v10578_v42 = vld [vmem:[%s16331_s10 + $0x90] sm:$0xf0]  ;;  %v9489_v44 = vor.u32 %v10791_v38, %v9486_v14  ;;  %v9092_v23 = vld [vmem:[%s16331_s10 + $0x420] sm:$0xf]  ;;  %v10704_v21 = vld [vmem:[%s16331_s10 + $0x480] sm:$0xf0] }
 0x3cc   :  { %v6038_v2 = vpop.f32.mrf.mxu2  ;;  %v6051_v0 = vpop.f32.mrf.mxu3  ;;  %v10892_v33 = vld [vmem:[%s16331_s10 + $0xa64] sm:$0xf]  ;;  %v9894_v6 = vld [vmem:[%s16331_s10 + $0xac4] sm:$0xf0]  ;;  %v9093_v35 = vor.u32 %v10704_v21, %v9092_v23  ;;  %v8992_v38 = vld [vmem:[%s16331_s10 + $0x358] sm:$0xf] }
 0x3cd   :  { %v15085_v60 = vpop.f32.mrf.mxu0  ;;  %v15087_v1 = vpop.f32.mrf.mxu1  ;;  %v9893_v2 = vor.u32 %v10904_v30, %v9892_v26  ;;  %v10679_v14 = vld [vmem:[%s16331_s10 + $0x3b8] sm:$0xf0]  ;;  %v8692_v23 = vld [vmem:[%s16331_s10 + $0x100] sm:$0xf]  ;;  %v10604_v21 = vld [vmem:[%s16331_s10 + $0x160] sm:$0xf0] }
 0x3ce   :  { %6316 = vmatpush.bf16.msrb.mxu0 %v8985_v46  ;;  %6329 = vmatpush.bf16.msrb.mxu1 %v9785_v52  ;;  %v9292_v46 = vld [vmem:[%s16331_s10 + $0x5b0] sm:$0xf]  ;;  %v10754_v52 = vld [vmem:[%s16331_s10 + $0x610] sm:$0xf0]  ;;  %v8993_v45 = vor.u32 %v10679_v14, %v8992_v38  ;;  %v9492_v26 = vld [vmem:[%s16331_s10 + $0x740] sm:$0xf] }
 0x3cf   :  { %6342 = vmatpush.bf16.msrb.mxu2 %v8989_v18  ;;  %6355 = vmatpush.bf16.msrb.mxu3 %v9789_v40  ;;  %v10742_v18 = vld [vmem:[%s16331_s10 + $0x5b4] sm:$0xf]  ;;  %v8585_v40 = vor.u32 %v10578_v42, %v8584_v32  ;;  %v9293_v57 = vor.u32 %v10754_v52, %v9292_v46  ;;  %v10879_v42 = vld [vmem:[%s16331_s10 + $0x9f8] sm:$0xf0]  ;;  %v8892_v46 = vld [vmem:[%s16331_s10 + $0x290] sm:$0xf] }
 0x3d0   :  { %v10654_v52 = vld [vmem:[%s16331_s10 + $0x2f0] sm:$0xf0]  ;;  %v10804_v30 = vld [vmem:[%s16331_s10 + $0x7a0] sm:$0xf0]  ;;  %v9392_v38 = vld [vmem:[%s16331_s10 + $0x678] sm:$0xf] }
 0x3d1   :  { %v10779_v14 = vld [vmem:[%s16331_s10 + $0x6d8] sm:$0xf0] }
 0x3d2   :  { %6317 = vmatpush.bf16.msrb.mxu0 %v8885_v63  ;;  %6330 = vmatpush.bf16.msrb.mxu1 %v9685_v58  ;;  %v10729_v63 = vld [vmem:[%s16331_s10 + $0x548] sm:$0xf0]  ;;  %v9297_v58 = vor.u32 %v10742_v18, %v9294_v54  ;;  %v9692_v18 = vld [vmem:[%s16331_s10 + $0x8d0] sm:$0xf]  ;;  %v8894_v54 = vld [vmem:[%s16331_s10 + $0x2f4] sm:$0xf0] }
 0x3d3   :  { %6343 = vmatpush.bf16.msrb.mxu2 %v8889_v8  ;;  %6356 = vmatpush.bf16.msrb.mxu3 %v9689_v10  ;;  %v9992_v8 = vld [vmem:[%s16331_s10 + $0xb28] sm:$0xf]  ;;  %v10929_v10 = vld [vmem:[%s16331_s10 + $0xb88] sm:$0xf0]  ;;  %v9193_v20 = vor.u32 %v10729_v63, %v9192_v62  ;;  %v9697_v63 = vor.u32 %v10842_v47, %v9694_v49  ;;  %v3937_v47 = vperm.slane %v14946_v34, 2  ;;  %v3938_v49 = vperm.slane %v14946_v34, 3 }
 0x3d4   :  { %v15137_v59 = vpop.f32.mrf.mxu2  ;;  %v15139_v61 = vpop.f32.mrf.mxu3  ;;  %v9993_v22 = vor.u32 %v10929_v10, %v9992_v8  ;;  %v8794_v10 = vld [vmem:[%s16331_s10 + $0x22c] sm:$0xf0] }
 0x3d5   :  { %v6064_v29 = vpop.f32.mrf.mxu0  ;;  %v6077_v28 = vpop.f32.mrf.mxu1 }
 0x3d6   :  { %6318 = vmatpush.bf16.msrb.mxu0 %v8785_v24  ;;  %6331 = vmatpush.bf16.msrb.mxu1 %v9585_v25  ;;  %v9197_v24 = vor.u32 %v10717_v11, %v9194_v36  ;;  %v9997_v25 = vor.u32 %v10917_v19, %v9994_v41  ;;  %v10617_v29 = vld [vmem:[%s16331_s10 + $0x1cc] sm:$0xf]  ;;  %v9594_v36 = vld [vmem:[%s16331_s10 + $0x86c] sm:$0xf0] }
 0x3d7   :  { %6344 = vmatpush.bf16.msrb.mxu2 %v8789_v4  ;;  %6357 = vmatpush.bf16.msrb.mxu3 %v9589_v31  ;;  %v10692_v4 = vld [vmem:[%s16331_s10 + $0x424] sm:$0xf]  ;;  %v9094_v31 = vld [vmem:[%s16331_s10 + $0x484] sm:$0xf0]  ;;  %v10817_v11 = vld [vmem:[%s16331_s10 + $0x80c] sm:$0xf] }
 0x3d8   :  { %v9097_v32 = vor.u32 %v10692_v4, %v9094_v31  ;;  %v10592_v4 = vld [vmem:[%s16331_s10 + $0x104] sm:$0xf]  ;;  %v8694_v31 = vld [vmem:[%s16331_s10 + $0x164] sm:$0xf0] }
 0x3da   :  { %6319 = vmatpush.bf16.msrb.mxu0 %v8685_v39  ;;  %6332 = vmatpush.bf16.msrb.mxu1 %v9485_v16  ;;  %v9897_v39 = vor.u32 %v10892_v33, %v9894_v6  ;;  %v9792_v16 = vld [vmem:[%s16331_s10 + $0x998] sm:$0xf]  ;;  %v10792_v33 = vld [vmem:[%s16331_s10 + $0x744] sm:$0xf]  ;;  %v9494_v6 = vld [vmem:[%s16331_s10 + $0x7a4] sm:$0xf0] }
 0x3db   :  { %6345 = vmatpush.bf16.msrb.mxu2 %v8689_v43  ;;  %6358 = vmatpush.bf16.msrb.mxu3 %v9489_v44  ;;  %v10867_v43 = vld [vmem:[%s16331_s10 + $0x99c] sm:$0xf]  ;;  %v9794_v44 = vld [vmem:[%s16331_s10 + $0x9fc] sm:$0xf0]  ;;  %v9793_v50 = vor.u32 %v10879_v42, %v9792_v16 }
 0x3dc   :  { %v6090_v0 = vpop.f32.mrf.mxu2  ;;  %v6103_v27 = vpop.f32.mrf.mxu3  ;;  %v9797_v13 = vor.u32 %v10867_v43, %v9794_v44  ;;  %v10567_v16 = vld [vmem:[%s16331_s10 + $0x3c] sm:$0xf]  ;;  %v8594_v42 = vld [vmem:[%s16331_s10 + $0x9c] sm:$0xf0] }
 0x3dd   :  { %v9493_v0 = vor.u32 %v10804_v30, %v9492_v26  ;;  %v10579_v27 = vld [vmem:[%s16331_s10 + $0x98] sm:$0xf0]  ;;  %v9394_v44 = vld [vmem:[%s16331_s10 + $0x6dc] sm:$0xf0]  ;;  %v9100_v26 = vld [vmem:[%s16331_s10 + $0x428] sm:$0xf] }
 0x3de   :  { %6320 = vmatpush.bf16.msrb.mxu0 %v8585_v40  ;;  %6333 = vmatpush.bf16.msrb.mxu1 %v9385_v37  ;;  %v15217_v9 = vpop.f32.mrf.mxu0  ;;  %v15219_v5 = vpop.f32.mrf.mxu1  ;;  %v10854_v40 = vld [vmem:[%s16331_s10 + $0x930] sm:$0xf0]  ;;  %v10705_v30 = vld [vmem:[%s16331_s10 + $0x488] sm:$0xf0] }
 0x3df   :  { %6346 = vmatpush.bf16.msrb.mxu2 %v8589_v55  ;;  %6359 = vmatpush.bf16.msrb.mxu3 %v9389_v56  ;;  %v10642_v37 = vld [vmem:[%s16331_s10 + $0x294] sm:$0xf]  ;;  %v8893_v55 = vor.u32 %v10654_v52, %v8892_v46  ;;  %v9693_v56 = vor.u32 %v10854_v40, %v9692_v18  ;;  %v10100_v46 = vld [vmem:[%s16331_s10 + $0xbf8] sm:$0xf]  ;;  %v10955_v52 = vld [vmem:[%s16331_s10 + $0xc58] sm:$0xf0]  ;;  %v9393_v18 = vor.u32 %v10779_v14, %v9392_v38 }
 0x3e0   :  { %v8897_v62 = vor.u32 %v10642_v37, %v8894_v54  ;;  %v9302_v40 = vld [vmem:[%s16331_s10 + $0x61c] sm:$0xf0]  ;;  %v10943_v37 = vld [vmem:[%s16331_s10 + $0xbfc] sm:$0xf]  ;;  %v9101_v14 = vor.u32 %v10705_v30, %v9100_v26 }
 0x3e1   :  { %6321 = vmatmul.bf16.vlgmr.msrb.gmra.mxu0 %v14136_v17  ;;  %6334 = vmatmul.bf16.vlgmr.msrb.gmra.mxu1 %v14138_v53  ;;  %v10102_v54 = vld [vmem:[%s16331_s10 + $0xc5c] sm:$0xf0] }
 0x3e2   :  { %6365 = vmatpush.bf16.msra.mxu0 %v9293_v57  ;;  %6378 = vmatpush.bf16.msra.mxu1 %v10093_v51  ;;  %v8792_v57 = vld [vmem:[%s16331_s10 + $0x1c8] sm:$0xf]  ;;  %v10629_v51 = vld [vmem:[%s16331_s10 + $0x228] sm:$0xf0] }
 0x3e3   :  { %6391 = vmatpush.bf16.msra.mxu2 %v9297_v58  ;;  %6404 = vmatpush.bf16.msra.mxu3 %v10097_v7  ;;  %v9592_v58 = vld [vmem:[%s16331_s10 + $0x808] sm:$0xf]  ;;  %v10829_v7 = vld [vmem:[%s16331_s10 + $0x868] sm:$0xf0] }
 0x3e4   :  { %6347 = vmatmul.bf16.vlgmr.msrb.gmra.mxu2 %v14136_v17  ;;  %6360 = vmatmul.bf16.vlgmr.msrb.gmra.mxu3 %v14138_v53 }
 0x3e6   :  { %6366 = vmatpush.bf16.msra.mxu0 %v9193_v20  ;;  %6379 = vmatpush.bf16.msra.mxu1 %v9993_v22  ;;  %v6116_v19 = vpop.f32.mrf.mxu0  ;;  %v6129_v41 = vpop.f32.mrf.mxu1  ;;  %v8793_v20 = vor.u32 %v10629_v51, %v8792_v57  ;;  %v9593_v22 = vor.u32 %v10829_v7, %v9592_v58  ;;  %v3940_v57 = vperm.slane %v14946_v34, 5  ;;  %v10730_v58 = vld [vmem:[%s16331_s10 + $0x550] sm:$0xf0] }
 0x3e7   :  { %6392 = vmatpush.bf16.msra.mxu2 %v9197_v24  ;;  %6405 = vmatpush.bf16.msra.mxu3 %v9997_v25  ;;  %v15260_v28 = vpop.f32.mrf.mxu2  ;;  %v15262_v8 = vpop.f32.mrf.mxu3  ;;  %v8797_v24 = vor.u32 %v10617_v29, %v8794_v10  ;;  %v9597_v25 = vor.u32 %v10817_v11, %v9594_v36  ;;  %v10105_v29 = vor.u32 %v10943_v37, %v10102_v54  ;;  %v10000_v10 = vld [vmem:[%s16331_s10 + $0xb30] sm:$0xf]  ;;  %v10930_v11 = vld [vmem:[%s16331_s10 + $0xb90] sm:$0xf0]  ;;  %v9202_v19 = vld [vmem:[%s16331_s10 + $0x554] sm:$0xf0] }
 0x3e8   :  { %v10718_v36 = vld [vmem:[%s16331_s10 + $0x4f4] sm:$0xf]  ;;  %v8900_v37 = vld [vmem:[%s16331_s10 + $0x298] sm:$0xf]  ;;  %v10655_v54 = vld [vmem:[%s16331_s10 + $0x2f8] sm:$0xf0] }
 0x3e9   :  { %v10918_v41 = vld [vmem:[%s16331_s10 + $0xb34] sm:$0xf] }
 0x3ea   :  { %6367 = vmatpush.bf16.msra.mxu0 %v9093_v35  ;;  %6380 = vmatpush.bf16.msra.mxu1 %v9893_v2  ;;  %v8592_v35 = vld [vmem:[%s16331_s10 + $0x38] sm:$0xf]  ;;  %v8693_v2 = vor.u32 %v10604_v21, %v8692_v23  ;;  %v6089_v23 = vadd.f32 %v15137_v59, %v3938_v49  ;;  %v3939_v21 = vperm.slane %v14946_v34, 4 }
 0x3eb   :  { %6393 = vmatpush.bf16.msra.mxu2 %v9097_v32  ;;  %6406 = vmatpush.bf16.msra.mxu3 %v9897_v39  ;;  %v8697_v32 = vor.u32 %v10592_v4, %v8694_v31  ;;  %v9497_v39 = vor.u32 %v10792_v33, %v9494_v6  ;;  %v9900_v4 = vld [vmem:[%s16331_s10 + $0xa68] sm:$0xf]  ;;  %v10905_v31 = vld [vmem:[%s16331_s10 + $0xac8] sm:$0xf0]  ;;  %v6141_v6 = vadd.f32 %v15260_v28, %v3940_v57  ;;  %v8902_v57 = vld [vmem:[%s16331_s10 + $0x2fc] sm:$0xf0] }
 0x3ec   :  { %v10693_v33 = vld [vmem:[%s16331_s10 + $0x42c] sm:$0xf]  ;;  %v6102_v28 = vadd.f32 %v15139_v61, %v6089_v23  ;;  %v6115_v38 = vadd.f32 %v15217_v9, %v3939_v21  ;;  %v9800_v9 = vld [vmem:[%s16331_s10 + $0x9a0] sm:$0xf]  ;;  %v9600_v23 = vld [vmem:[%s16331_s10 + $0x810] sm:$0xf] }
 0x3ed   :  { %v10830_v21 = vld [vmem:[%s16331_s10 + $0x870] sm:$0xf0] }
 0x3ee   :  { %6368 = vmatpush.bf16.msra.mxu0 %v8993_v45  ;;  %6381 = vmatpush.bf16.msra.mxu1 %v9793_v50  ;;  %v9300_v45 = vld [vmem:[%s16331_s10 + $0x5b8] sm:$0xf]  ;;  %v10755_v50 = vld [vmem:[%s16331_s10 + $0x618] sm:$0xf0] }
 0x3ef   :  { %6394 = vmatpush.bf16.msra.mxu2 %v8997_v15  ;;  %6407 = vmatpush.bf16.msra.mxu3 %v9797_v13  ;;  %v6142_v12 = vpop.f32.mrf.mxu2  ;;  %v6155_v43 = vpop.f32.mrf.mxu3  ;;  %v10743_v15 = vld [vmem:[%s16331_s10 + $0x5bc] sm:$0xf]  ;;  %v8593_v13 = vor.u32 %v10579_v27, %v8592_v35  ;;  %v9301_v51 = vor.u32 %v10755_v50, %v9300_v45  ;;  %v9102_v35 = vld [vmem:[%s16331_s10 + $0x48c] sm:$0xf0]  ;;  %v9802_v45 = vld [vmem:[%s16331_s10 + $0xa04] sm:$0xf0] }
 0x3f0   :  { %v9305_v7 = vor.u32 %v10743_v15, %v9302_v40  ;;  %v9105_v61 = vor.u32 %v10693_v33, %v9102_v35  ;;  %v6154_v12 = vadd.f32 %v15262_v8, %v6141_v6  ;;  %v9002_v43 = vld [vmem:[%s16331_s10 + $0x3c4] sm:$0xf0]  ;;  %v6128_v8 = vadd.f32 %v15219_v5, %v6115_v38 }
 0x3f2   :  { %6369 = vmatpush.bf16.msra.mxu0 %v8893_v55  ;;  %6382 = vmatpush.bf16.msra.mxu1 %v9693_v56  ;;  %v8597_v55 = vor.u32 %v10567_v16, %v8594_v42  ;;  %v9397_v56 = vor.u32 %v10767_v48, %v9394_v44  ;;  %v10880_v42 = vld [vmem:[%s16331_s10 + $0xa00] sm:$0xf0] }
 0x3f3   :  { %6395 = vmatpush.bf16.msra.mxu2 %v8897_v62  ;;  %6408 = vmatpush.bf16.msra.mxu3 %v9697_v63  ;;  %v10101_v62 = vor.u32 %v10955_v52, %v10100_v46  ;;  %v9200_v63 = vld [vmem:[%s16331_s10 + $0x4f0] sm:$0xf]  ;;  %v10668_v48 = vld [vmem:[%s16331_s10 + $0x364] sm:$0xf]  ;;  %v6654_v46 = vmax.f32 %v6102_v28, 0.0  ;;  %v3941_v52 = vperm.slane %v14946_v34, 6  ;;  %v9801_v40 = vor.u32 %v10880_v42, %v9800_v9 }
 0x3f4   :  { %v10868_v44 = vld [vmem:[%s16331_s10 + $0x9a4] sm:$0xf]  ;;  %v9005_v49 = vor.u32 %v10668_v48, %v9002_v43  ;;  %v10593_v9 = vld [vmem:[%s16331_s10 + $0x10c] sm:$0xf]  ;;  %v8702_v42 = vld [vmem:[%s16331_s10 + $0x16c] sm:$0xf0] }
 0x3f5   :  { %v9805_v5 = vor.u32 %v10868_v44, %v9802_v45  ;;  %v10793_v48 = vld [vmem:[%s16331_s10 + $0x74c] sm:$0xf]  ;;  %v9502_v44 = vld [vmem:[%s16331_s10 + $0x7ac] sm:$0xf0] }
 0x3f6   :  { %6370 = vmatpush.bf16.msra.mxu0 %v8793_v20  ;;  %6383 = vmatpush.bf16.msra.mxu1 %v9593_v22  ;;  %v10002_v20 = vld [vmem:[%s16331_s10 + $0xb94] sm:$0xf0]  ;;  %v6063_v22 = vadd.f32 %v15085_v60, %v3937_v47  ;;  %v9205_v60 = vor.u32 %v10718_v36, %v9202_v19  ;;  %v8901_v36 = vor.u32 %v10655_v54, %v8900_v37 }
 0x3f7   :  { %6396 = vmatpush.bf16.msra.mxu2 %v8797_v24  ;;  %6409 = vmatpush.bf16.msra.mxu3 %v9597_v25  ;;  %v9201_v24 = vor.u32 %v10730_v58, %v9200_v63  ;;  %v10001_v25 = vor.u32 %v10930_v11, %v10000_v10  ;;  %v10005_v59 = vor.u32 %v10918_v41, %v10002_v20  ;;  %v9700_v47 = vld [vmem:[%s16331_s10 + $0x8d8] sm:$0xf]  ;;  %v9702_v63 = vld [vmem:[%s16331_s10 + $0x93c] sm:$0xf0]  ;;  %v6702_v10 = vrot.slane %v15065_v3, 3 }
 0x3f8   :  { %v6076_v27 = vadd.f32 %v15087_v1, %v6063_v22  ;;  %v10680_v1 = vld [vmem:[%s16331_s10 + $0x3c0] sm:$0xf0]  ;;  %v6655_v11 = vmax.f32 %v6128_v8, 0.0  ;;  %v8800_v41 = vld [vmem:[%s16331_s10 + $0x1d0] sm:$0xf]  ;;  %v8705_v54 = vor.u32 %v10593_v9, %v8702_v42 }
 0x3f9   :  { %v10630_v20 = vld [vmem:[%s16331_s10 + $0x230] sm:$0xf0]  ;;  %v9400_v8 = vld [vmem:[%s16331_s10 + $0x680] sm:$0xf] }
 0x3fa   :  { %6371 = vmatpush.bf16.msra.mxu0 %v8693_v2  ;;  %6384 = vmatpush.bf16.msra.mxu1 %v9493_v0  ;;  %v10893_v2 = vld [vmem:[%s16331_s10 + $0xa6c] sm:$0xf]  ;;  %v9902_v0 = vld [vmem:[%s16331_s10 + $0xacc] sm:$0xf0]  ;;  %v6653_v50 = vmax.f32 %v6076_v27, 0.0  ;;  %v8801_v38 = vor.u32 %v10630_v20, %v8800_v41 }
 0x3fb   :  { %6397 = vmatpush.bf16.msra.mxu2 %v8697_v32  ;;  %6410 = vmatpush.bf16.msra.mxu3 %v9497_v39  ;;  %v9901_v32 = vor.u32 %v10905_v31, %v9900_v4  ;;  %v9000_v39 = vld [vmem:[%s16331_s10 + $0x360] sm:$0xf]  ;;  %v9905_v16 = vor.u32 %v10893_v2, %v9902_v0  ;;  %v9602_v4 = vld [vmem:[%s16331_s10 + $0x874] sm:$0xf0]  ;;  %v8700_v0 = vld [vmem:[%s16331_s10 + $0x108] sm:$0xf] }
 0x3fc   :  { %v15458_v58 = vpack.c.bf16 %v6654_v46, %v6653_v50  ;;  %v10605_v27 = vld [vmem:[%s16331_s10 + $0x168] sm:$0xf0]  ;;  %v8600_v46 = vld [vmem:[%s16331_s10 + $0x40] sm:$0xf]  ;;  %v10906_v42 = vld [vmem:[%s16331_s10 + $0xad0] sm:$0xf0] }
 0x3fe   :  { %6372 = vmatpush.bf16.msra.mxu0 %v8593_v13  ;;  %6385 = vmatpush.bf16.msra.mxu1 %v9393_v18  ;;  %v6166_v15 = vpop.f32.mrf.mxu0  ;;  %v6179_v13 = vpop.f32.mrf.mxu1  ;;  %v9001_v18 = vor.u32 %v10680_v1, %v9000_v39  ;;  %v6703_v31 = vrot.slane %v15458_v58, 6  ;;  %v6704_v28 = vrot.slane %v15458_v58, 1  ;;  %v10805_v39 = vld [vmem:[%s16331_s10 + $0x7a8] sm:$0xf0]  ;;  %v6727_v58 = vsel %vm6724_vm4, %v15065_v3, %v6702_v10  ;;  %v9310_v3 = vld [vmem:[%s16331_s10 + $0x624] sm:$0xf0] }
 0x3ff   :  { %6398 = vmatpush.bf16.msra.mxu2 %v8597_v55  ;;  %6411 = vmatpush.bf16.msra.mxu3 %v9397_v56  ;;  %v10855_v55 = vld [vmem:[%s16331_s10 + $0x938] sm:$0xf0]  ;;  %v10944_v10 = vld [vmem:[%s16331_s10 + $0xc04] sm:$0xf] }
 0x400   :  { %v10643_v56 = vld [vmem:[%s16331_s10 + $0x29c] sm:$0xf]  ;;  %v9701_v19 = vor.u32 %v10855_v55, %v9700_v47  ;;  %v9505_v47 = vor.u32 %v10793_v48, %v9502_v44  ;;  %v9402_v55 = vld [vmem:[%s16331_s10 + $0x6e4] sm:$0xf0]  ;;  %v10694_v48 = vld [vmem:[%s16331_s10 + $0x434] sm:$0xf] }
 0x401   :  { %6373 = vmatmul.bf16.vlgmr.msra.gmra.mxu0 %v14136_v17  ;;  %6386 = vmatmul.bf16.vlgmr.msra.gmra.mxu1 %v14138_v53  ;;  %v10894_v44 = vld [vmem:[%s16331_s10 + $0xa74] sm:$0xf] }
 0x402   :  { %6417 = vmatpush.bf16.msrb.mxu0 %v9301_v51  ;;  %6430 = vmatpush.bf16.msrb.mxu1 %v10101_v62  ;;  %v6656_v51 = vmax.f32 %v6154_v12, 0.0  ;;  %v10843_v62 = vld [vmem:[%s16331_s10 + $0x8dc] sm:$0xf] }
 0x403   :  { %6443 = vmatpush.bf16.msrb.mxu2 %v9305_v7  ;;  %6456 = vmatpush.bf16.msrb.mxu3 %v10105_v29  ;;  %v6167_v7 = vadd.f32 %v6166_v15, %v3941_v52  ;;  %v3942_v29 = vperm.slane %v14946_v34, 7  ;;  %v8905_v34 = vor.u32 %v10643_v56, %v8902_v57  ;;  %v9705_v22 = vor.u32 %v10843_v62, %v9702_v63  ;;  %v10580_v52 = vld [vmem:[%s16331_s10 + $0xa0] sm:$0xf0]  ;;  %v10108_v63 = vld [vmem:[%s16331_s10 + $0xc00] sm:$0xf] }
 0x404   :  { %6399 = vmatmul.bf16.vlgmr.msra.gmra.mxu2 %v14136_v17  ;;  %6412 = vmatmul.bf16.vlgmr.msra.gmra.mxu3 %v14138_v53  ;;  %v8701_v15 = vor.u32 %v10605_v27, %v8700_v0  ;;  %v10756_v62 = vld [vmem:[%s16331_s10 + $0x620] sm:$0xf0]  ;;  %v8601_v20 = vor.u32 %v10580_v52, %v8600_v46  ;;  %v10719_v0 = vld [vmem:[%s16331_s10 + $0x4fc] sm:$0xf]  ;;  %v9210_v27 = vld [vmem:[%s16331_s10 + $0x55c] sm:$0xf0] }
 0x405   :  { %v6180_v33 = vadd.f32 %v6179_v13, %v6167_v7  ;;  %v6731_v7 = vsel %vm6728_vm5, %v6703_v31, %v6704_v28  ;;  %v10919_v28 = vld [vmem:[%s16331_s10 + $0xb3c] sm:$0xf] }
 0x406   :  { %6418 = vmatpush.bf16.msrb.mxu0 %v9201_v24  ;;  %6431 = vmatpush.bf16.msrb.mxu1 %v10001_v25  ;;  %v10618_v24 = vld [vmem:[%s16331_s10 + $0x1d4] sm:$0xf]  ;;  %v15477_v25 = vpack.c.bf16 %v6656_v51, %v6655_v11  ;;  %v6168_v35 = vpop.f32.mrf.mxu0  ;;  %v6181_v2 = vpop.f32.mrf.mxu1  ;;  %v9308_v51 = vld [vmem:[%s16331_s10 + $0x5c0] sm:$0xf] }
 0x407   :  { %6444 = vmatpush.bf16.msrb.mxu2 %v9205_v60  ;;  %6457 = vmatpush.bf16.msrb.mxu3 %v10005_v59  ;;  %v6192_v26 = vpop.f32.mrf.mxu2  ;;  %v6205_v30 = vpop.f32.mrf.mxu3  ;;  %v8802_v60 = vld [vmem:[%s16331_s10 + $0x234] sm:$0xf0]  ;;  %v10818_v59 = vld [vmem:[%s16331_s10 + $0x814] sm:$0xf]  ;;  %v6657_v45 = vmax.f32 %v6180_v33, 0.0 }
 0x408   :  { %v6193_v6 = vadd.f32 %v6192_v26, %v3942_v29  ;;  %v6705_v12 = vrot.slane %v15477_v25, 4  ;;  %v6706_v43 = vrot.slane %v15477_v25, 7  ;;  %v6732_v25 = vsel %vm3474_vm1, %v6727_v58, %v6731_v7  ;;  %v10008_v35 = vld [vmem:[%s16331_s10 + $0xb38] sm:$0xf]  ;;  %v10931_v2 = vld [vmem:[%s16331_s10 + $0xb98] sm:$0xf0] }
 0x409   :  { %v10656_v58 = vld [vmem:[%s16331_s10 + $0x300] sm:$0xf0] }
 0x40a   :  { %6419 = vmatpush.bf16.msrb.mxu0 %v9101_v14  ;;  %6432 = vmatpush.bf16.msrb.mxu1 %v9901_v32  ;;  %v9601_v14 = vor.u32 %v10830_v21, %v9600_v23  ;;  %v9500_v32 = vld [vmem:[%s16331_s10 + $0x748] sm:$0xf]  ;;  %v6206_v1 = vadd.f32 %v6205_v30, %v6193_v6  ;;  %v6736_v41 = vsel %vm6733_vm6, %v6705_v12, %v6706_v43  ;;  %v9110_v43 = vld [vmem:[%s16331_s10 + $0x494] sm:$0xf0] }
 0x40b   :  { %6445 = vmatpush.bf16.msrb.mxu2 %v9105_v61  ;;  %6458 = vmatpush.bf16.msrb.mxu3 %v9905_v16  ;;  %v8805_v61 = vor.u32 %v10618_v24, %v8802_v60  ;;  %v9605_v16 = vor.u32 %v10818_v59, %v9602_v4  ;;  %v9501_v13 = vor.u32 %v10805_v39, %v9500_v32  ;;  %v9208_v59 = vld [vmem:[%s16331_s10 + $0x4f8] sm:$0xf]  ;;  %v10731_v4 = vld [vmem:[%s16331_s10 + $0x558] sm:$0xf0]  ;;  %v9108_v39 = vld [vmem:[%s16331_s10 + $0x430] sm:$0xf] }
 0x40c   :  { %v6658_v50 = vmax.f32 %v6206_v1, 0.0  ;;  %v9309_v30 = vor.u32 %v10756_v62, %v9308_v51  ;;  %v10009_v32 = vor.u32 %v10931_v2, %v10008_v35  ;;  %v10706_v1 = vld [vmem:[%s16331_s10 + $0x490] sm:$0xf0]  ;;  %v15619_v12 = vld [vmem:[%s16332_s11 + $0x8] sm:$0xff]  ;;  %v9610_v35 = vld [vmem:[%s16331_s10 + $0x87c] sm:$0xf0] }
 0x40d   :  { %v3943_v52 = vperm.slane %v15619_v12, 0 }
 0x40e   :  { %6420 = vmatpush.bf16.msrb.mxu0 %v9001_v18  ;;  %6433 = vmatpush.bf16.msrb.mxu1 %v9801_v40  ;;  %v10780_v18 = vld [vmem:[%s16331_s10 + $0x6e0] sm:$0xf0]  ;;  %v6679_v37 = vpack.c.bf16 %v6658_v50, %v6657_v45  ;;  %v9910_v45 = vld [vmem:[%s16331_s10 + $0xad4] sm:$0xf0]  ;;  %v9109_v50 = vor.u32 %v10706_v1, %v9108_v39 }
 0x40f   :  { %6446 = vmatpush.bf16.msrb.mxu2 %v9005_v49  ;;  %6459 = vmatpush.bf16.msrb.mxu3 %v9805_v5  ;;  %v10568_v40 = vld [vmem:[%s16331_s10 + $0x44] sm:$0xf]  ;;  %v8602_v49 = vld [vmem:[%s16331_s10 + $0xa4] sm:$0xf0]  ;;  %v6194_v56 = vpop.f32.mrf.mxu2  ;;  %v6207_v57 = vpop.f32.mrf.mxu3 }
 0x410   :  { %v10768_v5 = vld [vmem:[%s16331_s10 + $0x684] sm:$0xf]  ;;  %v6707_v29 = vrot.slane %v6679_v37, 2  ;;  %v6708_v11 = vrot.slane %v6679_v37, 5  ;;  %v8605_v21 = vor.u32 %v10568_v40, %v8602_v49  ;;  %v9808_v40 = vld [vmem:[%s16331_s10 + $0x9a8] sm:$0xf] }
 0x411   :  { %v9405_v24 = vor.u32 %v10768_v5, %v9402_v55  ;;  %v10881_v37 = vld [vmem:[%s16331_s10 + $0xa08] sm:$0xf0]  ;;  %v9810_v5 = vld [vmem:[%s16331_s10 + $0xa0c] sm:$0xf0] }
 0x412   :  { %6421 = vmatpush.bf16.msrb.mxu0 %v8901_v36  ;;  %6434 = vmatpush.bf16.msrb.mxu1 %v9701_v19  ;;  %v10956_v36 = vld [vmem:[%s16331_s10 + $0xc60] sm:$0xf0]  ;;  %v6740_v23 = vsel %vm6737_vm7, %v6707_v29, %v6708_v11  ;;  %v10869_v49 = vld [vmem:[%s16331_s10 + $0x9ac] sm:$0xf]  ;;  %v9809_v62 = vor.u32 %v10881_v37, %v9808_v40  ;;  %v9708_v11 = vld [vmem:[%s16331_s10 + $0x8e0] sm:$0xf] }
 0x413   :  { %6447 = vmatpush.bf16.msrb.mxu2 %v8905_v34  ;;  %6460 = vmatpush.bf16.msrb.mxu3 %v9705_v22  ;;  %v10744_v19 = vld [vmem:[%s16331_s10 + $0x5c4] sm:$0xf]  ;;  %v9401_v34 = vor.u32 %v10780_v18, %v9400_v8  ;;  %v10110_v22 = vld [vmem:[%s16331_s10 + $0xc64] sm:$0xf0]  ;;  %v6742_v26 = vsel %vm6741_vm8, %v6736_v41, %v6740_v23  ;;  %v10109_v60 = vor.u32 %v10956_v36, %v10108_v63  ;;  %v8908_v63 = vld [vmem:[%s16331_s10 + $0x2a0] sm:$0xf] }
 0x414   :  { %v6744_v31 = vsel %vm6743_vm9, %v6732_v25, %v6742_v26  ;;  %v9313_v33 = vor.u32 %v10744_v19, %v9310_v3  ;;  %v10113_v6 = vor.u32 %v10944_v10, %v10110_v22  ;;  %v9113_v8 = vor.u32 %v10694_v48, %v9110_v43  ;;  %v10856_v36 = vld [vmem:[%s16331_s10 + $0x940] sm:$0xf0]  ;;  %v9710_v3 = vld [vmem:[%s16331_s10 + $0x944] sm:$0xf0]  ;;  %v8710_v48 = vld [vmem:[%s16331_s10 + $0x174] sm:$0xf0] }
 0x415   :  { %6782 = vst [vmem:[%s16333_s12] sm:$0xff] %v6744_v31  ;;  %v9913_v18 = vor.u32 %v10894_v44, %v9910_v45  ;;  %v9813_v29 = vor.u32 %v10869_v49, %v9810_v5  ;;  %v10644_v19 = vld [vmem:[%s16331_s10 + $0x2a4] sm:$0xf]  ;;  %v3944_v10 = vperm.slane %v15619_v12, 1  ;;  %v8909_v22 = vor.u32 %v10656_v58, %v8908_v63  ;;  %v10794_v43 = vld [vmem:[%s16331_s10 + $0x754] sm:$0xf] }
 0x416   :  { %6422 = vmatpush.bf16.msrb.mxu0 %v8801_v38  ;;  %6435 = vmatpush.bf16.msrb.mxu1 %v9601_v14  ;;  %v10010_v38 = vld [vmem:[%s16331_s10 + $0xb9c] sm:$0xf0]  ;;  %v9209_v14 = vor.u32 %v10731_v4, %v9208_v59  ;;  %v9709_v23 = vor.u32 %v10856_v36, %v9708_v11  ;;  %v10619_v59 = vld [vmem:[%s16331_s10 + $0x1dc] sm:$0xf]  ;;  %v9510_v44 = vld [vmem:[%s16331_s10 + $0x7b4] sm:$0xf0] }
 0x417   :  { %6448 = vmatpush.bf16.msrb.mxu2 %v8805_v61  ;;  %6461 = vmatpush.bf16.msrb.mxu3 %v9605_v16  ;;  %v9908_v61 = vld [vmem:[%s16331_s10 + $0xa70] sm:$0xf]  ;;  %v9213_v16 = vor.u32 %v10719_v0, %v9210_v27  ;;  %v10013_v9 = vor.u32 %v10919_v28, %v10010_v38  ;;  %v10769_v5 = vld [vmem:[%s16331_s10 + $0x68c] sm:$0xf]  ;;  %v10116_v63 = vld [vmem:[%s16331_s10 + $0xc08] sm:$0xf] }
 0x418   :  { %v9909_v46 = vor.u32 %v10906_v42, %v9908_v61  ;;  %v10594_v42 = vld [vmem:[%s16331_s10 + $0x114] sm:$0xf]  ;;  %v8610_v49 = vld [vmem:[%s16331_s10 + $0xac] sm:$0xf0]  ;;  %v10957_v58 = vld [vmem:[%s16331_s10 + $0xc68] sm:$0xf0] }
 0x419   :  { %v8713_v37 = vor.u32 %v10594_v42, %v8710_v48  ;;  %v9318_v36 = vld [vmem:[%s16331_s10 + $0x62c] sm:$0xf0]  ;;  %v10682_v42 = vld [vmem:[%s16331_s10 + $0x3d0] sm:$0xf0] }
 0x41a   :  { %6423 = vmatpush.bf16.msrb.mxu0 %v8701_v15  ;;  %6436 = vmatpush.bf16.msrb.mxu1 %v9501_v13  ;;  %v9008_v15 = vld [vmem:[%s16331_s10 + $0x368] sm:$0xf]  ;;  %v10681_v13 = vld [vmem:[%s16331_s10 + $0x3c8] sm:$0xf0] }
 0x41b   :  { %6449 = vmatpush.bf16.msrb.mxu2 %v8705_v54  ;;  %6462 = vmatpush.bf16.msrb.mxu3 %v9505_v47  ;;  %v10669_v54 = vld [vmem:[%s16331_s10 + $0x36c] sm:$0xf]  ;;  %v9010_v47 = vld [vmem:[%s16331_s10 + $0x3cc] sm:$0xf0]  ;;  %v9009_v51 = vor.u32 %v10681_v13, %v9008_v15 }
 0x41c   :  { %v9013_v7 = vor.u32 %v10669_v54, %v9010_v47  ;;  %v10581_v13 = vld [vmem:[%s16331_s10 + $0xa8] sm:$0xf0]  ;;  %v9513_v54 = vor.u32 %v10794_v43, %v9510_v44  ;;  %v9816_v44 = vld [vmem:[%s16331_s10 + $0x9b0] sm:$0xf] }
 0x41d   :  { %v10569_v47 = vld [vmem:[%s16331_s10 + $0x4c] sm:$0xf] }
 0x41e   :  { %6424 = vmatpush.bf16.msrb.mxu0 %v8601_v20  ;;  %6437 = vmatpush.bf16.msrb.mxu1 %v9401_v34  ;;  %v6218_v55 = vpop.f32.mrf.mxu0  ;;  %v6231_v56 = vpop.f32.mrf.mxu1  ;;  %v8910_v20 = vld [vmem:[%s16331_s10 + $0x304] sm:$0xf0]  ;;  %v10844_v34 = vld [vmem:[%s16331_s10 + $0x8e4] sm:$0xf] }
 0x41f   :  { %6450 = vmatpush.bf16.msrb.mxu2 %v8605_v21  ;;  %6463 = vmatpush.bf16.msrb.mxu3 %v9405_v24  ;;  %v6219_v57 = vadd.f32 %v6218_v55, %v3943_v52  ;;  %v8808_v21 = vld [vmem:[%s16331_s10 + $0x1d8] sm:$0xf]  ;;  %v10631_v24 = vld [vmem:[%s16331_s10 + $0x238] sm:$0xf0]  ;;  %v8913_v25 = vor.u32 %v10644_v19, %v8910_v20  ;;  %v9713_v26 = vor.u32 %v10844_v34, %v9710_v3  ;;  %v10945_v19 = vld [vmem:[%s16331_s10 + $0xc0c] sm:$0xf] }
 0x420   :  { %v8809_v28 = vor.u32 %v10631_v24, %v8808_v21  ;;  %v8613_v20 = vor.u32 %v10569_v47, %v8610_v49  ;;  %v8916_v47 = vld [vmem:[%s16331_s10 + $0x2a8] sm:$0xf]  ;;  %v10657_v49 = vld [vmem:[%s16331_s10 + $0x308] sm:$0xf0] }
 0x421   :  { %6425 = vmatmul.bf16.vlgmr.msrb.gmra.mxu0 %v14136_v17  ;;  %6438 = vmatmul.bf16.vlgmr.msrb.gmra.mxu1 %v14138_v53  ;;  %v6232_v41 = vadd.f32 %v6231_v56, %v6219_v57  ;;  %v9410_v57 = vld [vmem:[%s16331_s10 + $0x6ec] sm:$0xf0] }
 0x422   :  { %6469 = vmatpush.bf16.msra.mxu0 %v9309_v30  ;;  %6482 = vmatpush.bf16.msra.mxu1 %v10109_v60  ;;  %v9608_v30 = vld [vmem:[%s16331_s10 + $0x818] sm:$0xf]  ;;  %v10831_v60 = vld [vmem:[%s16331_s10 + $0x878] sm:$0xf0]  ;;  %v9413_v34 = vor.u32 %v10769_v5, %v9410_v57  ;;  %v10857_v57 = vld [vmem:[%s16331_s10 + $0x948] sm:$0xf0] }
 0x423   :  { %6495 = vmatpush.bf16.msra.mxu2 %v9313_v33  ;;  %6508 = vmatpush.bf16.msra.mxu3 %v10113_v6  ;;  %v8810_v33 = vld [vmem:[%s16331_s10 + $0x23c] sm:$0xf0]  ;;  %v10819_v6 = vld [vmem:[%s16331_s10 + $0x81c] sm:$0xf]  ;;  %v9609_v38 = vor.u32 %v10831_v60, %v9608_v30  ;;  %v6659_v45 = vmax.f32 %v6232_v41, 0.0 }
 0x424   :  { %6451 = vmatmul.bf16.vlgmr.msrb.gmra.mxu2 %v14136_v17  ;;  %6464 = vmatmul.bf16.vlgmr.msrb.gmra.mxu3 %v14138_v53  ;;  %v8813_v1 = vor.u32 %v10619_v59, %v8810_v33  ;;  %v9613_v61 = vor.u32 %v10819_v6, %v9610_v35  ;;  %v10118_v41 = vld [vmem:[%s16331_s10 + $0xc6c] sm:$0xf0]  ;;  %v10720_v30 = vld [vmem:[%s16331_s10 + $0x504] sm:$0xf]  ;;  %v9218_v60 = vld [vmem:[%s16331_s10 + $0x564] sm:$0xf0] }
 0x425   :  { %v10121_v24 = vor.u32 %v10945_v19, %v10118_v41  ;;  %v10920_v59 = vld [vmem:[%s16331_s10 + $0xb44] sm:$0xf]  ;;  %v9116_v6 = vld [vmem:[%s16331_s10 + $0x438] sm:$0xf]  ;;  %v10707_v35 = vld [vmem:[%s16331_s10 + $0x498] sm:$0xf0] }
 0x426   :  { %6470 = vmatpush.bf16.msra.mxu0 %v9209_v14  ;;  %6483 = vmatpush.bf16.msra.mxu1 %v10009_v32  ;;  %v6220_v0 = vpop.f32.mrf.mxu0  ;;  %v6233_v27 = vpop.f32.mrf.mxu1  ;;  %v8708_v14 = vld [vmem:[%s16331_s10 + $0x110] sm:$0xf]  ;;  %v10606_v32 = vld [vmem:[%s16331_s10 + $0x170] sm:$0xf0]  ;;  %v8816_v19 = vld [vmem:[%s16331_s10 + $0x1e0] sm:$0xf] }
 0x427   :  { %6496 = vmatpush.bf16.msra.mxu2 %v9213_v16  ;;  %6509 = vmatpush.bf16.msra.mxu3 %v10013_v9  ;;  %v6244_v4 = vpop.f32.mrf.mxu2  ;;  %v6257_v31 = vpop.f32.mrf.mxu3  ;;  %v9508_v16 = vld [vmem:[%s16331_s10 + $0x750] sm:$0xf]  ;;  %v10806_v9 = vld [vmem:[%s16331_s10 + $0x7b0] sm:$0xf0]  ;;  %v8709_v52 = vor.u32 %v10606_v32, %v8708_v14  ;;  %v9916_v27 = vld [vmem:[%s16331_s10 + $0xa78] sm:$0xf] }
 0x428   :  { %v6245_v2 = vadd.f32 %v6244_v4, %v3944_v10  ;;  %v9509_v15 = vor.u32 %v10806_v9, %v9508_v16  ;;  %v10117_v10 = vor.u32 %v10957_v58, %v10116_v63  ;;  %v10018_v4 = vld [vmem:[%s16331_s10 + $0xba4] sm:$0xf0]  ;;  %v9118_v14 = vld [vmem:[%s16331_s10 + $0x49c] sm:$0xf0]  ;;  %v10895_v32 = vld [vmem:[%s16331_s10 + $0xa7c] sm:$0xf] }
 0x429   :  { %v10021_v0 = vor.u32 %v10920_v59, %v10018_v4  ;;  %v3945_v16 = vperm.slane %v15619_v12, 2  ;;  %v9016_v9 = vld [vmem:[%s16331_s10 + $0x370] sm:$0xf]  ;;  %v10845_v58 = vld [vmem:[%s16331_s10 + $0x8ec] sm:$0xf] }
 0x42a   :  { %6471 = vmatpush.bf16.msra.mxu0 %v9109_v50  ;;  %6484 = vmatpush.bf16.msra.mxu1 %v9909_v46  ;;  %v6258_v39 = vadd.f32 %v6257_v31, %v6245_v2  ;;  %v8608_v46 = vld [vmem:[%s16331_s10 + $0x48] sm:$0xf]  ;;  %v9221_v2 = vor.u32 %v10720_v30, %v9218_v60  ;;  %v8918_v63 = vld [vmem:[%s16331_s10 + $0x30c] sm:$0xf0]  ;;  %v10632_v41 = vld [vmem:[%s16331_s10 + $0x240] sm:$0xf0] }
 0x42b   :  { %6497 = vmatpush.bf16.msra.mxu2 %v9113_v8  ;;  %6510 = vmatpush.bf16.msra.mxu3 %v9913_v18  ;;  %v9408_v8 = vld [vmem:[%s16331_s10 + $0x688] sm:$0xf]  ;;  %v10781_v18 = vld [vmem:[%s16331_s10 + $0x6e8] sm:$0xf0]  ;;  %v8817_v4 = vor.u32 %v10632_v41, %v8816_v19 }
 0x42c   :  { %v6660_v50 = vmax.f32 %v6258_v39, 0.0  ;;  %v9409_v11 = vor.u32 %v10781_v18, %v9408_v8  ;;  %v9918_v39 = vld [vmem:[%s16331_s10 + $0xadc] sm:$0xf0] }
 0x42d   :  { %v9921_v43 = vor.u32 %v10895_v32, %v9918_v39  ;;  %v10795_v39 = vld [vmem:[%s16331_s10 + $0x75c] sm:$0xf] }
 0x42e   :  { %6472 = vmatpush.bf16.msra.mxu0 %v9009_v51  ;;  %6485 = vmatpush.bf16.msra.mxu1 %v9809_v62  ;;  %v15744_v40 = vpack.c.bf16 %v6660_v50, %v6659_v45  ;;  %v9316_v51 = vld [vmem:[%s16331_s10 + $0x5c8] sm:$0xf]  ;;  %v10757_v62 = vld [vmem:[%s16331_s10 + $0x628] sm:$0xf0]  ;;  %v10882_v45 = vld [vmem:[%s16331_s10 + $0xa10] sm:$0xf0] }
 0x42f   :  { %6498 = vmatpush.bf16.msra.mxu2 %v9013_v7  ;;  %6511 = vmatpush.bf16.msra.mxu3 %v9813_v29  ;;  %v6246_v55 = vpop.f32.mrf.mxu2  ;;  %v6259_v56 = vpop.f32.mrf.mxu3  ;;  %v10745_v7 = vld [vmem:[%s16331_s10 + $0x5cc] sm:$0xf]  ;;  %v8609_v29 = vor.u32 %v10581_v13, %v8608_v46  ;;  %v9317_v3 = vor.u32 %v10757_v62, %v9316_v51  ;;  %v10670_v50 = vld [vmem:[%s16331_s10 + $0x374] sm:$0xf]  ;;  %v9018_v46 = vld [vmem:[%s16331_s10 + $0x3d4] sm:$0xf0] }
 0x430   :  { %v9321_v21 = vor.u32 %v10745_v7, %v9318_v36  ;;  %v9021_v5 = vor.u32 %v10670_v50, %v9018_v46  ;;  %v9716_v56 = vld [vmem:[%s16331_s10 + $0x8e8] sm:$0xf]  ;;  %v10645_v51 = vld [vmem:[%s16331_s10 + $0x2ac] sm:$0xf]  ;;  %v9718_v7 = vld [vmem:[%s16331_s10 + $0x94c] sm:$0xf0] }
 0x431   :  { %v9717_v36 = vor.u32 %v10857_v57, %v9716_v56  ;;  %v6709_v32 = vrot.slane %v15744_v40, 3  ;;  %v10570_v50 = vld [vmem:[%s16331_s10 + $0x54] sm:$0xf] }
 0x432   :  { %6473 = vmatpush.bf16.msra.mxu0 %v8909_v22  ;;  %6486 = vmatpush.bf16.msra.mxu1 %v9709_v23  ;;  %v9216_v22 = vld [vmem:[%s16331_s10 + $0x500] sm:$0xf]  ;;  %v10732_v23 = vld [vmem:[%s16331_s10 + $0x560] sm:$0xf0]  ;;  %v10958_v57 = vld [vmem:[%s16331_s10 + $0xc70] sm:$0xf0] }
 0x433   :  { %6499 = vmatpush.bf16.msra.mxu2 %v8913_v25  ;;  %6512 = vmatpush.bf16.msra.mxu3 %v9713_v26  ;;  %v10016_v25 = vld [vmem:[%s16331_s10 + $0xb40] sm:$0xf]  ;;  %v10932_v26 = vld [vmem:[%s16331_s10 + $0xba0] sm:$0xf0]  ;;  %v9217_v31 = vor.u32 %v10732_v23, %v9216_v22 }
 0x434   :  { %v10017_v33 = vor.u32 %v10932_v26, %v10016_v25  ;;  %v10620_v22 = vld [vmem:[%s16331_s10 + $0x1e4] sm:$0xf]  ;;  %v9618_v26 = vld [vmem:[%s16331_s10 + $0x884] sm:$0xf0] }
 0x435   :  { %v10820_v25 = vld [vmem:[%s16331_s10 + $0x824] sm:$0xf] }
 0x436   :  { %6474 = vmatpush.bf16.msra.mxu0 %v8809_v28  ;;  %6487 = vmatpush.bf16.msra.mxu1 %v9609_v38  ;;  %v10907_v28 = vld [vmem:[%s16331_s10 + $0xad8] sm:$0xf0] }
 0x437   :  { %6500 = vmatpush.bf16.msra.mxu2 %v8813_v1  ;;  %6513 = vmatpush.bf16.msra.mxu3 %v9613_v61  ;;  %v10695_v38 = vld [vmem:[%s16331_s10 + $0x43c] sm:$0xf]  ;;  %v9117_v1 = vor.u32 %v10707_v35, %v9116_v6  ;;  %v9917_v61 = vor.u32 %v10907_v28, %v9916_v27  ;;  %v9516_v35 = vld [vmem:[%s16331_s10 + $0x758] sm:$0xf]  ;;  %v9621_v27 = vor.u32 %v10820_v25, %v9618_v26  ;;  %v10721_v25 = vld [vmem:[%s16331_s10 + $0x50c] sm:$0xf] }
 0x438   :  { %v9121_v48 = vor.u32 %v10695_v38, %v9118_v14  ;;  %v10607_v6 = vld [vmem:[%s16331_s10 + $0x178] sm:$0xf0]  ;;  %v8718_v14 = vld [vmem:[%s16331_s10 + $0x17c] sm:$0xf0]  ;;  %v9226_v26 = vld [vmem:[%s16331_s10 + $0x56c] sm:$0xf0] }
 0x439   :  { %v10807_v28 = vld [vmem:[%s16331_s10 + $0x7b8] sm:$0xf0] }
 0x43a   :  { %6475 = vmatpush.bf16.msra.mxu0 %v8709_v52  ;;  %6488 = vmatpush.bf16.msra.mxu1 %v9509_v15  ;;  %v10870_v52 = vld [vmem:[%s16331_s10 + $0x9b4] sm:$0xf]  ;;  %v9818_v15 = vld [vmem:[%s16331_s10 + $0xa14] sm:$0xf0]  ;;  %v10595_v38 = vld [vmem:[%s16331_s10 + $0x11c] sm:$0xf] }
 0x43b   :  { %6501 = vmatpush.bf16.msra.mxu2 %v8713_v37  ;;  %6514 = vmatpush.bf16.msra.mxu3 %v9513_v54  ;;  %v9017_v37 = vor.u32 %v10682_v42, %v9016_v9  ;;  %v9817_v54 = vor.u32 %v10882_v45, %v9816_v44  ;;  %v9821_v55 = vor.u32 %v10870_v52, %v9818_v15  ;;  %v8616_v9 = vld [vmem:[%s16331_s10 + $0x50] sm:$0xf]  ;;  %v10582_v42 = vld [vmem:[%s16331_s10 + $0xb0] sm:$0xf0] }
 0x43c   :  { %v9416_v44 = vld [vmem:[%s16331_s10 + $0x690] sm:$0xf]  ;;  %v10782_v45 = vld [vmem:[%s16331_s10 + $0x6f0] sm:$0xf0]  ;;  %v8721_v52 = vor.u32 %v10595_v38, %v8718_v14  ;;  %v10896_v38 = vld [vmem:[%s16331_s10 + $0xa84] sm:$0xf] }
 0x43d   :  { %v9926_v14 = vld [vmem:[%s16331_s10 + $0xae4] sm:$0xf0] }
 0x43e   :  { %6476 = vmatpush.bf16.msra.mxu0 %v8609_v29  ;;  %6489 = vmatpush.bf16.msra.mxu1 %v9409_v11  ;;  %v6270_v13 = vpop.f32.mrf.mxu0  ;;  %v6283_v8 = vpop.f32.mrf.mxu1  ;;  %v3946_v29 = vperm.slane %v15619_v12, 3  ;;  %v8917_v11 = vor.u32 %v10657_v49, %v8916_v47  ;;  %v9324_v47 = vld [vmem:[%s16331_s10 + $0x5d0] sm:$0xf]  ;;  %v10758_v49 = vld [vmem:[%s16331_s10 + $0x630] sm:$0xf0] }
 0x43f   :  { %6502 = vmatpush.bf16.msra.mxu2 %v8613_v20  ;;  %6515 = vmatpush.bf16.msra.mxu3 %v9413_v34  ;;  %v6271_v18 = vadd.f32 %v6270_v13, %v3945_v16  ;;  %v8921_v20 = vor.u32 %v10645_v51, %v8918_v63  ;;  %v9721_v34 = vor.u32 %v10845_v58, %v9718_v7  ;;  %v8618_v13 = vld [vmem:[%s16331_s10 + $0xb4] sm:$0xf0]  ;;  %v10746_v51 = vld [vmem:[%s16331_s10 + $0x5d4] sm:$0xf] }
 0x440   :  { %v8617_v63 = vor.u32 %v10582_v42, %v8616_v9  ;;  %v9417_v58 = vor.u32 %v10782_v45, %v9416_v44  ;;  %v9326_v7 = vld [vmem:[%s16331_s10 + $0x634] sm:$0xf0]  ;;  %v9929_v9 = vor.u32 %v10896_v38, %v9926_v14  ;;  %v9026_v44 = vld [vmem:[%s16331_s10 + $0x3dc] sm:$0xf0]  ;;  %v10871_v45 = vld [vmem:[%s16331_s10 + $0x9bc] sm:$0xf] }
 0x441   :  { %6477 = vmatmul.bf16.vlgmr.msra.gmra.mxu0 %v14136_v17  ;;  %6490 = vmatmul.bf16.vlgmr.msra.gmra.mxu1 %v14138_v53  ;;  %v6284_v62 = vadd.f32 %v6283_v8, %v6271_v18  ;;  %v10770_v8 = vld [vmem:[%s16331_s10 + $0x694] sm:$0xf]  ;;  %v9418_v18 = vld [vmem:[%s16331_s10 + $0x6f4] sm:$0xf0] }
 0x442   :  { %6521 = vmatpush.bf16.msrb.mxu0 %v9317_v3  ;;  %6534 = vmatpush.bf16.msrb.mxu1 %v10117_v10  ;;  %v9616_v3 = vld [vmem:[%s16331_s10 + $0x820] sm:$0xf]  ;;  %v10832_v10 = vld [vmem:[%s16331_s10 + $0x880] sm:$0xf0]  ;;  %v9421_v19 = vor.u32 %v10770_v8, %v9418_v18  ;;  %v9824_v42 = vld [vmem:[%s16331_s10 + $0x9b8] sm:$0xf] }
 0x443   :  { %6547 = vmatpush.bf16.msrb.mxu2 %v9321_v21  ;;  %6560 = vmatpush.bf16.msrb.mxu3 %v10121_v24  ;;  %v8818_v24 = vld [vmem:[%s16331_s10 + $0x244] sm:$0xf0]  ;;  %v8924_v8 = vld [vmem:[%s16331_s10 + $0x2b0] sm:$0xf]  ;;  %v10658_v18 = vld [vmem:[%s16331_s10 + $0x310] sm:$0xf0] }
 0x444   :  { %6503 = vmatmul.bf16.vlgmr.msra.gmra.mxu2 %v14136_v17  ;;  %6516 = vmatmul.bf16.vlgmr.msra.gmra.mxu3 %v14138_v53  ;;  %v9424_v38 = vld [vmem:[%s16331_s10 + $0x698] sm:$0xf] }
 0x446   :  { %6522 = vmatpush.bf16.msrb.mxu0 %v9217_v31  ;;  %6535 = vmatpush.bf16.msrb.mxu1 %v10017_v33  ;;  %v6272_v60 = vpop.f32.mrf.mxu0  ;;  %v6285_v59 = vpop.f32.mrf.mxu1  ;;  %v9617_v31 = vor.u32 %v10832_v10, %v9616_v3  ;;  %v8716_v33 = vld [vmem:[%s16331_s10 + $0x118] sm:$0xf]  ;;  %v9224_v3 = vld [vmem:[%s16331_s10 + $0x508] sm:$0xf]  ;;  %v10733_v10 = vld [vmem:[%s16331_s10 + $0x568] sm:$0xf0] }
 0x447   :  { %6548 = vmatpush.bf16.msrb.mxu2 %v9221_v2  ;;  %6561 = vmatpush.bf16.msrb.mxu3 %v10021_v0  ;;  %v6296_v23 = vpop.f32.mrf.mxu2  ;;  %v6309_v21 = vpop.f32.mrf.mxu3  ;;  %v8821_v0 = vor.u32 %v10620_v22, %v8818_v24  ;;  %v9329_v22 = vor.u32 %v10746_v51, %v9326_v7  ;;  %v10933_v24 = vld [vmem:[%s16331_s10 + $0xba8] sm:$0xf0]  ;;  %v10026_v60 = vld [vmem:[%s16331_s10 + $0xbac] sm:$0xf0]  ;;  %v9225_v59 = vor.u32 %v10733_v10, %v9224_v3 }
 0x448   :  { %v6297_v30 = vadd.f32 %v6296_v23, %v3946_v29  ;;  %v10946_v29 = vld [vmem:[%s16331_s10 + $0xc14] sm:$0xf]  ;;  %v8925_v51 = vor.u32 %v10658_v18, %v8924_v8  ;;  %v10821_v3 = vld [vmem:[%s16331_s10 + $0x82c] sm:$0xf]  ;;  %v9626_v10 = vld [vmem:[%s16331_s10 + $0x88c] sm:$0xf0] }
 0x44a   :  { %6523 = vmatpush.bf16.msrb.mxu0 %v9117_v1  ;;  %6536 = vmatpush.bf16.msrb.mxu1 %v9917_v61  ;;  %v6310_v2 = vadd.f32 %v6309_v21, %v6297_v30  ;;  %v9518_v1 = vld [vmem:[%s16331_s10 + $0x7bc] sm:$0xf0]  ;;  %v6661_v61 = vmax.f32 %v6284_v62, 0.0  ;;  %v6747_v62 = vsel %vm6724_vm4, %v15744_v40, %v6709_v32  ;;  %v8621_v40 = vor.u32 %v10570_v50, %v8618_v13  ;;  %v10024_v21 = vld [vmem:[%s16331_s10 + $0xb48] sm:$0xf] }
 0x44b   :  { %6549 = vmatpush.bf16.msrb.mxu2 %v9121_v48  ;;  %6562 = vmatpush.bf16.msrb.mxu3 %v9921_v43  ;;  %v8717_v48 = vor.u32 %v10607_v6, %v8716_v33  ;;  %v9517_v43 = vor.u32 %v10807_v28, %v9516_v35  ;;  %v9521_v15 = vor.u32 %v10795_v39, %v9518_v1  ;;  %v10921_v30 = vld [vmem:[%s16331_s10 + $0xb4c] sm:$0xf]  ;;  %v10708_v33 = vld [vmem:[%s16331_s10 + $0x4a0] sm:$0xf0]  ;;  %v9126_v28 = vld [vmem:[%s16331_s10 + $0x4a4] sm:$0xf0] }
 0x44c   :  { %v6662_v16 = vmax.f32 %v6310_v2, 0.0  ;;  %v9229_v6 = vor.u32 %v10721_v25, %v9226_v26  ;;  %v10029_v35 = vor.u32 %v10921_v30, %v10026_v60  ;;  %v9924_v2 = vld [vmem:[%s16331_s10 + $0xa80] sm:$0xf]  ;;  %v9024_v1 = vld [vmem:[%s16331_s10 + $0x378] sm:$0xf]  ;;  %v9629_v60 = vor.u32 %v10821_v3, %v9626_v10 }
 0x44d   :  { %v9826_v50 = vld [vmem:[%s16331_s10 + $0xa1c] sm:$0xf0]  ;;  %v10608_v26 = vld [vmem:[%s16331_s10 + $0x180] sm:$0xf0] }
 0x44e   :  { %6524 = vmatpush.bf16.msrb.mxu0 %v9017_v37  ;;  %6537 = vmatpush.bf16.msrb.mxu1 %v9817_v54  ;;  %v6681_v46 = vpack.c.bf16 %v6662_v16, %v6661_v61  ;;  %v10683_v61 = vld [vmem:[%s16331_s10 + $0x3d8] sm:$0xf0]  ;;  %v8724_v25 = vld [vmem:[%s16331_s10 + $0x120] sm:$0xf]  ;;  %v10684_v3 = vld [vmem:[%s16331_s10 + $0x3e0] sm:$0xf0] }
 0x44f   :  { %6550 = vmatpush.bf16.msrb.mxu2 %v9021_v5  ;;  %6563 = vmatpush.bf16.msrb.mxu3 %v9821_v55  ;;  %v6298_v37 = vpop.f32.mrf.mxu2  ;;  %v6311_v54 = vpop.f32.mrf.mxu3  ;;  %v10124_v5 = vld [vmem:[%s16331_s10 + $0xc10] sm:$0xf]  ;;  %v9832_v10 = vld [vmem:[%s16331_s10 + $0x9c0] sm:$0xf] }
 0x450   :  { %v6710_v55 = vrot.slane %v6681_v46, 6  ;;  %v6711_v56 = vrot.slane %v6681_v46, 1  ;;  %v9829_v54 = vor.u32 %v10871_v45, %v9826_v50  ;;  %v10132_v45 = vld [vmem:[%s16331_s10 + $0xc18] sm:$0xf]  ;;  %v10959_v50 = vld [vmem:[%s16331_s10 + $0xc78] sm:$0xf0] }
 0x452   :  { %6525 = vmatpush.bf16.msrb.mxu0 %v8917_v11  ;;  %6538 = vmatpush.bf16.msrb.mxu1 %v9717_v36  ;;  %v10126_v11 = vld [vmem:[%s16331_s10 + $0xc74] sm:$0xf0]  ;;  %v6750_v36 = vsel %vm6728_vm5, %v6710_v55, %v6711_v56  ;;  %v10846_v56 = vld [vmem:[%s16331_s10 + $0x8f4] sm:$0xf] }
 0x453   :  { %6551 = vmatpush.bf16.msrb.mxu2 %v8921_v20  ;;  %6564 = vmatpush.bf16.msrb.mxu3 %v9721_v34  ;;  %v15985_v41 = vsel %vm3474_vm1, %v6747_v62, %v6750_v36  ;;  %v9325_v20 = vor.u32 %v10758_v49, %v9324_v47  ;;  %v10125_v34 = vor.u32 %v10958_v57, %v10124_v5  ;;  %v9724_v47 = vld [vmem:[%s16331_s10 + $0x8f0] sm:$0xf]  ;;  %v10858_v49 = vld [vmem:[%s16331_s10 + $0x950] sm:$0xf0]  ;;  %v8926_v55 = vld [vmem:[%s16331_s10 + $0x314] sm:$0xf0] }
 0x454   :  { %v10129_v23 = vor.u32 %v10946_v29, %v10126_v11  ;;  %v10646_v5 = vld [vmem:[%s16331_s10 + $0x2b4] sm:$0xf]  ;;  %v9726_v57 = vld [vmem:[%s16331_s10 + $0x954] sm:$0xf0]  ;;  %v9725_v62 = vor.u32 %v10858_v49, %v9724_v47  ;;  %v9624_v11 = vld [vmem:[%s16331_s10 + $0x828] sm:$0xf] }
 0x455   :  { %v8929_v7 = vor.u32 %v10646_v5, %v8926_v55  ;;  %v9729_v29 = vor.u32 %v10846_v56, %v9726_v57  ;;  %v10833_v36 = vld [vmem:[%s16331_s10 + $0x888] sm:$0xf0]  ;;  %v9232_v47 = vld [vmem:[%s16331_s10 + $0x510] sm:$0xf]  ;;  %v10734_v49 = vld [vmem:[%s16331_s10 + $0x570] sm:$0xf0] }
 0x456   :  { %6526 = vmatpush.bf16.msrb.mxu0 %v8817_v4  ;;  %6539 = vmatpush.bf16.msrb.mxu1 %v9617_v31  ;;  %v10025_v4 = vor.u32 %v10933_v24, %v10024_v21  ;;  %v9124_v31 = vld [vmem:[%s16331_s10 + $0x440] sm:$0xf]  ;;  %v9625_v24 = vor.u32 %v10833_v36, %v9624_v11  ;;  %v10032_v5 = vld [vmem:[%s16331_s10 + $0xb50] sm:$0xf]  ;;  %v10934_v55 = vld [vmem:[%s16331_s10 + $0xbb0] sm:$0xf0]  ;;  %v9233_v57 = vor.u32 %v10734_v49, %v9232_v47 }
 0x457   :  { %6552 = vmatpush.bf16.msrb.mxu2 %v8821_v0  ;;  %6565 = vmatpush.bf16.msrb.mxu3 %v9621_v27  ;;  %v10908_v0 = vld [vmem:[%s16331_s10 + $0xae0] sm:$0xf0]  ;;  %v9125_v32 = vor.u32 %v10708_v33, %v9124_v31  ;;  %v8726_v33 = vld [vmem:[%s16331_s10 + $0x184] sm:$0xf0]  ;;  %v3948_v56 = vperm.slane %v15619_v12, 5 }
 0x458   :  { %v10696_v27 = vld [vmem:[%s16331_s10 + $0x444] sm:$0xf]  ;;  %v9925_v39 = vor.u32 %v10908_v0, %v9924_v2  ;;  %v8725_v2 = vor.u32 %v10608_v26, %v8724_v25  ;;  %v8632_v47 = vld [vmem:[%s16331_s10 + $0x60] sm:$0xf] }
 0x459   :  { %v9129_v16 = vor.u32 %v10696_v27, %v9126_v28  ;;  %v10596_v31 = vld [vmem:[%s16331_s10 + $0x124] sm:$0xf]  ;;  %v8624_v27 = vld [vmem:[%s16331_s10 + $0x58] sm:$0xf]  ;;  %v10583_v28 = vld [vmem:[%s16331_s10 + $0xb8] sm:$0xf0] }
 0x45a   :  { %6527 = vmatpush.bf16.msrb.mxu0 %v8717_v48  ;;  %6540 = vmatpush.bf16.msrb.mxu1 %v9517_v43  ;;  %v10883_v48 = vld [vmem:[%s16331_s10 + $0xa18] sm:$0xf0]  ;;  %v8729_v14 = vor.u32 %v10596_v31, %v8726_v33  ;;  %v3950_v33 = vperm.slane %v15619_v12, 7 }
 0x45b   :  { %6553 = vmatpush.bf16.msrb.mxu2 %v8721_v52  ;;  %6566 = vmatpush.bf16.msrb.mxu3 %v9521_v15  ;;  %v10671_v43 = vld [vmem:[%s16331_s10 + $0x37c] sm:$0xf]  ;;  %v9025_v15 = vor.u32 %v10683_v61, %v9024_v1  ;;  %v9825_v13 = vor.u32 %v10883_v48, %v9824_v42  ;;  %v8626_v61 = vld [vmem:[%s16331_s10 + $0xbc] sm:$0xf0] }
 0x45c   :  { %v9029_v37 = vor.u32 %v10671_v43, %v9026_v44  ;;  %v10571_v1 = vld [vmem:[%s16331_s10 + $0x5c] sm:$0xf]  ;;  %v9426_v48 = vld [vmem:[%s16331_s10 + $0x6fc] sm:$0xf0]  ;;  %v9332_v43 = vld [vmem:[%s16331_s10 + $0x5d8] sm:$0xf] }
 0x45d   :  { %v10771_v42 = vld [vmem:[%s16331_s10 + $0x69c] sm:$0xf]  ;;  %v8629_v8 = vor.u32 %v10571_v1, %v8626_v61 }
 0x45e   :  { %6528 = vmatpush.bf16.msrb.mxu0 %v8617_v63  ;;  %6541 = vmatpush.bf16.msrb.mxu1 %v9417_v58  ;;  %v16063_v46 = vpop.f32.mrf.mxu0  ;;  %v16065_v52 = vpop.f32.mrf.mxu1  ;;  %v8824_v63 = vld [vmem:[%s16331_s10 + $0x1e8] sm:$0xf]  ;;  %v10633_v58 = vld [vmem:[%s16331_s10 + $0x248] sm:$0xf0]  ;;  %v10759_v44 = vld [vmem:[%s16331_s10 + $0x638] sm:$0xf0]  ;;  %v9429_v18 = vor.u32 %v10771_v42, %v9426_v48 }
 0x45f   :  { %6554 = vmatpush.bf16.msrb.mxu2 %v8621_v40  ;;  %6567 = vmatpush.bf16.msrb.mxu3 %v9421_v19  ;;  %v10621_v40 = vld [vmem:[%s16331_s10 + $0x1ec] sm:$0xf]  ;;  %v8825_v21 = vor.u32 %v10633_v58, %v8824_v63  ;;  %v9932_v58 = vld [vmem:[%s16331_s10 + $0xa88] sm:$0xf] }
 0x460   :  { %v10709_v63 = vld [vmem:[%s16331_s10 + $0x4a8] sm:$0xf0]  ;;  %v8732_v48 = vld [vmem:[%s16331_s10 + $0x128] sm:$0xf] }
 0x461   :  { %6529 = vmatmul.bf16.vlgmr.msrb.gmra.mxu0 %v14136_v17  ;;  %6542 = vmatmul.bf16.vlgmr.msrb.gmra.mxu1 %v14138_v53 }
 0x462   :  { %6573 = vmatpush.bf16.msra.mxu0 %v9325_v20  ;;  %6586 = vmatpush.bf16.msra.mxu1 %v10125_v34  ;;  %v8826_v34 = vld [vmem:[%s16331_s10 + $0x24c] sm:$0xf0] }
 0x463   :  { %6599 = vmatpush.bf16.msra.mxu2 %v9329_v22  ;;  %6612 = vmatpush.bf16.msra.mxu3 %v10129_v23  ;;  %v8829_v30 = vor.u32 %v10621_v40, %v8826_v34  ;;  %v9032_v34 = vld [vmem:[%s16331_s10 + $0x380] sm:$0xf] }
 0x464   :  { %6555 = vmatmul.bf16.vlgmr.msrb.gmra.mxu2 %v14136_v17  ;;  %6568 = vmatmul.bf16.vlgmr.msrb.gmra.mxu3 %v14138_v53  ;;  %v9033_v26 = vor.u32 %v10684_v3, %v9032_v34  ;;  %v16288_v34 = vld [vmem:[%s16332_s11 + $0x10] sm:$0xff] }
 0x465   :  { %v3951_v3 = vperm.slane %v16288_v34, 0 }
 0x466   :  { %6574 = vmatpush.bf16.msra.mxu0 %v9225_v59  ;;  %6587 = vmatpush.bf16.msra.mxu1 %v10025_v4  ;;  %v6324_v22 = vpop.f32.mrf.mxu0  ;;  %v6337_v23 = vpop.f32.mrf.mxu1  ;;  %v9524_v59 = vld [vmem:[%s16331_s10 + $0x760] sm:$0xf]  ;;  %v10808_v4 = vld [vmem:[%s16331_s10 + $0x7c0] sm:$0xf0] }
 0x467   :  { %6600 = vmatpush.bf16.msra.mxu2 %v9229_v6  ;;  %6613 = vmatpush.bf16.msra.mxu3 %v10029_v35  ;;  %v16106_v19 = vpop.f32.mrf.mxu2  ;;  %v16108_v20 = vpop.f32.mrf.mxu3  ;;  %v10796_v6 = vld [vmem:[%s16331_s10 + $0x764] sm:$0xf]  ;;  %v9526_v35 = vld [vmem:[%s16331_s10 + $0x7c4] sm:$0xf0]  ;;  %v9525_v0 = vor.u32 %v10808_v4, %v9524_v59  ;;  %v3949_v23 = vperm.slane %v15619_v12, 6 }
 0x468   :  { %v6349_v11 = vadd.f32 %v16106_v19, %v3948_v56  ;;  %v10884_v19 = vld [vmem:[%s16331_s10 + $0xa20] sm:$0xf0]  ;;  %v10659_v59 = vld [vmem:[%s16331_s10 + $0x318] sm:$0xf0] }
 0x469   :  { %v10784_v56 = vld [vmem:[%s16331_s10 + $0x700] sm:$0xf0] }
 0x46a   :  { %6575 = vmatpush.bf16.msra.mxu0 %v9125_v32  ;;  %6588 = vmatpush.bf16.msra.mxu1 %v9925_v39  ;;  %v9529_v32 = vor.u32 %v10796_v6, %v9526_v35  ;;  %v10783_v39 = vld [vmem:[%s16331_s10 + $0x6f8] sm:$0xf0]  ;;  %v6362_v25 = vadd.f32 %v16108_v20, %v6349_v11 }
 0x46b   :  { %6601 = vmatpush.bf16.msra.mxu2 %v9129_v16  ;;  %6614 = vmatpush.bf16.msra.mxu3 %v9929_v9  ;;  %v10859_v20 = vld [vmem:[%s16331_s10 + $0x958] sm:$0xf0] }
 0x46c   :  { %v6664_v6 = vmax.f32 %v6362_v25, 0.0 }
 0x46e   :  { %6576 = vmatpush.bf16.msra.mxu0 %v9025_v15  ;;  %6589 = vmatpush.bf16.msra.mxu1 %v9825_v13  ;;  %v8625_v15 = vor.u32 %v10583_v28, %v8624_v27  ;;  %v9425_v13 = vor.u32 %v10783_v39, %v9424_v38  ;;  %v10634_v27 = vld [vmem:[%s16331_s10 + $0x250] sm:$0xf0] }
 0x46f   :  { %6602 = vmatpush.bf16.msra.mxu2 %v9029_v37  ;;  %6615 = vmatpush.bf16.msra.mxu3 %v9829_v54  ;;  %v6350_v16 = vpop.f32.mrf.mxu2  ;;  %v6363_v9 = vpop.f32.mrf.mxu3  ;;  %v9333_v37 = vor.u32 %v10759_v44, %v9332_v43  ;;  %v10133_v54 = vor.u32 %v10959_v50, %v10132_v45  ;;  %v10609_v44 = vld [vmem:[%s16331_s10 + $0x188] sm:$0xf0]  ;;  %v9532_v45 = vld [vmem:[%s16331_s10 + $0x768] sm:$0xf] }
 0x470   :  { %v10809_v50 = vld [vmem:[%s16331_s10 + $0x7c8] sm:$0xf0] }
 0x472   :  { %6577 = vmatpush.bf16.msra.mxu0 %v8925_v51  ;;  %6590 = vmatpush.bf16.msra.mxu1 %v9725_v62  ;;  %v10033_v51 = vor.u32 %v10934_v55, %v10032_v5  ;;  %v9132_v62 = vld [vmem:[%s16331_s10 + $0x448] sm:$0xf]  ;;  %v10584_v5 = vld [vmem:[%s16331_s10 + $0xc0] sm:$0xf0]  ;;  %v9432_v55 = vld [vmem:[%s16331_s10 + $0x6a0] sm:$0xf] }
 0x473   :  { %6603 = vmatpush.bf16.msra.mxu2 %v8929_v7  ;;  %6616 = vmatpush.bf16.msra.mxu3 %v9729_v29  ;;  %v10909_v7 = vld [vmem:[%s16331_s10 + $0xae8] sm:$0xf0]  ;;  %v3947_v29 = vperm.slane %v15619_v12, 4  ;;  %v9133_v36 = vor.u32 %v10709_v63, %v9132_v62  ;;  %v10834_v12 = vld [vmem:[%s16331_s10 + $0x890] sm:$0xf0] }
 0x474   :  { %v9933_v40 = vor.u32 %v10909_v7, %v9932_v58  ;;  %v8633_v58 = vor.u32 %v10584_v5, %v8632_v47  ;;  %v9433_v7 = vor.u32 %v10784_v56, %v9432_v55  ;;  %v3956_v47 = vperm.slane %v16288_v34, 5 }
 0x475   :  { %v6323_v22 = vadd.f32 %v16063_v46, %v3947_v29  ;;  %v9732_v46 = vld [vmem:[%s16331_s10 + $0x8f8] sm:$0xf]  ;;  %v3957_v56 = vperm.slane %v16288_v34, 6 }
 0x476   :  { %6578 = vmatpush.bf16.msra.mxu0 %v8825_v21  ;;  %6591 = vmatpush.bf16.msra.mxu1 %v9625_v24 }
 0x477   :  { %6604 = vmatpush.bf16.msra.mxu2 %v8829_v30  ;;  %6617 = vmatpush.bf16.msra.mxu3 %v9629_v60  ;;  %v9833_v30 = vor.u32 %v10884_v19, %v9832_v10  ;;  %v8932_v60 = vld [vmem:[%s16331_s10 + $0x2b8] sm:$0xf]  ;;  %v6336_v4 = vadd.f32 %v16065_v52, %v6323_v22  ;;  %v9632_v52 = vld [vmem:[%s16331_s10 + $0x830] sm:$0xf] }
 0x478   :  { %v8933_v35 = vor.u32 %v10659_v59, %v8932_v60  ;;  %v9633_v42 = vor.u32 %v10834_v12, %v9632_v52 }
 0x479   :  { %v6663_v28 = vmax.f32 %v6336_v4, 0.0  ;;  %v3953_v4 = vperm.slane %v16288_v34, 2 }
 0x47a   :  { %6579 = vmatpush.bf16.msra.mxu0 %v8725_v2  ;;  %6592 = vmatpush.bf16.msra.mxu1 %v9525_v0  ;;  %v9733_v2 = vor.u32 %v10859_v20, %v9732_v46  ;;  %v8832_v0 = vld [vmem:[%s16331_s10 + $0x1f0] sm:$0xf] }
 0x47b   :  { %6605 = vmatpush.bf16.msra.mxu2 %v8729_v14  ;;  %6618 = vmatpush.bf16.msra.mxu3 %v9529_v32  ;;  %v6682_v16 = vpack.c.bf16 %v6664_v6, %v6663_v28  ;;  %v8833_v9 = vor.u32 %v10634_v27, %v8832_v0 }
 0x47e   :  { %6580 = vmatpush.bf16.msra.mxu0 %v8625_v15  ;;  %6593 = vmatpush.bf16.msra.mxu1 %v9425_v13  ;;  %v6374_v21 = vpop.f32.mrf.mxu0  ;;  %v6387_v24 = vpop.f32.mrf.mxu1 }
 0x47f   :  { %6606 = vmatpush.bf16.msra.mxu2 %v8629_v8  ;;  %6619 = vmatpush.bf16.msra.mxu3 %v9429_v18  ;;  %v6375_v31 = vadd.f32 %v6374_v21, %v3949_v23  ;;  %v6712_v8 = vrot.slane %v6682_v16, 4  ;;  %v6713_v18 = vrot.slane %v6682_v16, 7 }
 0x481   :  { %6581 = vmatmul.bf16.vlgmr.msra.gmra.mxu0 %v14136_v17  ;;  %6594 = vmatmul.bf16.vlgmr.msra.gmra.mxu1 %v14138_v53  ;;  %v6388_v32 = vadd.f32 %v6387_v24, %v6375_v31  ;;  %v6754_v29 = vsel %vm6733_vm6, %v6712_v8, %v6713_v18 }
 0x482   :  { %6625 = vmatpush.bf16.msrb.mxu0 %v9333_v37  ;;  %6638 = vmatpush.bf16.msrb.mxu1 %v10133_v54  ;;  %v8733_v37 = vor.u32 %v10609_v44, %v8732_v48  ;;  %v9533_v54 = vor.u32 %v10809_v50, %v9532_v45 }
 0x483   :  { %6607 = vmatmul.bf16.vlgmr.msra.gmra.mxu2 %v14136_v17  ;;  %6620 = vmatmul.bf16.vlgmr.msra.gmra.mxu3 %v14138_v53  ;;  %v6665_v15 = vmax.f32 %v6388_v32, 0.0 }
 0x486   :  { %6626 = vmatpush.bf16.msrb.mxu0 %v9233_v57  ;;  %6639 = vmatpush.bf16.msrb.mxu1 %v10033_v51  ;;  %v6376_v1 = vpop.f32.mrf.mxu0  ;;  %v6389_v61 = vpop.f32.mrf.mxu1 }
 0x487   :  { %v6400_v38 = vpop.f32.mrf.mxu2  ;;  %v6413_v14 = vpop.f32.mrf.mxu3 }
 0x488   :  { %v6401_v39 = vadd.f32 %v6400_v38, %v3950_v33 }
 0x48a   :  { %6627 = vmatpush.bf16.msrb.mxu0 %v9133_v36  ;;  %6640 = vmatpush.bf16.msrb.mxu1 %v9933_v40  ;;  %v6414_v43 = vadd.f32 %v6413_v14, %v6401_v39 }
 0x48c   :  { %v6666_v13 = vmax.f32 %v6414_v43, 0.0 }
 0x48e   :  { %6628 = vmatpush.bf16.msrb.mxu0 %v9033_v26  ;;  %6641 = vmatpush.bf16.msrb.mxu1 %v9833_v30  ;;  %v6683_v49 = vpack.c.bf16 %v6666_v13, %v6665_v15 }
 0x48f   :  { %v6402_v57 = vpop.f32.mrf.mxu2  ;;  %v6415_v51 = vpop.f32.mrf.mxu3 }
 0x490   :  { %v6714_v62 = vrot.slane %v6683_v49, 2  ;;  %v6715_v63 = vrot.slane %v6683_v49, 5  ;;  %v3955_v49 = vperm.slane %v16288_v34, 4 }
 0x492   :  { %6629 = vmatpush.bf16.msrb.mxu0 %v8933_v35  ;;  %6642 = vmatpush.bf16.msrb.mxu1 %v9733_v2  ;;  %v6757_v11 = vsel %vm6737_vm7, %v6714_v62, %v6715_v63  ;;  %v3954_v2 = vperm.slane %v16288_v34, 3 }
 0x493   :  { %v6758_v36 = vsel %vm6741_vm8, %v6754_v29, %v6757_v11 }
 0x494   :  { %v6759_v40 = vsel %vm6743_vm9, %v15985_v41, %v6758_v36 }
 0x495   :  { %6783 = vst [vmem:[%s16333_s12 + $0x8] sm:$0xff] %v6759_v40 }
 0x496   :  { %6630 = vmatpush.bf16.msrb.mxu0 %v8833_v9  ;;  %6643 = vmatpush.bf16.msrb.mxu1 %v9633_v42 }
 0x49a   :  { %6631 = vmatpush.bf16.msrb.mxu0 %v8733_v37  ;;  %6644 = vmatpush.bf16.msrb.mxu1 %v9533_v54 }
 0x49e   :  { %6632 = vmatpush.bf16.msrb.mxu0 %v8633_v58  ;;  %6645 = vmatpush.bf16.msrb.mxu1 %v9433_v7  ;;  %v6426_v10 = vpop.f32.mrf.mxu0  ;;  %v6439_v19 = vpop.f32.mrf.mxu1  ;;  %v3958_v7 = vperm.slane %v16288_v34, 7 }
 0x49f   :  { %v6427_v41 = vadd.f32 %v6426_v10, %v3951_v3 }
 0x4a1   :  { %6633 = vmatmul.bf16.vlgmr.msrb.gmra.mxu0 %v14136_v17  ;;  %6646 = vmatmul.bf16.vlgmr.msrb.gmra.mxu1 %v14138_v53  ;;  %v6440_v17 = vadd.f32 %v6439_v19, %v6427_v41  ;;  %v3952_v53 = vperm.slane %v16288_v34, 1 }
 0x4a3   :  { %v6667_v30 = vmax.f32 %v6440_v17, 0.0 }
 0x4a6   :  { %v6428_v24 = vpop.f32.mrf.mxu0  ;;  %v6441_v25 = vpop.f32.mrf.mxu1 }
 0x4a7   :  { %v6452_v22 = vpop.f32.mrf.mxu2  ;;  %v6465_v23 = vpop.f32.mrf.mxu3 }
 0x4a8   :  { %v6453_v21 = vadd.f32 %v6452_v22, %v3952_v53 }
 0x4aa   :  { %v6466_v26 = vadd.f32 %v6465_v23, %v6453_v21 }
 0x4ac   :  { %v6668_v60 = vmax.f32 %v6466_v26, 0.0 }
 0x4ae   :  { %v6684_v59 = vpack.c.bf16 %v6668_v60, %v6667_v30 }
 0x4af   :  { %v6454_v46 = vpop.f32.mrf.mxu2  ;;  %v6467_v20 = vpop.f32.mrf.mxu3 }
 0x4b0   :  { %v6716_v39 = vrot.slane %v6684_v59, 3 }
 0x4b2   :  { %v6762_v48 = vsel %vm6724_vm4, %v6684_v59, %v6716_v39 }
 0x4be   :  { %v6478_v31 = vpop.f32.mrf.mxu0  ;;  %v6491_v33 = vpop.f32.mrf.mxu1 }
 0x4bf   :  { %v6479_v6 = vadd.f32 %v6478_v31, %v3953_v4  ;;  %v10964_v31 = vld [vmem:[%s16332_s11 + $0x18] ss:$0 sm:$0xff] }
 0x4c1   :  { %v6492_v35 = vadd.f32 %v6491_v33, %v6479_v6 }
 0x4c3   :  { %v6669_v14 = vmax.f32 %v6492_v35, 0.0 }
 0x4c6   :  { %v6480_v12 = vpop.f32.mrf.mxu0  ;;  %v6493_v28 = vpop.f32.mrf.mxu1 }
 0x4c7   :  { %v6504_v0 = vpop.f32.mrf.mxu2  ;;  %v6517_v27 = vpop.f32.mrf.mxu3 }
 0x4c8   :  { %v6505_v52 = vadd.f32 %v6504_v0, %v3954_v2 }
 0x4ca   :  { %v6518_v38 = vadd.f32 %v6517_v27, %v6505_v52 }
 0x4cc   :  { %v6670_v32 = vmax.f32 %v6518_v38, 0.0 }
 0x4ce   :  { %v6685_v1 = vpack.c.bf16 %v6670_v32, %v6669_v14 }
 0x4cf   :  { %v6506_v61 = vpop.f32.mrf.mxu2  ;;  %v6519_v16 = vpop.f32.mrf.mxu3 }
 0x4d0   :  { %v6717_v9 = vrot.slane %v6685_v1, 6  ;;  %v6718_v42 = vrot.slane %v6685_v1, 1 }
 0x4d2   :  { %v6765_v43 = vsel %vm6728_vm5, %v6717_v9, %v6718_v42 }
 0x4d3   :  { %v6766_v44 = vsel %vm3474_vm1, %v6762_v48, %v6765_v43 }
 0x4de   :  { %v6530_v45 = vpop.f32.mrf.mxu0  ;;  %v6543_v50 = vpop.f32.mrf.mxu1 }
 0x4df   :  { %v6531_v55 = vadd.f32 %v6530_v45, %v3955_v49 }
 0x4e1   :  { %v6544_v63 = vadd.f32 %v6543_v50, %v6531_v55 }
 0x4e3   :  { %v6671_v40 = vmax.f32 %v6544_v63, 0.0 }
 0x4e6   :  { %v6532_v8 = vpop.f32.mrf.mxu0  ;;  %v6545_v18 = vpop.f32.mrf.mxu1 }
 0x4e7   :  { %v6556_v15 = vpop.f32.mrf.mxu2  ;;  %v6569_v13 = vpop.f32.mrf.mxu3 }
 0x4e8   :  { %v6557_v5 = vadd.f32 %v6556_v15, %v3956_v47 }
 0x4ea   :  { %v6570_v62 = vadd.f32 %v6569_v13, %v6557_v5 }
 0x4ec   :  { %v6672_v29 = vmax.f32 %v6570_v62, 0.0 }
 0x4ee   :  { %v6686_v17 = vpack.c.bf16 %v6672_v29, %v6671_v40 }
 0x4ef   :  { %v6558_v37 = vpop.f32.mrf.mxu2  ;;  %v6571_v54 = vpop.f32.mrf.mxu3 }
 0x4f0   :  { %v6719_v21 = vrot.slane %v6686_v17, 4  ;;  %v6720_v24 = vrot.slane %v6686_v17, 7 }
 0x4f2   :  { %v6769_v34 = vsel %vm6733_vm6, %v6719_v21, %v6720_v24 }
 0x4fe   :  { %v6582_v57 = vpop.f32.mrf.mxu0  ;;  %v6595_v51 = vpop.f32.mrf.mxu1 }
 0x4ff   :  { %v6583_v58 = vadd.f32 %v6582_v57, %v3957_v56 }
 0x501   :  { %v6596_v3 = vadd.f32 %v6595_v51, %v6583_v58 }
 0x503   :  { %v6673_v22 = vmax.f32 %v6596_v3, 0.0 }
 0x506   :  { %v6608_v11 = vpop.f32.mrf.mxu2  ;;  %v6621_v36 = vpop.f32.mrf.mxu3 }
 0x507   :  { %v6609_v10 = vadd.f32 %v6608_v11, %v3958_v7  ;;  %v6584_v19 = vpop.f32.mrf.mxu0  ;;  %v6597_v41 = vpop.f32.mrf.mxu1 }
 0x509   :  { %v6622_v53 = vadd.f32 %v6621_v36, %v6609_v10 }
 0x50b   :  { %v6674_v23 = vmax.f32 %v6622_v53, 0.0 }
 0x50d   :  { %v6687_v25 = vpack.c.bf16 %v6674_v23, %v6673_v22 }
 0x50e   :  { %v6610_v26 = vpop.f32.mrf.mxu2  ;;  %v6623_v30 = vpop.f32.mrf.mxu3 }
 0x50f   :  { %v6721_v60 = vrot.slane %v6687_v25, 2  ;;  %v6722_v59 = vrot.slane %v6687_v25, 5 }
 0x511   :  { %v6772_v46 = vsel %vm6737_vm7, %v6721_v60, %v6722_v59 }
 0x512   :  { %v6773_v20 = vsel %vm6741_vm8, %v6769_v34, %v6772_v46 }
 0x513   :  { %v6774_v4 = vsel %vm6743_vm9, %v6766_v44, %v6773_v20 }
 0x514   :  { %6784 = vst [vmem:[%s16333_s12 + $0x10] sm:$0xff] %v6774_v4 }
 0x51e   :  { %v6634_v33 = vpop.f32.mrf.mxu0  ;;  %v6647_v6 = vpop.f32.mrf.mxu1 }
 0x51f   :  { %v6635_v35 = vadd.f32 %v10964_v31, %v6634_v33 }
 0x521   :  { %v6648_v2 = vadd.f32 %v6647_v6, %v6635_v35 }
 0x523   :  { %v6675_v0 = vmax.f32 %v6648_v2, 0.0 }
 0x525   :  { %v6688_v27 = vpack.c.bf16 %v6675_v0, %v6675_v0 }
 0x526   :  { %v6636_v52 = vpop.f32.mrf.mxu0  ;;  %v6649_v12 = vpop.f32.mrf.mxu1 }
 0x527   :  { %v6723_v28 = vrot.slane %v6688_v27, 3 }
 0x529   :  { %v6777_v38 = vsel %vm6724_vm4, %v6688_v27, %v6723_v28 }
 0x52a   :  { %6786 = vst.msk [vmem:[%s16333_s12 + $0x18] sm:$0x1] %vm6785_vm10, %v6777_v38 }
 0x52b   :  { %11017 = dma.done.wait [#allocation3], 32  }
 0x52c   :  { %11018 = vsyncadd [#allocation3], 4294967264 }
 0x52d   :  { %11019 = dma.done.wait [#allocation5], 32  }
 0x52e   :  { %11020 = vsyncadd [#allocation5], 4294967264 }
 0x52f   :  { %6824 = vsyncpa [#allocation3], 1 }
 0x530   :  { %6825 = vsyncpa [#allocation5], 1 }

</bundles_post_ra>
